<compile_context>
chip_gen: v7x
topology: tpu7x:2x2x1
jax: 0.10.0
libtpu: 0.0.40
codegen_flags: <defaults>
</compile_context>

<pallas_src>
import functools

import numpy as np
import jax
import jax.numpy as jnp
from jax.experimental import pallas as pl
from jax.experimental.pallas import tpu as pltpu

# ------------------------- small synthetic config ---------------------------
IMG = 64                       # input spatial size
PATCH = 8                      # patch-embed kernel/stride
IN_CH = 3
EMBED = 128                    # transformer width (lane-dense)
HEADS = 2
HEAD_DIM = EMBED // HEADS      # 64
DEPTH = 2                      # number of transformer blocks
MLP_HIDDEN = 4 * EMBED         # 512
OUT_CH = 128                   # neck output channels per encoder call (lane-dense)
GRID_HW = IMG // PATCH         # 8
N_TOK = GRID_HW * GRID_HW      # 64
PATCH_DIM = IN_CH * PATCH * PATCH  # 192
EPS = 1e-6


# ----------------------------- fused Pallas kernel ---------------------------
def _ln(v, w, b):
    """LayerNorm over the trailing (channel) dim; f32 math."""
    mu = jnp.mean(v, axis=-1, keepdims=True)
    var = jnp.mean(jnp.square(v - mu), axis=-1, keepdims=True)
    return (v - mu) * jax.lax.rsqrt(var + EPS) * w + b


def _encoder_kernel(
    patches_ref,
    patch_w_ref, patch_b_ref, pos_ref,
    ln1_w_ref, ln1_b_ref, qkv_w_ref, qkv_b_ref,
    proj_w_ref, proj_b_ref, ln2_w_ref, ln2_b_ref,
    fc1_w_ref, fc1_b_ref, fc2_w_ref, fc2_b_ref,
    neck_w1_ref, neck_ln1_w_ref, neck_ln1_b_ref,
    shift_ref, neck_w2_ref, neck_ln2_w_ref, neck_ln2_b_ref,
    o_ref,
):
    """Whole image encoder for one batch element; all activations in VMEM."""
    f32 = jnp.float32
    bf16 = jnp.bfloat16

    # ---- patch embed (+ absolute position embedding) ----
    x = jnp.dot(patches_ref[0].astype(bf16), patch_w_ref[...],
                preferred_element_type=f32)
    x = x + patch_b_ref[...] + pos_ref[...]                # (N_TOK, EMBED) f32

    # ---- transformer blocks (pre-LN), statically unrolled ----
    scale = HEAD_DIM ** -0.5
    for d in range(DEPTH):
        # attention
        h = _ln(x, ln1_w_ref[d], ln1_b_ref[d])
        qkv = jnp.dot(h.astype(bf16), qkv_w_ref[d],
                      preferred_element_type=f32) + qkv_b_ref[d]   # (N, 3E)
        pw = proj_w_ref[d]                                         # (E, E) bf16
        attn = jnp.zeros((N_TOK, EMBED), f32)
        for hh in range(HEADS):
            lo = hh * HEAD_DIM
            qh = qkv[:, lo:lo + HEAD_DIM].astype(bf16)
            kh = qkv[:, EMBED + lo:EMBED + lo + HEAD_DIM].astype(bf16)
            vh = qkv[:, 2 * EMBED + lo:2 * EMBED + lo + HEAD_DIM].astype(bf16)
            # q @ k^T without an explicit transpose (contract trailing dims)
            s = jax.lax.dot_general(qh, kh, (((1,), (1,)), ((), ())),
                                    preferred_element_type=f32) * scale
            s = s - jnp.max(s, axis=-1, keepdims=True)
            p = jnp.exp(s)
            p = p * pl.reciprocal(jnp.sum(p, axis=-1, keepdims=True), approx=True)
            oh = jnp.dot(p.astype(bf16), vh, preferred_element_type=f32)
            # fold head output through its slice of the projection (no concat)
            attn = attn + jnp.dot(oh.astype(bf16), pw[lo:lo + HEAD_DIM, :],
                                  preferred_element_type=f32)
        x = x + attn + proj_b_ref[d]

        # MLP
        h2 = _ln(x, ln2_w_ref[d], ln2_b_ref[d])
        h2 = jnp.dot(h2.astype(bf16), fc1_w_ref[d],
                     preferred_element_type=f32) + fc1_b_ref[d]
        # TODO(synk): SAM/PyTorch nn.GELU uses exact erf; tanh approx keeps it on the EUP.
        h2 = jax.nn.gelu(h2, approximate=True)
        h2 = jnp.dot(h2.astype(bf16), fc2_w_ref[d],
                     preferred_element_type=f32) + fc2_b_ref[d]
        x = x + h2

    # ---- neck: 1x1 conv -> LayerNorm2d -> 3x3 conv (pad=1) -> LayerNorm2d ----
    h = jnp.dot(x.astype(bf16), neck_w1_ref[...], preferred_element_type=f32)
    h = _ln(h, neck_ln1_w_ref[...], neck_ln1_b_ref[...])
    # 3x3 conv as 9 tap matmuls; shift_ref[k] is a 0/1 token-permutation matrix
    # that encodes the spatial shift and the zero padding simultaneously.
    acc = jnp.zeros((N_TOK, OUT_CH), f32)
    for k in range(9):
        tap = jnp.dot(h.astype(bf16), neck_w2_ref[k], preferred_element_type=f32)
        acc = acc + jnp.dot(shift_ref[k], tap.astype(bf16),
                            preferred_element_type=f32)
    h = _ln(acc, neck_ln2_w_ref[...], neck_ln2_b_ref[...])

    o_ref[0] = h                                            # (N_TOK, OUT_CH)


# ----------------------------- pallas_call wrapper ---------------------------
_PARAM_ORDER = (
    "patch_w", "patch_b", "pos",
    "ln1_w", "ln1_b", "qkv_w", "qkv_b", "proj_w", "proj_b",
    "ln2_w", "ln2_b", "fc1_w", "fc1_b", "fc2_w", "fc2_b",
    "neck_w1", "neck_ln1_w", "neck_ln1_b",
    "shift", "neck_w2", "neck_ln2_w", "neck_ln2_b",
)


def _bcast_spec(shape):
    nd = len(shape)
    return pl.BlockSpec(shape, lambda b, _nd=nd: (0,) * _nd)


def fused_encoder(patches, params):
    """patches: (Btot, N_TOK, PATCH_DIM) f32 -> (Btot, N_TOK, OUT_CH) f32."""
    bt = patches.shape[0]
    plist = [params[n] for n in _PARAM_ORDER]
    in_specs = [pl.BlockSpec((1, N_TOK, PATCH_DIM), lambda b: (b, 0, 0))]
    in_specs += [_bcast_spec(a.shape) for a in plist]
    return pl.pallas_call(
        _encoder_kernel,
        out_shape=jax.ShapeDtypeStruct((bt, N_TOK, OUT_CH), jnp.float32),
        grid=(bt,),
        in_specs=in_specs,
        out_specs=pl.BlockSpec((1, N_TOK, OUT_CH), lambda b: (b, 0, 0)),
        compiler_params=pltpu.CompilerParams(dimension_semantics=("parallel",)),
    )(patches, *plist)


# ------------------------------ JAX-side glue --------------------------------
def _extract_patches(x_nchw):
    # TODO(synk): patch unfold stays in the XLA wrapper (axis-mixing transpose is
    # not a rectangular BlockSpec); it is one copy of the tiny f32 input.
    b, c, h, w = x_nchw.shape
    hp, wp = h // PATCH, w // PATCH
    p = x_nchw.reshape(b, c, hp, PATCH, wp, PATCH)
    p = p.transpose(0, 2, 4, 1, 3, 5)                # (B, Hp, Wp, C, P, P)
    return p.reshape(b, hp * wp, c * PATCH * PATCH)


def encoder_forward(pre, post, params):
    b = pre.shape[0]
    x = jnp.concatenate([pre, post], axis=0)         # one encoder pass, B=2b
    feats = fused_encoder(_extract_patches(x), params)   # (2b, N_TOK, OUT_CH)
    feats = feats.reshape(2, b, GRID_HW, GRID_HW, OUT_CH)
    feats = feats.transpose(1, 0, 4, 2, 3)           # (b, 2, C, Hp, Wp)
    return feats.reshape(b, 2 * OUT_CH, GRID_HW, GRID_HW)   # == cat on channels


# ----------------------------- parameter init --------------------------------
def _make_shift_mats():
    """9 (N_TOK, N_TOK) 0/1 matrices implementing 3x3 shifts with zero padding."""
    mats = np.zeros((9, N_TOK, N_TOK), np.float32)
    k = 0
    for dy in (-1, 0, 1):
        for dx in (-1, 0, 1):
            for y in range(GRID_HW):
                for x in range(GRID_HW):
                    yy, xx = y + dy, x + dx
                    if 0 <= yy < GRID_HW and 0 <= xx < GRID_HW:
                        mats[k, y * GRID_HW + x, yy * GRID_HW + xx] = 1.0
            k += 1
    return jnp.asarray(mats, dtype=jnp.bfloat16)


def init_params(key):
    keys = iter(jax.random.split(key, 32))

    def nrm(shape, dtype=jnp.bfloat16, scale=0.02):
        return (scale * jax.random.normal(next(keys), shape, jnp.float32)).astype(dtype)

    def ones(shape):
        return jnp.ones(shape, jnp.float32)

    def zeros(shape):
        return jnp.zeros(shape, jnp.float32)

    return {
        "patch_w": nrm((PATCH_DIM, EMBED)),
        "patch_b": nrm((1, EMBED), dtype=jnp.float32),
        "pos": nrm((N_TOK, EMBED), dtype=jnp.float32),
        # transformer block params stacked along a leading DEPTH axis
        "ln1_w": ones((DEPTH, 1, EMBED)), "ln1_b": zeros((DEPTH, 1, EMBED)),
        "qkv_w": nrm((DEPTH, EMBED, 3 * EMBED)),
        "qkv_b": nrm((DEPTH, 1, 3 * EMBED), dtype=jnp.float32),
        "proj_w": nrm((DEPTH, EMBED, EMBED)),
        "proj_b": nrm((DEPTH, 1, EMBED), dtype=jnp.float32),
        "ln2_w": ones((DEPTH, 1, EMBED)), "ln2_b": zeros((DEPTH, 1, EMBED)),
        "fc1_w": nrm((DEPTH, EMBED, MLP_HIDDEN)),
        "fc1_b": nrm((DEPTH, 1, MLP_HIDDEN), dtype=jnp.float32),
        "fc2_w": nrm((DEPTH, MLP_HIDDEN, EMBED)),
        "fc2_b": nrm((DEPTH, 1, EMBED), dtype=jnp.float32),
        # neck (SAM neck convs have no bias)
        "neck_w1": nrm((EMBED, OUT_CH)),
        "neck_ln1_w": ones((1, OUT_CH)), "neck_ln1_b": zeros((1, OUT_CH)),
        "shift": _make_shift_mats(),
        "neck_w2": nrm((9, OUT_CH, OUT_CH)),
        "neck_ln2_w": ones((1, OUT_CH)), "neck_ln2_b": zeros((1, OUT_CH)),
    }


# ---------------------------------- main --------------------------------------
if __name__ == "__main__":
    key = jax.random.PRNGKey(0)
    k_pre, k_post, k_params = jax.random.split(key, 3)

    pre = jax.random.normal(k_pre, (2, IN_CH, IMG, IMG), dtype=jnp.float32)
    post = jax.random.normal(k_post, (2, IN_CH, IMG, IMG), dtype=jnp.float32)
    params = init_params(k_params)

    fwd = jax.jit(functools.partial(encoder_forward, params=params))
    out = jax.block_until_ready(fwd(pre, post))

    expected = (2, 2 * OUT_CH, GRID_HW, GRID_HW)
    assert out.shape == expected, (out.shape, expected)
    assert bool(jnp.all(jnp.isfinite(out)))
    print("KERNEL_OK")
</pallas_src>

<mosaic_0001>
module attributes {stable_mosaic.version = 11 : i64} {
  func.func @_encoder_kernel(%arg0: i32, %arg1: memref<1x64x192xf32, #tpu.memory_space<vmem>>, %arg2: memref<192x128xbf16, #tpu.memory_space<vmem>>, %arg3: memref<1x128xf32, #tpu.memory_space<vmem>>, %arg4: memref<64x128xf32, #tpu.memory_space<vmem>>, %arg5: memref<2x1x128xf32, #tpu.memory_space<vmem>>, %arg6: memref<2x1x128xf32, #tpu.memory_space<vmem>>, %arg7: memref<2x128x384xbf16, #tpu.memory_space<vmem>>, %arg8: memref<2x1x384xf32, #tpu.memory_space<vmem>>, %arg9: memref<2x128x128xbf16, #tpu.memory_space<vmem>>, %arg10: memref<2x1x128xf32, #tpu.memory_space<vmem>>, %arg11: memref<2x1x128xf32, #tpu.memory_space<vmem>>, %arg12: memref<2x1x128xf32, #tpu.memory_space<vmem>>, %arg13: memref<2x128x512xbf16, #tpu.memory_space<vmem>>, %arg14: memref<2x1x512xf32, #tpu.memory_space<vmem>>, %arg15: memref<2x512x128xbf16, #tpu.memory_space<vmem>>, %arg16: memref<2x1x128xf32, #tpu.memory_space<vmem>>, %arg17: memref<128x128xbf16, #tpu.memory_space<vmem>>, %arg18: memref<1x128xf32, #tpu.memory_space<vmem>>, %arg19: memref<1x128xf32, #tpu.memory_space<vmem>>, %arg20: memref<9x64x64xbf16, #tpu.memory_space<vmem>>, %arg21: memref<9x128x128xbf16, #tpu.memory_space<vmem>>, %arg22: memref<1x128xf32, #tpu.memory_space<vmem>>, %arg23: memref<1x128xf32, #tpu.memory_space<vmem>>, %arg24: memref<1x64x128xf32, #tpu.memory_space<vmem>>) attributes {dimension_semantics = [#tpu.dimension_semantics<parallel>], iteration_bounds = array<i64: 4>, scalar_prefetch = 0 : i64, scratch_operands = 0 : i64, tpu.core_type = #tpu.core_type<tc>, window_params = [{transform_indices = @transform_0, window_bounds = array<i64: 1, 64, 192>}, {pipeline_mode = #tpu.pipeline_mode<synchronous>, transform_indices = @transform_1, window_bounds = array<i64: 192, 128>}, {pipeline_mode = #tpu.pipeline_mode<synchronous>, transform_indices = @transform_2, window_bounds = array<i64: 1, 128>}, {pipeline_mode = #tpu.pipeline_mode<synchronous>, transform_indices = @transform_3, window_bounds = array<i64: 64, 128>}, {pipeline_mode = #tpu.pipeline_mode<synchronous>, transform_indices = @transform_4, window_bounds = array<i64: 2, 1, 128>}, {pipeline_mode = #tpu.pipeline_mode<synchronous>, transform_indices = @transform_5, window_bounds = array<i64: 2, 1, 128>}, {pipeline_mode = #tpu.pipeline_mode<synchronous>, transform_indices = @transform_6, window_bounds = array<i64: 2, 128, 384>}, {pipeline_mode = #tpu.pipeline_mode<synchronous>, transform_indices = @transform_7, window_bounds = array<i64: 2, 1, 384>}, {pipeline_mode = #tpu.pipeline_mode<synchronous>, transform_indices = @transform_8, window_bounds = array<i64: 2, 128, 128>}, {pipeline_mode = #tpu.pipeline_mode<synchronous>, transform_indices = @transform_9, window_bounds = array<i64: 2, 1, 128>}, {pipeline_mode = #tpu.pipeline_mode<synchronous>, transform_indices = @transform_10, window_bounds = array<i64: 2, 1, 128>}, {pipeline_mode = #tpu.pipeline_mode<synchronous>, transform_indices = @transform_11, window_bounds = array<i64: 2, 1, 128>}, {pipeline_mode = #tpu.pipeline_mode<synchronous>, transform_indices = @transform_12, window_bounds = array<i64: 2, 128, 512>}, {pipeline_mode = #tpu.pipeline_mode<synchronous>, transform_indices = @transform_13, window_bounds = array<i64: 2, 1, 512>}, {pipeline_mode = #tpu.pipeline_mode<synchronous>, transform_indices = @transform_14, window_bounds = array<i64: 2, 512, 128>}, {pipeline_mode = #tpu.pipeline_mode<synchronous>, transform_indices = @transform_15, window_bounds = array<i64: 2, 1, 128>}, {pipeline_mode = #tpu.pipeline_mode<synchronous>, transform_indices = @transform_16, window_bounds = array<i64: 128, 128>}, {pipeline_mode = #tpu.pipeline_mode<synchronous>, transform_indices = @transform_17, window_bounds = array<i64: 1, 128>}, {pipeline_mode = #tpu.pipeline_mode<synchronous>, transform_indices = @transform_18, window_bounds = array<i64: 1, 128>}, {pipeline_mode = #tpu.pipeline_mode<synchronous>, transform_indices = @transform_19, window_bounds = array<i64: 9, 64, 64>}, {pipeline_mode = #tpu.pipeline_mode<synchronous>, transform_indices = @transform_20, window_bounds = array<i64: 9, 128, 128>}, {pipeline_mode = #tpu.pipeline_mode<synchronous>, transform_indices = @transform_21, window_bounds = array<i64: 1, 128>}, {pipeline_mode = #tpu.pipeline_mode<synchronous>, transform_indices = @transform_22, window_bounds = array<i64: 1, 128>}, {transform_indices = @transform_23, window_bounds = array<i64: 1, 64, 128>}]} {
    %c0 = arith.constant 0 : index
    %c0_0 = arith.constant 0 : index
    %c0_1 = arith.constant 0 : index
    %0 = vector.load %arg1[%c0, %c0_0, %c0_1] : memref<1x64x192xf32, #tpu.memory_space<vmem>>, vector<1x64x192xf32>
    %1 = vector.shape_cast %0 : vector<1x64x192xf32> to vector<64x192xf32>
    %2 = arith.truncf %1 : vector<64x192xf32> to vector<64x192xbf16>
    %c0_2 = arith.constant 0 : index
    %c0_3 = arith.constant 0 : index
    %3 = vector.load %arg2[%c0_2, %c0_3] : memref<192x128xbf16, #tpu.memory_space<vmem>>, vector<192x128xbf16>
    %cst = arith.constant dense<0.000000e+00> : vector<64x128xf32>
    %4 = tpu.matmul %2, %3, %cst {dimension_numbers = #tpu.dot_dimension_numbers<[1], [0], [0], [1], [0, 0, 1, 1], [], []>} : vector<64x192xbf16>, vector<192x128xbf16>, vector<64x128xf32> -> vector<64x128xf32>
    %c0_4 = arith.constant 0 : index
    %c0_5 = arith.constant 0 : index
    %5 = vector.load %arg3[%c0_4, %c0_5] : memref<1x128xf32, #tpu.memory_space<vmem>>, vector<1x128xf32>
    %6 = vector.broadcast %5 : vector<1x128xf32> to vector<64x128xf32>
    %7 = arith.addf %4, %6 : vector<64x128xf32>
    %c0_6 = arith.constant 0 : index
    %c0_7 = arith.constant 0 : index
    %8 = vector.load %arg4[%c0_6, %c0_7] : memref<64x128xf32, #tpu.memory_space<vmem>>, vector<64x128xf32>
    %9 = arith.addf %7, %8 : vector<64x128xf32>
    %c0_8 = arith.constant 0 : index
    %c0_9 = arith.constant 0 : index
    %c0_10 = arith.constant 0 : index
    %10 = vector.load %arg5[%c0_8, %c0_9, %c0_10] : memref<2x1x128xf32, #tpu.memory_space<vmem>>, vector<1x1x128xf32>
    %11 = vector.shape_cast %10 : vector<1x1x128xf32> to vector<1x128xf32>
    %c0_11 = arith.constant 0 : index
    %c0_12 = arith.constant 0 : index
    %c0_13 = arith.constant 0 : index
    %12 = vector.load %arg6[%c0_11, %c0_12, %c0_13] : memref<2x1x128xf32, #tpu.memory_space<vmem>>, vector<1x1x128xf32>
    %13 = vector.shape_cast %12 : vector<1x1x128xf32> to vector<1x128xf32>
    %cst_14 = arith.constant dense<0.000000e+00> : vector<64xf32>
    %14 = vector.multi_reduction <add>, %9, %cst_14 [1] : vector<64x128xf32> to vector<64xf32>
    %15 = vector.shape_cast %14 : vector<64xf32> to vector<64x1xf32>
    %cst_15 = arith.constant 1.280000e+02 : f32
    %16 = vector.broadcast %cst_15 : f32 to vector<64x1xf32>
    %17 = arith.divf %15, %16 : vector<64x1xf32>
    %18 = vector.broadcast %17 : vector<64x1xf32> to vector<64x128xf32>
    %19 = arith.subf %9, %18 : vector<64x128xf32>
    %20 = arith.mulf %19, %19 : vector<64x128xf32>
    %cst_16 = arith.constant dense<0.000000e+00> : vector<64xf32>
    %21 = vector.multi_reduction <add>, %20, %cst_16 [1] : vector<64x128xf32> to vector<64xf32>
    %22 = vector.shape_cast %21 : vector<64xf32> to vector<64x1xf32>
    %cst_17 = arith.constant 1.280000e+02 : f32
    %23 = vector.broadcast %cst_17 : f32 to vector<64x1xf32>
    %24 = arith.divf %22, %23 : vector<64x1xf32>
    %25 = vector.broadcast %17 : vector<64x1xf32> to vector<64x128xf32>
    %26 = arith.subf %9, %25 : vector<64x128xf32>
    %cst_18 = arith.constant 9.99999997E-7 : f32
    %27 = vector.broadcast %cst_18 : f32 to vector<64x1xf32>
    %28 = arith.addf %24, %27 : vector<64x1xf32>
    %29 = math.rsqrt %28 : vector<64x1xf32>
    %30 = vector.broadcast %29 : vector<64x1xf32> to vector<64x128xf32>
    %31 = arith.mulf %26, %30 : vector<64x128xf32>
    %32 = vector.broadcast %11 : vector<1x128xf32> to vector<64x128xf32>
    %33 = arith.mulf %31, %32 : vector<64x128xf32>
    %34 = vector.broadcast %13 : vector<1x128xf32> to vector<64x128xf32>
    %35 = arith.addf %33, %34 : vector<64x128xf32>
    %36 = arith.truncf %35 : vector<64x128xf32> to vector<64x128xbf16>
    %c0_19 = arith.constant 0 : index
    %c0_20 = arith.constant 0 : index
    %c0_21 = arith.constant 0 : index
    %37 = vector.load %arg7[%c0_19, %c0_20, %c0_21] : memref<2x128x384xbf16, #tpu.memory_space<vmem>>, vector<1x128x384xbf16>
    %38 = vector.shape_cast %37 : vector<1x128x384xbf16> to vector<128x384xbf16>
    %cst_22 = arith.constant dense<0.000000e+00> : vector<64x384xf32>
    %39 = tpu.matmul %36, %38, %cst_22 {dimension_numbers = #tpu.dot_dimension_numbers<[1], [0], [0], [1], [0, 0, 1, 1], [], []>} : vector<64x128xbf16>, vector<128x384xbf16>, vector<64x384xf32> -> vector<64x384xf32>
    %c0_23 = arith.constant 0 : index
    %c0_24 = arith.constant 0 : index
    %c0_25 = arith.constant 0 : index
    %40 = vector.load %arg8[%c0_23, %c0_24, %c0_25] : memref<2x1x384xf32, #tpu.memory_space<vmem>>, vector<1x1x384xf32>
    %41 = vector.shape_cast %40 : vector<1x1x384xf32> to vector<1x384xf32>
    %42 = vector.broadcast %41 : vector<1x384xf32> to vector<64x384xf32>
    %43 = arith.addf %39, %42 : vector<64x384xf32>
    %c0_26 = arith.constant 0 : index
    %c0_27 = arith.constant 0 : index
    %c0_28 = arith.constant 0 : index
    %44 = vector.load %arg9[%c0_26, %c0_27, %c0_28] : memref<2x128x128xbf16, #tpu.memory_space<vmem>>, vector<1x128x128xbf16>
    %45 = vector.shape_cast %44 : vector<1x128x128xbf16> to vector<128x128xbf16>
    %cst_29 = arith.constant 0.000000e+00 : f32
    %46 = vector.broadcast %cst_29 : f32 to vector<64x128xf32>
    %47 = vector.extract_strided_slice %43 {offsets = [0, 0], sizes = [64, 64], strides = [1, 1]} : vector<64x384xf32> to vector<64x64xf32>
    %48 = arith.truncf %47 : vector<64x64xf32> to vector<64x64xbf16>
    %49 = vector.extract_strided_slice %43 {offsets = [0, 128], sizes = [64, 64], strides = [1, 1]} : vector<64x384xf32> to vector<64x64xf32>
    %50 = arith.truncf %49 : vector<64x64xf32> to vector<64x64xbf16>
    %51 = vector.extract_strided_slice %43 {offsets = [0, 256], sizes = [64, 64], strides = [1, 1]} : vector<64x384xf32> to vector<64x64xf32>
    %52 = arith.truncf %51 : vector<64x64xf32> to vector<64x64xbf16>
    %cst_30 = arith.constant dense<0.000000e+00> : vector<64x64xf32>
    %53 = tpu.matmul %48, %50, %cst_30 {dimension_numbers = #tpu.dot_dimension_numbers<[1], [1], [0], [0], [0, 0, 1, 0], [], []>} : vector<64x64xbf16>, vector<64x64xbf16>, vector<64x64xf32> -> vector<64x64xf32>
    %cst_31 = arith.constant 1.250000e-01 : f32
    %54 = vector.broadcast %cst_31 : f32 to vector<64x64xf32>
    %55 = arith.mulf %53, %54 : vector<64x64xf32>
    %cst_32 = arith.constant dense<0xFF800000> : vector<64xf32>
    %56 = vector.multi_reduction <maximumf>, %55, %cst_32 [1] : vector<64x64xf32> to vector<64xf32>
    %57 = vector.shape_cast %56 : vector<64xf32> to vector<64x1xf32>
    %58 = vector.broadcast %57 : vector<64x1xf32> to vector<64x64xf32>
    %59 = arith.subf %55, %58 : vector<64x64xf32>
    %60 = math.exp %59 : vector<64x64xf32>
    %cst_33 = arith.constant dense<0.000000e+00> : vector<64xf32>
    %61 = vector.multi_reduction <add>, %60, %cst_33 [1] : vector<64x64xf32> to vector<64xf32>
    %62 = vector.shape_cast %61 : vector<64xf32> to vector<64x1xf32>
    %63 = tpu.reciprocal %62 {approx = true} : vector<64x1xf32> -> vector<64x1xf32>
    %64 = vector.broadcast %63 : vector<64x1xf32> to vector<64x64xf32>
    %65 = arith.mulf %60, %64 : vector<64x64xf32>
    %66 = arith.truncf %65 : vector<64x64xf32> to vector<64x64xbf16>
    %cst_34 = arith.constant dense<0.000000e+00> : vector<64x64xf32>
    %67 = tpu.matmul %66, %52, %cst_34 {dimension_numbers = #tpu.dot_dimension_numbers<[1], [0], [0], [1], [0, 0, 1, 1], [], []>} : vector<64x64xbf16>, vector<64x64xbf16>, vector<64x64xf32> -> vector<64x64xf32>
    %68 = arith.truncf %67 : vector<64x64xf32> to vector<64x64xbf16>
    %69 = vector.extract_strided_slice %45 {offsets = [0, 0], sizes = [64, 128], strides = [1, 1]} : vector<128x128xbf16> to vector<64x128xbf16>
    %cst_35 = arith.constant dense<0.000000e+00> : vector<64x128xf32>
    %70 = tpu.matmul %68, %69, %cst_35 {dimension_numbers = #tpu.dot_dimension_numbers<[1], [0], [0], [1], [0, 0, 1, 1], [], []>} : vector<64x64xbf16>, vector<64x128xbf16>, vector<64x128xf32> -> vector<64x128xf32>
    %71 = arith.addf %46, %70 : vector<64x128xf32>
    %72 = vector.extract_strided_slice %43 {offsets = [0, 64], sizes = [64, 64], strides = [1, 1]} : vector<64x384xf32> to vector<64x64xf32>
    %73 = arith.truncf %72 : vector<64x64xf32> to vector<64x64xbf16>
    %74 = vector.extract_strided_slice %43 {offsets = [0, 192], sizes = [64, 64], strides = [1, 1]} : vector<64x384xf32> to vector<64x64xf32>
    %75 = arith.truncf %74 : vector<64x64xf32> to vector<64x64xbf16>
    %76 = vector.extract_strided_slice %43 {offsets = [0, 320], sizes = [64, 64], strides = [1, 1]} : vector<64x384xf32> to vector<64x64xf32>
    %77 = arith.truncf %76 : vector<64x64xf32> to vector<64x64xbf16>
    %cst_36 = arith.constant dense<0.000000e+00> : vector<64x64xf32>
    %78 = tpu.matmul %73, %75, %cst_36 {dimension_numbers = #tpu.dot_dimension_numbers<[1], [1], [0], [0], [0, 0, 1, 0], [], []>} : vector<64x64xbf16>, vector<64x64xbf16>, vector<64x64xf32> -> vector<64x64xf32>
    %cst_37 = arith.constant 1.250000e-01 : f32
    %79 = vector.broadcast %cst_37 : f32 to vector<64x64xf32>
    %80 = arith.mulf %78, %79 : vector<64x64xf32>
    %cst_38 = arith.constant dense<0xFF800000> : vector<64xf32>
    %81 = vector.multi_reduction <maximumf>, %80, %cst_38 [1] : vector<64x64xf32> to vector<64xf32>
    %82 = vector.shape_cast %81 : vector<64xf32> to vector<64x1xf32>
    %83 = vector.broadcast %82 : vector<64x1xf32> to vector<64x64xf32>
    %84 = arith.subf %80, %83 : vector<64x64xf32>
    %85 = math.exp %84 : vector<64x64xf32>
    %cst_39 = arith.constant dense<0.000000e+00> : vector<64xf32>
    %86 = vector.multi_reduction <add>, %85, %cst_39 [1] : vector<64x64xf32> to vector<64xf32>
    %87 = vector.shape_cast %86 : vector<64xf32> to vector<64x1xf32>
    %88 = tpu.reciprocal %87 {approx = true} : vector<64x1xf32> -> vector<64x1xf32>
    %89 = vector.broadcast %88 : vector<64x1xf32> to vector<64x64xf32>
    %90 = arith.mulf %85, %89 : vector<64x64xf32>
    %91 = arith.truncf %90 : vector<64x64xf32> to vector<64x64xbf16>
    %cst_40 = arith.constant dense<0.000000e+00> : vector<64x64xf32>
    %92 = tpu.matmul %91, %77, %cst_40 {dimension_numbers = #tpu.dot_dimension_numbers<[1], [0], [0], [1], [0, 0, 1, 1], [], []>} : vector<64x64xbf16>, vector<64x64xbf16>, vector<64x64xf32> -> vector<64x64xf32>
    %93 = arith.truncf %92 : vector<64x64xf32> to vector<64x64xbf16>
    %94 = vector.extract_strided_slice %45 {offsets = [64, 0], sizes = [64, 128], strides = [1, 1]} : vector<128x128xbf16> to vector<64x128xbf16>
    %cst_41 = arith.constant dense<0.000000e+00> : vector<64x128xf32>
    %95 = tpu.matmul %93, %94, %cst_41 {dimension_numbers = #tpu.dot_dimension_numbers<[1], [0], [0], [1], [0, 0, 1, 1], [], []>} : vector<64x64xbf16>, vector<64x128xbf16>, vector<64x128xf32> -> vector<64x128xf32>
    %96 = arith.addf %71, %95 : vector<64x128xf32>
    %97 = arith.addf %9, %96 : vector<64x128xf32>
    %c0_42 = arith.constant 0 : index
    %c0_43 = arith.constant 0 : index
    %c0_44 = arith.constant 0 : index
    %98 = vector.load %arg10[%c0_42, %c0_43, %c0_44] : memref<2x1x128xf32, #tpu.memory_space<vmem>>, vector<1x1x128xf32>
    %99 = vector.shape_cast %98 : vector<1x1x128xf32> to vector<1x128xf32>
    %100 = vector.broadcast %99 : vector<1x128xf32> to vector<64x128xf32>
    %101 = arith.addf %97, %100 : vector<64x128xf32>
    %c0_45 = arith.constant 0 : index
    %c0_46 = arith.constant 0 : index
    %c0_47 = arith.constant 0 : index
    %102 = vector.load %arg11[%c0_45, %c0_46, %c0_47] : memref<2x1x128xf32, #tpu.memory_space<vmem>>, vector<1x1x128xf32>
    %103 = vector.shape_cast %102 : vector<1x1x128xf32> to vector<1x128xf32>
    %c0_48 = arith.constant 0 : index
    %c0_49 = arith.constant 0 : index
    %c0_50 = arith.constant 0 : index
    %104 = vector.load %arg12[%c0_48, %c0_49, %c0_50] : memref<2x1x128xf32, #tpu.memory_space<vmem>>, vector<1x1x128xf32>
    %105 = vector.shape_cast %104 : vector<1x1x128xf32> to vector<1x128xf32>
    %cst_51 = arith.constant dense<0.000000e+00> : vector<64xf32>
    %106 = vector.multi_reduction <add>, %101, %cst_51 [1] : vector<64x128xf32> to vector<64xf32>
    %107 = vector.shape_cast %106 : vector<64xf32> to vector<64x1xf32>
    %cst_52 = arith.constant 1.280000e+02 : f32
    %108 = vector.broadcast %cst_52 : f32 to vector<64x1xf32>
    %109 = arith.divf %107, %108 : vector<64x1xf32>
    %110 = vector.broadcast %109 : vector<64x1xf32> to vector<64x128xf32>
    %111 = arith.subf %101, %110 : vector<64x128xf32>
    %112 = arith.mulf %111, %111 : vector<64x128xf32>
    %cst_53 = arith.constant dense<0.000000e+00> : vector<64xf32>
    %113 = vector.multi_reduction <add>, %112, %cst_53 [1] : vector<64x128xf32> to vector<64xf32>
    %114 = vector.shape_cast %113 : vector<64xf32> to vector<64x1xf32>
    %cst_54 = arith.constant 1.280000e+02 : f32
    %115 = vector.broadcast %cst_54 : f32 to vector<64x1xf32>
    %116 = arith.divf %114, %115 : vector<64x1xf32>
    %117 = vector.broadcast %109 : vector<64x1xf32> to vector<64x128xf32>
    %118 = arith.subf %101, %117 : vector<64x128xf32>
    %cst_55 = arith.constant 9.99999997E-7 : f32
    %119 = vector.broadcast %cst_55 : f32 to vector<64x1xf32>
    %120 = arith.addf %116, %119 : vector<64x1xf32>
    %121 = math.rsqrt %120 : vector<64x1xf32>
    %122 = vector.broadcast %121 : vector<64x1xf32> to vector<64x128xf32>
    %123 = arith.mulf %118, %122 : vector<64x128xf32>
    %124 = vector.broadcast %103 : vector<1x128xf32> to vector<64x128xf32>
    %125 = arith.mulf %123, %124 : vector<64x128xf32>
    %126 = vector.broadcast %105 : vector<1x128xf32> to vector<64x128xf32>
    %127 = arith.addf %125, %126 : vector<64x128xf32>
    %128 = arith.truncf %127 : vector<64x128xf32> to vector<64x128xbf16>
    %c0_56 = arith.constant 0 : index
    %c0_57 = arith.constant 0 : index
    %c0_58 = arith.constant 0 : index
    %129 = vector.load %arg13[%c0_56, %c0_57, %c0_58] : memref<2x128x512xbf16, #tpu.memory_space<vmem>>, vector<1x128x512xbf16>
    %130 = vector.shape_cast %129 : vector<1x128x512xbf16> to vector<128x512xbf16>
    %cst_59 = arith.constant dense<0.000000e+00> : vector<64x512xf32>
    %131 = tpu.matmul %128, %130, %cst_59 {dimension_numbers = #tpu.dot_dimension_numbers<[1], [0], [0], [1], [0, 0, 1, 1], [], []>} : vector<64x128xbf16>, vector<128x512xbf16>, vector<64x512xf32> -> vector<64x512xf32>
    %c0_60 = arith.constant 0 : index
    %c0_61 = arith.constant 0 : index
    %c0_62 = arith.constant 0 : index
    %132 = vector.load %arg14[%c0_60, %c0_61, %c0_62] : memref<2x1x512xf32, #tpu.memory_space<vmem>>, vector<1x1x512xf32>
    %133 = vector.shape_cast %132 : vector<1x1x512xf32> to vector<1x512xf32>
    %134 = vector.broadcast %133 : vector<1x512xf32> to vector<64x512xf32>
    %135 = arith.addf %131, %134 : vector<64x512xf32>
    %136 = arith.mulf %135, %135 : vector<64x512xf32>
    %137 = arith.mulf %135, %136 : vector<64x512xf32>
    %cst_63 = arith.constant 4.471500e-02 : f32
    %138 = vector.broadcast %cst_63 : f32 to vector<64x512xf32>
    %139 = arith.mulf %138, %137 : vector<64x512xf32>
    %140 = arith.addf %135, %139 : vector<64x512xf32>
    %cst_64 = arith.constant 0.797884583 : f32
    %141 = vector.broadcast %cst_64 : f32 to vector<64x512xf32>
    %142 = arith.mulf %141, %140 : vector<64x512xf32>
    %143 = math.tanh %142 : vector<64x512xf32>
    %cst_65 = arith.constant 1.000000e+00 : f32
    %144 = vector.broadcast %cst_65 : f32 to vector<64x512xf32>
    %145 = arith.addf %144, %143 : vector<64x512xf32>
    %cst_66 = arith.constant 5.000000e-01 : f32
    %146 = vector.broadcast %cst_66 : f32 to vector<64x512xf32>
    %147 = arith.mulf %146, %145 : vector<64x512xf32>
    %148 = arith.mulf %135, %147 : vector<64x512xf32>
    %149 = arith.truncf %148 : vector<64x512xf32> to vector<64x512xbf16>
    %c0_67 = arith.constant 0 : index
    %c0_68 = arith.constant 0 : index
    %c0_69 = arith.constant 0 : index
    %150 = vector.load %arg15[%c0_67, %c0_68, %c0_69] : memref<2x512x128xbf16, #tpu.memory_space<vmem>>, vector<1x512x128xbf16>
    %151 = vector.shape_cast %150 : vector<1x512x128xbf16> to vector<512x128xbf16>
    %cst_70 = arith.constant dense<0.000000e+00> : vector<64x128xf32>
    %152 = tpu.matmul %149, %151, %cst_70 {dimension_numbers = #tpu.dot_dimension_numbers<[1], [0], [0], [1], [0, 0, 1, 1], [], []>} : vector<64x512xbf16>, vector<512x128xbf16>, vector<64x128xf32> -> vector<64x128xf32>
    %c0_71 = arith.constant 0 : index
    %c0_72 = arith.constant 0 : index
    %c0_73 = arith.constant 0 : index
    %153 = vector.load %arg16[%c0_71, %c0_72, %c0_73] : memref<2x1x128xf32, #tpu.memory_space<vmem>>, vector<1x1x128xf32>
    %154 = vector.shape_cast %153 : vector<1x1x128xf32> to vector<1x128xf32>
    %155 = vector.broadcast %154 : vector<1x128xf32> to vector<64x128xf32>
    %156 = arith.addf %152, %155 : vector<64x128xf32>
    %157 = arith.addf %101, %156 : vector<64x128xf32>
    %c1 = arith.constant 1 : index
    %c0_74 = arith.constant 0 : index
    %c0_75 = arith.constant 0 : index
    %158 = vector.load %arg5[%c1, %c0_74, %c0_75] : memref<2x1x128xf32, #tpu.memory_space<vmem>>, vector<1x1x128xf32>
    %159 = vector.shape_cast %158 : vector<1x1x128xf32> to vector<1x128xf32>
    %c1_76 = arith.constant 1 : index
    %c0_77 = arith.constant 0 : index
    %c0_78 = arith.constant 0 : index
    %160 = vector.load %arg6[%c1_76, %c0_77, %c0_78] : memref<2x1x128xf32, #tpu.memory_space<vmem>>, vector<1x1x128xf32>
    %161 = vector.shape_cast %160 : vector<1x1x128xf32> to vector<1x128xf32>
    %cst_79 = arith.constant dense<0.000000e+00> : vector<64xf32>
    %162 = vector.multi_reduction <add>, %157, %cst_79 [1] : vector<64x128xf32> to vector<64xf32>
    %163 = vector.shape_cast %162 : vector<64xf32> to vector<64x1xf32>
    %cst_80 = arith.constant 1.280000e+02 : f32
    %164 = vector.broadcast %cst_80 : f32 to vector<64x1xf32>
    %165 = arith.divf %163, %164 : vector<64x1xf32>
    %166 = vector.broadcast %165 : vector<64x1xf32> to vector<64x128xf32>
    %167 = arith.subf %157, %166 : vector<64x128xf32>
    %168 = arith.mulf %167, %167 : vector<64x128xf32>
    %cst_81 = arith.constant dense<0.000000e+00> : vector<64xf32>
    %169 = vector.multi_reduction <add>, %168, %cst_81 [1] : vector<64x128xf32> to vector<64xf32>
    %170 = vector.shape_cast %169 : vector<64xf32> to vector<64x1xf32>
    %cst_82 = arith.constant 1.280000e+02 : f32
    %171 = vector.broadcast %cst_82 : f32 to vector<64x1xf32>
    %172 = arith.divf %170, %171 : vector<64x1xf32>
    %173 = vector.broadcast %165 : vector<64x1xf32> to vector<64x128xf32>
    %174 = arith.subf %157, %173 : vector<64x128xf32>
    %cst_83 = arith.constant 9.99999997E-7 : f32
    %175 = vector.broadcast %cst_83 : f32 to vector<64x1xf32>
    %176 = arith.addf %172, %175 : vector<64x1xf32>
    %177 = math.rsqrt %176 : vector<64x1xf32>
    %178 = vector.broadcast %177 : vector<64x1xf32> to vector<64x128xf32>
    %179 = arith.mulf %174, %178 : vector<64x128xf32>
    %180 = vector.broadcast %159 : vector<1x128xf32> to vector<64x128xf32>
    %181 = arith.mulf %179, %180 : vector<64x128xf32>
    %182 = vector.broadcast %161 : vector<1x128xf32> to vector<64x128xf32>
    %183 = arith.addf %181, %182 : vector<64x128xf32>
    %184 = arith.truncf %183 : vector<64x128xf32> to vector<64x128xbf16>
    %c1_84 = arith.constant 1 : index
    %c0_85 = arith.constant 0 : index
    %c0_86 = arith.constant 0 : index
    %185 = vector.load %arg7[%c1_84, %c0_85, %c0_86] : memref<2x128x384xbf16, #tpu.memory_space<vmem>>, vector<1x128x384xbf16>
    %186 = vector.shape_cast %185 : vector<1x128x384xbf16> to vector<128x384xbf16>
    %cst_87 = arith.constant dense<0.000000e+00> : vector<64x384xf32>
    %187 = tpu.matmul %184, %186, %cst_87 {dimension_numbers = #tpu.dot_dimension_numbers<[1], [0], [0], [1], [0, 0, 1, 1], [], []>} : vector<64x128xbf16>, vector<128x384xbf16>, vector<64x384xf32> -> vector<64x384xf32>
    %c1_88 = arith.constant 1 : index
    %c0_89 = arith.constant 0 : index
    %c0_90 = arith.constant 0 : index
    %188 = vector.load %arg8[%c1_88, %c0_89, %c0_90] : memref<2x1x384xf32, #tpu.memory_space<vmem>>, vector<1x1x384xf32>
    %189 = vector.shape_cast %188 : vector<1x1x384xf32> to vector<1x384xf32>
    %190 = vector.broadcast %189 : vector<1x384xf32> to vector<64x384xf32>
    %191 = arith.addf %187, %190 : vector<64x384xf32>
    %c1_91 = arith.constant 1 : index
    %c0_92 = arith.constant 0 : index
    %c0_93 = arith.constant 0 : index
    %192 = vector.load %arg9[%c1_91, %c0_92, %c0_93] : memref<2x128x128xbf16, #tpu.memory_space<vmem>>, vector<1x128x128xbf16>
    %193 = vector.shape_cast %192 : vector<1x128x128xbf16> to vector<128x128xbf16>
    %cst_94 = arith.constant 0.000000e+00 : f32
    %194 = vector.broadcast %cst_94 : f32 to vector<64x128xf32>
    %195 = vector.extract_strided_slice %191 {offsets = [0, 0], sizes = [64, 64], strides = [1, 1]} : vector<64x384xf32> to vector<64x64xf32>
    %196 = arith.truncf %195 : vector<64x64xf32> to vector<64x64xbf16>
    %197 = vector.extract_strided_slice %191 {offsets = [0, 128], sizes = [64, 64], strides = [1, 1]} : vector<64x384xf32> to vector<64x64xf32>
    %198 = arith.truncf %197 : vector<64x64xf32> to vector<64x64xbf16>
    %199 = vector.extract_strided_slice %191 {offsets = [0, 256], sizes = [64, 64], strides = [1, 1]} : vector<64x384xf32> to vector<64x64xf32>
    %200 = arith.truncf %199 : vector<64x64xf32> to vector<64x64xbf16>
    %cst_95 = arith.constant dense<0.000000e+00> : vector<64x64xf32>
    %201 = tpu.matmul %196, %198, %cst_95 {dimension_numbers = #tpu.dot_dimension_numbers<[1], [1], [0], [0], [0, 0, 1, 0], [], []>} : vector<64x64xbf16>, vector<64x64xbf16>, vector<64x64xf32> -> vector<64x64xf32>
    %cst_96 = arith.constant 1.250000e-01 : f32
    %202 = vector.broadcast %cst_96 : f32 to vector<64x64xf32>
    %203 = arith.mulf %201, %202 : vector<64x64xf32>
    %cst_97 = arith.constant dense<0xFF800000> : vector<64xf32>
    %204 = vector.multi_reduction <maximumf>, %203, %cst_97 [1] : vector<64x64xf32> to vector<64xf32>
    %205 = vector.shape_cast %204 : vector<64xf32> to vector<64x1xf32>
    %206 = vector.broadcast %205 : vector<64x1xf32> to vector<64x64xf32>
    %207 = arith.subf %203, %206 : vector<64x64xf32>
    %208 = math.exp %207 : vector<64x64xf32>
    %cst_98 = arith.constant dense<0.000000e+00> : vector<64xf32>
    %209 = vector.multi_reduction <add>, %208, %cst_98 [1] : vector<64x64xf32> to vector<64xf32>
    %210 = vector.shape_cast %209 : vector<64xf32> to vector<64x1xf32>
    %211 = tpu.reciprocal %210 {approx = true} : vector<64x1xf32> -> vector<64x1xf32>
    %212 = vector.broadcast %211 : vector<64x1xf32> to vector<64x64xf32>
    %213 = arith.mulf %208, %212 : vector<64x64xf32>
    %214 = arith.truncf %213 : vector<64x64xf32> to vector<64x64xbf16>
    %cst_99 = arith.constant dense<0.000000e+00> : vector<64x64xf32>
    %215 = tpu.matmul %214, %200, %cst_99 {dimension_numbers = #tpu.dot_dimension_numbers<[1], [0], [0], [1], [0, 0, 1, 1], [], []>} : vector<64x64xbf16>, vector<64x64xbf16>, vector<64x64xf32> -> vector<64x64xf32>
    %216 = arith.truncf %215 : vector<64x64xf32> to vector<64x64xbf16>
    %217 = vector.extract_strided_slice %193 {offsets = [0, 0], sizes = [64, 128], strides = [1, 1]} : vector<128x128xbf16> to vector<64x128xbf16>
    %cst_100 = arith.constant dense<0.000000e+00> : vector<64x128xf32>
    %218 = tpu.matmul %216, %217, %cst_100 {dimension_numbers = #tpu.dot_dimension_numbers<[1], [0], [0], [1], [0, 0, 1, 1], [], []>} : vector<64x64xbf16>, vector<64x128xbf16>, vector<64x128xf32> -> vector<64x128xf32>
    %219 = arith.addf %194, %218 : vector<64x128xf32>
    %220 = vector.extract_strided_slice %191 {offsets = [0, 64], sizes = [64, 64], strides = [1, 1]} : vector<64x384xf32> to vector<64x64xf32>
    %221 = arith.truncf %220 : vector<64x64xf32> to vector<64x64xbf16>
    %222 = vector.extract_strided_slice %191 {offsets = [0, 192], sizes = [64, 64], strides = [1, 1]} : vector<64x384xf32> to vector<64x64xf32>
    %223 = arith.truncf %222 : vector<64x64xf32> to vector<64x64xbf16>
    %224 = vector.extract_strided_slice %191 {offsets = [0, 320], sizes = [64, 64], strides = [1, 1]} : vector<64x384xf32> to vector<64x64xf32>
    %225 = arith.truncf %224 : vector<64x64xf32> to vector<64x64xbf16>
    %cst_101 = arith.constant dense<0.000000e+00> : vector<64x64xf32>
    %226 = tpu.matmul %221, %223, %cst_101 {dimension_numbers = #tpu.dot_dimension_numbers<[1], [1], [0], [0], [0, 0, 1, 0], [], []>} : vector<64x64xbf16>, vector<64x64xbf16>, vector<64x64xf32> -> vector<64x64xf32>
    %cst_102 = arith.constant 1.250000e-01 : f32
    %227 = vector.broadcast %cst_102 : f32 to vector<64x64xf32>
    %228 = arith.mulf %226, %227 : vector<64x64xf32>
    %cst_103 = arith.constant dense<0xFF800000> : vector<64xf32>
    %229 = vector.multi_reduction <maximumf>, %228, %cst_103 [1] : vector<64x64xf32> to vector<64xf32>
    %230 = vector.shape_cast %229 : vector<64xf32> to vector<64x1xf32>
    %231 = vector.broadcast %230 : vector<64x1xf32> to vector<64x64xf32>
    %232 = arith.subf %228, %231 : vector<64x64xf32>
    %233 = math.exp %232 : vector<64x64xf32>
    %cst_104 = arith.constant dense<0.000000e+00> : vector<64xf32>
    %234 = vector.multi_reduction <add>, %233, %cst_104 [1] : vector<64x64xf32> to vector<64xf32>
    %235 = vector.shape_cast %234 : vector<64xf32> to vector<64x1xf32>
    %236 = tpu.reciprocal %235 {approx = true} : vector<64x1xf32> -> vector<64x1xf32>
    %237 = vector.broadcast %236 : vector<64x1xf32> to vector<64x64xf32>
    %238 = arith.mulf %233, %237 : vector<64x64xf32>
    %239 = arith.truncf %238 : vector<64x64xf32> to vector<64x64xbf16>
    %cst_105 = arith.constant dense<0.000000e+00> : vector<64x64xf32>
    %240 = tpu.matmul %239, %225, %cst_105 {dimension_numbers = #tpu.dot_dimension_numbers<[1], [0], [0], [1], [0, 0, 1, 1], [], []>} : vector<64x64xbf16>, vector<64x64xbf16>, vector<64x64xf32> -> vector<64x64xf32>
    %241 = arith.truncf %240 : vector<64x64xf32> to vector<64x64xbf16>
    %242 = vector.extract_strided_slice %193 {offsets = [64, 0], sizes = [64, 128], strides = [1, 1]} : vector<128x128xbf16> to vector<64x128xbf16>
    %cst_106 = arith.constant dense<0.000000e+00> : vector<64x128xf32>
    %243 = tpu.matmul %241, %242, %cst_106 {dimension_numbers = #tpu.dot_dimension_numbers<[1], [0], [0], [1], [0, 0, 1, 1], [], []>} : vector<64x64xbf16>, vector<64x128xbf16>, vector<64x128xf32> -> vector<64x128xf32>
    %244 = arith.addf %219, %243 : vector<64x128xf32>
    %245 = arith.addf %157, %244 : vector<64x128xf32>
    %c1_107 = arith.constant 1 : index
    %c0_108 = arith.constant 0 : index
    %c0_109 = arith.constant 0 : index
    %246 = vector.load %arg10[%c1_107, %c0_108, %c0_109] : memref<2x1x128xf32, #tpu.memory_space<vmem>>, vector<1x1x128xf32>
    %247 = vector.shape_cast %246 : vector<1x1x128xf32> to vector<1x128xf32>
    %248 = vector.broadcast %247 : vector<1x128xf32> to vector<64x128xf32>
    %249 = arith.addf %245, %248 : vector<64x128xf32>
    %c1_110 = arith.constant 1 : index
    %c0_111 = arith.constant 0 : index
    %c0_112 = arith.constant 0 : index
    %250 = vector.load %arg11[%c1_110, %c0_111, %c0_112] : memref<2x1x128xf32, #tpu.memory_space<vmem>>, vector<1x1x128xf32>
    %251 = vector.shape_cast %250 : vector<1x1x128xf32> to vector<1x128xf32>
    %c1_113 = arith.constant 1 : index
    %c0_114 = arith.constant 0 : index
    %c0_115 = arith.constant 0 : index
    %252 = vector.load %arg12[%c1_113, %c0_114, %c0_115] : memref<2x1x128xf32, #tpu.memory_space<vmem>>, vector<1x1x128xf32>
    %253 = vector.shape_cast %252 : vector<1x1x128xf32> to vector<1x128xf32>
    %cst_116 = arith.constant dense<0.000000e+00> : vector<64xf32>
    %254 = vector.multi_reduction <add>, %249, %cst_116 [1] : vector<64x128xf32> to vector<64xf32>
    %255 = vector.shape_cast %254 : vector<64xf32> to vector<64x1xf32>
    %cst_117 = arith.constant 1.280000e+02 : f32
    %256 = vector.broadcast %cst_117 : f32 to vector<64x1xf32>
    %257 = arith.divf %255, %256 : vector<64x1xf32>
    %258 = vector.broadcast %257 : vector<64x1xf32> to vector<64x128xf32>
    %259 = arith.subf %249, %258 : vector<64x128xf32>
    %260 = arith.mulf %259, %259 : vector<64x128xf32>
    %cst_118 = arith.constant dense<0.000000e+00> : vector<64xf32>
    %261 = vector.multi_reduction <add>, %260, %cst_118 [1] : vector<64x128xf32> to vector<64xf32>
    %262 = vector.shape_cast %261 : vector<64xf32> to vector<64x1xf32>
    %cst_119 = arith.constant 1.280000e+02 : f32
    %263 = vector.broadcast %cst_119 : f32 to vector<64x1xf32>
    %264 = arith.divf %262, %263 : vector<64x1xf32>
    %265 = vector.broadcast %257 : vector<64x1xf32> to vector<64x128xf32>
    %266 = arith.subf %249, %265 : vector<64x128xf32>
    %cst_120 = arith.constant 9.99999997E-7 : f32
    %267 = vector.broadcast %cst_120 : f32 to vector<64x1xf32>
    %268 = arith.addf %264, %267 : vector<64x1xf32>
    %269 = math.rsqrt %268 : vector<64x1xf32>
    %270 = vector.broadcast %269 : vector<64x1xf32> to vector<64x128xf32>
    %271 = arith.mulf %266, %270 : vector<64x128xf32>
    %272 = vector.broadcast %251 : vector<1x128xf32> to vector<64x128xf32>
    %273 = arith.mulf %271, %272 : vector<64x128xf32>
    %274 = vector.broadcast %253 : vector<1x128xf32> to vector<64x128xf32>
    %275 = arith.addf %273, %274 : vector<64x128xf32>
    %276 = arith.truncf %275 : vector<64x128xf32> to vector<64x128xbf16>
    %c1_121 = arith.constant 1 : index
    %c0_122 = arith.constant 0 : index
    %c0_123 = arith.constant 0 : index
    %277 = vector.load %arg13[%c1_121, %c0_122, %c0_123] : memref<2x128x512xbf16, #tpu.memory_space<vmem>>, vector<1x128x512xbf16>
    %278 = vector.shape_cast %277 : vector<1x128x512xbf16> to vector<128x512xbf16>
    %cst_124 = arith.constant dense<0.000000e+00> : vector<64x512xf32>
    %279 = tpu.matmul %276, %278, %cst_124 {dimension_numbers = #tpu.dot_dimension_numbers<[1], [0], [0], [1], [0, 0, 1, 1], [], []>} : vector<64x128xbf16>, vector<128x512xbf16>, vector<64x512xf32> -> vector<64x512xf32>
    %c1_125 = arith.constant 1 : index
    %c0_126 = arith.constant 0 : index
    %c0_127 = arith.constant 0 : index
    %280 = vector.load %arg14[%c1_125, %c0_126, %c0_127] : memref<2x1x512xf32, #tpu.memory_space<vmem>>, vector<1x1x512xf32>
    %281 = vector.shape_cast %280 : vector<1x1x512xf32> to vector<1x512xf32>
    %282 = vector.broadcast %281 : vector<1x512xf32> to vector<64x512xf32>
    %283 = arith.addf %279, %282 : vector<64x512xf32>
    %284 = arith.mulf %283, %283 : vector<64x512xf32>
    %285 = arith.mulf %283, %284 : vector<64x512xf32>
    %cst_128 = arith.constant 4.471500e-02 : f32
    %286 = vector.broadcast %cst_128 : f32 to vector<64x512xf32>
    %287 = arith.mulf %286, %285 : vector<64x512xf32>
    %288 = arith.addf %283, %287 : vector<64x512xf32>
    %cst_129 = arith.constant 0.797884583 : f32
    %289 = vector.broadcast %cst_129 : f32 to vector<64x512xf32>
    %290 = arith.mulf %289, %288 : vector<64x512xf32>
    %291 = math.tanh %290 : vector<64x512xf32>
    %cst_130 = arith.constant 1.000000e+00 : f32
    %292 = vector.broadcast %cst_130 : f32 to vector<64x512xf32>
    %293 = arith.addf %292, %291 : vector<64x512xf32>
    %cst_131 = arith.constant 5.000000e-01 : f32
    %294 = vector.broadcast %cst_131 : f32 to vector<64x512xf32>
    %295 = arith.mulf %294, %293 : vector<64x512xf32>
    %296 = arith.mulf %283, %295 : vector<64x512xf32>
    %297 = arith.truncf %296 : vector<64x512xf32> to vector<64x512xbf16>
    %c1_132 = arith.constant 1 : index
    %c0_133 = arith.constant 0 : index
    %c0_134 = arith.constant 0 : index
    %298 = vector.load %arg15[%c1_132, %c0_133, %c0_134] : memref<2x512x128xbf16, #tpu.memory_space<vmem>>, vector<1x512x128xbf16>
    %299 = vector.shape_cast %298 : vector<1x512x128xbf16> to vector<512x128xbf16>
    %cst_135 = arith.constant dense<0.000000e+00> : vector<64x128xf32>
    %300 = tpu.matmul %297, %299, %cst_135 {dimension_numbers = #tpu.dot_dimension_numbers<[1], [0], [0], [1], [0, 0, 1, 1], [], []>} : vector<64x512xbf16>, vector<512x128xbf16>, vector<64x128xf32> -> vector<64x128xf32>
    %c1_136 = arith.constant 1 : index
    %c0_137 = arith.constant 0 : index
    %c0_138 = arith.constant 0 : index
    %301 = vector.load %arg16[%c1_136, %c0_137, %c0_138] : memref<2x1x128xf32, #tpu.memory_space<vmem>>, vector<1x1x128xf32>
    %302 = vector.shape_cast %301 : vector<1x1x128xf32> to vector<1x128xf32>
    %303 = vector.broadcast %302 : vector<1x128xf32> to vector<64x128xf32>
    %304 = arith.addf %300, %303 : vector<64x128xf32>
    %305 = arith.addf %249, %304 : vector<64x128xf32>
    %306 = arith.truncf %305 : vector<64x128xf32> to vector<64x128xbf16>
    %c0_139 = arith.constant 0 : index
    %c0_140 = arith.constant 0 : index
    %307 = vector.load %arg17[%c0_139, %c0_140] : memref<128x128xbf16, #tpu.memory_space<vmem>>, vector<128x128xbf16>
    %cst_141 = arith.constant dense<0.000000e+00> : vector<64x128xf32>
    %308 = tpu.matmul %306, %307, %cst_141 {dimension_numbers = #tpu.dot_dimension_numbers<[1], [0], [0], [1], [0, 0, 1, 1], [], []>} : vector<64x128xbf16>, vector<128x128xbf16>, vector<64x128xf32> -> vector<64x128xf32>
    %c0_142 = arith.constant 0 : index
    %c0_143 = arith.constant 0 : index
    %309 = vector.load %arg18[%c0_142, %c0_143] : memref<1x128xf32, #tpu.memory_space<vmem>>, vector<1x128xf32>
    %c0_144 = arith.constant 0 : index
    %c0_145 = arith.constant 0 : index
    %310 = vector.load %arg19[%c0_144, %c0_145] : memref<1x128xf32, #tpu.memory_space<vmem>>, vector<1x128xf32>
    %cst_146 = arith.constant dense<0.000000e+00> : vector<64xf32>
    %311 = vector.multi_reduction <add>, %308, %cst_146 [1] : vector<64x128xf32> to vector<64xf32>
    %312 = vector.shape_cast %311 : vector<64xf32> to vector<64x1xf32>
    %cst_147 = arith.constant 1.280000e+02 : f32
    %313 = vector.broadcast %cst_147 : f32 to vector<64x1xf32>
    %314 = arith.divf %312, %313 : vector<64x1xf32>
    %315 = vector.broadcast %314 : vector<64x1xf32> to vector<64x128xf32>
    %316 = arith.subf %308, %315 : vector<64x128xf32>
    %317 = arith.mulf %316, %316 : vector<64x128xf32>
    %cst_148 = arith.constant dense<0.000000e+00> : vector<64xf32>
    %318 = vector.multi_reduction <add>, %317, %cst_148 [1] : vector<64x128xf32> to vector<64xf32>
    %319 = vector.shape_cast %318 : vector<64xf32> to vector<64x1xf32>
    %cst_149 = arith.constant 1.280000e+02 : f32
    %320 = vector.broadcast %cst_149 : f32 to vector<64x1xf32>
    %321 = arith.divf %319, %320 : vector<64x1xf32>
    %322 = vector.broadcast %314 : vector<64x1xf32> to vector<64x128xf32>
    %323 = arith.subf %308, %322 : vector<64x128xf32>
    %cst_150 = arith.constant 9.99999997E-7 : f32
    %324 = vector.broadcast %cst_150 : f32 to vector<64x1xf32>
    %325 = arith.addf %321, %324 : vector<64x1xf32>
    %326 = math.rsqrt %325 : vector<64x1xf32>
    %327 = vector.broadcast %326 : vector<64x1xf32> to vector<64x128xf32>
    %328 = arith.mulf %323, %327 : vector<64x128xf32>
    %329 = vector.broadcast %309 : vector<1x128xf32> to vector<64x128xf32>
    %330 = arith.mulf %328, %329 : vector<64x128xf32>
    %331 = vector.broadcast %310 : vector<1x128xf32> to vector<64x128xf32>
    %332 = arith.addf %330, %331 : vector<64x128xf32>
    %cst_151 = arith.constant 0.000000e+00 : f32
    %333 = vector.broadcast %cst_151 : f32 to vector<64x128xf32>
    %334 = arith.truncf %332 : vector<64x128xf32> to vector<64x128xbf16>
    %c0_152 = arith.constant 0 : index
    %c0_153 = arith.constant 0 : index
    %c0_154 = arith.constant 0 : index
    %335 = vector.load %arg21[%c0_152, %c0_153, %c0_154] : memref<9x128x128xbf16, #tpu.memory_space<vmem>>, vector<1x128x128xbf16>
    %336 = vector.shape_cast %335 : vector<1x128x128xbf16> to vector<128x128xbf16>
    %cst_155 = arith.constant dense<0.000000e+00> : vector<64x128xf32>
    %337 = tpu.matmul %334, %336, %cst_155 {dimension_numbers = #tpu.dot_dimension_numbers<[1], [0], [0], [1], [0, 0, 1, 1], [], []>} : vector<64x128xbf16>, vector<128x128xbf16>, vector<64x128xf32> -> vector<64x128xf32>
    %c0_156 = arith.constant 0 : index
    %c0_157 = arith.constant 0 : index
    %c0_158 = arith.constant 0 : index
    %338 = vector.load %arg20[%c0_156, %c0_157, %c0_158] : memref<9x64x64xbf16, #tpu.memory_space<vmem>>, vector<1x64x64xbf16>
    %339 = vector.shape_cast %338 : vector<1x64x64xbf16> to vector<64x64xbf16>
    %340 = arith.truncf %337 : vector<64x128xf32> to vector<64x128xbf16>
    %cst_159 = arith.constant dense<0.000000e+00> : vector<64x128xf32>
    %341 = tpu.matmul %339, %340, %cst_159 {dimension_numbers = #tpu.dot_dimension_numbers<[1], [0], [0], [1], [0, 0, 1, 1], [], []>} : vector<64x64xbf16>, vector<64x128xbf16>, vector<64x128xf32> -> vector<64x128xf32>
    %342 = arith.addf %333, %341 : vector<64x128xf32>
    %343 = arith.truncf %332 : vector<64x128xf32> to vector<64x128xbf16>
    %c1_160 = arith.constant 1 : index
    %c0_161 = arith.constant 0 : index
    %c0_162 = arith.constant 0 : index
    %344 = vector.load %arg21[%c1_160, %c0_161, %c0_162] : memref<9x128x128xbf16, #tpu.memory_space<vmem>>, vector<1x128x128xbf16>
    %345 = vector.shape_cast %344 : vector<1x128x128xbf16> to vector<128x128xbf16>
    %cst_163 = arith.constant dense<0.000000e+00> : vector<64x128xf32>
    %346 = tpu.matmul %343, %345, %cst_163 {dimension_numbers = #tpu.dot_dimension_numbers<[1], [0], [0], [1], [0, 0, 1, 1], [], []>} : vector<64x128xbf16>, vector<128x128xbf16>, vector<64x128xf32> -> vector<64x128xf32>
    %c1_164 = arith.constant 1 : index
    %c0_165 = arith.constant 0 : index
    %c0_166 = arith.constant 0 : index
    %347 = vector.load %arg20[%c1_164, %c0_165, %c0_166] : memref<9x64x64xbf16, #tpu.memory_space<vmem>>, vector<1x64x64xbf16>
    %348 = vector.shape_cast %347 : vector<1x64x64xbf16> to vector<64x64xbf16>
    %349 = arith.truncf %346 : vector<64x128xf32> to vector<64x128xbf16>
    %cst_167 = arith.constant dense<0.000000e+00> : vector<64x128xf32>
    %350 = tpu.matmul %348, %349, %cst_167 {dimension_numbers = #tpu.dot_dimension_numbers<[1], [0], [0], [1], [0, 0, 1, 1], [], []>} : vector<64x64xbf16>, vector<64x128xbf16>, vector<64x128xf32> -> vector<64x128xf32>
    %351 = arith.addf %342, %350 : vector<64x128xf32>
    %352 = arith.truncf %332 : vector<64x128xf32> to vector<64x128xbf16>
    %c2 = arith.constant 2 : index
    %c0_168 = arith.constant 0 : index
    %c0_169 = arith.constant 0 : index
    %353 = vector.load %arg21[%c2, %c0_168, %c0_169] : memref<9x128x128xbf16, #tpu.memory_space<vmem>>, vector<1x128x128xbf16>
    %354 = vector.shape_cast %353 : vector<1x128x128xbf16> to vector<128x128xbf16>
    %cst_170 = arith.constant dense<0.000000e+00> : vector<64x128xf32>
    %355 = tpu.matmul %352, %354, %cst_170 {dimension_numbers = #tpu.dot_dimension_numbers<[1], [0], [0], [1], [0, 0, 1, 1], [], []>} : vector<64x128xbf16>, vector<128x128xbf16>, vector<64x128xf32> -> vector<64x128xf32>
    %c2_171 = arith.constant 2 : index
    %c0_172 = arith.constant 0 : index
    %c0_173 = arith.constant 0 : index
    %356 = vector.load %arg20[%c2_171, %c0_172, %c0_173] : memref<9x64x64xbf16, #tpu.memory_space<vmem>>, vector<1x64x64xbf16>
    %357 = vector.shape_cast %356 : vector<1x64x64xbf16> to vector<64x64xbf16>
    %358 = arith.truncf %355 : vector<64x128xf32> to vector<64x128xbf16>
    %cst_174 = arith.constant dense<0.000000e+00> : vector<64x128xf32>
    %359 = tpu.matmul %357, %358, %cst_174 {dimension_numbers = #tpu.dot_dimension_numbers<[1], [0], [0], [1], [0, 0, 1, 1], [], []>} : vector<64x64xbf16>, vector<64x128xbf16>, vector<64x128xf32> -> vector<64x128xf32>
    %360 = arith.addf %351, %359 : vector<64x128xf32>
    %361 = arith.truncf %332 : vector<64x128xf32> to vector<64x128xbf16>
    %c3 = arith.constant 3 : index
    %c0_175 = arith.constant 0 : index
    %c0_176 = arith.constant 0 : index
    %362 = vector.load %arg21[%c3, %c0_175, %c0_176] : memref<9x128x128xbf16, #tpu.memory_space<vmem>>, vector<1x128x128xbf16>
    %363 = vector.shape_cast %362 : vector<1x128x128xbf16> to vector<128x128xbf16>
    %cst_177 = arith.constant dense<0.000000e+00> : vector<64x128xf32>
    %364 = tpu.matmul %361, %363, %cst_177 {dimension_numbers = #tpu.dot_dimension_numbers<[1], [0], [0], [1], [0, 0, 1, 1], [], []>} : vector<64x128xbf16>, vector<128x128xbf16>, vector<64x128xf32> -> vector<64x128xf32>
    %c3_178 = arith.constant 3 : index
    %c0_179 = arith.constant 0 : index
    %c0_180 = arith.constant 0 : index
    %365 = vector.load %arg20[%c3_178, %c0_179, %c0_180] : memref<9x64x64xbf16, #tpu.memory_space<vmem>>, vector<1x64x64xbf16>
    %366 = vector.shape_cast %365 : vector<1x64x64xbf16> to vector<64x64xbf16>
    %367 = arith.truncf %364 : vector<64x128xf32> to vector<64x128xbf16>
    %cst_181 = arith.constant dense<0.000000e+00> : vector<64x128xf32>
    %368 = tpu.matmul %366, %367, %cst_181 {dimension_numbers = #tpu.dot_dimension_numbers<[1], [0], [0], [1], [0, 0, 1, 1], [], []>} : vector<64x64xbf16>, vector<64x128xbf16>, vector<64x128xf32> -> vector<64x128xf32>
    %369 = arith.addf %360, %368 : vector<64x128xf32>
    %370 = arith.truncf %332 : vector<64x128xf32> to vector<64x128xbf16>
    %c4 = arith.constant 4 : index
    %c0_182 = arith.constant 0 : index
    %c0_183 = arith.constant 0 : index
    %371 = vector.load %arg21[%c4, %c0_182, %c0_183] : memref<9x128x128xbf16, #tpu.memory_space<vmem>>, vector<1x128x128xbf16>
    %372 = vector.shape_cast %371 : vector<1x128x128xbf16> to vector<128x128xbf16>
    %cst_184 = arith.constant dense<0.000000e+00> : vector<64x128xf32>
    %373 = tpu.matmul %370, %372, %cst_184 {dimension_numbers = #tpu.dot_dimension_numbers<[1], [0], [0], [1], [0, 0, 1, 1], [], []>} : vector<64x128xbf16>, vector<128x128xbf16>, vector<64x128xf32> -> vector<64x128xf32>
    %c4_185 = arith.constant 4 : index
    %c0_186 = arith.constant 0 : index
    %c0_187 = arith.constant 0 : index
    %374 = vector.load %arg20[%c4_185, %c0_186, %c0_187] : memref<9x64x64xbf16, #tpu.memory_space<vmem>>, vector<1x64x64xbf16>
    %375 = vector.shape_cast %374 : vector<1x64x64xbf16> to vector<64x64xbf16>
    %376 = arith.truncf %373 : vector<64x128xf32> to vector<64x128xbf16>
    %cst_188 = arith.constant dense<0.000000e+00> : vector<64x128xf32>
    %377 = tpu.matmul %375, %376, %cst_188 {dimension_numbers = #tpu.dot_dimension_numbers<[1], [0], [0], [1], [0, 0, 1, 1], [], []>} : vector<64x64xbf16>, vector<64x128xbf16>, vector<64x128xf32> -> vector<64x128xf32>
    %378 = arith.addf %369, %377 : vector<64x128xf32>
    %379 = arith.truncf %332 : vector<64x128xf32> to vector<64x128xbf16>
    %c5 = arith.constant 5 : index
    %c0_189 = arith.constant 0 : index
    %c0_190 = arith.constant 0 : index
    %380 = vector.load %arg21[%c5, %c0_189, %c0_190] : memref<9x128x128xbf16, #tpu.memory_space<vmem>>, vector<1x128x128xbf16>
    %381 = vector.shape_cast %380 : vector<1x128x128xbf16> to vector<128x128xbf16>
    %cst_191 = arith.constant dense<0.000000e+00> : vector<64x128xf32>
    %382 = tpu.matmul %379, %381, %cst_191 {dimension_numbers = #tpu.dot_dimension_numbers<[1], [0], [0], [1], [0, 0, 1, 1], [], []>} : vector<64x128xbf16>, vector<128x128xbf16>, vector<64x128xf32> -> vector<64x128xf32>
    %c5_192 = arith.constant 5 : index
    %c0_193 = arith.constant 0 : index
    %c0_194 = arith.constant 0 : index
    %383 = vector.load %arg20[%c5_192, %c0_193, %c0_194] : memref<9x64x64xbf16, #tpu.memory_space<vmem>>, vector<1x64x64xbf16>
    %384 = vector.shape_cast %383 : vector<1x64x64xbf16> to vector<64x64xbf16>
    %385 = arith.truncf %382 : vector<64x128xf32> to vector<64x128xbf16>
    %cst_195 = arith.constant dense<0.000000e+00> : vector<64x128xf32>
    %386 = tpu.matmul %384, %385, %cst_195 {dimension_numbers = #tpu.dot_dimension_numbers<[1], [0], [0], [1], [0, 0, 1, 1], [], []>} : vector<64x64xbf16>, vector<64x128xbf16>, vector<64x128xf32> -> vector<64x128xf32>
    %387 = arith.addf %378, %386 : vector<64x128xf32>
    %388 = arith.truncf %332 : vector<64x128xf32> to vector<64x128xbf16>
    %c6 = arith.constant 6 : index
    %c0_196 = arith.constant 0 : index
    %c0_197 = arith.constant 0 : index
    %389 = vector.load %arg21[%c6, %c0_196, %c0_197] : memref<9x128x128xbf16, #tpu.memory_space<vmem>>, vector<1x128x128xbf16>
    %390 = vector.shape_cast %389 : vector<1x128x128xbf16> to vector<128x128xbf16>
    %cst_198 = arith.constant dense<0.000000e+00> : vector<64x128xf32>
    %391 = tpu.matmul %388, %390, %cst_198 {dimension_numbers = #tpu.dot_dimension_numbers<[1], [0], [0], [1], [0, 0, 1, 1], [], []>} : vector<64x128xbf16>, vector<128x128xbf16>, vector<64x128xf32> -> vector<64x128xf32>
    %c6_199 = arith.constant 6 : index
    %c0_200 = arith.constant 0 : index
    %c0_201 = arith.constant 0 : index
    %392 = vector.load %arg20[%c6_199, %c0_200, %c0_201] : memref<9x64x64xbf16, #tpu.memory_space<vmem>>, vector<1x64x64xbf16>
    %393 = vector.shape_cast %392 : vector<1x64x64xbf16> to vector<64x64xbf16>
    %394 = arith.truncf %391 : vector<64x128xf32> to vector<64x128xbf16>
    %cst_202 = arith.constant dense<0.000000e+00> : vector<64x128xf32>
    %395 = tpu.matmul %393, %394, %cst_202 {dimension_numbers = #tpu.dot_dimension_numbers<[1], [0], [0], [1], [0, 0, 1, 1], [], []>} : vector<64x64xbf16>, vector<64x128xbf16>, vector<64x128xf32> -> vector<64x128xf32>
    %396 = arith.addf %387, %395 : vector<64x128xf32>
    %397 = arith.truncf %332 : vector<64x128xf32> to vector<64x128xbf16>
    %c7 = arith.constant 7 : index
    %c0_203 = arith.constant 0 : index
    %c0_204 = arith.constant 0 : index
    %398 = vector.load %arg21[%c7, %c0_203, %c0_204] : memref<9x128x128xbf16, #tpu.memory_space<vmem>>, vector<1x128x128xbf16>
    %399 = vector.shape_cast %398 : vector<1x128x128xbf16> to vector<128x128xbf16>
    %cst_205 = arith.constant dense<0.000000e+00> : vector<64x128xf32>
    %400 = tpu.matmul %397, %399, %cst_205 {dimension_numbers = #tpu.dot_dimension_numbers<[1], [0], [0], [1], [0, 0, 1, 1], [], []>} : vector<64x128xbf16>, vector<128x128xbf16>, vector<64x128xf32> -> vector<64x128xf32>
    %c7_206 = arith.constant 7 : index
    %c0_207 = arith.constant 0 : index
    %c0_208 = arith.constant 0 : index
    %401 = vector.load %arg20[%c7_206, %c0_207, %c0_208] : memref<9x64x64xbf16, #tpu.memory_space<vmem>>, vector<1x64x64xbf16>
    %402 = vector.shape_cast %401 : vector<1x64x64xbf16> to vector<64x64xbf16>
    %403 = arith.truncf %400 : vector<64x128xf32> to vector<64x128xbf16>
    %cst_209 = arith.constant dense<0.000000e+00> : vector<64x128xf32>
    %404 = tpu.matmul %402, %403, %cst_209 {dimension_numbers = #tpu.dot_dimension_numbers<[1], [0], [0], [1], [0, 0, 1, 1], [], []>} : vector<64x64xbf16>, vector<64x128xbf16>, vector<64x128xf32> -> vector<64x128xf32>
    %405 = arith.addf %396, %404 : vector<64x128xf32>
    %406 = arith.truncf %332 : vector<64x128xf32> to vector<64x128xbf16>
    %c8 = arith.constant 8 : index
    %c0_210 = arith.constant 0 : index
    %c0_211 = arith.constant 0 : index
    %407 = vector.load %arg21[%c8, %c0_210, %c0_211] : memref<9x128x128xbf16, #tpu.memory_space<vmem>>, vector<1x128x128xbf16>
    %408 = vector.shape_cast %407 : vector<1x128x128xbf16> to vector<128x128xbf16>
    %cst_212 = arith.constant dense<0.000000e+00> : vector<64x128xf32>
    %409 = tpu.matmul %406, %408, %cst_212 {dimension_numbers = #tpu.dot_dimension_numbers<[1], [0], [0], [1], [0, 0, 1, 1], [], []>} : vector<64x128xbf16>, vector<128x128xbf16>, vector<64x128xf32> -> vector<64x128xf32>
    %c8_213 = arith.constant 8 : index
    %c0_214 = arith.constant 0 : index
    %c0_215 = arith.constant 0 : index
    %410 = vector.load %arg20[%c8_213, %c0_214, %c0_215] : memref<9x64x64xbf16, #tpu.memory_space<vmem>>, vector<1x64x64xbf16>
    %411 = vector.shape_cast %410 : vector<1x64x64xbf16> to vector<64x64xbf16>
    %412 = arith.truncf %409 : vector<64x128xf32> to vector<64x128xbf16>
    %cst_216 = arith.constant dense<0.000000e+00> : vector<64x128xf32>
    %413 = tpu.matmul %411, %412, %cst_216 {dimension_numbers = #tpu.dot_dimension_numbers<[1], [0], [0], [1], [0, 0, 1, 1], [], []>} : vector<64x64xbf16>, vector<64x128xbf16>, vector<64x128xf32> -> vector<64x128xf32>
    %414 = arith.addf %405, %413 : vector<64x128xf32>
    %c0_217 = arith.constant 0 : index
    %c0_218 = arith.constant 0 : index
    %415 = vector.load %arg22[%c0_217, %c0_218] : memref<1x128xf32, #tpu.memory_space<vmem>>, vector<1x128xf32>
    %c0_219 = arith.constant 0 : index
    %c0_220 = arith.constant 0 : index
    %416 = vector.load %arg23[%c0_219, %c0_220] : memref<1x128xf32, #tpu.memory_space<vmem>>, vector<1x128xf32>
    %cst_221 = arith.constant dense<0.000000e+00> : vector<64xf32>
    %417 = vector.multi_reduction <add>, %414, %cst_221 [1] : vector<64x128xf32> to vector<64xf32>
    %418 = vector.shape_cast %417 : vector<64xf32> to vector<64x1xf32>
    %cst_222 = arith.constant 1.280000e+02 : f32
    %419 = vector.broadcast %cst_222 : f32 to vector<64x1xf32>
    %420 = arith.divf %418, %419 : vector<64x1xf32>
    %421 = vector.broadcast %420 : vector<64x1xf32> to vector<64x128xf32>
    %422 = arith.subf %414, %421 : vector<64x128xf32>
    %423 = arith.mulf %422, %422 : vector<64x128xf32>
    %cst_223 = arith.constant dense<0.000000e+00> : vector<64xf32>
    %424 = vector.multi_reduction <add>, %423, %cst_223 [1] : vector<64x128xf32> to vector<64xf32>
    %425 = vector.shape_cast %424 : vector<64xf32> to vector<64x1xf32>
    %cst_224 = arith.constant 1.280000e+02 : f32
    %426 = vector.broadcast %cst_224 : f32 to vector<64x1xf32>
    %427 = arith.divf %425, %426 : vector<64x1xf32>
    %428 = vector.broadcast %420 : vector<64x1xf32> to vector<64x128xf32>
    %429 = arith.subf %414, %428 : vector<64x128xf32>
    %cst_225 = arith.constant 9.99999997E-7 : f32
    %430 = vector.broadcast %cst_225 : f32 to vector<64x1xf32>
    %431 = arith.addf %427, %430 : vector<64x1xf32>
    %432 = math.rsqrt %431 : vector<64x1xf32>
    %433 = vector.broadcast %432 : vector<64x1xf32> to vector<64x128xf32>
    %434 = arith.mulf %429, %433 : vector<64x128xf32>
    %435 = vector.broadcast %415 : vector<1x128xf32> to vector<64x128xf32>
    %436 = arith.mulf %434, %435 : vector<64x128xf32>
    %437 = vector.broadcast %416 : vector<1x128xf32> to vector<64x128xf32>
    %438 = arith.addf %436, %437 : vector<64x128xf32>
    %c0_226 = arith.constant 0 : index
    %c0_227 = arith.constant 0 : index
    %c0_228 = arith.constant 0 : index
    %439 = vector.load %arg24[%c0_226, %c0_227, %c0_228] : memref<1x64x128xf32, #tpu.memory_space<vmem>>, vector<1x64x128xf32>
    %440 = vector.shape_cast %439 : vector<1x64x128xf32> to vector<64x128xf32>
    %441 = vector.shape_cast %438 : vector<64x128xf32> to vector<1x64x128xf32>
    tpu.vector_store %arg24[%c0_226, %c0_227, %c0_228], %441 {strides = array<i32>} : memref<1x64x128xf32, #tpu.memory_space<vmem>>, vector<1x64x128xf32>,
    return
  }
  func.func @transform_0(%arg0: i32) -> (i32, i32, i32) {
    %c0_i32 = arith.constant 0 : i32
    %c0_i32_0 = arith.constant 0 : i32
    %c0_i32_1 = arith.constant 0 : i32
    return %arg0, %c0_i32, %c0_i32_0 : i32, i32, i32
  }
  func.func @transform_1(%arg0: i32) -> (i32, i32) {
    %c0_i32 = arith.constant 0 : i32
    %c0_i32_0 = arith.constant 0 : i32
    %c0_i32_1 = arith.constant 0 : i32
    return %c0_i32, %c0_i32_0 : i32, i32
  }
  func.func @transform_2(%arg0: i32) -> (i32, i32) {
    %c0_i32 = arith.constant 0 : i32
    %c0_i32_0 = arith.constant 0 : i32
    %c0_i32_1 = arith.constant 0 : i32
    return %c0_i32, %c0_i32_0 : i32, i32
  }
  func.func @transform_3(%arg0: i32) -> (i32, i32) {
    %c0_i32 = arith.constant 0 : i32
    %c0_i32_0 = arith.constant 0 : i32
    %c0_i32_1 = arith.constant 0 : i32
    return %c0_i32, %c0_i32_0 : i32, i32
  }
  func.func @transform_4(%arg0: i32) -> (i32, i32, i32) {
    %c0_i32 = arith.constant 0 : i32
    %c0_i32_0 = arith.constant 0 : i32
    %c0_i32_1 = arith.constant 0 : i32
    %c0_i32_2 = arith.constant 0 : i32
    return %c0_i32, %c0_i32_0, %c0_i32_1 : i32, i32, i32
  }
  func.func @transform_5(%arg0: i32) -> (i32, i32, i32) {
    %c0_i32 = arith.constant 0 : i32
    %c0_i32_0 = arith.constant 0 : i32
    %c0_i32_1 = arith.constant 0 : i32
    %c0_i32_2 = arith.constant 0 : i32
    return %c0_i32, %c0_i32_0, %c0_i32_1 : i32, i32, i32
  }
  func.func @transform_6(%arg0: i32) -> (i32, i32, i32) {
    %c0_i32 = arith.constant 0 : i32
    %c0_i32_0 = arith.constant 0 : i32
    %c0_i32_1 = arith.constant 0 : i32
    %c0_i32_2 = arith.constant 0 : i32
    return %c0_i32, %c0_i32_0, %c0_i32_1 : i32, i32, i32
  }
  func.func @transform_7(%arg0: i32) -> (i32, i32, i32) {
    %c0_i32 = arith.constant 0 : i32
    %c0_i32_0 = arith.constant 0 : i32
    %c0_i32_1 = arith.constant 0 : i32
    %c0_i32_2 = arith.constant 0 : i32
    return %c0_i32, %c0_i32_0, %c0_i32_1 : i32, i32, i32
  }
  func.func @transform_8(%arg0: i32) -> (i32, i32, i32) {
    %c0_i32 = arith.constant 0 : i32
    %c0_i32_0 = arith.constant 0 : i32
    %c0_i32_1 = arith.constant 0 : i32
    %c0_i32_2 = arith.constant 0 : i32
    return %c0_i32, %c0_i32_0, %c0_i32_1 : i32, i32, i32
  }
  func.func @transform_9(%arg0: i32) -> (i32, i32, i32) {
    %c0_i32 = arith.constant 0 : i32
    %c0_i32_0 = arith.constant 0 : i32
    %c0_i32_1 = arith.constant 0 : i32
    %c0_i32_2 = arith.constant 0 : i32
    return %c0_i32, %c0_i32_0, %c0_i32_1 : i32, i32, i32
  }
  func.func @transform_10(%arg0: i32) -> (i32, i32, i32) {
    %c0_i32 = arith.constant 0 : i32
    %c0_i32_0 = arith.constant 0 : i32
    %c0_i32_1 = arith.constant 0 : i32
    %c0_i32_2 = arith.constant 0 : i32
    return %c0_i32, %c0_i32_0, %c0_i32_1 : i32, i32, i32
  }
  func.func @transform_11(%arg0: i32) -> (i32, i32, i32) {
    %c0_i32 = arith.constant 0 : i32
    %c0_i32_0 = arith.constant 0 : i32
    %c0_i32_1 = arith.constant 0 : i32
    %c0_i32_2 = arith.constant 0 : i32
    return %c0_i32, %c0_i32_0, %c0_i32_1 : i32, i32, i32
  }
  func.func @transform_12(%arg0: i32) -> (i32, i32, i32) {
    %c0_i32 = arith.constant 0 : i32
    %c0_i32_0 = arith.constant 0 : i32
    %c0_i32_1 = arith.constant 0 : i32
    %c0_i32_2 = arith.constant 0 : i32
    return %c0_i32, %c0_i32_0, %c0_i32_1 : i32, i32, i32
  }
  func.func @transform_13(%arg0: i32) -> (i32, i32, i32) {
    %c0_i32 = arith.constant 0 : i32
    %c0_i32_0 = arith.constant 0 : i32
    %c0_i32_1 = arith.constant 0 : i32
    %c0_i32_2 = arith.constant 0 : i32
    return %c0_i32, %c0_i32_0, %c0_i32_1 : i32, i32, i32
  }
  func.func @transform_14(%arg0: i32) -> (i32, i32, i32) {
    %c0_i32 = arith.constant 0 : i32
    %c0_i32_0 = arith.constant 0 : i32
    %c0_i32_1 = arith.constant 0 : i32
    %c0_i32_2 = arith.constant 0 : i32
    return %c0_i32, %c0_i32_0, %c0_i32_1 : i32, i32, i32
  }
  func.func @transform_15(%arg0: i32) -> (i32, i32, i32) {
    %c0_i32 = arith.constant 0 : i32
    %c0_i32_0 = arith.constant 0 : i32
    %c0_i32_1 = arith.constant 0 : i32
    %c0_i32_2 = arith.constant 0 : i32
    return %c0_i32, %c0_i32_0, %c0_i32_1 : i32, i32, i32
  }
  func.func @transform_16(%arg0: i32) -> (i32, i32) {
    %c0_i32 = arith.constant 0 : i32
    %c0_i32_0 = arith.constant 0 : i32
    %c0_i32_1 = arith.constant 0 : i32
    return %c0_i32, %c0_i32_0 : i32, i32
  }
  func.func @transform_17(%arg0: i32) -> (i32, i32) {
    %c0_i32 = arith.constant 0 : i32
    %c0_i32_0 = arith.constant 0 : i32
    %c0_i32_1 = arith.constant 0 : i32
    return %c0_i32, %c0_i32_0 : i32, i32
  }
  func.func @transform_18(%arg0: i32) -> (i32, i32) {
    %c0_i32 = arith.constant 0 : i32
    %c0_i32_0 = arith.constant 0 : i32
    %c0_i32_1 = arith.constant 0 : i32
    return %c0_i32, %c0_i32_0 : i32, i32
  }
  func.func @transform_19(%arg0: i32) -> (i32, i32, i32) {
    %c0_i32 = arith.constant 0 : i32
    %c0_i32_0 = arith.constant 0 : i32
    %c0_i32_1 = arith.constant 0 : i32
    %c0_i32_2 = arith.constant 0 : i32
    return %c0_i32, %c0_i32_0, %c0_i32_1 : i32, i32, i32
  }
  func.func @transform_20(%arg0: i32) -> (i32, i32, i32) {
    %c0_i32 = arith.constant 0 : i32
    %c0_i32_0 = arith.constant 0 : i32
    %c0_i32_1 = arith.constant 0 : i32
    %c0_i32_2 = arith.constant 0 : i32
    return %c0_i32, %c0_i32_0, %c0_i32_1 : i32, i32, i32
  }
  func.func @transform_21(%arg0: i32) -> (i32, i32) {
    %c0_i32 = arith.constant 0 : i32
    %c0_i32_0 = arith.constant 0 : i32
    %c0_i32_1 = arith.constant 0 : i32
    return %c0_i32, %c0_i32_0 : i32, i32
  }
  func.func @transform_22(%arg0: i32) -> (i32, i32) {
    %c0_i32 = arith.constant 0 : i32
    %c0_i32_0 = arith.constant 0 : i32
    %c0_i32_1 = arith.constant 0 : i32
    return %c0_i32, %c0_i32_0 : i32, i32
  }
  func.func @transform_23(%arg0: i32) -> (i32, i32, i32) {
    %c0_i32 = arith.constant 0 : i32
    %c0_i32_0 = arith.constant 0 : i32
    %c0_i32_1 = arith.constant 0 : i32
    return %arg0, %c0_i32, %c0_i32_0 : i32, i32, i32
  }
}

</mosaic_0001>

<bundles_post_ra>
// kernel: encoder_forward.1
= control target key start
LH: loop header
LB: loop body
LE: loop exit
PB: predicated region body
PF: predicated region fallthrough
CT: control target
= control target key end

     0   :  { %s14312_s0 = inlined_call_operand.vmem [shape: f32[4,64,192], index: 0, kind: input, shape index: {}]   ;;  %s14313_s1 = inlined_call_operand.vmem [shape: bf16[192,128], index: 1, kind: input, shape index: {}]   ;;  %s14314_s2 = inlined_call_operand.vmem [shape: f32[1,128], index: 2, kind: input, shape index: {}]   ;;  %s14315_s3 = inlined_call_operand.vmem [shape: f32[64,128], index: 3, kind: input, shape index: {}]   ;;  %s14316_s4 = inlined_call_operand.vmem [shape: f32[2,1,128], index: 4, kind: input, shape index: {}, may-alias: {4,10}]   ;;  %s14317_s5 = inlined_call_operand.vmem [shape: f32[2,1,128], index: 5, kind: input, shape index: {}, may-alias: {5,11}]   ;;  %s14318_s6 = inlined_call_operand.vmem [shape: bf16[2,128,384], index: 6, kind: input, shape index: {}]   ;;  %s14319_s7 = inlined_call_operand.vmem [shape: f32[2,1,384], index: 7, kind: input, shape index: {}]   ;;  %s14320_s8 = inlined_call_operand.vmem [shape: bf16[2,128,128], index: 8, kind: input, shape index: {}]   ;;  %s14321_s9 = inlined_call_operand.vmem [shape: f32[2,1,128], index: 9, kind: input, shape index: {}]   ;;  %s14322_s10 = inlined_call_operand.vmem [shape: f32[2,1,128], index: 10, kind: input, shape index: {}, may-alias: {4,10}]   ;;  %s14323_s11 = inlined_call_operand.vmem [shape: f32[2,1,128], index: 11, kind: input, shape index: {}, may-alias: {5,11}]   ;;  %s14324_s12 = inlined_call_operand.vmem [shape: bf16[2,128,512], index: 12, kind: input, shape index: {}]   ;;  %s14325_s13 = inlined_call_operand.vmem [shape: f32[2,1,512], index: 13, kind: input, shape index: {}]   ;;  %s14326_s14 = inlined_call_operand.vmem [shape: bf16[2,512,128], index: 14, kind: input, shape index: {}]   ;;  %s14327_s15 = inlined_call_operand.vmem [shape: f32[2,1,128], index: 15, kind: input, shape index: {}]   ;;  %s14328_s16 = inlined_call_operand.vmem [shape: bf16[128,128], index: 16, kind: input, shape index: {}]   ;;  %s14329_s17 = inlined_call_operand.vmem [shape: f32[1,128], index: 17, kind: input, shape index: {}, may-alias: {17,21}]   ;;  %s14330_s18 = inlined_call_operand.vmem [shape: f32[1,128], index: 18, kind: input, shape index: {}, may-alias: {18,22}]   ;;  %s14331_s19 = inlined_call_operand.vmem [shape: bf16[9,64,64], index: 19, kind: input, shape index: {}]   ;;  %s14332_s20 = inlined_call_operand.vmem [shape: bf16[9,128,128], index: 20, kind: input, shape index: {}]   ;;  %s14333_s21 = inlined_call_operand.vmem [shape: f32[1,128], index: 21, kind: input, shape index: {}, may-alias: {17,21}]   ;;  %s14334_s22 = inlined_call_operand.vmem [shape: f32[1,128], index: 22, kind: input, shape index: {}, may-alias: {18,22}]   ;;  %s14335_s23 = inlined_call_operand.vmem [shape: f32[4,64,128], index: 23, kind: output, shape index: {}]  }
   0x1   :  { %14380 = sst [smem:[#allocation18_spill]] %s14312_s0 }
   0x2   :  { %14381 = sst [smem:[#allocation19_spill]] %s14313_s1 }
   0x3   :  { %14382 = sst [smem:[#allocation20_spill]] %s14314_s2 }
   0x4   :  { %14383 = sst [smem:[#allocation21_spill]] %s14315_s3 }
   0x5   :  { %14384 = sst [smem:[#allocation22_spill]] %s14316_s4  ;;  %s11344_s4 = smov 0  }
   0x6   :  { %14385 = sst [smem:[#allocation23_spill]] %s14317_s5 }
   0x7   :  { %14386 = sst [smem:[#allocation24_spill]] %s14318_s6 }
   0x8   :  { %14387 = sst [smem:[#allocation25_spill]] %s14319_s7 }
   0x9   :  { %14388 = sst [smem:[#allocation26_spill]] %s14335_s23 }
   0xa LB: > { %14389 = sst [smem:[#allocation2_spill]] %s11220_s4  ;;  %s8510_s30 = sadd.s32 4294967295, %s11220_s4   ;;  %s11220_s4 = sphi %s11344_s4, %s33_s4  }
   0xb   : > { %p8514_p0 = scmp.ge.s32.totalorder %s11220_s4, 1  ;;  %p637_p1 = scmp.lt.s32.totalorder %s11220_s4, 5 }
   0xd   : > { %p638_p2 = pnand %p8514_p0, %p637_p1 }
   0xf   : > { %641 = sbr.rel (%p638_p2) target bundleno = 7831 (0x1e97), region = 112 }
  0x16   : > { %s14390_s5 = sld [smem:[#allocation19_spill]]  ;;  %v14348_v1 = vmov 0   ;;  %p701_p3 = scmp.lt.s32.totalorder %s8510_s30, 3  ;;  %vm839_vm0 = vcmask 523264  }
  0x17   : > { %852 = vmatprep.subr.bf16.mxu0 %v14348_v1  ;;  %1265 = vmatprep.mubr.bf16.mxu1 %v14348_v1  ;;  %s14391_s29 = sld [smem:[#allocation18_spill]]  ;;  %s14392_s28 = sld [smem:[#allocation20_spill]] }
  0x18   : > { %s14462_s30 = smov (!%p701_p3, %s8510_s30), 3  ;;  %s14393_s24 = sld [smem:[#allocation21_spill]] }
  0x19   : > { %s9290_s27 = sshll.u32 %s14462_s30, 7  ;;  %s14394_s6 = sld [smem:[#allocation24_spill]] }
  0x1a   : > { %s14395_s0 = sld [smem:[#allocation22_spill]]  ;;  %s14396_s1 = sld [smem:[#allocation23_spill]] }
  0x1b   : > { %s14399_s26 = sld [smem:[#allocation25_spill]]  ;;  %s14342_s2 = smov 64  }
  0x1c   : > { %v10494_v0 = vld [vmem:[%s14390_s5] sm:$0xff]   ;;  %v10495_v2 = vld [vmem:[%s14390_s5 + $0x8] sm:$0xff]   ;;  %v10496_v3 = vld [vmem:[%s14390_s5 + $0x10] sm:$0xff]   ;;  %s14459_s23 = sld [smem:[#allocation26_spill]] }
  0x1d   : > { %853 = vmatpush1.bf16.msra.mxu0 %v10494_v0  ;;  %s11371_s3 = scalar_lea.vmem %s14391_s29, %s9290_s27  ;;  %v10497_v4 = vld [vmem:[%s14390_s5 + $0x18] sm:$0xff]   ;;  %v10498_v8 = vld [vmem:[%s14390_s5 + $0x20] sm:$0xff]   ;;  %v10499_v9 = vld [vmem:[%s14390_s5 + $0x28] sm:$0xff]   ;;  %s14430_s29 = smov 64  }
  0x1e   : > { %854 = vmatprep.subr.bf16.mxu0 %v14348_v1  ;;  %v713_v5 = vld [vmem:[%s11371_s3 + $0x8] sm:$0xff]  ;;  %v715_v6 = vld [vmem:[%s11371_s3 + $0x18] sm:$0xff]  ;;  %v10500_v10 = vld [vmem:[%s14390_s5 + $0x30] sm:$0xff]   ;;  %s9291_s27 = sshll.u32 %s14462_s30, 6 }
  0x1f   : > { %v729_v7 = vpack.c.bf16 %v715_v6, %v713_v5  ;;  %v10501_v11 = vld [vmem:[%s14390_s5 + $0x38] sm:$0xff]   ;;  %v10502_v12 = vld [vmem:[%s14390_s5 + $0x40] sm:$0xff]   ;;  %v10503_v13 = vld [vmem:[%s14390_s5 + $0x48] sm:$0xff]  }
  0x20   : > { %v10504_v14 = vld [vmem:[%s14390_s5 + $0x50] sm:$0xff]   ;;  %v10505_v15 = vld [vmem:[%s14390_s5 + $0x58] sm:$0xff]   ;;  %v712_v16 = vld [vmem:[%s11371_s3] sm:$0xff] }
  0x21   : > { %855 = vmatpush1.bf16.msra.mxu0 %v10495_v2  ;;  %8532 = vmatprep.mubr.msk.bf16.mxu0 %vm839_vm0, %v729_v7  ;;  %v714_v17 = vld [vmem:[%s11371_s3 + $0x10] sm:$0xff]  ;;  %v717_v18 = vld [vmem:[%s11371_s3 + $0x28] sm:$0xff]  ;;  %v719_v19 = vld [vmem:[%s11371_s3 + $0x38] sm:$0xff] }
  0x22   : > { %856 = vmatprep.subr.bf16.mxu0 %v14348_v1  ;;  %v728_v20 = vpack.c.bf16 %v714_v17, %v712_v16  ;;  %v731_v21 = vpack.c.bf16 %v719_v19, %v717_v18  ;;  %v716_v22 = vld [vmem:[%s11371_s3 + $0x20] sm:$0xff]  ;;  %v718_v23 = vld [vmem:[%s11371_s3 + $0x30] sm:$0xff]  ;;  %v721_v24 = vld [vmem:[%s11371_s3 + $0x48] sm:$0xff]  ;;  %s14293_s30 = scalar_lea.vmem %s14459_s23, %s9291_s27 }
  0x23   : > { %v723_v25 = vld [vmem:[%s11371_s3 + $0x58] sm:$0xff]  ;;  %v730_v26 = vpack.c.bf16 %v718_v23, %v716_v22  ;;  %v720_v28 = vld [vmem:[%s11371_s3 + $0x40] sm:$0xff]  ;;  %v722_v29 = vld [vmem:[%s11371_s3 + $0x50] sm:$0xff] }
  0x24   : > { %v733_v27 = vpack.c.bf16 %v723_v25, %v721_v24  ;;  %v725_v30 = vld [vmem:[%s11371_s3 + $0x68] sm:$0xff]  ;;  %v727_v31 = vld [vmem:[%s11371_s3 + $0x78] sm:$0xff]  ;;  %v732_v32 = vpack.c.bf16 %v722_v29, %v720_v28  ;;  %v724_v34 = vld [vmem:[%s11371_s3 + $0x60] sm:$0xff] }
  0x25   : > { %857 = vmatpush1.bf16.msra.mxu0 %v10496_v3  ;;  %v735_v33 = vpack.c.bf16 %v727_v31, %v725_v30  ;;  %v726_v35 = vld [vmem:[%s11371_s3 + $0x70] sm:$0xff]  ;;  %v8519_v37 = vld [vmem:[%s14392_s28] ss:$0 sm:$0xff]  ;;  %v918_v46 = vld [vmem:[%s14393_s24 + $0x8] sm:$0xff] }
  0x26   : > { %858 = vmatprep.subr.bf16.mxu0 %v14348_v1  ;;  %v734_v36 = vpack.c.bf16 %v726_v35, %v724_v34  ;;  %v917_v39 = vld [vmem:[%s14393_s24] sm:$0xff]  ;;  %v919_v49 = vld [vmem:[%s14393_s24 + $0x10] sm:$0xff]  ;;  %v920_v56 = vld [vmem:[%s14393_s24 + $0x18] sm:$0xff] }
  0x27   : > { %v921_v59 = vld [vmem:[%s14393_s24 + $0x20] sm:$0xff]  ;;  %v922_v63 = vld [vmem:[%s14393_s24 + $0x28] sm:$0xff]  ;;  %v923_v6 = vld [vmem:[%s14393_s24 + $0x30] sm:$0xff] }
  0x28   : > { %v10508_v16 = vld [vmem:[%s14394_s6] ss:$12 sps:$4 sm:$0xff]   ;;  %v10509_v17 = vld [vmem:[%s14394_s6 + $0x1c] ss:$12 sps:$4 sm:$0xff]  }
  0x29   : > { %859 = vmatpush1.bf16.msra.mxu0 %v10497_v4 }
  0x2a   : > { %860 = vmatprep.subr.bf16.mxu0 %v14348_v1 }
  0x2d   : > { %861 = vmatpush1.bf16.msra.mxu0 %v10498_v8 }
  0x2e   : > { %862 = vmatprep.subr.bf16.mxu0 %v14348_v1 }
  0x31   : > { %863 = vmatpush1.bf16.msra.mxu0 %v10499_v9 }
  0x32   : > { %864 = vmatprep.subr.bf16.mxu0 %v14348_v1 }
  0x35   : > { %865 = vmatpush1.bf16.msra.mxu0 %v10500_v10  ;;  %v924_v10 = vld [vmem:[%s14393_s24 + $0x38] sm:$0xff] }
  0x36   : > { %866 = vmatprep.subr.bf16.mxu0 %v14348_v1 }
  0x39   : > { %867 = vmatpush1.bf16.msra.mxu0 %v10501_v11 }
  0x3a   : > { %868 = vmatprep.subr.bf16.mxu0 %v14348_v1 }
  0x3d   : > { %869 = vmatpush1.bf16.msra.mxu0 %v10502_v12 }
  0x3e   : > { %870 = vmatprep.subr.bf16.mxu0 %v14348_v1 }
  0x41   : > { %871 = vmatpush1.bf16.msra.mxu0 %v10503_v13 }
  0x42   : > { %872 = vmatprep.subr.bf16.mxu0 %v14348_v1 }
  0x45   : > { %873 = vmatpush1.bf16.msra.mxu0 %v10504_v14 }
  0x46   : > { %874 = vmatprep.subr.bf16.mxu0 %v14348_v1 }
  0x49   : > { %875 = vmatpush1.bf16.msra.mxu0 %v10505_v15  ;;  %v10506_v15 = vld [vmem:[%s14394_s6 + $0x4] ss:$12 sps:$4 sm:$0xff]  }
  0x4a   : > { %1233 = vmatprep.subr.bf16.mxu1 %v10506_v15 }
  0x4b   : > { %1234 = vmatpush1.bf16.msra.mxu1 %v10508_v16 }
  0x4c   : > { %885 = vmatmul.mubr.bf16.vlgmr.msra.gmra.mrb[0].mxu0 %v728_v20  ;;  %1235 = vmatprep.subr.bf16.mxu1 %v10509_v17 }
  0x4d   : > { %8533 = vmatprep.mubr.msk.bf16.mxu0 %vm839_vm0, %v731_v21 }
  0x54   : > { %893 = vmatmul.mubr.bf16.gmra.mrb[4].mxu0 %v730_v26 }
  0x55   : > { %8534 = vmatprep.mubr.msk.bf16.mxu0 %vm839_vm0, %v733_v27 }
  0x5c   : > { %901 = vmatmul.mubr.bf16.gmra.mrb[8].mxu0 %v732_v32 }
  0x5d   : > { %8535 = vmatprep.mubr.msk.bf16.mxu0 %vm839_vm0, %v735_v33 }
  0x64   : > { %909 = vmatmul.mubr.bf16.gmra.mrb[12].mxu0 %v734_v36 }
 0x11f   : > { %v886_v38 = vpop.f32.mrb[0].mxu0 }
 0x120   : > { %v887_v40 = vadd.f32 %v8519_v37, %v886_v38  ;;  %v888_v41 = vpop.f32.mrb[1].mxu0 }
 0x121   : > { %v889_v42 = vpop.f32.mrb[2].mxu0 }
 0x122   : > { %v11435_v43 = vadd.f32 %v917_v39, %v887_v40  ;;  %v890_v44 = vadd.f32 %v8519_v37, %v889_v42  ;;  %v891_v45 = vpop.f32.mrb[3].mxu0  ;;  %v10511_v39 = vld [vmem:[%s14394_s6 + $0x18] ss:$12 sps:$4 sm:$0xff]   ;;  %v10512_v42 = vld [vmem:[%s14394_s6 + $0x34] ss:$12 sps:$4 sm:$0xff]  }
 0x123   : > { %1236 = vmatpush1.bf16.msra.mxu1 %v10511_v39  ;;  %v10514_v45 = vld [vmem:[%s14394_s6 + $0x30] ss:$12 sps:$4 sm:$0xff]  }
 0x124   : > { %935 = vadd.xlane.f32.xlu0 %v11435_v43  ;;  %v11441_v47 = vadd.f32 %v918_v46, %v890_v44  ;;  %1237 = vmatprep.subr.bf16.mxu1 %v10512_v42 }
 0x127   : > { %v894_v48 = vpop.f32.mrb[4].mxu0  ;;  %1238 = vmatpush1.bf16.msra.mxu1 %v10514_v45 }
 0x128   : > { %v895_v50 = vadd.f32 %v8519_v37, %v894_v48  ;;  %v896_v51 = vpop.f32.mrb[5].mxu0  ;;  %937 = vadd.xlane.f32.xlu0 %v11441_v47 }
 0x129   : > { %v897_v52 = vpop.f32.mrb[6].mxu0 }
 0x12a   : > { %v11447_v53 = vadd.f32 %v919_v49, %v895_v50  ;;  %v898_v54 = vadd.f32 %v8519_v37, %v897_v52  ;;  %v899_v55 = vpop.f32.mrb[7].mxu0  ;;  %v10515_v50 = vld [vmem:[%s14394_s6 + $0x4c] ss:$12 sps:$4 sm:$0xff]  }
 0x12b   : > { %1239 = vmatprep.subr.bf16.mxu1 %v10515_v50 }
 0x12c   : > { %939 = vadd.xlane.f32.xlu1 %v11447_v53  ;;  %v11453_v57 = vadd.f32 %v920_v56, %v898_v54  ;;  %v10517_v54 = vld [vmem:[%s14394_s6 + $0x48] ss:$12 sps:$4 sm:$0xff]  }
 0x12d   : > { %1240 = vmatpush1.bf16.msra.mxu1 %v10517_v54 }
 0x12f   : > { %v902_v58 = vpop.f32.mrb[8].mxu0 }
 0x130   : > { %v903_v60 = vadd.f32 %v8519_v37, %v902_v58  ;;  %v904_v61 = vpop.f32.mrb[9].mxu0  ;;  %941 = vadd.xlane.f32.xlu1 %v11453_v57  ;;  %v10518_v58 = vld [vmem:[%s14394_s6 + $0x64] ss:$12 sps:$4 sm:$0xff]  }
 0x131   : > { %v905_v62 = vpop.f32.mrb[10].mxu0  ;;  %1241 = vmatprep.subr.bf16.mxu1 %v10518_v58  ;;  %v10521_v61 = vld [vmem:[%s14394_s6 + $0x7c] ss:$12 sps:$4 sm:$0xff]  }
 0x132   : > { %v11462_v0 = vadd.f32 %v921_v59, %v903_v60  ;;  %v906_v2 = vadd.f32 %v8519_v37, %v905_v62  ;;  %v907_v3 = vpop.f32.mrb[11].mxu0  ;;  %v10520_v60 = vld [vmem:[%s14394_s6 + $0x60] ss:$12 sps:$4 sm:$0xff]   ;;  %v10523_v62 = vld [vmem:[%s14394_s6 + $0x78] ss:$12 sps:$4 sm:$0xff]  }
 0x133   : > { %1242 = vmatpush1.bf16.msra.mxu1 %v10520_v60  ;;  %v10527_v3 = vld [vmem:[%s14394_s6 + $0xac] ss:$12 sps:$4 sm:$0xff]  }
 0x134   : > { %v11464_v4 = vadd.f32 %v922_v63, %v906_v2  ;;  %943 = vadd.xlane.f32.xlu0 %v11462_v0  ;;  %1243 = vmatprep.subr.bf16.mxu1 %v10521_v61  ;;  %v10524_v63 = vld [vmem:[%s14394_s6 + $0x94] ss:$12 sps:$4 sm:$0xff]   ;;  %v10526_v2 = vld [vmem:[%s14394_s6 + $0x90] ss:$12 sps:$4 sm:$0xff]   ;;  %v10532_v60 = vld [vmem:[%s14394_s6 + $0x38] ss:$12 sps:$4 sm:$0xff]  }
 0x136   : > { %945 = vadd.xlane.f32.xlu1 %v11464_v4 }
 0x137   : > { %v910_v5 = vpop.f32.mrb[12].mxu0  ;;  %1244 = vmatpush1.bf16.msra.mxu1 %v10523_v62 }
 0x138   : > { %v911_v7 = vadd.f32 %v8519_v37, %v910_v5  ;;  %v912_v8 = vpop.f32.mrb[13].mxu0  ;;  %1245 = vmatprep.subr.bf16.mxu1 %v10524_v63  ;;  %v10529_v5 = vld [vmem:[%s14394_s6 + $0xa8] ss:$12 sps:$4 sm:$0xff]  }
 0x139   : > { %v913_v9 = vpop.f32.mrb[14].mxu0 }
 0x13a   : > { %v11474_v11 = vadd.f32 %v923_v6, %v911_v7  ;;  %v914_v12 = vadd.f32 %v8519_v37, %v913_v9  ;;  %v915_v13 = vpop.f32.mrb[15].mxu0  ;;  %v10530_v6 = vld [vmem:[%s14394_s6 + $0x8] ss:$12 sps:$4 sm:$0xff]  }
 0x13b   : > { %1246 = vmatpush1.bf16.msra.mxu1 %v10526_v2 }
 0x13c   : > { %v11476_v14 = vadd.f32 %v924_v10, %v914_v12  ;;  %947 = vadd.xlane.f32.xlu0 %v11474_v11  ;;  %1247 = vmatprep.subr.bf16.mxu1 %v10527_v3 }
 0x13e   : > { %949 = vadd.xlane.f32.xlu1 %v11476_v14 }
 0x13f   : > { %1248 = vmatpush1.bf16.msra.mxu1 %v10529_v5  ;;  %v10533_v5 = vld [vmem:[%s14394_s6 + $0x50] ss:$12 sps:$4 sm:$0xff]  }
 0x140   : > { %9764 = vmatprep.subr.bf16.mxu1 %v10530_v6 }
 0x1b1   : > { %v936_v18 = vpop.xlane.xlu0 %935 }
 0x1b2   : > { %v952_v19 = vmul.f32 0.0078125, %v936_v18 }
 0x1b4   : > { %v11490_v20 = vsub.f32 %v11435_v43, %v952_v19 }
 0x1b5   : > { %v938_v21 = vpop.xlane.xlu0 %937 }
 0x1b6   : > { %v953_v22 = vmul.f32 0.0078125, %v938_v21  ;;  %v968_v23 = vmul.f32 %v11490_v20, %v11490_v20 }
 0x1b8   : > { %976 = vadd.xlane.f32.xlu0 %v968_v23  ;;  %v11495_v24 = vsub.f32 %v11441_v47, %v953_v22 }
 0x1b9   : > { %v940_v25 = vpop.xlane.xlu1 %939 }
 0x1ba   : > { %v954_v26 = vmul.f32 0.0078125, %v940_v25  ;;  %v969_v27 = vmul.f32 %v11495_v24, %v11495_v24 }
 0x1bc   : > { %978 = vadd.xlane.f32.xlu1 %v969_v27  ;;  %v11500_v28 = vsub.f32 %v11447_v53, %v954_v26  ;;  %v11575_v27 = vld [vmem:[%s14395_s0] ss:$0 sm:$0xff] }
 0x1bd   : > { %v942_v29 = vpop.xlane.xlu1 %941 }
 0x1be   : > { %v955_v30 = vmul.f32 0.0078125, %v942_v29  ;;  %v970_v31 = vmul.f32 %v11500_v28, %v11500_v28 }
 0x1c0   : > { %980 = vadd.xlane.f32.xlu0 %v970_v31  ;;  %v11505_v32 = vsub.f32 %v11453_v57, %v955_v30 }
 0x1c1   : > { %v944_v33 = vpop.xlane.xlu0 %943 }
 0x1c2   : > { %v956_v34 = vmul.f32 0.0078125, %v944_v33  ;;  %v971_v35 = vmul.f32 %v11505_v32, %v11505_v32 }
 0x1c3   : > { %v946_v36 = vpop.xlane.xlu1 %945 }
 0x1c4   : > { %v957_v37 = vmul.f32 0.0078125, %v946_v36  ;;  %982 = vadd.xlane.f32.xlu1 %v971_v35  ;;  %v11510_v38 = vsub.f32 %v11462_v0, %v956_v34 }
 0x1c6   : > { %v972_v40 = vmul.f32 %v11510_v38, %v11510_v38  ;;  %v11518_v41 = vsub.f32 %v11464_v4, %v957_v37 }
 0x1c8   : > { %984 = vadd.xlane.f32.xlu0 %v972_v40  ;;  %v973_v44 = vmul.f32 %v11518_v41, %v11518_v41 }
 0x1c9   : > { %v948_v46 = vpop.xlane.xlu0 %947 }
 0x1ca   : > { %v958_v48 = vmul.f32 0.0078125, %v948_v46  ;;  %986 = vadd.xlane.f32.xlu1 %v973_v44 }
 0x1cb   : > { %v950_v49 = vpop.xlane.xlu1 %949 }
 0x1cc   : > { %v959_v51 = vmul.f32 0.0078125, %v950_v49  ;;  %v11532_v52 = vsub.f32 %v11474_v11, %v958_v48  ;;  %v10531_v49 = vld [vmem:[%s14394_s6 + $0x20] ss:$12 sps:$4 sm:$0xff]  }
 0x1ce   : > { %v974_v55 = vmul.f32 %v11532_v52, %v11532_v52  ;;  %v11540_v56 = vsub.f32 %v11476_v14, %v959_v51 }
 0x1d0   : > { %988 = vadd.xlane.f32.xlu0 %v974_v55  ;;  %v975_v59 = vmul.f32 %v11540_v56, %v11540_v56 }
 0x1d2   : > { %990 = vadd.xlane.f32.xlu1 %v975_v59 }
 0x245   : > { %v977_v7 = vpop.xlane.xlu0 %976 }
 0x246   : > { %v992_v8 = vmul.f32 0.0078125, %v977_v7 }
 0x248   : > { %v1000_v9 = vadd.f32 1e-06, %v992_v8 }
 0x249   : > { %v979_v10 = vpop.xlane.xlu1 %978 }
 0x24a   : > { %10862 = vrsqrt.f32 %v1000_v9  ;;  %v993_v12 = vmul.f32 0.0078125, %v979_v10  ;;  %v10534_v9 = vld [vmem:[%s14394_s6 + $0x68] ss:$12 sps:$4 sm:$0xff]  }
 0x24c   : > { %v1001_v13 = vadd.f32 1e-06, %v993_v12 }
 0x24d   : > { %v981_v15 = vpop.xlane.xlu0 %980 }
 0x24e   : > { %10864 = vrsqrt.f32 %v1001_v13  ;;  %v994_v16 = vmul.f32 0.0078125, %v981_v15 }
 0x250   : > { %v1002_v17 = vadd.f32 1e-06, %v994_v16  ;;  %v10535_v16 = vld [vmem:[%s14394_s6 + $0x80] ss:$12 sps:$4 sm:$0xff]  }
 0x251   : > { %v983_v18 = vpop.xlane.xlu1 %982 }
 0x252   : > { %10866 = vrsqrt.f32 %v1002_v17  ;;  %v995_v19 = vmul.f32 0.0078125, %v983_v18 }
 0x254   : > { %v10863_v21 = vpop.eup %10862  ;;  %v1003_v22 = vadd.f32 1e-06, %v995_v19 }
 0x255   : > { %v985_v23 = vpop.xlane.xlu0 %984  ;;  %v1016_v25 = vmul.f32 %v10863_v21, %v11490_v20  ;;  %v8537_v20 = vld [vmem:[%s14396_s1] ss:$0 sm:$0xff]  ;;  %v10536_v21 = vld [vmem:[%s14394_s6 + $0x98] ss:$12 sps:$4 sm:$0xff]  }
 0x256   : > { %10868 = vrsqrt.f32 %v1003_v22  ;;  %v996_v26 = vmul.f32 0.0078125, %v985_v23 }
 0x257   : > { %v987_v29 = vpop.xlane.xlu1 %986  ;;  %v1030_v35 = vmul.f32 %v11575_v27, %v1016_v25  ;;  %v1090_v25 = vlaneseq }
 0x258   : > { %v10865_v30 = vpop.eup %10864  ;;  %v1004_v31 = vadd.f32 1e-06, %v996_v26  ;;  %v997_v33 = vmul.f32 0.0078125, %v987_v29  ;;  %v1088_v29 = vld [vmem:[%s14399_s26] sm:$0x7] }
 0x259   : > { %v1017_v34 = vmul.f32 %v10865_v30, %v11495_v24  ;;  %v1044_v42 = vadd.f32 %v8537_v20, %v1030_v35  ;;  %v11619_v26 = vshrl.u32 %v1090_v25, 7 }
 0x25a   : > { %10870 = vrsqrt.f32 %v1004_v31  ;;  %v1005_v36 = vadd.f32 1e-06, %v997_v33 }
 0x25b   : > { %v1031_v37 = vmul.f32 %v11575_v27, %v1017_v34  ;;  %14397 = vst [vmem:[#allocation3_spill] sm:$0xff] %v11619_v26  ;;  %v11628_v30 = vsub.s32 1, %v11619_v26 }
 0x25c   : > { %v10867_v39 = vpop.eup %10866  ;;  %10872 = vrsqrt.f32 %v1005_v36 }
 0x25d   : > { %v989_v40 = vpop.xlane.xlu0 %988  ;;  %v1045_v44 = vadd.f32 %v8537_v20, %v1031_v37  ;;  %v1018_v45 = vmul.f32 %v10867_v39, %v11500_v28  ;;  %14400 = vst [vmem:[#allocation5_spill] sm:$0xff] %v11628_v30  ;;  %v1097_v34 = vrot.slane %v1088_v29, %v11628_v30 }
 0x25e   : > { %v998_v46 = vmul.f32 0.0078125, %v989_v40 }
 0x25f   : > { %v991_v48 = vpop.xlane.xlu1 %990  ;;  %v1052_v24 = vpack.c.bf16 %v1045_v44, %v1044_v42  ;;  %v1032_v58 = vmul.f32 %v11575_v27, %v1018_v45 }
 0x260   : > { %v10869_v50 = vpop.eup %10868  ;;  %v1006_v51 = vadd.f32 1e-06, %v998_v46  ;;  %v999_v54 = vmul.f32 0.0078125, %v991_v48 }
 0x261   : > { %1266 = vmatmul.mubr.bf16.vlgmr.msra.gmra.mrb[0].mxu1 %v1052_v24  ;;  %v1019_v55 = vmul.f32 %v10869_v50, %v11505_v32  ;;  %v1046_v62 = vadd.f32 %v8537_v20, %v1032_v58 }
 0x262   : > { %10874 = vrsqrt.f32 %v1006_v51  ;;  %v1007_v59 = vadd.f32 1e-06, %v999_v54  ;;  %9765 = vmatpush3.bf16.msra.mxu1 %v10530_v6  ;;  %1275 = vmatprep.mubr.bf16.mxu1 %v14348_v1 }
 0x263   : > { %9766 = vmatprep.subr.bf16.mxu1 %v10531_v49  ;;  %v1033_v28 = vmul.f32 %v11575_v27, %v1019_v55 }
 0x264   : > { %v10871_v61 = vpop.eup %10870  ;;  %10876 = vrsqrt.f32 %v1007_v59 }
 0x265   : > { %v1047_v63 = vadd.f32 %v8537_v20, %v1033_v28  ;;  %v1020_v32 = vmul.f32 %v10871_v61, %v11510_v38 }
 0x266   : > { %v10873_v2 = vpop.eup %10872  ;;  %9767 = vmatpush3.bf16.msra.mxu1 %v10531_v49 }
 0x267   : > { %v1053_v3 = vpack.c.bf16 %v1047_v63, %v1046_v62  ;;  %9768 = vmatprep.subr.bf16.mxu1 %v10532_v60  ;;  %v1021_v6 = vmul.f32 %v10873_v2, %v11518_v41  ;;  %v1034_v7 = vmul.f32 %v11575_v27, %v1020_v32 }
 0x269   : > { %1276 = vmatmul.mubr.bf16.gmra.mrb[4].mxu1 %v1053_v3  ;;  %v1035_v8 = vmul.f32 %v11575_v27, %v1021_v6  ;;  %v1048_v12 = vadd.f32 %v8537_v20, %v1034_v7 }
 0x26a   : > { %9769 = vmatpush3.bf16.msra.mxu1 %v10532_v60  ;;  %1285 = vmatprep.mubr.bf16.mxu1 %v14348_v1 }
 0x26b   : > { %9770 = vmatprep.subr.bf16.mxu1 %v10533_v5  ;;  %v1049_v38 = vadd.f32 %v8537_v20, %v1035_v8 }
 0x26c   : > { %v10875_v10 = vpop.eup %10874 }
 0x26d   : > { %v1022_v13 = vmul.f32 %v10875_v10, %v11532_v52  ;;  %v1054_v41 = vpack.c.bf16 %v1049_v38, %v1048_v12 }
 0x26e   : > { %v10877_v15 = vpop.eup %10876  ;;  %9771 = vmatpush3.bf16.msra.mxu1 %v10533_v5 }
 0x26f   : > { %9772 = vmatprep.subr.bf16.mxu1 %v10534_v9  ;;  %v1023_v17 = vmul.f32 %v10877_v15, %v11540_v56  ;;  %v1036_v18 = vmul.f32 %v11575_v27, %v1022_v13  ;;  %v10537_v56 = vld [vmem:[%s14394_s6 + $0xb0] ss:$12 sps:$4 sm:$0xff]  }
 0x271   : > { %1286 = vmatmul.mubr.bf16.gmra.mrb[8].mxu1 %v1054_v41  ;;  %v1037_v19 = vmul.f32 %v11575_v27, %v1023_v17  ;;  %v1050_v22 = vadd.f32 %v8537_v20, %v1036_v18  ;;  %v11622_v27 = vsub.s32 0, %v11619_v26 }
 0x272   : > { %9773 = vmatpush3.bf16.msra.mxu1 %v10534_v9  ;;  %1295 = vmatprep.mubr.bf16.mxu1 %v14348_v1 }
 0x273   : > { %9774 = vmatprep.subr.bf16.mxu1 %v10535_v16  ;;  %v1051_v52 = vadd.f32 %v8537_v20, %v1037_v19  ;;  %14398 = vst [vmem:[#allocation4_spill] sm:$0xff] %v11622_v27  ;;  %v1093_v31 = vrot.slane %v1088_v29, %v11622_v27 }
 0x275   : > { %v1055_v23 = vpack.c.bf16 %v1051_v52, %v1050_v22 }
 0x276   : > { %9775 = vmatpush3.bf16.msra.mxu1 %v10535_v16  ;;  %v11659_v16 = vsub.s32 2, %v11619_v26 }
 0x277   : > { %9776 = vmatprep.subr.bf16.mxu1 %v10536_v21 }
 0x278   : > { %14401 = vst [vmem:[#allocation6_spill] sm:$0xff] %v11659_v16 }
 0x279   : > { %1296 = vmatmul.mubr.bf16.gmra.mrb[12].mxu1 %v1055_v23 }
 0x27a   : > { %9777 = vmatpush3.bf16.msra.mxu1 %v10536_v21  ;;  %9780 = vmatprep.mubr.bf16.mxu1 %v1052_v24  ;;  %v1101_v21 = vrot.slane %v1088_v29, %v11659_v16 }
 0x27b   : > { %9778 = vmatprep.subr.bf16.mxu1 %v10537_v56 }
 0x27e   : > { %9779 = vmatpush3.bf16.msra.mxu1 %v10537_v56 }
 0x281   : > { %9781 = vmatmul.mubr.bf16.vlgmr.msra.gmra.mrb[16].mxu1 %v1053_v3 }
 0x282   : > { %9784 = vmatprep.mubr.bf16.mxu1 %v1054_v41 }
 0x289   : > { %9785 = vmatmul.mubr.bf16.gmra.mrb[20].mxu1 %v1055_v23 }
 0x334   : > { %v1267_v33 = vpop.f32.mrb[0].mxu1 }
 0x335   : > { %v1269_v35 = vpop.f32.mrb[1].mxu1  ;;  %v1268_v20 = vadd.f32 %v1267_v33, %v1093_v31 }
 0x336   : > { %v1271_v36 = vpop.f32.mrb[2].mxu1  ;;  %v1270_v40 = vadd.f32 %v1269_v35, %v1097_v34 }
 0x337   : > { %v1272_v37 = vadd.f32 %v1271_v36, %v1093_v31  ;;  %v1273_v39 = vpop.f32.mrb[3].mxu1 }
 0x338   : > { %v1274_v42 = vadd.f32 %v1273_v39, %v1097_v34 }
 0x339   : > { %v11632_v44 = vpack.c.bf16 %v1272_v37, %v1268_v20 }
 0x33a   : > { %v11634_v45 = vpack.c.bf16 %v1274_v42, %v1270_v40 }
 0x33b   : > { %9796 = vmatprep.mubr.msk.bf16.mxu0 %vm839_vm0, %v11632_v44 }
 0x33c   : > { %v1277_v46 = vpop.f32.mrb[4].mxu1  ;;  %10468 = vmatprep.subr.msk.bf16.mxu0 %vm839_vm0, %v11634_v45  ;;  %v1412_v48 = vsel %vm839_vm0, %v11634_v45, 0 }
 0x33d   : > { %v1279_v24 = vpop.f32.mrb[5].mxu1  ;;  %9789 = vmatpush3.bf16.xpose.msra.mxu0 %v1412_v48  ;;  %v1278_v50 = vadd.f32 %v1277_v46, %v1093_v31 }
 0x33e   : > { %v1281_v49 = vpop.f32.mrb[6].mxu1  ;;  %v1280_v55 = vadd.f32 %v1279_v24, %v1097_v34 }
 0x33f   : > { %v1282_v51 = vadd.f32 %v1281_v49, %v1093_v31  ;;  %v1283_v54 = vpop.f32.mrb[7].mxu1 }
 0x340   : > { %v1284_v58 = vadd.f32 %v1283_v54, %v1097_v34 }
 0x341   : > { %v11642_v59 = vpack.c.bf16 %v1282_v51, %v1278_v50 }
 0x342   : > { %v11644_v28 = vpack.c.bf16 %v1284_v58, %v1280_v55 }
 0x344   : > { %v1287_v60 = vpop.f32.mrb[8].mxu1  ;;  %10469 = vmatprep.subr.msk.bf16.mxu0 %vm839_vm0, %v11644_v28  ;;  %v1415_v61 = vsel %vm839_vm0, %v11644_v28, 0 }
 0x345   : > { %v1289_v62 = vpop.f32.mrb[9].mxu1  ;;  %9791 = vmatpush3.bf16.xpose.msra.mxu0 %v1415_v61  ;;  %v1288_v32 = vadd.f32 %v1287_v60, %v1093_v31 }
 0x346   : > { %v1291_v63 = vpop.f32.mrb[10].mxu1  ;;  %v1290_v5 = vadd.f32 %v1289_v62, %v1097_v34 }
 0x347   : > { %v1292_v2 = vadd.f32 %v1291_v63, %v1093_v31  ;;  %v1293_v3 = vpop.f32.mrb[11].mxu1 }
 0x348   : > { %v1294_v6 = vadd.f32 %v1293_v3, %v1097_v34 }
 0x349   : > { %v11650_v7 = vpack.c.bf16 %v1292_v2, %v1288_v32 }
 0x34a   : > { %v11652_v8 = vpack.c.bf16 %v1294_v6, %v1290_v5 }
 0x34c   : > { %v1297_v38 = vpop.f32.mrb[12].mxu1  ;;  %10470 = vmatprep.subr.msk.bf16.mxu0 %vm839_vm0, %v11652_v8  ;;  %v1418_v9 = vsel %vm839_vm0, %v11652_v8, 0 }
 0x34d   : > { %v1299_v10 = vpop.f32.mrb[13].mxu1  ;;  %9793 = vmatpush3.bf16.xpose.msra.mxu0 %v1418_v9  ;;  %v1298_v13 = vadd.f32 %v1297_v38, %v1093_v31 }
 0x34e   : > { %v1301_v12 = vpop.f32.mrb[14].mxu1  ;;  %v1300_v17 = vadd.f32 %v1299_v10, %v1097_v34 }
 0x34f   : > { %v1302_v15 = vadd.f32 %v1301_v12, %v1093_v31  ;;  %v1303_v41 = vpop.f32.mrb[15].mxu1 }
 0x350   : > { %v1304_v18 = vadd.f32 %v1303_v41, %v1097_v34 }
 0x351   : > { %v11661_v19 = vpack.c.bf16 %v1302_v15, %v1298_v13 }
 0x352   : > { %v11663_v52 = vpack.c.bf16 %v1304_v18, %v1300_v17 }
 0x354   : > { %v9782_v22 = vpop.f32.mrb[16].mxu1  ;;  %10471 = vmatprep.subr.msk.bf16.mxu0 %vm839_vm0, %v11663_v52  ;;  %v1421_v23 = vsel %vm839_vm0, %v11663_v52, 0 }
 0x355   : > { %v1340_v56 = vpop.f32.mrb[17].mxu1  ;;  %9795 = vmatpush3.bf16.xpose.msra.mxu0 %v1421_v23  ;;  %v1349_v31 = vadd.f32 %v9782_v22, %v1101_v21 }
 0x356   : > { %v9783_v25 = vpop.f32.mrb[18].mxu1  ;;  %v1341_v34 = vadd.f32 %v1340_v56, %v1101_v21 }
 0x357   : > { %v1352_v33 = vadd.f32 %v9783_v25, %v1101_v21  ;;  %v1343_v35 = vpop.f32.mrb[19].mxu1 }
 0x358   : > { %v1344_v36 = vadd.f32 %v1343_v35, %v1101_v21 }
 0x359   : > { %v11670_v20 = vpack.c.bf16 %v1352_v33, %v1349_v31 }
 0x35a   : > { %v11672_v37 = vpack.c.bf16 %v1344_v36, %v1341_v34 }
 0x35c   : > { %v9786_v29 = vpop.f32.mrb[20].mxu1  ;;  %9797 = vmatmul.mubr.msk.bf16.vlgmr.msra.gmra.mrb[16].mxu0 %vm839_vm0, %v11642_v59  ;;  %9804 = vmatprep.subr.bf16.mxu0 %v11672_v37 }
 0x35d   : > { %v1356_v39 = vpop.f32.mrb[21].mxu1  ;;  %9800 = vmatprep.mubr.msk.bf16.mxu0 %vm839_vm0, %v11650_v7  ;;  %9805 = vmatpush3.bf16.msra.mxu0 %v11672_v37  ;;  %v1365_v42 = vadd.f32 %v9786_v29, %v1101_v21 }
 0x35e   : > { %v9787_v40 = vpop.f32.mrb[22].mxu1  ;;  %9806 = vmatprep.subr.bf16.mxu0 %v11670_v20  ;;  %v1357_v24 = vadd.f32 %v1356_v39, %v1101_v21 }
 0x35f   : > { %v1368_v46 = vadd.f32 %v9787_v40, %v1101_v21  ;;  %v1359_v48 = vpop.f32.mrb[23].mxu1 }
 0x360   : > { %v1360_v49 = vadd.f32 %v1359_v48, %v1101_v21 }
 0x361   : > { %v11681_v50 = vpack.c.bf16 %v1368_v46, %v1365_v42  ;;  %9807 = vmatpush3.bf16.msra.mxu0 %v11670_v20 }
 0x362   : > { %v11684_v51 = vpack.c.bf16 %v1360_v49, %v1357_v24 }
 0x364   : > { %9801 = vmatmul.mubr.msk.bf16.gmra.mrb[20].mxu0 %vm839_vm0, %v11661_v19  ;;  %9808 = vmatprep.subr.bf16.mxu0 %v11684_v51 }
 0x365   : > { %9809 = vmatpush3.bf16.msra.mxu0 %v11684_v51 }
 0x366   : > { %9810 = vmatprep.subr.bf16.mxu0 %v11681_v50 }
 0x369   : > { %9811 = vmatpush3.bf16.msra.mxu0 %v11681_v50 }
 0x42f   : > { %v9798_v54 = vpop.f32.mrb[16].mxu0 }
 0x430   : > { %v1457_v55 = vpop.f32.mrb[17].mxu0  ;;  %v1490_v62 = vmul.f32 0.125, %v9798_v54 }
 0x431   : > { %v1488_v58 = vmul.f32 0.125, %v1457_v55  ;;  %v9799_v60 = vpop.f32.mrb[18].mxu0 }
 0x432   : > { %v1460_v61 = vpop.f32.mrb[19].mxu0  ;;  %v1491_v2 = vmul.f32 0.125, %v9799_v60  ;;  %v1502_v6 = vsel %vm839_vm0, %v1490_v62, -inf }
 0x433   : > { %v1489_v63 = vmul.f32 0.125, %v1460_v61  ;;  %v1496_v32 = vsel %vm839_vm0, %v1488_v58, -inf }
 0x434   : > { %1497 = vmax.xlane.f32.xlu0 %v1496_v32  ;;  %v1505_v12 = vsel %vm839_vm0, %v1491_v2, -inf }
 0x435   : > { %v1499_v3 = vsel %vm839_vm0, %v1489_v63, -inf }
 0x436   : > { %1500 = vmax.xlane.f32.xlu1 %v1499_v3 }
 0x437   : > { %v9802_v5 = vpop.f32.mrb[20].mxu0 }
 0x438   : > { %1503 = vmax.xlane.f32.xlu0 %v1502_v6  ;;  %v1473_v38 = vpop.f32.mrb[21].mxu0  ;;  %v1494_v15 = vmul.f32 0.125, %v9802_v5 }
 0x439   : > { %v1492_v9 = vmul.f32 0.125, %v1473_v38  ;;  %v9803_v10 = vpop.f32.mrb[22].mxu0 }
 0x43a   : > { %1506 = vmax.xlane.f32.xlu1 %v1505_v12  ;;  %v1476_v13 = vpop.f32.mrb[23].mxu0  ;;  %v1495_v18 = vmul.f32 0.125, %v9803_v10  ;;  %v1514_v22 = vsel %vm839_vm0, %v1494_v15, -inf }
 0x43b   : > { %v11696_v41 = vmul.f32 0.125, %v1476_v13  ;;  %v1508_v17 = vsel %vm839_vm0, %v1492_v9, -inf }
 0x43c   : > { %1509 = vmax.xlane.f32.xlu0 %v1508_v17  ;;  %v1517_v23 = vsel %vm839_vm0, %v1495_v18, -inf }
 0x43d   : > { %v1511_v21 = vsel %vm839_vm0, %v11696_v41, -inf }
 0x43e   : > { %1512 = vmax.xlane.f32.xlu1 %v1511_v21 }
 0x440   : > { %1515 = vmax.xlane.f32.xlu0 %v1514_v22 }
 0x442   : > { %1518 = vmax.xlane.f32.xlu1 %v1517_v23 }
 0x4c1   : > { %v1498_v56 = vpop.xlane.xlu0 %1497 }
 0x4c2   : > { %v1520_v25 = vsub.f32 %v1488_v58, %v1498_v56 }
 0x4c3   : > { %v1501_v31 = vpop.xlane.xlu1 %1500 }
 0x4c4   : > { %v1521_v35 = vsub.f32 %v1489_v63, %v1501_v31  ;;  %v1528_v36 = vmul.f32 1.442695, %v1520_v25 }
 0x4c5   : > { %v1504_v33 = vpop.xlane.xlu0 %1503 }
 0x4c6   : > { %v1522_v34 = vsub.f32 %v1490_v62, %v1504_v33  ;;  %v1530_v46 = vmul.f32 1.442695, %v1521_v35 }
 0x4c7   : > { %v1507_v29 = vpop.xlane.xlu1 %1506 }
 0x4c8   : > { %v1532_v39 = vmul.f32 1.442695, %v1522_v34  ;;  %v1523_v40 = vsub.f32 %v1491_v2, %v1507_v29 }
 0x4c9   : > { %v1510_v42 = vpop.xlane.xlu0 %1509 }
 0x4ca   : > { %10878 = vpow2.f32 %v1532_v39  ;;  %v1534_v48 = vmul.f32 1.442695, %v1523_v40  ;;  %v1524_v24 = vsub.f32 %v1492_v9, %v1510_v42 }
 0x4cb   : > { %10880 = vpow2.f32 %v1528_v36  ;;  %v1513_v12 = vpop.xlane.xlu1 %1512 }
 0x4cc   : > { %10882 = vpow2.f32 %v1534_v48  ;;  %v1536_v55 = vmul.f32 1.442695, %v1524_v24  ;;  %v1525_v17 = vsub.f32 %v11696_v41, %v1513_v12 }
 0x4cd   : > { %v1516_v49 = vpop.xlane.xlu0 %1515  ;;  %10884 = vpow2.f32 %v1530_v46 }
 0x4ce   : > { %v1526_v54 = vsub.f32 %v1494_v15, %v1516_v49  ;;  %v1538_v22 = vmul.f32 1.442695, %v1525_v17 }
 0x4cf   : > { %v1519_v13 = vpop.xlane.xlu1 %1518 }
 0x4d0   : > { %v1540_v58 = vmul.f32 1.442695, %v1526_v54  ;;  %v1527_v15 = vsub.f32 %v1495_v18, %v1519_v13 }
 0x4d2   : > { %10886 = vpow2.f32 %v1540_v58  ;;  %v1542_v21 = vmul.f32 1.442695, %v1527_v15 }
 0x4d3   : > { %10888 = vpow2.f32 %v1536_v55 }
 0x4d4   : > { %v10879_v60 = vpop.eup %10878  ;;  %10890 = vpow2.f32 %v1542_v21 }
 0x4d5   : > { %v10881_v61 = vpop.eup %10880  ;;  %v1550_v62 = vsel %vm839_vm0, %v10879_v60, 0.0  ;;  %10892 = vpow2.f32 %v1538_v22 }
 0x4d6   : > { %v10883_v63 = vpop.eup %10882  ;;  %1551 = vadd.xlane.f32.xlu0 %v1550_v62  ;;  %v1544_v3 = vsel %vm839_vm0, %v10881_v61, 0.0 }
 0x4d7   : > { %v1553_v32 = vsel %vm839_vm0, %v10883_v63, 0.0  ;;  %v10885_v2 = vpop.eup %10884 }
 0x4d8   : > { %1554 = vadd.xlane.f32.xlu1 %v1553_v32  ;;  %v1547_v5 = vsel %vm839_vm0, %v10885_v2, 0.0 }
 0x4da   : > { %1545 = vadd.xlane.f32.xlu0 %v1544_v3 }
 0x4dc   : > { %v11707_v6 = vpop.eup %10886  ;;  %1548 = vadd.xlane.f32.xlu1 %v1547_v5 }
 0x4dd   : > { %v1562_v38 = vsel %vm839_vm0, %v11707_v6, 0.0  ;;  %v11711_v9 = vpop.eup %10888 }
 0x4de   : > { %1563 = vadd.xlane.f32.xlu0 %v1562_v38  ;;  %v1556_v10 = vsel %vm839_vm0, %v11711_v9, 0.0 }
 0x4e2   : > { %1557 = vadd.xlane.f32.xlu0 %v1556_v10 }
 0x4ed   : > { %1687 = vrot.lane.b32.xlu1 %v11644_v28, %s14342_s2  ;;  %v10891_v28 = vpop.eup %10890 }
 0x4ee   : > { %v10893_v23 = vpop.eup %10892 }
 0x4f1   : > { %1689 = vrot.lane.b32.xlu1 %v11652_v8, %s14342_s2  ;;  %v1565_v8 = vsel %vm839_vm0, %v10891_v28, 0.0 }
 0x4f8   : > { %1685 = vrot.lane.b32.xlu0 %v11634_v45, %s14342_s2  ;;  %v1559_v45 = vsel %vm839_vm0, %v10893_v23, 0.0 }
 0x4fc   : > { %1673 = vrot.lane.b32.xlu0 %v11632_v44, %s14342_s2 }
 0x500   : > { %1677 = vrot.lane.b32.xlu0 %v11650_v7, %s14342_s2 }
 0x515   : > { %1566 = vadd.xlane.f32.xlu1 %v1565_v8 }
 0x519   : > { %1560 = vadd.xlane.f32.xlu1 %v1559_v45 }
 0x52a   : > { %1691 = vrot.lane.b32.xlu1 %v11663_v52, %s14342_s2 }
 0x52e   : > { %1675 = vrot.lane.b32.xlu1 %v11642_v59, %s14342_s2 }
 0x532   : > { %1679 = vrot.lane.b32.xlu1 %v11661_v19, %s14342_s2 }
 0x563   : > { %v1552_v44 = vpop.xlane.xlu0 %1551 }
 0x565   : > { %v1555_v7 = vpop.xlane.xlu1 %1554 }
 0x566   : > { %10894 = vrcp.f32 %v1555_v7 }
 0x567   : > { %v1546_v41 = vpop.xlane.xlu0 %1545 }
 0x568   : > { %10896 = vrcp.f32 %v1546_v41 }
 0x569   : > { %10898 = vrcp.f32 %v1552_v44  ;;  %v1549_v18 = vpop.xlane.xlu1 %1548 }
 0x56a   : > { %10900 = vrcp.f32 %v1549_v18 }
 0x56b   : > { %v1564_v56 = vpop.xlane.xlu0 %1563 }
 0x56d   : > { %v1688_v46 = vpop.permute.xlu1 %1687 }
 0x56e   : > { %v1709_v48 = vsel %vm839_vm0, %v1688_v46, 0 }
 0x56f   : > { %v1558_v25 = vpop.xlane.xlu0 %1557 }
 0x570   : > { %v10895_v31 = vpop.eup %10894 }
 0x571   : > { %v1579_v36 = vmul.f32 %v10895_v31, %v10883_v63  ;;  %v1690_v24 = vpop.permute.xlu1 %1689 }
 0x572   : > { %v10897_v33 = vpop.eup %10896  ;;  %v1712_v49 = vsel %vm839_vm0, %v1690_v24, 0 }
 0x573   : > { %v10899_v35 = vpop.eup %10898  ;;  %v1686_v52 = vpop.permute.xlu0 %1685  ;;  %v1576_v59 = vmul.f32 %v10897_v33, %v10881_v61 }
 0x574   : > { %v10901_v34 = vpop.eup %10900  ;;  %10472 = vmatprep.subr.msk.bf16.mxu0 %vm839_vm0, %v1686_v52  ;;  %v1578_v29 = vmul.f32 %v10899_v35, %v10879_v60  ;;  %v1706_v42 = vsel %vm839_vm0, %v1686_v52, 0 }
 0x575   : > { %v1577_v19 = vmul.f32 %v10901_v34, %v10885_v2 }
 0x576   : > { %v1585_v40 = vpack.c.bf16 %v1579_v36, %v1578_v29 }
 0x577   : > { %v1584_v39 = vpack.c.bf16 %v1577_v19, %v1576_v59  ;;  %v1674_v13 = vpop.permute.xlu0 %1673 }
 0x579   : > { %9812 = vmatprep.mubr.msk.bf16.mxu0 %vm839_vm0, %v1584_v39 }
 0x57a   : > { %9813 = vmatmul.mubr.msk.bf16.vlgmr.msra.gmra.mrb[24].mxu0 %vm839_vm0, %v1585_v40 }
 0x57b   : > { %9821 = vmatpush3.bf16.xpose.msra.mxu0 %v1706_v42  ;;  %v1678_v17 = vpop.permute.xlu0 %1677 }
 0x57c   : > { %10473 = vmatprep.subr.msk.bf16.mxu0 %vm839_vm0, %v1688_v46 }
 0x583   : > { %9823 = vmatpush3.bf16.xpose.msra.mxu0 %v1709_v48 }
 0x584   : > { %10474 = vmatprep.subr.msk.bf16.mxu0 %vm839_vm0, %v1690_v24 }
 0x58b   : > { %9825 = vmatpush3.bf16.xpose.msra.mxu0 %v1712_v49 }
 0x5a2   : > { %v1567_v54 = vpop.xlane.xlu1 %1566 }
 0x5a3   : > { %10902 = vrcp.f32 %v1567_v54 }
 0x5a4   : > { %10904 = vrcp.f32 %v1558_v25 }
 0x5a5   : > { %10906 = vrcp.f32 %v1564_v56 }
 0x5a6   : > { %v1561_v55 = vpop.xlane.xlu1 %1560 }
 0x5a7   : > { %10908 = vrcp.f32 %v1561_v55 }
 0x5aa   : > { %v1692_v58 = vpop.permute.xlu1 %1691 }
 0x5ab   : > { %10475 = vmatprep.subr.msk.bf16.mxu0 %vm839_vm0, %v1692_v58  ;;  %v1715_v60 = vsel %vm839_vm0, %v1692_v58, 0 }
 0x5ac   : > { %9827 = vmatpush3.bf16.xpose.msra.mxu0 %v1715_v60 }
 0x5ad   : > { %v10903_v61 = vpop.eup %10902 }
 0x5ae   : > { %v10905_v62 = vpop.eup %10904  ;;  %v1583_v2 = vmul.f32 %v10903_v61, %v10891_v28  ;;  %v1676_v15 = vpop.permute.xlu1 %1675 }
 0x5af   : > { %v10907_v63 = vpop.eup %10906  ;;  %v1580_v3 = vmul.f32 %v10905_v62, %v11711_v9 }
 0x5b0   : > { %v1582_v38 = vmul.f32 %v10907_v63, %v11707_v6 }
 0x5b1   : > { %v10909_v32 = vpop.eup %10908 }
 0x5b2   : > { %v1581_v5 = vmul.f32 %v10909_v32, %v10893_v23  ;;  %v1587_v12 = vpack.c.bf16 %v1583_v2, %v1582_v38  ;;  %v1680_v21 = vpop.permute.xlu1 %1679 }
 0x5b4   : > { %v1586_v10 = vpack.c.bf16 %v1581_v5, %v1580_v3 }
 0x5b6   : > { %9816 = vmatprep.mubr.msk.bf16.mxu0 %vm839_vm0, %v1586_v10 }
 0x5b7   : > { %9817 = vmatmul.mubr.msk.bf16.gmra.mrb[28].mxu0 %vm839_vm0, %v1587_v12 }
 0x5b8   : > { %9828 = vmatprep.mubr.msk.bf16.mxu0 %vm839_vm0, %v1674_v13 }
 0x5bf   : > { %9829 = vmatmul.mubr.msk.bf16.vlgmr.msra.gmra.mrb[32].mxu0 %vm839_vm0, %v1676_v15 }
 0x5c0   : > { %9832 = vmatprep.mubr.msk.bf16.mxu0 %vm839_vm0, %v1678_v17 }
 0x5c7   : > { %9833 = vmatmul.mubr.msk.bf16.gmra.mrb[36].mxu0 %vm839_vm0, %v1680_v21 }
 0x5c8   : > { %2572 = vmatprep.mubr.bf16.mxu0 %v14348_v1 }
 0x64d   : > { %v11753_v6 = vpop.f32.mrb[24].mxu0 }
 0x64e   : > { %v11755_v9 = vpop.f32.mrb[25].mxu0 }
 0x64f   : > { %v11757_v22 = vpop.f32.mrb[26].mxu0 }
 0x650   : > { %v1666_v28 = vpack.c.bf16 %v11757_v22, %v11753_v6  ;;  %v11761_v8 = vpop.f32.mrb[27].mxu0 }
 0x651   : > { %v1665_v23 = vpack.c.bf16 %v11761_v8, %v11755_v9  ;;  %v8594_v8 = vld [vmem:[%s14321_s9] ss:$0 sm:$0xff] }
 0x68a   : > { %v11765_v45 = vpop.f32.mrb[28].mxu0 }
 0x68b   : > { %v11767_v44 = vpop.f32.mrb[29].mxu0 }
 0x68c   : > { %v11769_v7 = vpop.f32.mrb[30].mxu0 }
 0x68d   : > { %v1668_v41 = vpack.c.bf16 %v11769_v7, %v11765_v45  ;;  %v11773_v18 = vpop.f32.mrb[31].mxu0 }
 0x68e   : > { %v1667_v56 = vpack.c.bf16 %v11773_v18, %v11767_v44 }
 0x692   : > { %v9830_v25 = vpop.f32.mrb[32].mxu0 }
 0x693   : > { %v1751_v31 = vpop.f32.mrb[33].mxu0  ;;  %v1784_v34 = vmul.f32 0.125, %v9830_v25 }
 0x694   : > { %v1782_v33 = vmul.f32 0.125, %v1751_v31  ;;  %v9831_v35 = vpop.f32.mrb[34].mxu0 }
 0x695   : > { %v1754_v52 = vpop.f32.mrb[35].mxu0  ;;  %v1785_v29 = vmul.f32 0.125, %v9831_v35  ;;  %v1796_v40 = vsel %vm839_vm0, %v1784_v34, -inf }
 0x696   : > { %v1783_v36 = vmul.f32 0.125, %v1754_v52  ;;  %v1790_v59 = vsel %vm839_vm0, %v1782_v33, -inf }
 0x697   : > { %1791 = vmax.xlane.f32.xlu0 %v1790_v59  ;;  %v1799_v54 = vsel %vm839_vm0, %v1785_v29, -inf }
 0x698   : > { %v1793_v19 = vsel %vm839_vm0, %v1783_v36, -inf }
 0x699   : > { %1794 = vmax.xlane.f32.xlu1 %v1793_v19 }
 0x69a   : > { %v9834_v39 = vpop.f32.mrb[36].mxu0 }
 0x69b   : > { %1797 = vmax.xlane.f32.xlu0 %v1796_v40  ;;  %v1767_v42 = vpop.f32.mrb[37].mxu0  ;;  %v1788_v60 = vmul.f32 0.125, %v9834_v39 }
 0x69c   : > { %v9835_v46 = vpop.f32.mrb[38].mxu0  ;;  %v1786_v24 = vmul.f32 0.125, %v1767_v42 }
 0x69d   : > { %v1770_v48 = vpop.f32.mrb[39].mxu0  ;;  %v1789_v55 = vmul.f32 0.125, %v9835_v46  ;;  %v1808_v63 = vsel %vm839_vm0, %v1788_v60, -inf }
 0x69e   : > { %v11780_v49 = vmul.f32 0.125, %v1770_v48  ;;  %v1802_v61 = vsel %vm839_vm0, %v1786_v24, -inf }
 0x69f   : > { %1800 = vmax.xlane.f32.xlu0 %v1799_v54  ;;  %v1811_v62 = vsel %vm839_vm0, %v1789_v55, -inf }
 0x6a0   : > { %v1805_v58 = vsel %vm839_vm0, %v11780_v49, -inf }
 0x6a1   : > { %1806 = vmax.xlane.f32.xlu1 %v1805_v58 }
 0x6a3   : > { %1803 = vmax.xlane.f32.xlu0 %v1802_v61 }
 0x6a5   : > { %1812 = vmax.xlane.f32.xlu1 %v1811_v62 }
 0x6a7   : > { %1809 = vmax.xlane.f32.xlu0 %v1808_v63 }
 0x724   : > { %v1792_v32 = vpop.xlane.xlu0 %1791 }
 0x725   : > { %v1814_v2 = vsub.f32 %v1782_v33, %v1792_v32 }
 0x726   : > { %v1795_v3 = vpop.xlane.xlu1 %1794 }
 0x727   : > { %v1822_v10 = vmul.f32 1.442695, %v1814_v2  ;;  %v1815_v12 = vsub.f32 %v1783_v36, %v1795_v3 }
 0x728   : > { %v1798_v5 = vpop.xlane.xlu0 %1797 }
 0x729   : > { %v1816_v38 = vsub.f32 %v1784_v34, %v1798_v5  ;;  %v1824_v21 = vmul.f32 1.442695, %v1815_v12 }
 0x72b   : > { %v1826_v13 = vmul.f32 1.442695, %v1816_v38 }
 0x72c   : > { %v1801_v15 = vpop.xlane.xlu0 %1800 }
 0x72d   : > { %10910 = vpow2.f32 %v1826_v13  ;;  %v1817_v17 = vsub.f32 %v1785_v29, %v1801_v15 }
 0x72e   : > { %10912 = vpow2.f32 %v1822_v10  ;;  %v1807_v61 = vpop.xlane.xlu1 %1806 }
 0x72f   : > { %v1828_v25 = vmul.f32 1.442695, %v1817_v17  ;;  %v1819_v32 = vsub.f32 %v11780_v49, %v1807_v61 }
 0x730   : > { %v1804_v31 = vpop.xlane.xlu0 %1803 }
 0x731   : > { %10914 = vpow2.f32 %v1828_v25  ;;  %v1818_v35 = vsub.f32 %v1786_v24, %v1804_v31  ;;  %v1832_v3 = vmul.f32 1.442695, %v1819_v32 }
 0x732   : > { %10916 = vpow2.f32 %v1824_v21  ;;  %v1813_v62 = vpop.xlane.xlu1 %1812 }
 0x733   : > { %v1830_v33 = vmul.f32 1.442695, %v1818_v35  ;;  %v1821_v63 = vsub.f32 %v1789_v55, %v1813_v62 }
 0x734   : > { %v1810_v52 = vpop.xlane.xlu0 %1809 }
 0x735   : > { %v1820_v59 = vsub.f32 %v1788_v60, %v1810_v52  ;;  %v1836_v2 = vmul.f32 1.442695, %v1821_v63 }
 0x737   : > { %v11788_v19 = vpop.eup %10910  ;;  %v1834_v39 = vmul.f32 1.442695, %v1820_v59 }
 0x738   : > { %v1844_v34 = vsel %vm839_vm0, %v11788_v19, 0.0  ;;  %v10913_v36 = vpop.eup %10912 }
 0x739   : > { %10918 = vpow2.f32 %v1834_v39  ;;  %1845 = vadd.xlane.f32.xlu0 %v1844_v34  ;;  %v1838_v40 = vsel %vm839_vm0, %v10913_v36, 0.0 }
 0x73a   : > { %10920 = vpow2.f32 %v1830_v33 }
 0x73b   : > { %v11792_v29 = vpop.eup %10914  ;;  %10922 = vpow2.f32 %v1836_v2 }
 0x73c   : > { %v1847_v42 = vsel %vm839_vm0, %v11792_v29, 0.0  ;;  %v10917_v46 = vpop.eup %10916  ;;  %10924 = vpow2.f32 %v1832_v3 }
 0x73d   : > { %1839 = vadd.xlane.f32.xlu0 %v1838_v40  ;;  %1848 = vadd.xlane.f32.xlu1 %v1847_v42  ;;  %v1841_v48 = vsel %vm839_vm0, %v10917_v46, 0.0  ;;  %v10538_v40 = vld [vmem:[%s14320_s8 + $0x20] sm:$0xff]  }
 0x741   : > { %1842 = vadd.xlane.f32.xlu1 %v1841_v48 }
 0x743   : > { %v11798_v24 = vpop.eup %10918 }
 0x744   : > { %v1856_v54 = vsel %vm839_vm0, %v11798_v24, 0.0  ;;  %v11802_v58 = vpop.eup %10920 }
 0x745   : > { %1857 = vadd.xlane.f32.xlu0 %v1856_v54  ;;  %v1850_v60 = vsel %vm839_vm0, %v11802_v58, 0.0  ;;  %v10923_v5 = vpop.eup %10922  ;;  %v10539_v54 = vld [vmem:[%s14320_s8 + $0x28] sm:$0xff]  }
 0x746   : > { %v1859_v38 = vsel %vm839_vm0, %v10923_v5, 0.0  ;;  %v10925_v10 = vpop.eup %10924 }
 0x749   : > { %1851 = vadd.xlane.f32.xlu0 %v1850_v60 }
 0x752   : > { %1888 = vrot.lane.b32.xlu1 %v11670_v20, %s14342_s2  ;;  %v1853_v20 = vsel %vm839_vm0, %v10925_v10, 0.0 }
 0x756   : > { %1890 = vrot.lane.b32.xlu1 %v11684_v51, %s14342_s2 }
 0x75f   : > { %1886 = vrot.lane.b32.xlu0 %v11672_v37, %s14342_s2 }
 0x77a   : > { %1860 = vadd.xlane.f32.xlu1 %v1859_v38 }
 0x77e   : > { %1854 = vadd.xlane.f32.xlu1 %v1853_v20 }
 0x78f   : > { %1892 = vrot.lane.b32.xlu1 %v11681_v50, %s14342_s2 }
 0x7c6   : > { %v1846_v37 = vpop.xlane.xlu0 %1845 }
 0x7ca   : > { %v1840_v51 = vpop.xlane.xlu0 %1839  ;;  %v1849_v55 = vpop.xlane.xlu1 %1848 }
 0x7cb   : > { %10926 = vrcp.f32 %v1840_v51 }
 0x7ce   : > { %v1843_v49 = vpop.xlane.xlu1 %1842 }
 0x7cf   : > { %10928 = vrcp.f32 %v1843_v49 }
 0x7d0   : > { %10930 = vrcp.f32 %v1849_v55 }
 0x7d1   : > { %10932 = vrcp.f32 %v1846_v37 }
 0x7d2   : > { %v1858_v12 = vpop.xlane.xlu0 %1857  ;;  %v1889_v21 = vpop.permute.xlu1 %1888 }
 0x7d5   : > { %v10927_v15 = vpop.eup %10926 }
 0x7d6   : > { %v1852_v13 = vpop.xlane.xlu0 %1851  ;;  %v1870_v31 = vmul.f32 %v10927_v15, %v10913_v36  ;;  %v1891_v50 = vpop.permute.xlu1 %1890 }
 0x7d9   : > { %v10929_v17 = vpop.eup %10928 }
 0x7da   : > { %v1887_v25 = vpop.permute.xlu0 %1886  ;;  %v1871_v35 = vmul.f32 %v10929_v17, %v10917_v46  ;;  %v10931_v33 = vpop.eup %10930  ;;  %v10544_v17 = vld [vmem:[%s14320_s8 + $0x10] sm:$0xff]  }
 0x7db   : > { %9836 = vmatprep.subr.bf16.mxu1 %v1887_v25  ;;  %v10933_v34 = vpop.eup %10932  ;;  %v1873_v36 = vmul.f32 %v10931_v33, %v11792_v29 }
 0x7dc   : > { %9837 = vmatpush3.bf16.msra.mxu1 %v1887_v25  ;;  %v1878_v52 = vpack.c.bf16 %v1871_v35, %v1870_v31  ;;  %v1872_v46 = vmul.f32 %v10933_v34, %v11788_v19  ;;  %v10540_v19 = vld [vmem:[%s14320_s8 + $0x30] sm:$0xff]  }
 0x7dd   : > { %9838 = vmatprep.subr.bf16.mxu1 %v1889_v21 }
 0x7de   : > { %9844 = vmatprep.mubr.msk.bf16.mxu1 %vm839_vm0, %v1878_v52  ;;  %v1879_v48 = vpack.c.bf16 %v1873_v36, %v1872_v46  ;;  %v10545_v52 = vld [vmem:[%s14320_s8 + $0x18] sm:$0xff]  }
 0x7e0   : > { %9839 = vmatpush3.bf16.msra.mxu1 %v1889_v21 }
 0x7e1   : > { %9840 = vmatprep.subr.bf16.mxu1 %v1891_v50 }
 0x7e4   : > { %9841 = vmatpush3.bf16.msra.mxu1 %v1891_v50 }
 0x807   : > { %v1861_v59 = vpop.xlane.xlu1 %1860 }
 0x808   : > { %10934 = vrcp.f32 %v1861_v59 }
 0x809   : > { %10936 = vrcp.f32 %v1852_v13 }
 0x80a   : > { %10938 = vrcp.f32 %v1858_v12  ;;  %v10543_v12 = vld [vmem:[%s14320_s8 + $0x8] sm:$0xff]  }
 0x80b   : > { %v1855_v39 = vpop.xlane.xlu1 %1854 }
 0x80c   : > { %10940 = vrcp.f32 %v1855_v39 }
 0x80f   : > { %v1893_v42 = vpop.permute.xlu1 %1892 }
 0x810   : > { %9842 = vmatprep.subr.bf16.mxu1 %v1893_v42 }
 0x811   : > { %9843 = vmatpush3.bf16.msra.mxu1 %v1893_v42 }
 0x812   : > { %9852 = vmatprep.subr.bf16.mxu1 %v10538_v40  ;;  %v10935_v60 = vpop.eup %10934 }
 0x813   : > { %v10937_v61 = vpop.eup %10936  ;;  %v1877_v63 = vmul.f32 %v10935_v60, %v10923_v5  ;;  %v10541_v5 = vld [vmem:[%s14320_s8 + $0x38] sm:$0xff]   ;;  %v10552_v60 = vld [vmem:[%s14324_s12 + $0x20] ss:$16 sps:$4 sm:$0xff]  }
 0x814   : > { %9845 = vmatmul.mubr.msk.bf16.vlgmr.msra.gmra.mrb[24].mxu1 %vm839_vm0, %v1879_v48  ;;  %v10939_v29 = vpop.eup %10938  ;;  %v1874_v32 = vmul.f32 %v10937_v61, %v11802_v58  ;;  %v10542_v58 = vld [vmem:[%s14320_s8] sm:$0xff]   ;;  %v10555_v61 = vld [vmem:[%s14324_s12 + $0x28] ss:$16 sps:$4 sm:$0xff]  }
 0x815   : > { %9853 = vmatpush3.bf16.msra.mxu1 %v10538_v40  ;;  %v1876_v3 = vmul.f32 %v10939_v29, %v11798_v24  ;;  %v10554_v48 = vld [vmem:[%s14324_s12 + $0x24] ss:$16 sps:$4 sm:$0xff]  }
 0x816   : > { %v10941_v62 = vpop.eup %10940  ;;  %9854 = vmatprep.subr.bf16.mxu1 %v10539_v54 }
 0x817   : > { %v1875_v2 = vmul.f32 %v10941_v62, %v10925_v10  ;;  %v1881_v20 = vpack.c.bf16 %v1877_v63, %v1876_v3 }
 0x819   : > { %v1880_v38 = vpack.c.bf16 %v1875_v2, %v1874_v32  ;;  %9855 = vmatpush3.bf16.msra.mxu1 %v10539_v54  ;;  %v10557_v54 = vld [vmem:[%s14324_s12 + $0x2c] ss:$16 sps:$4 sm:$0xff]  }
 0x81a   : > { %9856 = vmatprep.subr.bf16.mxu1 %v10540_v19 }
 0x81b   : > { %9848 = vmatprep.mubr.msk.bf16.mxu1 %vm839_vm0, %v1880_v38 }
 0x81c   : > { %9849 = vmatmul.mubr.msk.bf16.gmra.mrb[28].mxu1 %vm839_vm0, %v1881_v20 }
 0x81d   : > { %9857 = vmatpush3.bf16.msra.mxu1 %v10540_v19 }
 0x81e   : > { %9858 = vmatprep.subr.bf16.mxu1 %v10541_v5 }
 0x821   : > { %9859 = vmatpush3.bf16.msra.mxu1 %v10541_v5 }
 0x822   : > { %9868 = vmatprep.subr.bf16.mxu1 %v10542_v58 }
 0x8e7   : > { %v9846_v24 = vpop.f32.mrb[24].mxu1 }
 0x8e8   : > { %v1944_v10 = vpop.f32.mrb[25].mxu1 }
 0x8e9   : > { %v9847_v37 = vpop.f32.mrb[26].mxu1 }
 0x8ea   : > { %v1976_v51 = vpack.c.bf16 %v9847_v37, %v9846_v24  ;;  %v1947_v55 = vpop.f32.mrb[27].mxu1 }
 0x8eb   : > { %v1975_v49 = vpack.c.bf16 %v1947_v55, %v1944_v10 }
 0x8ed   : > { %9860 = vmatprep.mubr.msk.bf16.mxu1 %vm839_vm0, %v1975_v49 }
 0x8ee   : > { %9861 = vmatmul.mubr.msk.bf16.vlgmr.msra.gmra.mrb[32].mxu1 %vm839_vm0, %v1976_v51 }
 0x8ef   : > { %v9850_v13 = vpop.f32.mrb[28].mxu1  ;;  %9869 = vmatpush3.bf16.msra.mxu1 %v10542_v58 }
 0x8f0   : > { %v1960_v15 = vpop.f32.mrb[29].mxu1  ;;  %9870 = vmatprep.subr.bf16.mxu1 %v10543_v12 }
 0x8f1   : > { %v9851_v21 = vpop.f32.mrb[30].mxu1 }
 0x8f2   : > { %v1978_v25 = vpack.c.bf16 %v9851_v21, %v9850_v13  ;;  %v1963_v31 = vpop.f32.mrb[31].mxu1 }
 0x8f3   : > { %v1977_v35 = vpack.c.bf16 %v1963_v31, %v1960_v15  ;;  %9871 = vmatpush3.bf16.msra.mxu1 %v10543_v12 }
 0x8f4   : > { %9872 = vmatprep.subr.bf16.mxu1 %v10544_v17 }
 0x8f5   : > { %9864 = vmatprep.mubr.msk.bf16.mxu1 %vm839_vm0, %v1977_v35 }
 0x8f6   : > { %9865 = vmatmul.mubr.msk.bf16.gmra.mrb[36].mxu1 %vm839_vm0, %v1978_v25 }
 0x8f7   : > { %9873 = vmatpush3.bf16.msra.mxu1 %v10544_v17  ;;  %9876 = vmatprep.mubr.msk.bf16.mxu1 %vm839_vm0, %v1665_v23 }
 0x8f8   : > { %9874 = vmatprep.subr.bf16.mxu1 %v10545_v52 }
 0x8fb   : > { %9875 = vmatpush3.bf16.msra.mxu1 %v10545_v52 }
 0x8fe   : > { %9877 = vmatmul.mubr.msk.bf16.vlgmr.msra.gmra.mrb[32].mxu1 %vm839_vm0, %v1666_v28 }
 0x8ff   : > { %9880 = vmatprep.mubr.msk.bf16.mxu1 %vm839_vm0, %v1667_v56 }
 0x906   : > { %9881 = vmatmul.mubr.msk.bf16.gmra.mrb[36].mxu1 %vm839_vm0, %v1668_v41 }
 0x907   : > { %2645 = vmatprep.mubr.bf16.mxu1 %v14348_v1 }
 0x9d1   : > { %v9878_v9 = vpop.f32.mrb[32].mxu1 }
 0x9d2   : > { %v2150_v6 = vpop.f32.mrb[33].mxu1  ;;  %v2183_v44 = vadd.f32 %v9878_v9, %v11447_v53 }
 0x9d3   : > { %v2181_v22 = vadd.f32 %v2150_v6, %v11435_v43  ;;  %v9879_v28 = vpop.f32.mrb[34].mxu1 }
 0x9d4   : > { %v2153_v23 = vpop.f32.mrb[35].mxu1  ;;  %v11881_v41 = vadd.f32 %v8594_v8, %v2183_v44  ;;  %v2184_v56 = vadd.f32 %v9879_v28, %v11453_v57  ;;  %v10560_v44 = vld [vmem:[%s14324_s12 + $0x44] ss:$16 sps:$4 sm:$0xff]  }
 0x9d5   : > { %v11875_v18 = vadd.f32 %v8594_v8, %v2181_v22  ;;  %v2182_v45 = vadd.f32 %v2153_v23, %v11441_v47 }
 0x9d6   : > { %14404 = vst [vmem:[#allocation9_spill] sm:$0xff] %v11881_v41  ;;  %v11886_v33 = vadd.f32 %v8594_v8, %v2184_v56  ;;  %v10558_v56 = vld [vmem:[%s14324_s12 + $0x40] ss:$16 sps:$4 sm:$0xff]  }
 0x9d7   : > { %14402 = vst [vmem:[#allocation7_spill] sm:$0xff] %v11875_v18  ;;  %v11878_v7 = vadd.f32 %v8594_v8, %v2182_v45  ;;  %2206 = vadd.xlane.f32.xlu0 %v11875_v18  ;;  %v10563_v45 = vld [vmem:[%s14324_s12 + $0x4c] ss:$16 sps:$4 sm:$0xff]  }
 0x9d8   : > { %14405 = vst [vmem:[#allocation10_spill] sm:$0xff] %v11886_v33 }
 0x9d9   : > { %14403 = vst [vmem:[#allocation8_spill] sm:$0xff] %v11878_v7  ;;  %2208 = vadd.xlane.f32.xlu1 %v11878_v7  ;;  %v9882_v50 = vpop.f32.mrb[36].mxu1 }
 0x9da   : > { %v2166_v43 = vpop.f32.mrb[37].mxu1  ;;  %v2187_v57 = vadd.f32 %v9882_v50, %v11474_v11  ;;  %v10549_v11 = vld [vmem:[%s14324_s12 + $0x8] ss:$16 sps:$4 sm:$0xff]  }
 0x9db   : > { %2210 = vadd.xlane.f32.xlu0 %v11881_v41  ;;  %v9883_v59 = vpop.f32.mrb[38].mxu1  ;;  %v2185_v47 = vadd.f32 %v2166_v43, %v11462_v0  ;;  %v10546_v0 = vld [vmem:[%s14324_s12] ss:$16 sps:$4 sm:$0xff]   ;;  %v10561_v50 = vld [vmem:[%s14324_s12 + $0x48] ss:$16 sps:$4 sm:$0xff]  }
 0x9dc   : > { %v2169_v53 = vpop.f32.mrb[39].mxu1  ;;  %v2188_v34 = vadd.f32 %v9883_v59, %v11476_v14  ;;  %v11901_v46 = vadd.f32 %v8594_v8, %v2187_v57  ;;  %v10551_v14 = vld [vmem:[%s14324_s12 + $0xc] ss:$16 sps:$4 sm:$0xff]   ;;  %v10566_v43 = vld [vmem:[%s14324_s12 + $0x64] ss:$16 sps:$4 sm:$0xff]  }
 0x9dd   : > { %v2186_v39 = vadd.f32 %v2169_v53, %v11464_v4  ;;  %v11895_v40 = vadd.f32 %v8594_v8, %v2185_v47  ;;  %v10548_v4 = vld [vmem:[%s14324_s12 + $0x4] ss:$16 sps:$4 sm:$0xff]   ;;  %2613 = vmatprep.subr.bf16.mxu1 %v10551_v14  ;;  %v10569_v59 = vld [vmem:[%s14324_s12 + $0x6c] ss:$16 sps:$4 sm:$0xff]   ;;  %v10564_v53 = vld [vmem:[%s14324_s12 + $0x60] ss:$16 sps:$4 sm:$0xff]  }
 0x9de   : > { %v11898_v42 = vadd.f32 %v8594_v8, %v2188_v34  ;;  %14409 = vst [vmem:[#allocation14_spill] sm:$0xff] %v11901_v46  ;;  %2540 = vmatprep.subr.bf16.mxu0 %v10548_v4  ;;  %2614 = vmatpush1.bf16.msra.mxu1 %v10549_v11  ;;  %v10567_v47 = vld [vmem:[%s14324_s12 + $0x68] ss:$16 sps:$4 sm:$0xff]   ;;  %v10575_v34 = vld [vmem:[%s14324_s12 + $0x8c] ss:$16 sps:$4 sm:$0xff]  }
 0x9df   : > { %v11891_v36 = vadd.f32 %v8594_v8, %v2186_v39  ;;  %2212 = vadd.xlane.f32.xlu0 %v11886_v33  ;;  %14407 = vst [vmem:[#allocation12_spill] sm:$0xff] %v11895_v40  ;;  %2541 = vmatpush1.bf16.msra.mxu0 %v10546_v0  ;;  %v10572_v39 = vld [vmem:[%s14324_s12 + $0x84] ss:$16 sps:$4 sm:$0xff]   ;;  %v10570_v57 = vld [vmem:[%s14324_s12 + $0x80] ss:$16 sps:$4 sm:$0xff]  }
 0x9e0   : > { %14408 = vst [vmem:[#allocation13_spill] sm:$0xff] %v11898_v42  ;;  %2542 = vmatprep.subr.bf16.mxu0 %v10554_v48  ;;  %2615 = vmatprep.subr.bf16.mxu1 %v10557_v54  ;;  %v10573_v0 = vld [vmem:[%s14324_s12 + $0x88] ss:$16 sps:$4 sm:$0xff]   ;;  %v10578_v4 = vld [vmem:[%s14324_s12 + $0xa4] ss:$16 sps:$4 sm:$0xff]  }
 0x9e1   : > { %14406 = vst [vmem:[#allocation11_spill] sm:$0xff] %v11891_v36  ;;  %2216 = vadd.xlane.f32.xlu1 %v11891_v36  ;;  %v10581_v11 = vld [vmem:[%s14324_s12 + $0xac] ss:$16 sps:$4 sm:$0xff]   ;;  %v10576_v14 = vld [vmem:[%s14324_s12 + $0xa0] ss:$16 sps:$4 sm:$0xff]  }
 0x9e2   : > { %2616 = vmatpush1.bf16.msra.mxu1 %v10555_v61  ;;  %v10579_v48 = vld [vmem:[%s14324_s12 + $0xa8] ss:$16 sps:$4 sm:$0xff]   ;;  %v10584_v54 = vld [vmem:[%s14324_s12 + $0xc4] ss:$16 sps:$4 sm:$0xff]   ;;  %v10582_v61 = vld [vmem:[%s14324_s12 + $0xc0] ss:$16 sps:$4 sm:$0xff]  }
 0x9e3   : > { %2214 = vadd.xlane.f32.xlu0 %v11895_v40  ;;  %2543 = vmatpush1.bf16.msra.mxu0 %v10552_v60  ;;  %v10587_v60 = vld [vmem:[%s14324_s12 + $0xcc] ss:$16 sps:$4 sm:$0xff]  }
 0x9e4   : > { %2544 = vmatprep.subr.bf16.mxu0 %v10560_v44  ;;  %2617 = vmatprep.subr.bf16.mxu1 %v10563_v45 }
 0x9e5   : > { %2220 = vadd.xlane.f32.xlu1 %v11898_v42 }
 0x9e6   : > { %2618 = vmatpush1.bf16.msra.mxu1 %v10561_v50 }
 0x9e7   : > { %2218 = vadd.xlane.f32.xlu0 %v11901_v46  ;;  %2545 = vmatpush1.bf16.msra.mxu0 %v10558_v56 }
 0x9e8   : > { %2546 = vmatprep.subr.bf16.mxu0 %v10566_v43  ;;  %2619 = vmatprep.subr.bf16.mxu1 %v10569_v59 }
 0x9ea   : > { %2620 = vmatpush1.bf16.msra.mxu1 %v10567_v47 }
 0x9eb   : > { %2547 = vmatpush1.bf16.msra.mxu0 %v10564_v53  ;;  %2621 = vmatprep.subr.bf16.mxu1 %v10575_v34 }
 0x9ec   : > { %2548 = vmatprep.subr.bf16.mxu0 %v10572_v39 }
 0x9ee   : > { %2622 = vmatpush1.bf16.msra.mxu1 %v10573_v0 }
 0x9ef   : > { %2549 = vmatpush1.bf16.msra.mxu0 %v10570_v57  ;;  %2623 = vmatprep.subr.bf16.mxu1 %v10581_v11 }
 0x9f0   : > { %2550 = vmatprep.subr.bf16.mxu0 %v10578_v4  ;;  %v8596_v4 = vld [vmem:[%s14323_s11] ss:$0 sm:$0xff] }
 0x9f2   : > { %2624 = vmatpush1.bf16.msra.mxu1 %v10579_v48 }
 0x9f3   : > { %2551 = vmatpush1.bf16.msra.mxu0 %v10576_v14  ;;  %2625 = vmatprep.subr.bf16.mxu1 %v10587_v60 }
 0x9f4   : > { %2552 = vmatprep.subr.bf16.mxu0 %v10584_v54 }
 0x9f7   : > { %2553 = vmatpush1.bf16.msra.mxu0 %v10582_v61 }
 0xa64   : > { %v2207_v29 = vpop.xlane.xlu0 %2206 }
 0xa65   : > { %v2222_v62 = vmul.f32 0.0078125, %v2207_v29  ;;  %v10585_v29 = vld [vmem:[%s14324_s12 + $0xc8] ss:$16 sps:$4 sm:$0xff]  }
 0xa66   : > { %v2209_v63 = vpop.xlane.xlu1 %2208  ;;  %2626 = vmatpush1.bf16.msra.mxu1 %v10585_v29 }
 0xa67   : > { %v2223_v19 = vmul.f32 0.0078125, %v2209_v63  ;;  %v11930_v32 = vsub.f32 %v11875_v18, %v2222_v62  ;;  %v10590_v62 = vld [vmem:[%s14324_s12 + $0xe4] ss:$16 sps:$4 sm:$0xff]   ;;  %v10593_v63 = vld [vmem:[%s14324_s12 + $0xec] ss:$16 sps:$4 sm:$0xff]  }
 0xa68   : > { %v2211_v2 = vpop.xlane.xlu0 %2210  ;;  %2554 = vmatprep.subr.bf16.mxu0 %v10590_v62  ;;  %2627 = vmatprep.subr.bf16.mxu1 %v10593_v63 }
 0xa69   : > { %v2224_v3 = vmul.f32 0.0078125, %v2211_v2  ;;  %v2238_v38 = vmul.f32 %v11930_v32, %v11930_v32  ;;  %v11935_v20 = vsub.f32 %v11878_v7, %v2223_v19  ;;  %v10588_v19 = vld [vmem:[%s14324_s12 + $0xe0] ss:$16 sps:$4 sm:$0xff]   ;;  %v10591_v2 = vld [vmem:[%s14324_s12 + $0xe8] ss:$16 sps:$4 sm:$0xff]  }
 0xa6a   : > { %2555 = vmatpush1.bf16.msra.mxu0 %v10588_v19  ;;  %2628 = vmatpush1.bf16.msra.mxu1 %v10591_v2 }
 0xa6b   : > { %2246 = vadd.xlane.f32.xlu0 %v2238_v38  ;;  %v2239_v5 = vmul.f32 %v11935_v20, %v11935_v20  ;;  %v11940_v58 = vsub.f32 %v11881_v41, %v2224_v3 }
 0xa6c   : > { %v2213_v24 = vpop.xlane.xlu0 %2212 }
 0xa6d   : > { %v2225_v10 = vmul.f32 0.0078125, %v2213_v24  ;;  %2248 = vadd.xlane.f32.xlu1 %v2239_v5  ;;  %v2240_v37 = vmul.f32 %v11940_v58, %v11940_v58 }
 0xa6e   : > { %v2217_v51 = vpop.xlane.xlu1 %2216 }
 0xa6f   : > { %v2227_v55 = vmul.f32 0.0078125, %v2217_v51  ;;  %2250 = vadd.xlane.f32.xlu0 %v2240_v37  ;;  %v11945_v49 = vsub.f32 %v11886_v33, %v2225_v10 }
 0xa70   : > { %v2215_v12 = vpop.xlane.xlu0 %2214 }
 0xa71   : > { %v2226_v13 = vmul.f32 0.0078125, %v2215_v12  ;;  %v2241_v15 = vmul.f32 %v11945_v49, %v11945_v49  ;;  %v11950_v17 = vsub.f32 %v11891_v36, %v2227_v55 }
 0xa72   : > { %v2221_v21 = vpop.xlane.xlu1 %2220 }
 0xa73   : > { %v2229_v25 = vmul.f32 0.0078125, %v2221_v21  ;;  %2252 = vadd.xlane.f32.xlu1 %v2241_v15  ;;  %v11953_v31 = vsub.f32 %v11895_v40, %v2226_v13  ;;  %v2243_v8 = vmul.f32 %v11950_v17, %v11950_v17 }
 0xa74   : > { %v2219_v35 = vpop.xlane.xlu0 %2218 }
 0xa75   : > { %v2228_v52 = vmul.f32 0.0078125, %v2219_v35  ;;  %v2242_v9 = vmul.f32 %v11953_v31, %v11953_v31  ;;  %v11960_v6 = vsub.f32 %v11898_v42, %v2229_v25 }
 0xa77   : > { %2254 = vadd.xlane.f32.xlu0 %v2242_v9  ;;  %2256 = vadd.xlane.f32.xlu1 %v2243_v8  ;;  %v11963_v22 = vsub.f32 %v11901_v46, %v2228_v52  ;;  %v2245_v23 = vmul.f32 %v11960_v6, %v11960_v6 }
 0xa79   : > { %v2244_v28 = vmul.f32 %v11963_v22, %v11963_v22 }
 0xa7b   : > { %2258 = vadd.xlane.f32.xlu0 %v2244_v28  ;;  %2260 = vadd.xlane.f32.xlu1 %v2245_v23  ;;  %v8595_v28 = vld [vmem:[%s14322_s10] ss:$0 sm:$0xff] }
 0xaf8   : > { %v2247_v3 = vpop.xlane.xlu0 %2246 }
 0xaf9   : > { %v2262_v38 = vmul.f32 0.0078125, %v2247_v3 }
 0xafa   : > { %v2249_v5 = vpop.xlane.xlu1 %2248 }
 0xafb   : > { %v2270_v24 = vadd.f32 1e-06, %v2262_v38  ;;  %v2263_v10 = vmul.f32 0.0078125, %v2249_v5 }
 0xafc   : > { %v2251_v37 = vpop.xlane.xlu0 %2250 }
 0xafd   : > { %10942 = vrsqrt.f32 %v2270_v24  ;;  %v2271_v51 = vadd.f32 1e-06, %v2263_v10  ;;  %v2264_v55 = vmul.f32 0.0078125, %v2251_v37 }
 0xaff   : > { %10944 = vrsqrt.f32 %v2271_v51  ;;  %v2272_v12 = vadd.f32 1e-06, %v2264_v55 }
 0xb00   : > { %v2253_v13 = vpop.xlane.xlu1 %2252 }
 0xb01   : > { %10946 = vrsqrt.f32 %v2272_v12  ;;  %v2265_v15 = vmul.f32 0.0078125, %v2253_v13 }
 0xb03   : > { %v2273_v21 = vadd.f32 1e-06, %v2265_v15 }
 0xb04   : > { %v2255_v25 = vpop.xlane.xlu0 %2254  ;;  %v2257_v35 = vpop.xlane.xlu1 %2256 }
 0xb05   : > { %10948 = vrsqrt.f32 %v2273_v21  ;;  %v2266_v52 = vmul.f32 0.0078125, %v2255_v25  ;;  %v2267_v9 = vmul.f32 0.0078125, %v2257_v35  ;;  %v10596_v35 = vld [vmem:[%s14326_s14] sm:$0xff]  }
 0xb07   : > { %v10943_v8 = vpop.eup %10942  ;;  %v2274_v23 = vadd.f32 1e-06, %v2266_v52  ;;  %v2275_v44 = vadd.f32 1e-06, %v2267_v9  ;;  %v10597_v52 = vld [vmem:[%s14326_s14 + $0x80] sm:$0xff]   ;;  %v10598_v9 = vld [vmem:[%s14326_s14 + $0x48] sm:$0xff]  }
 0xb08   : > { %v2286_v45 = vmul.f32 %v10943_v8, %v11930_v32  ;;  %v2259_v56 = vpop.xlane.xlu0 %2258  ;;  %v2261_v50 = vpop.xlane.xlu1 %2260  ;;  %v10599_v8 = vld [vmem:[%s14326_s14 + $0xc8] sm:$0xff]  }
 0xb09   : > { %v10945_v43 = vpop.eup %10944  ;;  %10950 = vrsqrt.f32 %v2274_v23  ;;  %v2268_v59 = vmul.f32 0.0078125, %v2259_v56  ;;  %v2269_v53 = vmul.f32 0.0078125, %v2261_v50  ;;  %v10601_v23 = vld [vmem:[%s14326_s14 + $0x88] sm:$0xff]   ;;  %v10604_v56 = vld [vmem:[%s14326_s14 + $0x10] sm:$0xff]  }
 0xb0a   : > { %v2300_v47 = vmul.f32 %v8595_v28, %v2286_v45  ;;  %v2287_v39 = vmul.f32 %v10945_v43, %v11935_v20  ;;  %10952 = vrsqrt.f32 %v2275_v44  ;;  %v10602_v44 = vld [vmem:[%s14326_s14 + $0x50] sm:$0xff]   ;;  %v10606_v43 = vld [vmem:[%s14326_s14 + $0x58] sm:$0xff]  }
 0xb0b   : > { %v10947_v34 = vpop.eup %10946  ;;  %v2276_v57 = vadd.f32 1e-06, %v2268_v59  ;;  %v2277_v0 = vadd.f32 1e-06, %v2269_v53  ;;  %v10603_v45 = vld [vmem:[%s14326_s14 + $0xd0] sm:$0xff]   ;;  %v10607_v59 = vld [vmem:[%s14326_s14 + $0xd8] sm:$0xff]  }
 0xb0c   : > { %v2301_v11 = vmul.f32 %v8595_v28, %v2287_v39  ;;  %v2314_v32 = vadd.f32 %v8596_v4, %v2300_v47  ;;  %v2288_v48 = vmul.f32 %v10947_v34, %v11940_v58  ;;  %v10605_v50 = vld [vmem:[%s14326_s14 + $0x90] sm:$0xff]   ;;  %v10608_v53 = vld [vmem:[%s14326_s14 + $0x18] sm:$0xff]   ;;  %v10610_v39 = vld [vmem:[%s14326_s14 + $0x60] sm:$0xff]  }
 0xb0d   : > { %10954 = vrsqrt.f32 %v2276_v57  ;;  %v10609_v47 = vld [vmem:[%s14326_s14 + $0x98] sm:$0xff]   ;;  %v10611_v34 = vld [vmem:[%s14326_s14 + $0xe0] sm:$0xff]  }
 0xb0e   : > { %v2315_v14 = vadd.f32 %v8596_v4, %v2301_v11  ;;  %10956 = vrsqrt.f32 %v2277_v0  ;;  %v2302_v20 = vmul.f32 %v8595_v28, %v2288_v48  ;;  %v10612_v57 = vld [vmem:[%s14326_s14 + $0x20] sm:$0xff]   ;;  %v10615_v11 = vld [vmem:[%s14326_s14 + $0xe8] sm:$0xff]   ;;  %v10618_v48 = vld [vmem:[%s14326_s14 + $0x70] sm:$0xff]  }
 0xb0f   : > { %v10949_v54 = vpop.eup %10948  ;;  %v10613_v0 = vld [vmem:[%s14326_s14 + $0xa0] sm:$0xff]  }
 0xb10   : > { %v2322_v60 = vpack.c.bf16 %v2315_v14, %v2314_v32  ;;  %v2289_v61 = vmul.f32 %v10949_v54, %v11945_v49  ;;  %v2316_v3 = vadd.f32 %v8596_v4, %v2302_v20  ;;  %v10616_v32 = vld [vmem:[%s14326_s14 + $0x28] sm:$0xff]   ;;  %v10619_v54 = vld [vmem:[%s14326_s14 + $0xf0] sm:$0xff]   ;;  %v10622_v20 = vld [vmem:[%s14326_s14 + $0x78] sm:$0xff]  }
 0xb11   : > { %v10617_v14 = vld [vmem:[%s14326_s14 + $0xa8] sm:$0xff]  }
 0xb12   : > { %2573 = vmatmul.mubr.bf16.vlgmr.msra.gmra.mrb[40].mxu0 %v2322_v60  ;;  %2646 = vmatmul.mubr.bf16.vlgmr.msra.gmra.mrb[40].mxu1 %v2322_v60  ;;  %v2303_v29 = vmul.f32 %v8595_v28, %v2289_v61  ;;  %v10620_v60 = vld [vmem:[%s14326_s14 + $0x30] sm:$0xff]  }
 0xb13   : > { %v10951_v62 = vpop.eup %10950  ;;  %2582 = vmatprep.mubr.bf16.mxu0 %v14348_v1  ;;  %2655 = vmatprep.mubr.bf16.mxu1 %v14348_v1  ;;  %v10621_v61 = vld [vmem:[%s14326_s14 + $0xb0] sm:$0xff]  }
 0xb14   : > { %v10953_v63 = vpop.eup %10952  ;;  %v2317_v19 = vadd.f32 %v8596_v4, %v2303_v29  ;;  %v2290_v2 = vmul.f32 %v10951_v62, %v11953_v31  ;;  %v10623_v29 = vld [vmem:[%s14326_s14 + $0xf8] sm:$0xff]  }
 0xb15   : > { %v2291_v58 = vmul.f32 %v10953_v63, %v11950_v17  ;;  %v10624_v62 = vld [vmem:[%s14326_s14 + $0x38] sm:$0xff]  }
 0xb16   : > { %v2323_v5 = vpack.c.bf16 %v2317_v19, %v2316_v3  ;;  %v2304_v24 = vmul.f32 %v8595_v28, %v2290_v2  ;;  %v10625_v63 = vld [vmem:[%s14326_s14 + $0xb8] sm:$0xff]   ;;  %v2358_v19 = vld [vmem:[%s14325_s13] sm:$0xf]  ;;  %v14347_v2 = vsub.s32 3, %v11619_v26 }
 0xb17   : > { %v10955_v38 = vpop.eup %10954  ;;  %v2305_v49 = vmul.f32 %v8595_v28, %v2291_v58  ;;  %v12162_v58 = vrot.slane %v2358_v19, %v11622_v27  ;;  %v12165_v3 = vrot.slane %v2358_v19, %v11659_v16 }
 0xb18   : > { %v10957_v10 = vpop.eup %10956  ;;  %v2318_v37 = vadd.f32 %v8596_v4, %v2304_v24  ;;  %v2292_v55 = vmul.f32 %v10955_v38, %v11963_v22  ;;  %v10594_v22 = vld [vmem:[%s14326_s14 + $0x40] sm:$0xff]   ;;  %v12168_v38 = vrot.slane %v2358_v19, %v11628_v30 }
 0xb19   : > { %v2319_v51 = vadd.f32 %v8596_v4, %v2305_v49  ;;  %v2293_v31 = vmul.f32 %v10957_v10, %v11960_v6  ;;  %v10595_v6 = vld [vmem:[%s14326_s14 + $0xc0] sm:$0xff]   ;;  %9352 = vmatprep.subr.bf16.mxu0 %v10594_v22 }
 0xb1a   : > { %2583 = vmatmul.mubr.bf16.gmra.mrb[44].mxu0 %v2323_v5  ;;  %2656 = vmatmul.mubr.bf16.gmra.mrb[44].mxu1 %v2323_v5  ;;  %v2306_v17 = vmul.f32 %v8595_v28, %v2292_v55  ;;  %v12172_v5 = vrot.slane %v2358_v19, %v14347_v2 }
 0xb1b   : > { %2592 = vmatprep.mubr.bf16.mxu0 %v14348_v1  ;;  %2665 = vmatprep.mubr.bf16.mxu1 %v14348_v1  ;;  %v2324_v12 = vpack.c.bf16 %v2319_v51, %v2318_v37  ;;  %v2307_v13 = vmul.f32 %v8595_v28, %v2293_v31  ;;  %v10600_v28 = vld [vmem:[%s14326_s14 + $0x8] sm:$0xff]  }
 0xb1c   : > { %v2320_v15 = vadd.f32 %v8596_v4, %v2306_v17  ;;  %9392 = vmatprep.subr.bf16.mxu1 %v10595_v6  ;;  %9353 = vmatpush3.bf16.msra.mxu0 %v10596_v35 }
 0xb1d   : > { %v2321_v21 = vadd.f32 %v8596_v4, %v2307_v13  ;;  %9393 = vmatpush3.bf16.msra.mxu1 %v10597_v52  ;;  %9354 = vmatprep.subr.bf16.mxu0 %v10598_v9  ;;  %v10614_v4 = vld [vmem:[%s14326_s14 + $0x68] sm:$0xff]  }
 0xb1e   : > { %9394 = vmatprep.subr.bf16.mxu1 %v10599_v8 }
 0xb1f   : > { %v2325_v25 = vpack.c.bf16 %v2321_v21, %v2320_v15 }
 0xb20   : > { %9355 = vmatpush3.bf16.msra.mxu0 %v10600_v28 }
 0xb21   : > { %9395 = vmatpush3.bf16.msra.mxu1 %v10601_v23  ;;  %9356 = vmatprep.subr.bf16.mxu0 %v10602_v44 }
 0xb22   : > { %2593 = vmatmul.mubr.bf16.gmra.mrb[48].mxu0 %v2324_v12  ;;  %2666 = vmatmul.mubr.bf16.gmra.mrb[48].mxu1 %v2324_v12 }
 0xb23   : > { %2602 = vmatprep.mubr.bf16.mxu0 %v14348_v1  ;;  %2675 = vmatprep.mubr.bf16.mxu1 %v14348_v1 }
 0xb24   : > { %9396 = vmatprep.subr.bf16.mxu1 %v10603_v45  ;;  %9357 = vmatpush3.bf16.msra.mxu0 %v10604_v56 }
 0xb25   : > { %9397 = vmatpush3.bf16.msra.mxu1 %v10605_v50  ;;  %9358 = vmatprep.subr.bf16.mxu0 %v10606_v43 }
 0xb26   : > { %9398 = vmatprep.subr.bf16.mxu1 %v10607_v59 }
 0xb28   : > { %9359 = vmatpush3.bf16.msra.mxu0 %v10608_v53 }
 0xb29   : > { %9399 = vmatpush3.bf16.msra.mxu1 %v10609_v47  ;;  %9360 = vmatprep.subr.bf16.mxu0 %v10610_v39 }
 0xb2a   : > { %2603 = vmatmul.mubr.bf16.gmra.mrb[52].mxu0 %v2325_v25  ;;  %2676 = vmatmul.mubr.bf16.gmra.mrb[52].mxu1 %v2325_v25 }
 0xb2b   : > { %9400 = vmatprep.subr.bf16.mxu1 %v10611_v34 }
 0xb2c   : > { %9361 = vmatpush3.bf16.msra.mxu0 %v10612_v57 }
 0xb2d   : > { %9401 = vmatpush3.bf16.msra.mxu1 %v10613_v0  ;;  %9362 = vmatprep.subr.bf16.mxu0 %v10614_v4 }
 0xb2e   : > { %9402 = vmatprep.subr.bf16.mxu1 %v10615_v11 }
 0xb30   : > { %9363 = vmatpush3.bf16.msra.mxu0 %v10616_v32 }
 0xb31   : > { %9403 = vmatpush3.bf16.msra.mxu1 %v10617_v14  ;;  %9364 = vmatprep.subr.bf16.mxu0 %v10618_v48 }
 0xb32   : > { %9404 = vmatprep.subr.bf16.mxu1 %v10619_v54 }
 0xb34   : > { %9365 = vmatpush3.bf16.msra.mxu0 %v10620_v60 }
 0xb35   : > { %9405 = vmatpush3.bf16.msra.mxu1 %v10621_v61  ;;  %9366 = vmatprep.subr.bf16.mxu0 %v10622_v20 }
 0xb36   : > { %9406 = vmatprep.subr.bf16.mxu1 %v10623_v29 }
 0xb38   : > { %9367 = vmatpush3.bf16.msra.mxu0 %v10624_v62 }
 0xb39   : > { %9407 = vmatpush3.bf16.msra.mxu1 %v10625_v63 }
 0xbe5   : > { %v2574_v24 = vpop.f32.mrb[40].mxu0  ;;  %v2647_v49 = vpop.f32.mrb[40].mxu1 }
 0xbe6   : > { %v12175_v10 = vadd.f32 %v2574_v24, %v12162_v58  ;;  %v12178_v37 = vadd.f32 %v2647_v49, %v12165_v3  ;;  %v2576_v51 = vpop.f32.mrb[41].mxu0  ;;  %v2649_v55 = vpop.f32.mrb[41].mxu1 }
 0xbe7   : > { %v12181_v31 = vadd.f32 %v2576_v51, %v12168_v38  ;;  %v12184_v12 = vadd.f32 %v2649_v55, %v12172_v5  ;;  %v2578_v17 = vpop.f32.mrb[42].mxu0  ;;  %v2651_v13 = vpop.f32.mrb[42].mxu1 }
 0xbe8   : > { %v2686_v15 = vmul.f32 %v12175_v10, %v12175_v10  ;;  %v2688_v21 = vmul.f32 %v12178_v37, %v12178_v37  ;;  %v12191_v25 = vadd.f32 %v2578_v17, %v12162_v58  ;;  %v12194_v22 = vadd.f32 %v2651_v13, %v12165_v3  ;;  %v2580_v6 = vpop.f32.mrb[43].mxu0  ;;  %v2653_v35 = vpop.f32.mrb[43].mxu1 }
 0xbe9   : > { %v2687_v52 = vmul.f32 %v12181_v31, %v12181_v31  ;;  %v2689_v9 = vmul.f32 %v12184_v12, %v12184_v12  ;;  %v12201_v8 = vadd.f32 %v2580_v6, %v12168_v38  ;;  %v12204_v28 = vadd.f32 %v2653_v35, %v12172_v5 }
 0xbea   : > { %v2718_v23 = vmul.f32 %v2686_v15, %v12175_v10  ;;  %v2720_v44 = vmul.f32 %v2688_v21, %v12178_v37  ;;  %v2690_v45 = vmul.f32 %v12191_v25, %v12191_v25  ;;  %v2692_v56 = vmul.f32 %v12194_v22, %v12194_v22 }
 0xbeb   : > { %v2719_v50 = vmul.f32 %v2687_v52, %v12181_v31  ;;  %v2721_v43 = vmul.f32 %v2689_v9, %v12184_v12  ;;  %v2691_v59 = vmul.f32 %v12201_v8, %v12201_v8  ;;  %v2693_v53 = vmul.f32 %v12204_v28, %v12204_v28 }
 0xbec   : > { %v2750_v47 = vmul.f32 0.044715, %v2718_v23  ;;  %v2752_v39 = vmul.f32 0.044715, %v2720_v44  ;;  %v2722_v34 = vmul.f32 %v2690_v45, %v12191_v25  ;;  %v2724_v57 = vmul.f32 %v2692_v56, %v12194_v22 }
 0xbed   : > { %v2751_v0 = vmul.f32 0.044715, %v2719_v50  ;;  %v2753_v4 = vmul.f32 0.044715, %v2721_v43  ;;  %v2723_v11 = vmul.f32 %v2691_v59, %v12201_v8  ;;  %v2725_v32 = vmul.f32 %v2693_v53, %v12204_v28  ;;  %v2584_v14 = vpop.f32.mrb[44].mxu0  ;;  %v2657_v48 = vpop.f32.mrb[44].mxu1 }
 0xbee   : > { %v2782_v54 = vadd.f32 %v2750_v47, %v12175_v10  ;;  %v2784_v60 = vadd.f32 %v2752_v39, %v12178_v37  ;;  %v2754_v61 = vmul.f32 0.044715, %v2722_v34  ;;  %v2756_v20 = vmul.f32 0.044715, %v2724_v57  ;;  %v2586_v29 = vpop.f32.mrb[45].mxu0  ;;  %v2659_v62 = vpop.f32.mrb[45].mxu1 }
 0xbef   : > { %v2783_v63 = vadd.f32 %v2751_v0, %v12181_v31  ;;  %v2785_v19 = vadd.f32 %v2753_v4, %v12184_v12  ;;  %v2755_v24 = vmul.f32 0.044715, %v2723_v11  ;;  %v2757_v49 = vmul.f32 0.044715, %v2725_v32  ;;  %v2588_v51 = vpop.f32.mrb[46].mxu0  ;;  %v2661_v55 = vpop.f32.mrb[46].mxu1 }
 0xbf0   : > { %v2814_v17 = vmul.f32 0.7978846, %v2782_v54  ;;  %v2816_v13 = vmul.f32 0.7978846, %v2784_v60  ;;  %v2786_v15 = vadd.f32 %v2754_v61, %v12191_v25  ;;  %v2788_v21 = vadd.f32 %v2756_v20, %v12194_v22  ;;  %v2590_v6 = vpop.f32.mrb[47].mxu0  ;;  %v2663_v35 = vpop.f32.mrb[47].mxu1 }
 0xbf1   : > { %v2815_v52 = vmul.f32 0.7978846, %v2783_v63  ;;  %v2817_v9 = vmul.f32 0.7978846, %v2785_v19  ;;  %v2787_v23 = vadd.f32 %v2755_v24, %v12201_v8  ;;  %v2789_v44 = vadd.f32 %v2757_v49, %v12204_v28 }
 0xbf2   : > { %10958 = vtanh.f32 %v2814_v17  ;;  %v2818_v45 = vmul.f32 0.7978846, %v2786_v15  ;;  %v2820_v56 = vmul.f32 0.7978846, %v2788_v21  ;;  %v12231_v50 = vadd.f32 %v2584_v14, %v12162_v58 }
 0xbf3   : > { %10960 = vtanh.f32 %v2816_v13  ;;  %v2819_v43 = vmul.f32 0.7978846, %v2787_v23  ;;  %v2821_v59 = vmul.f32 0.7978846, %v2789_v44  ;;  %v12234_v53 = vadd.f32 %v2657_v48, %v12165_v3 }
 0xbf4   : > { %10962 = vtanh.f32 %v2815_v52  ;;  %v2694_v47 = vmul.f32 %v12231_v50, %v12231_v50  ;;  %v12239_v39 = vadd.f32 %v2586_v29, %v12168_v38  ;;  %v12242_v34 = vadd.f32 %v2659_v62, %v12172_v5 }
 0xbf5   : > { %10964 = vtanh.f32 %v2817_v9  ;;  %v2696_v57 = vmul.f32 %v12234_v53, %v12234_v53  ;;  %v12247_v0 = vadd.f32 %v2588_v51, %v12162_v58  ;;  %v12250_v4 = vadd.f32 %v2661_v55, %v12165_v3  ;;  %v12252_v11 = vpop.f32.mrb[48].mxu0  ;;  %v12254_v32 = vpop.f32.mrb[48].mxu1 }
 0xbf6   : > { %10966 = vtanh.f32 %v2818_v45  ;;  %v2726_v14 = vmul.f32 %v2694_v47, %v12231_v50  ;;  %v2695_v48 = vmul.f32 %v12239_v39, %v12239_v39  ;;  %v2697_v54 = vmul.f32 %v12242_v34, %v12242_v34  ;;  %v12261_v60 = vpop.f32.mrb[49].mxu0  ;;  %v12263_v61 = vpop.f32.mrb[49].mxu1 }
 0xbf7   : > { %10968 = vtanh.f32 %v2820_v56  ;;  %v2728_v20 = vmul.f32 %v2696_v57, %v12234_v53  ;;  %v2698_v29 = vmul.f32 %v12247_v0, %v12247_v0  ;;  %v2700_v62 = vmul.f32 %v12250_v4, %v12250_v4  ;;  %v12270_v63 = vpop.f32.mrb[50].mxu0  ;;  %v12272_v19 = vpop.f32.mrb[50].mxu1 }
 0xbf8   : > { %10970 = vtanh.f32 %v2819_v43  ;;  %v2758_v24 = vmul.f32 0.044715, %v2726_v14  ;;  %v2727_v49 = vmul.f32 %v2695_v48, %v12239_v39  ;;  %v2729_v51 = vmul.f32 %v2697_v54, %v12242_v34  ;;  %v12276_v55 = vpop.f32.mrb[51].mxu0  ;;  %v12278_v17 = vpop.f32.mrb[51].mxu1 }
 0xbf9   : > { %10972 = vtanh.f32 %v2821_v59  ;;  %v2760_v13 = vmul.f32 0.044715, %v2728_v20  ;;  %v2730_v15 = vmul.f32 %v2698_v29, %v12247_v0  ;;  %v2732_v21 = vmul.f32 %v2700_v62, %v12250_v4 }
 0xbfa   : > { %v2790_v52 = vadd.f32 %v2758_v24, %v12231_v50  ;;  %v2759_v9 = vmul.f32 0.044715, %v2727_v49  ;;  %v2761_v23 = vmul.f32 0.044715, %v2729_v51  ;;  %v12284_v44 = vadd.f32 %v2590_v6, %v12168_v38 }
 0xbfb   : > { %v2792_v45 = vadd.f32 %v2760_v13, %v12234_v53  ;;  %v2762_v56 = vmul.f32 0.044715, %v2730_v15  ;;  %v2764_v43 = vmul.f32 0.044715, %v2732_v21  ;;  %v12288_v47 = vadd.f32 %v2663_v35, %v12172_v5 }
 0xbfc   : > { %v10959_v59 = vpop.eup %10958  ;;  %v2822_v57 = vmul.f32 0.7978846, %v2790_v52  ;;  %v2791_v14 = vadd.f32 %v2759_v9, %v12239_v39  ;;  %v2793_v48 = vadd.f32 %v2761_v23, %v12242_v34  ;;  %v2699_v54 = vmul.f32 %v12284_v44, %v12284_v44 }
 0xbfd   : > { %v10961_v20 = vpop.eup %10960  ;;  %v2878_v29 = vadd.f32 1.0, %v10959_v59  ;;  %v2824_v6 = vmul.f32 0.7978846, %v2792_v45  ;;  %v2794_v62 = vadd.f32 %v2762_v56, %v12247_v0  ;;  %v2796_v24 = vadd.f32 %v2764_v43, %v12250_v4  ;;  %v12296_v49 = vpop.f32.mrb[52].mxu0 }
 0xbfe   : > { %v12298_v35 = vpop.f32.mrb[52].mxu1  ;;  %v12300_v51 = vpop.eup %10962  ;;  %v2880_v13 = vadd.f32 1.0, %v10961_v20  ;;  %10974 = vtanh.f32 %v2822_v57  ;;  %v2823_v15 = vmul.f32 0.7978846, %v2791_v14  ;;  %v2825_v21 = vmul.f32 0.7978846, %v2793_v48 }
 0xbff   : > { %v12302_v52 = vpop.f32.mrb[53].mxu0  ;;  %v12304_v9 = vpop.eup %10964  ;;  %v2910_v23 = vmul.f32 0.5, %v2878_v29  ;;  %10976 = vtanh.f32 %v2824_v6  ;;  %v2826_v45 = vmul.f32 0.7978846, %v2794_v62  ;;  %v2828_v56 = vmul.f32 0.7978846, %v2796_v24 }
 0xc00   : > { %v12306_v59 = vpop.f32.mrb[53].mxu1  ;;  %v10967_v43 = vpop.eup %10966  ;;  %v2912_v2 = vmul.f32 0.5, %v2880_v13  ;;  %10978 = vtanh.f32 %v2823_v15  ;;  %v2731_v1 = vmul.f32 %v2699_v54, %v12284_v44  ;;  %v2701_v57 = vmul.f32 %v12288_v47, %v12288_v47 }
 0xc01   : > { %v12311_v14 = vpop.f32.mrb[54].mxu0  ;;  %v12313_v48 = vpop.f32.mrb[54].mxu1  ;;  %v12316_v29 = vmul.f32 %v2910_v23, %v12175_v10  ;;  %v2882_v6 = vadd.f32 1.0, %v10967_v43  ;;  %10980 = vtanh.f32 %v2825_v21  ;;  %v12320_v62 = vadd.f32 %v12252_v11, %v12162_v58 }
 0xc02   : > { %v10969_v20 = vpop.eup %10968  ;;  %v12322_v24 = vpop.f32.mrb[55].mxu0  ;;  %v12329_v15 = vmul.f32 %v2912_v2, %v12178_v37  ;;  %10982 = vtanh.f32 %v2826_v45  ;;  %v2763_v16 = vmul.f32 0.044715, %v2731_v1  ;;  %v2733_v21 = vmul.f32 %v2701_v57, %v12288_v47 }
 0xc03   : > { %v12324_v54 = vpop.f32.mrb[55].mxu1  ;;  %v12326_v13 = vpop.eup %10970  ;;  %v2884_v26 = vadd.f32 1.0, %v10969_v20  ;;  %v2914_v23 = vmul.f32 0.5, %v2882_v6  ;;  %10984 = vtanh.f32 %v2828_v56  ;;  %v2702_v11 = vmul.f32 %v12320_v62, %v12320_v62 }
 0xc04   : > { %v12331_v10 = vpop.eup %10972  ;;  %v2795_v30 = vadd.f32 %v2763_v16, %v12284_v44  ;;  %v12339_v27 = vadd.f32 %v12254_v32, %v12165_v3  ;;  %v12343_v2 = vadd.f32 %v12261_v60, %v12168_v38  ;;  %v2765_v37 = vmul.f32 0.044715, %v2733_v21 }
 0xc05   : > { %v2916_v43 = vmul.f32 0.5, %v2884_v26  ;;  %v12346_v1 = vmul.f32 %v2914_v23, %v12191_v25  ;;  %v2734_v45 = vmul.f32 %v2702_v11, %v12320_v62  ;;  %v12351_v56 = vadd.f32 %v12263_v61, %v12172_v5 }
 0xc06   : > { %v2827_v16 = vmul.f32 0.7978846, %v2795_v30  ;;  %v2704_v32 = vmul.f32 %v12339_v27, %v12339_v27  ;;  %v2703_v60 = vmul.f32 %v12343_v2, %v12343_v2  ;;  %v2797_v57 = vadd.f32 %v2765_v37, %v12288_v47 }
 0xc07   : > { %v12354_v26 = vmul.f32 %v2916_v43, %v12194_v22  ;;  %v2766_v20 = vmul.f32 0.044715, %v2734_v45  ;;  %v2705_v61 = vmul.f32 %v12351_v56, %v12351_v56  ;;  %v12377_v45 = vadd.f32 %v12270_v63, %v12162_v58 }
 0xc08   : > { %v12365_v6 = vpop.eup %10974  ;;  %10986 = vtanh.f32 %v2827_v16  ;;  %v2736_v22 = vmul.f32 %v2704_v32, %v12339_v27  ;;  %v2735_v23 = vmul.f32 %v2703_v60, %v12343_v2  ;;  %v2829_v11 = vmul.f32 0.7978846, %v2797_v57 }
 0xc09   : > { %v12371_v21 = vpop.eup %10976  ;;  %v2798_v43 = vadd.f32 %v2766_v20, %v12320_v62  ;;  %v2737_v37 = vmul.f32 %v2705_v61, %v12351_v56  ;;  %v12383_v16 = vadd.f32 %v12272_v19, %v12165_v3  ;;  %v12387_v32 = vadd.f32 %v12276_v55, %v12168_v38 }
 0xc0a   : > { %v12379_v25 = vpop.eup %10978  ;;  %v2768_v42 = vmul.f32 0.044715, %v2736_v22  ;;  %v2767_v30 = vmul.f32 0.044715, %v2735_v23  ;;  %10988 = vtanh.f32 %v2829_v11  ;;  %v2706_v63 = vmul.f32 %v12377_v45, %v12377_v45 }
 0xc0b   : > { %v12389_v60 = vpop.eup %10980  ;;  %v2830_v57 = vmul.f32 0.7978846, %v2798_v43  ;;  %v2769_v20 = vmul.f32 0.044715, %v2737_v37  ;;  %v2708_v19 = vmul.f32 %v12383_v16, %v12383_v16  ;;  %v2707_v55 = vmul.f32 %v12387_v32, %v12387_v32 }
 0xc0c   : > { %v12393_v61 = vpop.eup %10982  ;;  %v2800_v22 = vadd.f32 %v2768_v42, %v12339_v27  ;;  %v2799_v23 = vadd.f32 %v2767_v30, %v12343_v2  ;;  %v2738_v43 = vmul.f32 %v2706_v63, %v12377_v45  ;;  %v12407_v37 = vadd.f32 %v12278_v17, %v12172_v5 }
 0xc0d   : > { %v12401_v46 = vpop.eup %10984  ;;  %10990 = vtanh.f32 %v2830_v57  ;;  %v2801_v11 = vadd.f32 %v2769_v20, %v12351_v56  ;;  %v2740_v30 = vmul.f32 %v2708_v19, %v12383_v16  ;;  %v2739_v40 = vmul.f32 %v2707_v55, %v12387_v32 }
 0xc0e   : > { %v2832_v42 = vmul.f32 0.7978846, %v2800_v22  ;;  %v2831_v36 = vmul.f32 0.7978846, %v2799_v23  ;;  %v2770_v41 = vmul.f32 0.044715, %v2738_v43  ;;  %v2709_v7 = vmul.f32 %v12407_v37, %v12407_v37 }
 0xc0f   : > { %v2833_v33 = vmul.f32 0.7978846, %v2801_v11  ;;  %v12415_v57 = vadd.f32 %v12296_v49, %v12162_v58  ;;  %v2772_v20 = vmul.f32 0.044715, %v2740_v30  ;;  %v2771_v63 = vmul.f32 0.044715, %v2739_v40 }
 0xc10   : > { %10992 = vtanh.f32 %v2832_v42  ;;  %v12419_v17 = vadd.f32 %v12298_v35, %v12165_v3  ;;  %v2802_v22 = vadd.f32 %v2770_v41, %v12377_v45  ;;  %v2741_v23 = vmul.f32 %v2709_v7, %v12407_v37 }
 0xc11   : > { %14410 = vst [vmem:[#allocation15_spill] sm:$0xff] %v12415_v57  ;;  %10994 = vtanh.f32 %v2831_v36  ;;  %v2710_v19 = vmul.f32 %v12415_v57, %v12415_v57  ;;  %v2804_v49 = vadd.f32 %v2772_v20, %v12383_v16  ;;  %v2803_v11 = vadd.f32 %v2771_v63, %v12387_v32 }
 0xc12   : > { %14411 = vst [vmem:[#allocation16_spill] sm:$0xff] %v12419_v17  ;;  %v12425_v55 = vpop.eup %10986  ;;  %10996 = vtanh.f32 %v2833_v33  ;;  %v2712_v40 = vmul.f32 %v12419_v17, %v12419_v17  ;;  %v2834_v35 = vmul.f32 0.7978846, %v2802_v22  ;;  %v2773_v43 = vmul.f32 0.044715, %v2741_v23 }
 0xc13   : > { %v2742_v36 = vmul.f32 %v2710_v19, %v12415_v57  ;;  %v12434_v7 = vadd.f32 %v12302_v52, %v12168_v38  ;;  %v2836_v41 = vmul.f32 0.7978846, %v2804_v49  ;;  %v2835_v42 = vmul.f32 0.7978846, %v2803_v11 }
 0xc14   : > { %v2744_v30 = vmul.f32 %v2712_v40, %v12419_v17  ;;  %v12439_v33 = vadd.f32 %v12306_v59, %v12172_v5  ;;  %v12441_v20 = vpop.eup %10988  ;;  %10998 = vtanh.f32 %v2834_v35  ;;  %v2805_v63 = vadd.f32 %v2773_v43, %v12407_v37 }
 0xc15   : > { %v2774_v22 = vmul.f32 0.044715, %v2742_v36  ;;  %v2711_v23 = vmul.f32 %v12434_v7, %v12434_v7  ;;  %11000 = vtanh.f32 %v2836_v41  ;;  %v12450_v49 = vadd.f32 %v12311_v14, %v12162_v58 }
 0xc16   : > { %v2776_v52 = vmul.f32 0.044715, %v2744_v30  ;;  %v2713_v19 = vmul.f32 %v12439_v33, %v12439_v33  ;;  %11002 = vtanh.f32 %v2835_v42  ;;  %v2837_v11 = vmul.f32 0.7978846, %v2805_v63 }
 0xc17   : > { %14412 = vst [vmem:[#allocation17_spill] sm:$0xff] %v12450_v49  ;;  %v12452_v59 = vpop.eup %10990  ;;  %v2806_v40 = vadd.f32 %v2774_v22, %v12415_v57  ;;  %v2743_v35 = vmul.f32 %v2711_v23, %v12434_v7  ;;  %v2714_v41 = vmul.f32 %v12450_v49, %v12450_v49  ;;  %v12462_v30 = vadd.f32 %v12313_v48, %v12165_v3 }
 0xc18   : > { %v2808_v43 = vadd.f32 %v2776_v52, %v12419_v17  ;;  %v2745_v36 = vmul.f32 %v2713_v19, %v12439_v33  ;;  %11004 = vtanh.f32 %v2837_v11  ;;  %v12466_v42 = vadd.f32 %v12322_v24, %v12168_v38 }
 0xc19   : > { %v2838_v58 = vmul.f32 0.7978846, %v2806_v40  ;;  %v2775_v14 = vmul.f32 0.044715, %v2743_v35  ;;  %v2746_v52 = vmul.f32 %v2714_v41, %v12450_v49  ;;  %v2716_v19 = vmul.f32 %v12462_v30, %v12462_v30 }
 0xc1a   : > { %v12468_v63 = vpop.eup %10992  ;;  %v2840_v22 = vmul.f32 0.7978846, %v2808_v43  ;;  %v2777_v23 = vmul.f32 0.044715, %v2745_v36  ;;  %v2715_v48 = vmul.f32 %v12466_v42, %v12466_v42  ;;  %v12480_v38 = vadd.f32 %v12324_v54, %v12172_v5 }
 0xc1b   : > { %v12473_v18 = vpop.eup %10994  ;;  %11006 = vtanh.f32 %v2838_v58  ;;  %v2807_v3 = vadd.f32 %v2775_v14, %v12434_v7  ;;  %v2778_v40 = vmul.f32 0.044715, %v2746_v52  ;;  %v2748_v35 = vmul.f32 %v2716_v19, %v12462_v30 }
 0xc1c   : > { %v12482_v24 = vpop.eup %10996  ;;  %11008 = vtanh.f32 %v2840_v22  ;;  %v2809_v11 = vadd.f32 %v2777_v23, %v12439_v33  ;;  %v2747_v36 = vmul.f32 %v2715_v48, %v12466_v42  ;;  %v2717_v41 = vmul.f32 %v12480_v38, %v12480_v38 }
 0xc1d   : > { %v2839_v43 = vmul.f32 0.7978846, %v2807_v3  ;;  %v2879_v58 = vadd.f32 1.0, %v12300_v51  ;;  %v2810_v5 = vadd.f32 %v2778_v40, %v12450_v49  ;;  %v2780_v54 = vmul.f32 0.044715, %v2748_v35 }
 0xc1e   : > { %v2841_v14 = vmul.f32 0.7978846, %v2809_v11  ;;  %v2883_v17 = vadd.f32 1.0, %v12326_v13  ;;  %v12492_v22 = vpop.eup %10998  ;;  %v2779_v23 = vmul.f32 0.044715, %v2747_v36  ;;  %v2749_v52 = vmul.f32 %v2717_v41, %v12480_v38 }
 0xc1f   : > { %11010 = vtanh.f32 %v2839_v43  ;;  %v2911_v19 = vmul.f32 0.5, %v2879_v58  ;;  %v12495_v3 = vpop.eup %11000  ;;  %v2842_v48 = vmul.f32 0.7978846, %v2810_v5  ;;  %v2812_v57 = vadd.f32 %v2780_v54, %v12462_v30 }
 0xc20   : > { %11012 = vtanh.f32 %v2841_v14  ;;  %v2915_v51 = vmul.f32 0.5, %v2883_v17  ;;  %v11003_v11 = vpop.eup %11002  ;;  %v2811_v40 = vadd.f32 %v2779_v23, %v12466_v42  ;;  %v2781_v35 = vmul.f32 0.044715, %v2749_v52 }
 0xc21   : > { %v2943_v13 = vmul.f32 %v2911_v19, %v12181_v31  ;;  %v2881_v49 = vadd.f32 1.0, %v12304_v9  ;;  %11014 = vtanh.f32 %v2842_v48  ;;  %v2844_v43 = vmul.f32 0.7978846, %v2812_v57 }
 0xc22   : > { %v2947_v36 = vmul.f32 %v2915_v51, %v12201_v8  ;;  %v2885_v41 = vadd.f32 1.0, %v12331_v10  ;;  %v11005_v58 = vpop.eup %11004  ;;  %v2843_v14 = vmul.f32 0.7978846, %v2811_v40  ;;  %v2813_v5 = vadd.f32 %v2781_v35, %v12480_v38 }
 0xc23   : > { %v2913_v54 = vmul.f32 0.5, %v2881_v49  ;;  %v2887_v17 = vadd.f32 1.0, %v12379_v25  ;;  %11016 = vtanh.f32 %v2844_v43  ;;  %v2891_v31 = vadd.f32 1.0, %v12425_v55 }
 0xc24   : > { %v2975_v23 = vpack.c.bf16 %v2947_v36, %v2943_v13  ;;  %v2917_v52 = vmul.f32 0.5, %v2885_v41  ;;  %11018 = vtanh.f32 %v2843_v14  ;;  %v2845_v9 = vmul.f32 0.7978846, %v2813_v5 }
 0xc25   : > { %v12506_v19 = vpop.eup %11006  ;;  %v2945_v8 = vmul.f32 %v2913_v54, %v12184_v12  ;;  %v2919_v57 = vmul.f32 0.5, %v2887_v17  ;;  %v2923_v49 = vmul.f32 0.5, %v2891_v31  ;;  %v2889_v25 = vadd.f32 1.0, %v12389_v60 }
 0xc26   : > { %v12509_v10 = vpop.eup %11008  ;;  %3285 = vmatprep.mubr.bf16.mxu0 %v2975_v23  ;;  %v2949_v48 = vmul.f32 %v2917_v52, %v12204_v28  ;;  %v2893_v51 = vadd.f32 1.0, %v12441_v20  ;;  %11020 = vtanh.f32 %v2845_v9  ;;  %v14413_v55 = vpack.c.bf16 %v12346_v1, %v12316_v29 }
 0xc27   : > { %v2951_v40 = vmul.f32 %v2919_v57, %v12239_v39  ;;  %v2886_v12 = vadd.f32 1.0, %v12365_v6  ;;  %v2890_v35 = vadd.f32 1.0, %v12393_v61  ;;  %v2955_v43 = vmul.f32 %v2923_v49, %v12284_v44 }
 0xc28   : > { %3286 = vmatmul.mubr.bf16.vlgmr.msra.gmra.mrb[56].mxu0 %v14413_v55  ;;  %v2977_v13 = vpack.c.bf16 %v2949_v48, %v2945_v8  ;;  %v2921_v28 = vmul.f32 0.5, %v2889_v25  ;;  %v2925_v36 = vmul.f32 0.5, %v2893_v51  ;;  %v2888_v20 = vadd.f32 1.0, %v12371_v21 }
 0xc29   : > { %v11011_v41 = vpop.eup %11010  ;;  %v2918_v60 = vmul.f32 0.5, %v2886_v12  ;;  %v2922_v14 = vmul.f32 0.5, %v2890_v35  ;;  %v2892_v5 = vadd.f32 1.0, %v12401_v46  ;;  %v2979_v1 = vpack.c.bf16 %v2955_v43, %v2951_v40 }
 0xc2a   : > { %v11013_v29 = vpop.eup %11012  ;;  %3350 = vmatprep.mubr.bf16.mxu1 %v2977_v13  ;;  %v2953_v39 = vmul.f32 %v2921_v28, %v12242_v34  ;;  %v2957_v6 = vmul.f32 %v2925_v36, %v12288_v47  ;;  %v2895_v61 = vadd.f32 1.0, %v12473_v18  ;;  %v14414_v44 = vpack.c.bf16 %v12354_v26, %v12329_v15 }
 0xc2b   : > { %v2950_v54 = vmul.f32 %v2918_v60, %v12231_v50  ;;  %v2954_v17 = vmul.f32 %v2922_v14, %v12247_v0  ;;  %v2920_v21 = vmul.f32 0.5, %v2888_v20  ;;  %v2924_v23 = vmul.f32 0.5, %v2892_v5  ;;  %v11015_v46 = vpop.eup %11014  ;;  %3293 = vmatprep.mubr.bf16.mxu0 %v2979_v1 }
 0xc2c   : > { %3351 = vmatmul.mubr.bf16.vlgmr.msra.gmra.mrb[56].mxu1 %v14414_v44  ;;  %v2981_v52 = vpack.c.bf16 %v2957_v6, %v2953_v39  ;;  %v2899_v31 = vadd.f32 1.0, %v11003_v11  ;;  %v2927_v9 = vmul.f32 0.5, %v2895_v61  ;;  %v2897_v34 = vadd.f32 1.0, %v12482_v24 }
 0xc2d   : > { %v2978_v47 = vpack.c.bf16 %v2954_v17, %v2950_v54  ;;  %v2952_v18 = vmul.f32 %v2920_v21, %v12234_v53  ;;  %v2956_v8 = vmul.f32 %v2924_v23, %v12250_v4  ;;  %v2901_v15 = vadd.f32 1.0, %v11005_v58  ;;  %v11017_v26 = vpop.eup %11016 }
 0xc2e   : > { %3358 = vmatprep.mubr.bf16.mxu1 %v2981_v52  ;;  %v2931_v50 = vmul.f32 0.5, %v2899_v31  ;;  %v2959_v0 = vmul.f32 %v2927_v9, %v12343_v2  ;;  %v2929_v57 = vmul.f32 0.5, %v2897_v34  ;;  %v2894_v48 = vadd.f32 1.0, %v12452_v59  ;;  %v11019_v49 = vpop.eup %11018  ;;  %v14417_v9 = vld [vmem:[#allocation16_spill] sm:$0xff] }
 0xc2f   : > { %v2980_v11 = vpack.c.bf16 %v2956_v8, %v2952_v18  ;;  %v2933_v25 = vmul.f32 0.5, %v2901_v15  ;;  %v2898_v24 = vadd.f32 1.0, %v12492_v22  ;;  %v2896_v51 = vadd.f32 1.0, %v12468_v63  ;;  %v12560_v18 = vld [vmem:[%s14327_s15] ss:$0 sm:$0xff] }
 0xc30   : > { %3294 = vmatmul.mubr.bf16.gmra.mrb[60].mxu0 %v2978_v47  ;;  %v2963_v53 = vmul.f32 %v2931_v50, %v12387_v32  ;;  %v2961_v4 = vmul.f32 %v2929_v57, %v12351_v56  ;;  %v2926_v58 = vmul.f32 0.5, %v2894_v48  ;;  %v2900_v55 = vadd.f32 1.0, %v12495_v3  ;;  %v11021_v40 = vpop.eup %11020 }
 0xc31   : > { %v2965_v2 = vmul.f32 %v2933_v25, %v12407_v37  ;;  %v2930_v12 = vmul.f32 0.5, %v2898_v24  ;;  %v2928_v59 = vmul.f32 0.5, %v2896_v51  ;;  %v2903_v35 = vadd.f32 1.0, %v11011_v41 }
 0xc32   : > { %v2983_v13 = vpack.c.bf16 %v2963_v53, %v2959_v0  ;;  %v2958_v43 = vmul.f32 %v2926_v58, %v12320_v62  ;;  %v2932_v28 = vmul.f32 0.5, %v2900_v55  ;;  %v2907_v22 = vadd.f32 1.0, %v11019_v49 }
 0xc33   : > { %v2985_v63 = vpack.c.bf16 %v2965_v2, %v2961_v4  ;;  %v2962_v32 = vmul.f32 %v2930_v12, %v12377_v45  ;;  %v2960_v56 = vmul.f32 %v2928_v59, %v12339_v27  ;;  %v2935_v36 = vmul.f32 0.5, %v2903_v35  ;;  %v14419_v12 = vld [vmem:[#allocation7_spill] sm:$0xff] }
 0xc34   : > { %3359 = vmatmul.mubr.bf16.gmra.mrb[60].mxu1 %v2980_v11  ;;  %3301 = vmatprep.mubr.bf16.mxu0 %v2983_v13  ;;  %v2964_v3 = vmul.f32 %v2932_v28, %v12383_v16  ;;  %v2939_v60 = vmul.f32 0.5, %v2907_v22  ;;  %v2905_v37 = vadd.f32 1.0, %v11013_v29  ;;  %v2909_v14 = vadd.f32 1.0, %v11021_v40  ;;  %v14420_v22 = vld [vmem:[#allocation8_spill] sm:$0xff] }
 0xc35   : > { %3366 = vmatprep.mubr.bf16.mxu1 %v2985_v63  ;;  %v2982_v41 = vpack.c.bf16 %v2962_v32, %v2958_v43  ;;  %v2967_v20 = vmul.f32 %v2935_v36, %v12434_v7  ;;  %v2902_v62 = vadd.f32 1.0, %v12506_v19  ;;  %v2906_v5 = vadd.f32 1.0, %v11015_v46  ;;  %v14415_v7 = vld [vmem:[#allocation15_spill] sm:$0xff]  ;;  %v14416_v19 = vld [vmem:[#allocation17_spill] sm:$0xff] }
 0xc36   : > { %v2984_v1 = vpack.c.bf16 %v2964_v3, %v2960_v56  ;;  %v2971_v39 = vmul.f32 %v2939_v60, %v12466_v42  ;;  %v2937_v45 = vmul.f32 0.5, %v2905_v37  ;;  %v2941_v6 = vmul.f32 0.5, %v2909_v14 }
 0xc37   : > { %v2934_v27 = vmul.f32 0.5, %v2902_v62  ;;  %v2938_v61 = vmul.f32 0.5, %v2906_v5  ;;  %v2904_v16 = vadd.f32 1.0, %v12509_v10  ;;  %v2908_v44 = vadd.f32 1.0, %v11017_v26 }
 0xc38   : > { %3302 = vmatmul.mubr.bf16.gmra.mrb[64].mxu0 %v2982_v41  ;;  %v2987_v29 = vpack.c.bf16 %v2971_v39, %v2967_v20  ;;  %v2969_v54 = vmul.f32 %v2937_v45, %v12439_v33  ;;  %v2973_v17 = vmul.f32 %v2941_v6, %v12480_v38  ;;  %v14418_v33 = vmov 0   ;;  %v14421_v39 = vld [vmem:[#allocation9_spill] sm:$0xff] }
 0xc39   : > { %v2966_v21 = vmul.f32 %v2934_v27, %v14415_v7  ;;  %v2970_v23 = vmul.f32 %v2938_v61, %v14416_v19  ;;  %v2936_v46 = vmul.f32 0.5, %v2904_v16  ;;  %v2940_v52 = vmul.f32 0.5, %v2908_v44  ;;  %v14422_v44 = vld [vmem:[#allocation10_spill] sm:$0xff] }
 0xc3a   : > { %3309 = vmatprep.mubr.bf16.mxu0 %v2987_v29  ;;  %v2989_v42 = vpack.c.bf16 %v2973_v17, %v2969_v54 }
 0xc3b   : > { %v2986_v31 = vpack.c.bf16 %v2970_v23, %v2966_v21  ;;  %v2968_v34 = vmul.f32 %v2936_v46, %v14417_v9  ;;  %v2972_v10 = vmul.f32 %v2940_v52, %v12462_v30 }
 0xc3c   : > { %3367 = vmatmul.mubr.bf16.gmra.mrb[64].mxu1 %v2984_v1 }
 0xc3d   : > { %3374 = vmatprep.mubr.bf16.mxu1 %v2989_v42  ;;  %v2988_v47 = vpack.c.bf16 %v2972_v10, %v2968_v34  ;;  %v14423_v34 = vld [vmem:[#allocation12_spill] sm:$0xff] }
 0xc40   : > { %3310 = vmatmul.mubr.bf16.gmra.mrb[68].mxu0 %v2986_v31 }
 0xc41   : > { %3726 = vmatprep.mubr.bf16.mxu0 %v14418_v33 }
 0xc44   : > { %3375 = vmatmul.mubr.bf16.gmra.mrb[68].mxu1 %v2988_v47 }
 0xcfb   : > { %v9368_v38 = vpop.f32.mrb[56].mxu0 }
 0xcfc   : > { %v9369_v8 = vpop.f32.mrb[57].mxu0 }
 0xcfd   : > { %v9370_v15 = vadd.f32 %v9369_v8, %v9368_v38  ;;  %v9371_v26 = vpop.f32.mrb[58].mxu0 }
 0xcfe   : > { %v9372_v50 = vpop.f32.mrb[59].mxu0 }
 0xcff   : > { %v9408_v0 = vpop.f32.mrb[56].mxu1  ;;  %v3288_v57 = vadd.f32 %v9370_v15, %v12560_v18  ;;  %v9373_v30 = vadd.f32 %v9372_v50, %v9371_v26  ;;  %v14424_v50 = vld [vmem:[#allocation11_spill] sm:$0xff] }
 0xd00   : > { %v9409_v48 = vpop.f32.mrb[57].mxu1 }
 0xd01   : > { %v9410_v49 = vadd.f32 %v9409_v48, %v9408_v0  ;;  %v9411_v11 = vpop.f32.mrb[58].mxu1  ;;  %v3291_v25 = vadd.f32 %v9373_v30, %v12560_v18 }
 0xd02   : > { %v9412_v24 = vpop.f32.mrb[59].mxu1 }
 0xd03   : > { %v3353_v51 = vadd.f32 %v9410_v49, %v3288_v57  ;;  %v9413_v53 = vadd.f32 %v9412_v24, %v9411_v11  ;;  %v9374_v4 = vpop.f32.mrb[60].mxu0 }
 0xd04   : > { %v9375_v58 = vpop.f32.mrb[61].mxu0 }
 0xd05   : > { %v3356_v55 = vadd.f32 %v9413_v53, %v3291_v25  ;;  %v9376_v40 = vadd.f32 %v9375_v58, %v9374_v4  ;;  %v9377_v2 = vpop.f32.mrb[62].mxu0  ;;  %v12565_v59 = vadd.f32 %v3353_v51, %v14419_v12  ;;  %v14425_v53 = vld [vmem:[#allocation14_spill] sm:$0xff]  ;;  %v14426_v58 = vld [vmem:[#allocation13_spill] sm:$0xff] }
 0xd06   : > { %v9378_v35 = vpop.f32.mrb[63].mxu0  ;;  %v10629_v12 = vld [vmem:[%s14394_s6 + $0xd8] ss:$12 sps:$4 sm:$0xff]  }
 0xd07   : > { %v9414_v13 = vpop.f32.mrb[60].mxu1  ;;  %v3296_v43 = vadd.f32 %v9376_v40, %v12560_v18  ;;  %3395 = vadd.xlane.f32.xlu0 %v12565_v59  ;;  %v9379_v28 = vadd.f32 %v9378_v35, %v9377_v2  ;;  %v12570_v63 = vadd.f32 %v3356_v55, %v14420_v22  ;;  %v10628_v40 = vld [vmem:[%s14394_s6 + $0xc4] ss:$12 sps:$4 sm:$0xff]   ;;  %v10631_v2 = vld [vmem:[%s14394_s6 + $0xdc] ss:$12 sps:$4 sm:$0xff]  }
 0xd08   : > { %v9415_v32 = vpop.f32.mrb[61].mxu1  ;;  %3694 = vmatprep.subr.bf16.mxu0 %v10628_v40 }
 0xd09   : > { %v9416_v56 = vadd.f32 %v9415_v32, %v9414_v13  ;;  %v9417_v36 = vpop.f32.mrb[62].mxu1  ;;  %v3299_v3 = vadd.f32 %v9379_v28, %v12560_v18  ;;  %3397 = vadd.xlane.f32.xlu1 %v12570_v63 }
 0xd0a   : > { %v9418_v60 = vpop.f32.mrb[63].mxu1 }
 0xd0b   : > { %v3361_v37 = vadd.f32 %v9416_v56, %v3296_v43  ;;  %v9419_v14 = vadd.f32 %v9418_v60, %v9417_v36  ;;  %v9380_v41 = vpop.f32.mrb[64].mxu0 }
 0xd0c   : > { %v9381_v20 = vpop.f32.mrb[65].mxu0 }
 0xd0d   : > { %v3364_v62 = vadd.f32 %v9419_v14, %v3299_v3  ;;  %v9382_v5 = vadd.f32 %v9381_v20, %v9380_v41  ;;  %v9383_v1 = vpop.f32.mrb[66].mxu0  ;;  %v12575_v45 = vadd.f32 %v3361_v37, %v14421_v39 }
 0xd0e   : > { %v9384_v6 = vpop.f32.mrb[67].mxu0 }
 0xd0f   : > { %v9420_v27 = vpop.f32.mrb[64].mxu1  ;;  %v3304_v61 = vadd.f32 %v9382_v5, %v12560_v18  ;;  %3399 = vadd.xlane.f32.xlu0 %v12575_v45  ;;  %v9385_v16 = vadd.f32 %v9384_v6, %v9383_v1  ;;  %v12580_v29 = vadd.f32 %v3364_v62, %v14422_v44 }
 0xd10   : > { %v9421_v54 = vpop.f32.mrb[65].mxu1 }
 0xd11   : > { %v9422_v17 = vadd.f32 %v9421_v54, %v9420_v27  ;;  %v9423_v7 = vpop.f32.mrb[66].mxu1  ;;  %v3307_v21 = vadd.f32 %v9385_v16, %v12560_v18  ;;  %3401 = vadd.xlane.f32.xlu1 %v12580_v29 }
 0xd12   : > { %v9424_v19 = vpop.f32.mrb[67].mxu1 }
 0xd13   : > { %v3369_v23 = vadd.f32 %v9422_v17, %v3304_v61  ;;  %v9425_v46 = vadd.f32 %v9424_v19, %v9423_v7  ;;  %v9386_v52 = vpop.f32.mrb[68].mxu0  ;;  %v10634_v7 = vld [vmem:[%s14394_s6 + $0xf4] ss:$12 sps:$4 sm:$0xff]  }
 0xd14   : > { %v9387_v42 = vpop.f32.mrb[69].mxu0 }
 0xd15   : > { %v3372_v31 = vadd.f32 %v9425_v46, %v3307_v21  ;;  %v9388_v9 = vadd.f32 %v9387_v42, %v9386_v52  ;;  %v12585_v10 = vadd.f32 %v3369_v23, %v14423_v34  ;;  %v9389_v47 = vpop.f32.mrb[70].mxu0  ;;  %v10635_v21 = vld [vmem:[%s14394_s6 + $0xc8] ss:$12 sps:$4 sm:$0xff]   ;;  %v10632_v23 = vld [vmem:[%s14394_s6 + $0xf0] ss:$12 sps:$4 sm:$0xff]  }
 0xd16   : > { %v9390_v38 = vpop.f32.mrb[71].mxu0  ;;  %9884 = vmatprep.subr.bf16.mxu1 %v10635_v21 }
 0xd17   : > { %v9426_v8 = vpop.f32.mrb[68].mxu1  ;;  %v3312_v15 = vadd.f32 %v9388_v9, %v12560_v18  ;;  %3403 = vadd.xlane.f32.xlu0 %v12585_v10  ;;  %v9391_v26 = vadd.f32 %v9390_v38, %v9389_v47  ;;  %v12590_v0 = vadd.f32 %v3372_v31, %v14424_v50  ;;  %9885 = vmatpush3.bf16.msra.mxu1 %v10635_v21  ;;  %v10638_v31 = vld [vmem:[%s14394_s6 + $0x10c] ss:$12 sps:$4 sm:$0xff]   ;;  %v10636_v38 = vld [vmem:[%s14394_s6 + $0x108] ss:$12 sps:$4 sm:$0xff]  }
 0xd18   : > { %v9427_v57 = vpop.f32.mrb[69].mxu1  ;;  %v10639_v9 = vld [vmem:[%s14394_s6 + $0xe0] ss:$12 sps:$4 sm:$0xff]  }
 0xd19   : > { %v9428_v30 = vadd.f32 %v9427_v57, %v9426_v8  ;;  %v9429_v48 = vpop.f32.mrb[70].mxu1  ;;  %v3315_v49 = vadd.f32 %v9391_v26, %v12560_v18  ;;  %3405 = vadd.xlane.f32.xlu1 %v12590_v0  ;;  %v10626_v18 = vld [vmem:[%s14394_s6 + $0xc0] ss:$12 sps:$4 sm:$0xff]   ;;  %9886 = vmatprep.subr.bf16.mxu1 %v10639_v9  ;;  %v10643_v26 = vld [vmem:[%s14394_s6 + $0xf8] ss:$12 sps:$4 sm:$0xff]  }
 0xd1a   : > { %v9430_v11 = vpop.f32.mrb[71].mxu1  ;;  %3695 = vmatpush1.bf16.msra.mxu0 %v10626_v18  ;;  %v10640_v50 = vld [vmem:[%s14394_s6 + $0x120] ss:$12 sps:$4 sm:$0xff]   ;;  %v10646_v57 = vld [vmem:[%s14394_s6 + $0x13c] ss:$12 sps:$4 sm:$0xff]  }
 0xd1b   : > { %v3377_v25 = vadd.f32 %v9428_v30, %v3312_v15  ;;  %v9431_v24 = vadd.f32 %v9430_v11, %v9429_v48  ;;  %3696 = vmatprep.subr.bf16.mxu0 %v10631_v2  ;;  %9887 = vmatpush3.bf16.msra.mxu1 %v10639_v9  ;;  %v10642_v15 = vld [vmem:[%s14394_s6 + $0x124] ss:$12 sps:$4 sm:$0xff]   ;;  %v10651_v11 = vld [vmem:[%s14394_s6 + $0x128] ss:$12 sps:$4 sm:$0xff]   ;;  %v8665_v21 = vld [vmem:[%s14396_s1 + $0x1] ss:$0 sm:$0xff] }
 0xd1c   : > { %9888 = vmatprep.subr.bf16.mxu1 %v10643_v26  ;;  %v10647_v30 = vld [vmem:[%s14394_s6 + $0x110] ss:$12 sps:$4 sm:$0xff]   ;;  %v10644_v48 = vld [vmem:[%s14394_s6 + $0x138] ss:$12 sps:$4 sm:$0xff]  }
 0xd1d   : > { %v3380_v51 = vadd.f32 %v9431_v24, %v3315_v49  ;;  %v12595_v4 = vadd.f32 %v3377_v25, %v14425_v53  ;;  %v10650_v49 = vld [vmem:[%s14394_s6 + $0x154] ss:$12 sps:$4 sm:$0xff]   ;;  %v10648_v25 = vld [vmem:[%s14394_s6 + $0x150] ss:$12 sps:$4 sm:$0xff]  }
 0xd1e   : > { %3697 = vmatpush1.bf16.msra.mxu0 %v10629_v12  ;;  %v10652_v24 = vld [vmem:[%s14394_s6 + $0x168] ss:$12 sps:$4 sm:$0xff]   ;;  %v10655_v53 = vld [vmem:[%s14394_s6 + $0x140] ss:$12 sps:$4 sm:$0xff]   ;;  %v10657_v18 = vld [vmem:[%s14394_s6 + $0x170] ss:$12 sps:$4 sm:$0xff]  }
 0xd1f   : > { %3407 = vadd.xlane.f32.xlu0 %v12595_v4  ;;  %v12599_v55 = vadd.f32 %v3380_v51, %v14426_v58  ;;  %3698 = vmatprep.subr.bf16.mxu0 %v10634_v7  ;;  %v10654_v51 = vld [vmem:[%s14394_s6 + $0x16c] ss:$12 sps:$4 sm:$0xff]  }
 0xd20   : > { %9889 = vmatpush3.bf16.msra.mxu1 %v10643_v26  ;;  %v10656_v58 = vld [vmem:[%s14394_s6 + $0x158] ss:$12 sps:$4 sm:$0xff]  }
 0xd21   : > { %3409 = vadd.xlane.f32.xlu1 %v12599_v55  ;;  %9890 = vmatprep.subr.bf16.mxu1 %v10647_v30 }
 0xd22   : > { %3699 = vmatpush1.bf16.msra.mxu0 %v10632_v23 }
 0xd23   : > { %3700 = vmatprep.subr.bf16.mxu0 %v10638_v31 }
 0xd24   : > { %9891 = vmatpush3.bf16.msra.mxu1 %v10647_v30 }
 0xd25   : > { %9892 = vmatprep.subr.bf16.mxu1 %v10651_v11 }
 0xd26   : > { %3701 = vmatpush1.bf16.msra.mxu0 %v10636_v38 }
 0xd27   : > { %3702 = vmatprep.subr.bf16.mxu0 %v10642_v15 }
 0xd28   : > { %9893 = vmatpush3.bf16.msra.mxu1 %v10651_v11 }
 0xd29   : > { %9894 = vmatprep.subr.bf16.mxu1 %v10655_v53 }
 0xd2a   : > { %3703 = vmatpush1.bf16.msra.mxu0 %v10640_v50 }
 0xd2b   : > { %3704 = vmatprep.subr.bf16.mxu0 %v10646_v57 }
 0xd2c   : > { %9895 = vmatpush3.bf16.msra.mxu1 %v10655_v53 }
 0xd2d   : > { %9896 = vmatprep.subr.bf16.mxu1 %v10656_v58 }
 0xd2e   : > { %3705 = vmatpush1.bf16.msra.mxu0 %v10644_v48 }
 0xd2f   : > { %3706 = vmatprep.subr.bf16.mxu0 %v10650_v49 }
 0xd30   : > { %9897 = vmatpush3.bf16.msra.mxu1 %v10656_v58 }
 0xd31   : > { %9898 = vmatprep.subr.bf16.mxu1 %v10657_v18 }
 0xd32   : > { %3707 = vmatpush1.bf16.msra.mxu0 %v10648_v25 }
 0xd33   : > { %3708 = vmatprep.subr.bf16.mxu0 %v10654_v51 }
 0xd34   : > { %9899 = vmatpush3.bf16.msra.mxu1 %v10657_v18 }
 0xd36   : > { %3709 = vmatpush1.bf16.msra.mxu0 %v10652_v24 }
 0xd94   : > { %v3396_v35 = vpop.xlane.xlu0 %3395 }
 0xd95   : > { %v3411_v13 = vmul.f32 0.0078125, %v3396_v35 }
 0xd96   : > { %v3398_v43 = vpop.xlane.xlu1 %3397 }
 0xd97   : > { %v3412_v28 = vmul.f32 0.0078125, %v3398_v43  ;;  %v12615_v22 = vsub.f32 %v12565_v59, %v3411_v13 }
 0xd99   : > { %v3427_v32 = vmul.f32 %v12615_v22, %v12615_v22  ;;  %v12620_v56 = vsub.f32 %v12570_v63, %v3412_v28 }
 0xd9b   : > { %3435 = vadd.xlane.f32.xlu0 %v3427_v32  ;;  %v3428_v36 = vmul.f32 %v12620_v56, %v12620_v56 }
 0xd9c   : > { %v3400_v3 = vpop.xlane.xlu0 %3399 }
 0xd9d   : > { %v3413_v60 = vmul.f32 0.0078125, %v3400_v3  ;;  %3437 = vadd.xlane.f32.xlu1 %v3428_v36 }
 0xd9e   : > { %v3402_v37 = vpop.xlane.xlu1 %3401 }
 0xd9f   : > { %v3414_v14 = vmul.f32 0.0078125, %v3402_v37  ;;  %v12625_v41 = vsub.f32 %v12575_v45, %v3413_v60 }
 0xda1   : > { %v3429_v20 = vmul.f32 %v12625_v41, %v12625_v41  ;;  %v12630_v62 = vsub.f32 %v12580_v29, %v3414_v14 }
 0xda3   : > { %3439 = vadd.xlane.f32.xlu0 %v3429_v20  ;;  %v3430_v5 = vmul.f32 %v12630_v62, %v12630_v62  ;;  %v8664_v20 = vld [vmem:[%s14395_s0 + $0x1] ss:$0 sm:$0xff] }
 0xda4   : > { %v3404_v1 = vpop.xlane.xlu0 %3403 }
 0xda5   : > { %v3415_v39 = vmul.f32 0.0078125, %v3404_v1  ;;  %3441 = vadd.xlane.f32.xlu1 %v3430_v5 }
 0xda6   : > { %v3406_v6 = vpop.xlane.xlu1 %3405 }
 0xda7   : > { %v3416_v27 = vmul.f32 0.0078125, %v3406_v6  ;;  %v12635_v61 = vsub.f32 %v12585_v10, %v3415_v39 }
 0xda9   : > { %v3431_v16 = vmul.f32 %v12635_v61, %v12635_v61  ;;  %v12640_v44 = vsub.f32 %v12590_v0, %v3416_v27 }
 0xdab   : > { %3443 = vadd.xlane.f32.xlu0 %v3431_v16  ;;  %v3432_v54 = vmul.f32 %v12640_v44, %v12640_v44 }
 0xdac   : > { %v3408_v17 = vpop.xlane.xlu0 %3407 }
 0xdad   : > { %v3417_v19 = vmul.f32 0.0078125, %v3408_v17  ;;  %3445 = vadd.xlane.f32.xlu1 %v3432_v54 }
 0xdae   : > { %v3410_v46 = vpop.xlane.xlu1 %3409 }
 0xdaf   : > { %v3418_v52 = vmul.f32 0.0078125, %v3410_v46  ;;  %v12654_v42 = vsub.f32 %v12595_v4, %v3417_v19 }
 0xdb1   : > { %v3433_v34 = vmul.f32 %v12654_v42, %v12654_v42  ;;  %v12665_v47 = vsub.f32 %v12599_v55, %v3418_v52 }
 0xdb3   : > { %3447 = vadd.xlane.f32.xlu0 %v3433_v34  ;;  %v3434_v8 = vmul.f32 %v12665_v47, %v12665_v47 }
 0xdb5   : > { %3449 = vadd.xlane.f32.xlu1 %v3434_v8 }
 0xe28   : > { %v3436_v40 = vpop.xlane.xlu0 %3435 }
 0xe29   : > { %v3451_v2 = vmul.f32 0.0078125, %v3436_v40 }
 0xe2a   : > { %v3438_v12 = vpop.xlane.xlu1 %3437 }
 0xe2b   : > { %v3459_v35 = vadd.f32 1e-06, %v3451_v2  ;;  %v3452_v13 = vmul.f32 0.0078125, %v3438_v12 }
 0xe2d   : > { %11022 = vrsqrt.f32 %v3459_v35  ;;  %v3460_v43 = vadd.f32 1e-06, %v3452_v13 }
 0xe2f   : > { %11024 = vrsqrt.f32 %v3460_v43 }
 0xe30   : > { %v3440_v28 = vpop.xlane.xlu0 %3439 }
 0xe31   : > { %v3453_v32 = vmul.f32 0.0078125, %v3440_v28 }
 0xe32   : > { %v3442_v36 = vpop.xlane.xlu1 %3441 }
 0xe33   : > { %v3461_v3 = vadd.f32 1e-06, %v3453_v32  ;;  %v3454_v60 = vmul.f32 0.0078125, %v3442_v36 }
 0xe35   : > { %11026 = vrsqrt.f32 %v3461_v3  ;;  %v3462_v37 = vadd.f32 1e-06, %v3454_v60  ;;  %v8698_v3 = vld [vmem:[%s14399_s26 + $0x3] sm:$0x7]  ;;  %v14427_v60 = vld [vmem:[#allocation4_spill] sm:$0xff] }
 0xe37   : > { %v11023_v14 = vpop.eup %11022  ;;  %11028 = vrsqrt.f32 %v3462_v37 }
 0xe38   : > { %v3475_v5 = vmul.f32 %v11023_v14, %v12615_v22  ;;  %v3444_v1 = vpop.xlane.xlu0 %3443  ;;  %v14428_v14 = vld [vmem:[#allocation5_spill] sm:$0xff] }
 0xe39   : > { %v11025_v39 = vpop.eup %11024  ;;  %v3455_v6 = vmul.f32 0.0078125, %v3444_v1 }
 0xe3a   : > { %v3489_v27 = vmul.f32 %v8664_v20, %v3475_v5  ;;  %v3476_v16 = vmul.f32 %v11025_v39, %v12620_v56  ;;  %v3446_v54 = vpop.xlane.xlu1 %3445  ;;  %v12738_v5 = vrot.slane %v8698_v3, %v14428_v14 }
 0xe3b   : > { %v3463_v17 = vadd.f32 1e-06, %v3455_v6  ;;  %v3456_v7 = vmul.f32 0.0078125, %v3446_v54 }
 0xe3c   : > { %v3490_v19 = vmul.f32 %v8664_v20, %v3476_v16  ;;  %v3503_v46 = vadd.f32 %v8665_v21, %v3489_v27 }
 0xe3d   : > { %11030 = vrsqrt.f32 %v3463_v17  ;;  %v3464_v23 = vadd.f32 1e-06, %v3456_v7  ;;  %v14429_v7 = vld [vmem:[#allocation6_spill] sm:$0xff] }
 0xe3e   : > { %v3504_v52 = vadd.f32 %v8665_v21, %v3490_v19 }
 0xe3f   : > { %v11027_v31 = vpop.eup %11026  ;;  %11032 = vrsqrt.f32 %v3464_v23 }
 0xe40   : > { %v3448_v22 = vpop.xlane.xlu0 %3447  ;;  %v3511_v9 = vpack.c.bf16 %v3504_v52, %v3503_v46  ;;  %v3477_v34 = vmul.f32 %v11027_v31, %v12625_v41 }
 0xe41   : > { %v11029_v38 = vpop.eup %11028  ;;  %v3457_v56 = vmul.f32 0.0078125, %v3448_v22 }
 0xe42   : > { %v3450_v8 = vpop.xlane.xlu1 %3449  ;;  %3727 = vmatmul.mubr.bf16.vlgmr.msra.gmra.mrb[72].mxu0 %v3511_v9  ;;  %9900 = vmatprep.mubr.bf16.mxu1 %v3511_v9  ;;  %v3478_v15 = vmul.f32 %v11029_v38, %v12630_v62  ;;  %v3491_v26 = vmul.f32 %v8664_v20, %v3477_v34 }
 0xe43   : > { %v3465_v50 = vadd.f32 1e-06, %v3457_v56  ;;  %v3458_v57 = vmul.f32 0.0078125, %v3450_v8  ;;  %3736 = vmatprep.mubr.bf16.mxu0 %v14418_v33 }
 0xe44   : > { %v3492_v30 = vmul.f32 %v8664_v20, %v3478_v15  ;;  %v3505_v49 = vadd.f32 %v8665_v21, %v3491_v26 }
 0xe45   : > { %11034 = vrsqrt.f32 %v3465_v50  ;;  %v3466_v48 = vadd.f32 1e-06, %v3458_v57 }
 0xe46   : > { %v3506_v11 = vadd.f32 %v8665_v21, %v3492_v30 }
 0xe47   : > { %v11031_v25 = vpop.eup %11030  ;;  %11036 = vrsqrt.f32 %v3466_v48 }
 0xe48   : > { %v3512_v41 = vpack.c.bf16 %v3506_v11, %v3505_v49  ;;  %v3479_v24 = vmul.f32 %v11031_v25, %v12635_v61 }
 0xe49   : > { %v11033_v51 = vpop.eup %11032 }
 0xe4a   : > { %3737 = vmatmul.mubr.bf16.gmra.mrb[76].mxu0 %v3512_v41  ;;  %9901 = vmatmul.mubr.bf16.vlgmr.msra.gmra.mrb[72].mxu1 %v3512_v41  ;;  %v3480_v62 = vmul.f32 %v11033_v51, %v12640_v44  ;;  %v3493_v53 = vmul.f32 %v8664_v20, %v3479_v24 }
 0xe4b   : > { %3746 = vmatprep.mubr.bf16.mxu0 %v14418_v33 }
 0xe4c   : > { %v3494_v58 = vmul.f32 %v8664_v20, %v3480_v62  ;;  %v3507_v18 = vadd.f32 %v8665_v21, %v3493_v53 }
 0xe4e   : > { %v3508_v40 = vadd.f32 %v8665_v21, %v3494_v58 }
 0xe4f   : > { %v11035_v2 = vpop.eup %11034 }
 0xe50   : > { %v3513_v12 = vpack.c.bf16 %v3508_v40, %v3507_v18  ;;  %v3481_v35 = vmul.f32 %v11035_v2, %v12654_v42  ;;  %v12735_v42 = vrot.slane %v8698_v3, %v14427_v60 }
 0xe51   : > { %v11037_v13 = vpop.eup %11036 }
 0xe52   : > { %3747 = vmatmul.mubr.bf16.gmra.mrb[80].mxu0 %v3513_v12  ;;  %9904 = vmatprep.mubr.bf16.mxu1 %v3513_v12  ;;  %v3482_v61 = vmul.f32 %v11037_v13, %v12665_v47  ;;  %v3495_v43 = vmul.f32 %v8664_v20, %v3481_v35 }
 0xe53   : > { %3756 = vmatprep.mubr.bf16.mxu0 %v14418_v33 }
 0xe54   : > { %v3496_v28 = vmul.f32 %v8664_v20, %v3482_v61  ;;  %v3509_v44 = vadd.f32 %v8665_v21, %v3495_v43 }
 0xe56   : > { %v3510_v32 = vadd.f32 %v8665_v21, %v3496_v28  ;;  %v12746_v21 = vrot.slane %v8698_v3, %v14429_v7 }
 0xe58   : > { %v3514_v36 = vpack.c.bf16 %v3510_v32, %v3509_v44 }
 0xe5a   : > { %3757 = vmatmul.mubr.bf16.gmra.mrb[84].mxu0 %v3514_v36  ;;  %9905 = vmatmul.mubr.bf16.gmra.mrb[76].mxu1 %v3514_v36 }
 0xf15   : > { %v3728_v37 = vpop.f32.mrb[72].mxu0 }
 0xf16   : > { %v3730_v47 = vpop.f32.mrb[73].mxu0  ;;  %v3729_v20 = vadd.f32 %v3728_v37, %v12735_v42 }
 0xf17   : > { %v3732_v1 = vpop.f32.mrb[74].mxu0  ;;  %v3731_v27 = vadd.f32 %v3730_v47, %v12738_v5 }
 0xf18   : > { %v3733_v39 = vadd.f32 %v3732_v1, %v12735_v42  ;;  %v3734_v6 = vpop.f32.mrb[75].mxu0 }
 0xf19   : > { %v3735_v16 = vadd.f32 %v3734_v6, %v12738_v5 }
 0xf1a   : > { %v3849_v54 = vpack.c.bf16 %v3733_v39, %v3729_v20 }
 0xf1b   : > { %v3853_v17 = vpack.c.bf16 %v3735_v16, %v3731_v27 }
 0xf1c   : > { %9916 = vmatprep.mubr.msk.bf16.mxu0 %vm839_vm0, %v3849_v54 }
 0xf1d   : > { %4147 = vrot.lane.b32.xlu0 %v3853_v17, %s14430_s29  ;;  %v3738_v19 = vpop.f32.mrb[76].mxu0  ;;  %v9902_v23 = vpop.f32.mrb[72].mxu1  ;;  %10476 = vmatprep.subr.msk.bf16.mxu0 %vm839_vm0, %v3853_v17  ;;  %v3874_v46 = vsel %vm839_vm0, %v3853_v17, 0 }
 0xf1e   : > { %v3740_v52 = vpop.f32.mrb[77].mxu0  ;;  %v3801_v31 = vpop.f32.mrb[73].mxu1  ;;  %9909 = vmatpush3.bf16.xpose.msra.mxu0 %v3874_v46  ;;  %v3739_v34 = vadd.f32 %v3738_v19, %v12735_v42  ;;  %v3810_v38 = vadd.f32 %v9902_v23, %v12746_v21 }
 0xf1f   : > { %v3742_v22 = vpop.f32.mrb[78].mxu0  ;;  %v9903_v9 = vpop.f32.mrb[74].mxu1  ;;  %v3741_v50 = vadd.f32 %v3740_v52, %v12738_v5  ;;  %v3802_v57 = vadd.f32 %v3801_v31, %v12746_v21 }
 0xf20   : > { %v3743_v56 = vadd.f32 %v3742_v22, %v12735_v42  ;;  %v3813_v8 = vadd.f32 %v9903_v9, %v12746_v21  ;;  %v3744_v15 = vpop.f32.mrb[79].mxu0  ;;  %v3804_v26 = vpop.f32.mrb[75].mxu1 }
 0xf21   : > { %v3745_v30 = vadd.f32 %v3744_v15, %v12738_v5  ;;  %v3805_v48 = vadd.f32 %v3804_v26, %v12746_v21  ;;  %4135 = vrot.lane.b32.xlu0 %v3849_v54, %s14430_s29 }
 0xf22   : > { %v3850_v49 = vpack.c.bf16 %v3743_v56, %v3739_v34  ;;  %v12760_v11 = vpack.c.bf16 %v3813_v8, %v3810_v38 }
 0xf23   : > { %v3854_v25 = vpack.c.bf16 %v3745_v30, %v3741_v50  ;;  %v12762_v41 = vpack.c.bf16 %v3805_v48, %v3802_v57 }
 0xf25   : > { %9924 = vmatprep.subr.bf16.mxu1 %v12762_v41  ;;  %4149 = vrot.lane.b32.xlu1 %v3854_v25, %s14430_s29  ;;  %v3748_v24 = vpop.f32.mrb[80].mxu0  ;;  %v3877_v51 = vsel %vm839_vm0, %v3854_v25, 0 }
 0xf26   : > { %10477 = vmatprep.subr.msk.bf16.mxu0 %vm839_vm0, %v3854_v25  ;;  %v3750_v62 = vpop.f32.mrb[81].mxu0  ;;  %9925 = vmatpush3.bf16.msra.mxu1 %v12762_v41  ;;  %v3749_v58 = vadd.f32 %v3748_v24, %v12735_v42 }
 0xf27   : > { %9911 = vmatpush3.bf16.xpose.msra.mxu0 %v3877_v51  ;;  %v3752_v53 = vpop.f32.mrb[82].mxu0  ;;  %9926 = vmatprep.subr.bf16.mxu1 %v12760_v11  ;;  %v3751_v2 = vadd.f32 %v3750_v62, %v12738_v5 }
 0xf28   : > { %v3753_v18 = vadd.f32 %v3752_v53, %v12735_v42  ;;  %v3754_v40 = vpop.f32.mrb[83].mxu0 }
 0xf29   : > { %v3755_v12 = vadd.f32 %v3754_v40, %v12738_v5 }
 0xf2a   : > { %v3851_v35 = vpack.c.bf16 %v3753_v18, %v3749_v58  ;;  %9927 = vmatpush3.bf16.msra.mxu1 %v12760_v11 }
 0xf2b   : > { %v3855_v13 = vpack.c.bf16 %v3755_v12, %v3751_v2 }
 0xf2c   : > { %4139 = vrot.lane.b32.xlu0 %v3851_v35, %s14430_s29 }
 0xf2d   : > { %4151 = vrot.lane.b32.xlu1 %v3855_v13, %s14430_s29  ;;  %v3758_v61 = vpop.f32.mrb[84].mxu0  ;;  %v9906_v43 = vpop.f32.mrb[76].mxu1  ;;  %10478 = vmatprep.subr.msk.bf16.mxu0 %vm839_vm0, %v3855_v13  ;;  %v3880_v28 = vsel %vm839_vm0, %v3855_v13, 0 }
 0xf2e   : > { %v3760_v44 = vpop.f32.mrb[85].mxu0  ;;  %v3817_v32 = vpop.f32.mrb[77].mxu1  ;;  %v3759_v37 = vadd.f32 %v3758_v61, %v12735_v42  ;;  %v3826_v47 = vadd.f32 %v9906_v43, %v12746_v21 }
 0xf2f   : > { %9913 = vmatpush3.bf16.xpose.msra.mxu0 %v3880_v28  ;;  %v3762_v36 = vpop.f32.mrb[86].mxu0  ;;  %v9907_v3 = vpop.f32.mrb[78].mxu1  ;;  %v3761_v27 = vadd.f32 %v3760_v44, %v12738_v5  ;;  %v3818_v16 = vadd.f32 %v3817_v32, %v12746_v21 }
 0xf30   : > { %v3763_v1 = vadd.f32 %v3762_v36, %v12735_v42  ;;  %v3829_v20 = vadd.f32 %v9907_v3, %v12746_v21  ;;  %v3764_v39 = vpop.f32.mrb[87].mxu0  ;;  %v3820_v6 = vpop.f32.mrb[79].mxu1 }
 0xf31   : > { %v3765_v54 = vadd.f32 %v3764_v39, %v12738_v5  ;;  %v3821_v17 = vadd.f32 %v3820_v6, %v12746_v21 }
 0xf32   : > { %v3852_v19 = vpack.c.bf16 %v3763_v1, %v3759_v37  ;;  %v12787_v23 = vpack.c.bf16 %v3829_v20, %v3826_v47 }
 0xf33   : > { %v3856_v46 = vpack.c.bf16 %v3765_v54, %v3761_v27  ;;  %v12789_v52 = vpack.c.bf16 %v3821_v17, %v3818_v16 }
 0xf35   : > { %9928 = vmatprep.subr.bf16.mxu1 %v12789_v52  ;;  %4153 = vrot.lane.b32.xlu1 %v3856_v46, %s14430_s29  ;;  %v3883_v42 = vsel %vm839_vm0, %v3856_v46, 0 }
 0xf36   : > { %10479 = vmatprep.subr.msk.bf16.mxu0 %vm839_vm0, %v3856_v46  ;;  %9929 = vmatpush3.bf16.msra.mxu1 %v12789_v52 }
 0xf37   : > { %9915 = vmatpush3.bf16.xpose.msra.mxu0 %v3883_v42  ;;  %9930 = vmatprep.subr.bf16.mxu1 %v12787_v23 }
 0xf39   : > { %4137 = vrot.lane.b32.xlu1 %v3850_v49, %s14430_s29 }
 0xf3a   : > { %9931 = vmatpush3.bf16.msra.mxu1 %v12787_v23 }
 0xf3d   : > { %4141 = vrot.lane.b32.xlu1 %v3852_v19, %s14430_s29 }
 0xf3e   : > { %9917 = vmatmul.mubr.msk.bf16.vlgmr.msra.gmra.mrb[88].mxu0 %vm839_vm0, %v3850_v49 }
 0xf3f   : > { %9920 = vmatprep.mubr.msk.bf16.mxu0 %vm839_vm0, %v3851_v35 }
 0xf46   : > { %9921 = vmatmul.mubr.msk.bf16.gmra.mrb[92].mxu0 %vm839_vm0, %v3852_v19 }
 0xf8f   : > { %v4148_v5 = vpop.permute.xlu0 %4147 }
 0xf90   : > { %v4168_v21 = vsel %vm839_vm0, %v4148_v5, 0  ;;  %10480 = vmatprep.subr.msk.bf16.mxu0 %vm839_vm0, %v4148_v5 }
 0xf91   : > { %9941 = vmatpush3.bf16.xpose.msra.mxu0 %v4168_v21 }
 0xf93   : > { %v4136_v31 = vpop.permute.xlu0 %4135 }
 0xf94   : > { %9948 = vmatprep.mubr.msk.bf16.mxu0 %vm839_vm0, %v4136_v31 }
 0xf97   : > { %v4150_v22 = vpop.permute.xlu1 %4149 }
 0xf98   : > { %v4171_v9 = vsel %vm839_vm0, %v4150_v22, 0  ;;  %10481 = vmatprep.subr.msk.bf16.mxu0 %vm839_vm0, %v4150_v22 }
 0xf99   : > { %9943 = vmatpush3.bf16.xpose.msra.mxu0 %v4171_v9 }
 0xf9e   : > { %v4140_v26 = vpop.permute.xlu0 %4139 }
 0xf9f   : > { %v4152_v34 = vpop.permute.xlu1 %4151 }
 0xfa0   : > { %v4174_v38 = vsel %vm839_vm0, %v4152_v34, 0  ;;  %10482 = vmatprep.subr.msk.bf16.mxu0 %vm839_vm0, %v4152_v34 }
 0xfa1   : > { %9945 = vmatpush3.bf16.xpose.msra.mxu0 %v4174_v38 }
 0xfa7   : > { %v4154_v56 = vpop.permute.xlu1 %4153 }
 0xfa8   : > { %v4177_v8 = vsel %vm839_vm0, %v4154_v56, 0  ;;  %10483 = vmatprep.subr.msk.bf16.mxu0 %vm839_vm0, %v4154_v56 }
 0xfa9   : > { %9947 = vmatpush3.bf16.xpose.msra.mxu0 %v4177_v8 }
 0xfab   : > { %v4138_v15 = vpop.permute.xlu1 %4137 }
 0xfaf   : > { %v4142_v50 = vpop.permute.xlu1 %4141 }
 0xfb0   : > { %9949 = vmatmul.mubr.msk.bf16.vlgmr.msra.gmra.mrb[96].mxu0 %vm839_vm0, %v4138_v15 }
 0xfb1   : > { %9952 = vmatprep.mubr.msk.bf16.mxu0 %vm839_vm0, %v4140_v26 }
 0xfb8   : > { %9953 = vmatmul.mubr.msk.bf16.gmra.mrb[100].mxu0 %vm839_vm0, %v4142_v50 }
 0xfb9   : > { %5039 = vmatprep.mubr.bf16.mxu0 %v14418_v33 }
0x1011   : > { %v9918_v57 = vpop.f32.mrb[88].mxu0 }
0x1012   : > { %v12816_v30 = vmul.f32 0.125, %v9918_v57  ;;  %v3919_v48 = vpop.f32.mrb[89].mxu0 }
0x1013   : > { %v9919_v49 = vpop.f32.mrb[90].mxu0  ;;  %v12818_v25 = vmul.f32 0.125, %v3919_v48 }
0x1014   : > { %v3922_v24 = vpop.f32.mrb[91].mxu0  ;;  %v3964_v51 = vsel %vm839_vm0, %v12816_v30, -inf  ;;  %v12826_v58 = vmul.f32 0.125, %v9919_v49 }
0x1015   : > { %v12822_v62 = vmul.f32 0.125, %v3922_v24  ;;  %3965 = vmax.xlane.f32.xlu0 %v3964_v51  ;;  %v3958_v18 = vsel %vm839_vm0, %v12818_v25, -inf }
0x1016   : > { %v3967_v43 = vsel %vm839_vm0, %v12826_v58, -inf }
0x1017   : > { %v3961_v53 = vsel %vm839_vm0, %v12822_v62, -inf }
0x1018   : > { %3962 = vmax.xlane.f32.xlu1 %v3961_v53 }
0x1019   : > { %3959 = vmax.xlane.f32.xlu0 %v3958_v18  ;;  %v9922_v40 = vpop.f32.mrb[92].mxu0 }
0x101a   : > { %v3935_v2 = vpop.f32.mrb[93].mxu0  ;;  %v12840_v32 = vmul.f32 0.125, %v9922_v40 }
0x101b   : > { %v9923_v12 = vpop.f32.mrb[94].mxu0  ;;  %v12830_v35 = vmul.f32 0.125, %v3935_v2 }
0x101c   : > { %v12832_v13 = vmul.f32 0.125, %v9923_v12  ;;  %v3938_v61 = vpop.f32.mrb[95].mxu0  ;;  %v3976_v37 = vsel %vm839_vm0, %v12840_v32, -inf }
0x101d   : > { %3968 = vmax.xlane.f32.xlu0 %v3967_v43  ;;  %v12836_v28 = vmul.f32 0.125, %v3938_v61  ;;  %v3970_v36 = vsel %vm839_vm0, %v12830_v35, -inf }
0x101e   : > { %v3979_v44 = vsel %vm839_vm0, %v12832_v13, -inf }
0x101f   : > { %3980 = vmax.xlane.f32.xlu1 %v3979_v44  ;;  %v3973_v3 = vsel %vm839_vm0, %v12836_v28, -inf }
0x1021   : > { %3971 = vmax.xlane.f32.xlu0 %v3970_v36 }
0x1023   : > { %3974 = vmax.xlane.f32.xlu1 %v3973_v3 }
0x1025   : > { %3977 = vmax.xlane.f32.xlu0 %v3976_v37 }
0x1083   : > { %v9950_v47 = vpop.f32.mrb[96].mxu0 }
0x1084   : > { %v4213_v1 = vpop.f32.mrb[97].mxu0  ;;  %v12852_v16 = vmul.f32 0.125, %v9950_v47 }
0x1085   : > { %v12848_v20 = vmul.f32 0.125, %v4213_v1  ;;  %v9951_v39 = vpop.f32.mrb[98].mxu0 }
0x1086   : > { %v12850_v6 = vmul.f32 0.125, %v9951_v39  ;;  %v4216_v27 = vpop.f32.mrb[99].mxu0  ;;  %v4258_v42 = vsel %vm839_vm0, %v12852_v16, -inf }
0x1087   : > { %v4252_v54 = vsel %vm839_vm0, %v12848_v20, -inf  ;;  %v12856_v17 = vmul.f32 0.125, %v4216_v27 }
0x1088   : > { %4253 = vmax.xlane.f32.xlu0 %v4252_v54  ;;  %v4261_v19 = vsel %vm839_vm0, %v12850_v6, -inf }
0x1089   : > { %4262 = vmax.xlane.f32.xlu1 %v4261_v19  ;;  %v4255_v21 = vsel %vm839_vm0, %v12856_v17, -inf }
0x108b   : > { %v9954_v46 = vpop.f32.mrb[100].mxu0 }
0x108c   : > { %4259 = vmax.xlane.f32.xlu0 %v4258_v42  ;;  %v4229_v5 = vpop.f32.mrb[101].mxu0  ;;  %v12868_v38 = vmul.f32 0.125, %v9954_v46 }
0x108d   : > { %v12864_v31 = vmul.f32 0.125, %v4229_v5  ;;  %4256 = vmax.xlane.f32.xlu1 %v4255_v21  ;;  %v9955_v22 = vpop.f32.mrb[102].mxu0 }
0x108e   : > { %v12866_v9 = vmul.f32 0.125, %v9955_v22  ;;  %v4232_v34 = vpop.f32.mrb[103].mxu0  ;;  %v4270_v26 = vsel %vm839_vm0, %v12868_v38, -inf }
0x108f   : > { %v4264_v56 = vsel %vm839_vm0, %v12864_v31, -inf  ;;  %v12872_v8 = vmul.f32 0.125, %v4232_v34 }
0x1090   : > { %4265 = vmax.xlane.f32.xlu0 %v4264_v56  ;;  %v4273_v15 = vsel %vm839_vm0, %v12866_v9, -inf }
0x1091   : > { %4274 = vmax.xlane.f32.xlu1 %v4273_v15  ;;  %v4267_v50 = vsel %vm839_vm0, %v12872_v8, -inf }
0x1094   : > { %4271 = vmax.xlane.f32.xlu0 %v4270_v26 }
0x1095   : > { %4268 = vmax.xlane.f32.xlu1 %v4267_v50 }
0x10a2   : > { %v3966_v57 = vpop.xlane.xlu0 %3965 }
0x10a3   : > { %v3984_v48 = vsub.f32 %v12816_v30, %v3966_v57 }
0x10a5   : > { %v3994_v49 = vmul.f32 1.442695, %v3984_v48  ;;  %v3963_v24 = vpop.xlane.xlu1 %3962 }
0x10a6   : > { %v3960_v51 = vpop.xlane.xlu0 %3959  ;;  %v3983_v18 = vsub.f32 %v12822_v62, %v3963_v24 }
0x10a7   : > { %11038 = vpow2.f32 %v3994_v49  ;;  %v3982_v53 = vsub.f32 %v12818_v25, %v3960_v51 }
0x10a8   : > { %v3992_v43 = vmul.f32 1.442695, %v3983_v18 }
0x10a9   : > { %v3990_v40 = vmul.f32 1.442695, %v3982_v53 }
0x10aa   : > { %v3969_v2 = vpop.xlane.xlu0 %3968 }
0x10ab   : > { %11040 = vpow2.f32 %v3990_v40  ;;  %v3985_v12 = vsub.f32 %v12826_v58, %v3969_v2 }
0x10ac   : > { %v3981_v61 = vpop.xlane.xlu1 %3980 }
0x10ad   : > { %v3996_v44 = vmul.f32 1.442695, %v3985_v12  ;;  %v3989_v36 = vsub.f32 %v12832_v13, %v3981_v61 }
0x10ae   : > { %v3972_v3 = vpop.xlane.xlu0 %3971 }
0x10af   : > { %11042 = vpow2.f32 %v3996_v44  ;;  %v3986_v30 = vsub.f32 %v12830_v35, %v3972_v3  ;;  %v4004_v25 = vmul.f32 1.442695, %v3989_v36 }
0x10b0   : > { %v3975_v37 = vpop.xlane.xlu1 %3974  ;;  %11044 = vpow2.f32 %v3992_v43 }
0x10b1   : > { %v12886_v47 = vpop.eup %11038  ;;  %v3987_v62 = vsub.f32 %v12836_v28, %v3975_v37  ;;  %v3998_v27 = vmul.f32 1.442695, %v3986_v30  ;;  %11046 = vpow2.f32 %v4004_v25 }
0x10b2   : > { %v3978_v1 = vpop.xlane.xlu0 %3977  ;;  %v4012_v58 = vsel %vm839_vm0, %v12886_v47, 0.0 }
0x10b3   : > { %v3988_v39 = vsub.f32 %v12840_v32, %v3978_v1  ;;  %4013 = vadd.xlane.f32.xlu0 %v4012_v58  ;;  %v4000_v54 = vmul.f32 1.442695, %v3987_v62 }
0x10b5   : > { %v12892_v13 = vpop.eup %11040  ;;  %v4002_v35 = vmul.f32 1.442695, %v3988_v39 }
0x10b6   : > { %v4006_v19 = vsel %vm839_vm0, %v12892_v13, 0.0 }
0x10b7   : > { %11048 = vpow2.f32 %v4002_v35  ;;  %4007 = vadd.xlane.f32.xlu0 %v4006_v19 }
0x10b8   : > { %11050 = vpow2.f32 %v3998_v27 }
0x10b9   : > { %v12896_v28 = vpop.eup %11042  ;;  %11052 = vpow2.f32 %v4000_v54 }
0x10ba   : > { %v4015_v46 = vsel %vm839_vm0, %v12896_v28, 0.0  ;;  %v12900_v32 = vpop.eup %11044 }
0x10bb   : > { %4016 = vadd.xlane.f32.xlu1 %v4015_v46  ;;  %v4009_v42 = vsel %vm839_vm0, %v12900_v32, 0.0  ;;  %v12904_v5 = vpop.eup %11046 }
0x10bc   : > { %v4027_v34 = vsel %vm839_vm0, %v12904_v5, 0.0 }
0x10bf   : > { %4010 = vadd.xlane.f32.xlu1 %v4009_v42 }
0x10c1   : > { %v12906_v21 = vpop.eup %11048 }
0x10c2   : > { %v12908_v22 = vpop.eup %11050  ;;  %v4024_v56 = vsel %vm839_vm0, %v12906_v21, 0.0 }
0x10c3   : > { %v12914_v15 = vpop.eup %11052  ;;  %4028 = vadd.xlane.f32.xlu1 %v4027_v34  ;;  %4025 = vadd.xlane.f32.xlu0 %v4024_v56  ;;  %v4018_v50 = vsel %vm839_vm0, %v12908_v22, 0.0 }
0x10c4   : > { %v4021_v26 = vsel %vm839_vm0, %v12914_v15, 0.0 }
0x10c7   : > { %4022 = vadd.xlane.f32.xlu1 %v4021_v26  ;;  %4019 = vadd.xlane.f32.xlu0 %v4018_v50 }
0x1115   : > { %v4254_v57 = vpop.xlane.xlu0 %4253 }
0x1116   : > { %v4263_v48 = vpop.xlane.xlu1 %4262  ;;  %v4276_v24 = vsub.f32 %v12848_v20, %v4254_v57 }
0x1117   : > { %v4279_v49 = vsub.f32 %v12850_v6, %v4263_v48 }
0x1118   : > { %v4284_v12 = vmul.f32 1.442695, %v4276_v24 }
0x1119   : > { %v4290_v51 = vmul.f32 1.442695, %v4279_v49  ;;  %v4260_v53 = vpop.xlane.xlu0 %4259 }
0x111a   : > { %v4278_v18 = vsub.f32 %v12852_v16, %v4260_v53  ;;  %v4257_v40 = vpop.xlane.xlu1 %4256 }
0x111b   : > { %11054 = vpow2.f32 %v4290_v51  ;;  %v4277_v2 = vsub.f32 %v12856_v17, %v4257_v40 }
0x111c   : > { %v4288_v61 = vmul.f32 1.442695, %v4278_v18 }
0x111d   : > { %v4286_v43 = vmul.f32 1.442695, %v4277_v2  ;;  %v4266_v44 = vpop.xlane.xlu0 %4265 }
0x111e   : > { %11056 = vpow2.f32 %v4288_v61  ;;  %v4280_v36 = vsub.f32 %v12864_v31, %v4266_v44  ;;  %v4275_v35 = vpop.xlane.xlu1 %4274 }
0x111f   : > { %11058 = vpow2.f32 %v4286_v43  ;;  %v4283_v56 = vsub.f32 %v12866_v9, %v4275_v35 }
0x1120   : > { %11060 = vpow2.f32 %v4284_v12  ;;  %v4292_v3 = vmul.f32 1.442695, %v4280_v36 }
0x1121   : > { %v4272_v6 = vpop.xlane.xlu0 %4271  ;;  %v4298_v50 = vmul.f32 1.442695, %v4283_v56 }
0x1122   : > { %v4282_v20 = vsub.f32 %v12868_v38, %v4272_v6  ;;  %v4269_v46 = vpop.xlane.xlu1 %4268 }
0x1123   : > { %v4281_v48 = vsub.f32 %v12872_v8, %v4269_v46 }
0x1124   : > { %v4296_v30 = vmul.f32 1.442695, %v4282_v20 }
0x1125   : > { %v12926_v37 = vpop.eup %11054  ;;  %v4294_v53 = vmul.f32 1.442695, %v4281_v48 }
0x1126   : > { %11062 = vpow2.f32 %v4296_v30  ;;  %v4309_v16 = vsel %vm839_vm0, %v12926_v37, 0.0 }
0x1127   : > { %4310 = vadd.xlane.f32.xlu1 %v4309_v16  ;;  %11064 = vpow2.f32 %v4292_v3 }
0x1128   : > { %v12930_v17 = vpop.eup %11056 }
0x1129   : > { %v12932_v25 = vpop.eup %11058  ;;  %v4306_v31 = vsel %vm839_vm0, %v12930_v17, 0.0 }
0x112a   : > { %v12936_v62 = vpop.eup %11060  ;;  %4307 = vadd.xlane.f32.xlu0 %v4306_v31  ;;  %v4303_v38 = vsel %vm839_vm0, %v12932_v25, 0.0 }
0x112b   : > { %4304 = vadd.xlane.f32.xlu1 %v4303_v38  ;;  %v4300_v1 = vsel %vm839_vm0, %v12936_v62, 0.0 }
0x112e   : > { %4301 = vadd.xlane.f32.xlu0 %v4300_v1 }
0x1130   : > { %v12942_v58 = vpop.eup %11062 }
0x1131   : > { %v4318_v39 = vsel %vm839_vm0, %v12942_v58, 0.0  ;;  %v12946_v27 = vpop.eup %11064 }
0x1132   : > { %4319 = vadd.xlane.f32.xlu0 %v4318_v39  ;;  %v4312_v54 = vsel %vm839_vm0, %v12946_v27, 0.0 }
0x1136   : > { %4313 = vadd.xlane.f32.xlu0 %v4312_v54 }
0x113c   : > { %4350 = vrot.lane.b32.xlu1 %v12760_v11, %s14430_s29 }
0x1140   : > { %4352 = vrot.lane.b32.xlu1 %v12789_v52, %s14430_s29  ;;  %v4014_v19 = vpop.xlane.xlu0 %4013 }
0x1144   : > { %v4008_v42 = vpop.xlane.xlu0 %4007 }
0x1148   : > { %v4017_v34 = vpop.xlane.xlu1 %4016 }
0x1149   : > { %11066 = vrcp.f32 %v4017_v34 }
0x114a   : > { %11068 = vrcp.f32 %v4008_v42 }
0x114b   : > { %11070 = vrcp.f32 %v4014_v19 }
0x114c   : > { %v4011_v26 = vpop.xlane.xlu1 %4010  ;;  %4348 = vrot.lane.b32.xlu0 %v12762_v41, %s14430_s29 }
0x114d   : > { %11072 = vrcp.f32 %v4011_v26 }
0x1150   : > { %v4029_v11 = vpop.xlane.xlu1 %4028  ;;  %v4026_v57 = vpop.xlane.xlu0 %4025 }
0x1151   : > { %11074 = vrcp.f32 %v4029_v11 }
0x1152   : > { %11076 = vrcp.f32 %v4026_v57  ;;  %v10658_v57 = vld [vmem:[%s14320_s8 + $0x60] sm:$0xff]  }
0x1153   : > { %v11067_v52 = vpop.eup %11066  ;;  %11078 = vpow2.f32 %v4298_v50 }
0x1154   : > { %v4023_v49 = vpop.xlane.xlu1 %4022  ;;  %v4020_v24 = vpop.xlane.xlu0 %4019  ;;  %v4041_v41 = vmul.f32 %v11067_v52, %v12896_v28 }
0x1155   : > { %v11069_v51 = vpop.eup %11068  ;;  %11080 = vrcp.f32 %v4023_v49 }
0x1156   : > { %v11071_v9 = vpop.eup %11070  ;;  %11082 = vrcp.f32 %v4020_v24  ;;  %v4038_v40 = vmul.f32 %v11069_v51, %v12892_v13  ;;  %v10659_v24 = vld [vmem:[%s14320_s8 + $0x68] sm:$0xff]  }
0x1157   : > { %v11073_v18 = vpop.eup %11072  ;;  %v4040_v8 = vmul.f32 %v11071_v9, %v12886_v47  ;;  %11084 = vpow2.f32 %v4294_v53 }
0x1158   : > { %v4039_v2 = vmul.f32 %v11073_v18, %v12900_v32 }
0x1159   : > { %v4047_v61 = vpack.c.bf16 %v4041_v41, %v4040_v8 }
0x115a   : > { %v4046_v12 = vpack.c.bf16 %v4039_v2, %v4038_v40 }
0x115b   : > { %v11075_v43 = vpop.eup %11074 }
0x115c   : > { %9932 = vmatprep.mubr.msk.bf16.mxu1 %vm839_vm0, %v4046_v12  ;;  %v11077_v44 = vpop.eup %11076  ;;  %v4045_v32 = vmul.f32 %v11075_v43, %v12904_v5 }
0x115d   : > { %9933 = vmatmul.mubr.msk.bf16.vlgmr.msra.gmra.mrb[80].mxu1 %vm839_vm0, %v4047_v61  ;;  %v12964_v36 = vpop.eup %11078  ;;  %v4044_v13 = vmul.f32 %v11077_v44, %v12906_v21 }
0x115e   : > { %v4321_v30 = vsel %vm839_vm0, %v12964_v36, 0.0 }
0x115f   : > { %v11081_v6 = vpop.eup %11080  ;;  %v4049_v31 = vpack.c.bf16 %v4045_v32, %v4044_v13 }
0x1160   : > { %v11083_v20 = vpop.eup %11082  ;;  %v4043_v28 = vmul.f32 %v11081_v6, %v12914_v15 }
0x1161   : > { %v4042_v47 = vmul.f32 %v11083_v20, %v12908_v22  ;;  %v11085_v16 = vpop.eup %11084 }
0x1162   : > { %v4315_v38 = vsel %vm839_vm0, %v11085_v16, 0.0 }
0x1163   : > { %v4048_v3 = vpack.c.bf16 %v4043_v28, %v4042_v47 }
0x1164   : > { %4322 = vadd.xlane.f32.xlu1 %v4321_v30  ;;  %v10662_v30 = vld [vmem:[%s14320_s8 + $0x40] sm:$0xff]  }
0x1165   : > { %9936 = vmatprep.mubr.msk.bf16.mxu1 %vm839_vm0, %v4048_v3  ;;  %v10661_v3 = vld [vmem:[%s14320_s8 + $0x78] sm:$0xff]  }
0x1166   : > { %9937 = vmatmul.mubr.msk.bf16.gmra.mrb[84].mxu1 %vm839_vm0, %v4049_v31 }
0x1168   : > { %4316 = vadd.xlane.f32.xlu1 %v4315_v38 }
0x1179   : > { %4354 = vrot.lane.b32.xlu1 %v12787_v23, %s14430_s29 }
0x11b4   : > { %v4311_v5 = vpop.xlane.xlu1 %4310 }
0x11b7   : > { %v4308_v21 = vpop.xlane.xlu0 %4307 }
0x11b8   : > { %v4305_v22 = vpop.xlane.xlu1 %4304 }
0x11b9   : > { %11086 = vrcp.f32 %v4305_v22 }
0x11bb   : > { %v4302_v15 = vpop.xlane.xlu0 %4301 }
0x11bc   : > { %11088 = vrcp.f32 %v4302_v15  ;;  %v4351_v19 = vpop.permute.xlu1 %4350  ;;  %v10663_v15 = vld [vmem:[%s14320_s8 + $0x48] sm:$0xff]  }
0x11bd   : > { %11090 = vrcp.f32 %v4308_v21 }
0x11be   : > { %11092 = vrcp.f32 %v4311_v5 }
0x11bf   : > { %v4320_v1 = vpop.xlane.xlu0 %4319 }
0x11c0   : > { %v4353_v23 = vpop.permute.xlu1 %4352 }
0x11c3   : > { %v4314_v39 = vpop.xlane.xlu0 %4313  ;;  %v11087_v54 = vpop.eup %11086 }
0x11c4   : > { %v4333_v34 = vmul.f32 %v11087_v54, %v12932_v25  ;;  %v10664_v54 = vld [vmem:[%s14320_s8 + $0x50] sm:$0xff]  }
0x11c6   : > { %v11089_v35 = vpop.eup %11088 }
0x11c7   : > { %v4349_v46 = vpop.permute.xlu0 %4348  ;;  %v4332_v42 = vmul.f32 %v11089_v35, %v12936_v62  ;;  %v11091_v50 = vpop.eup %11090 }
0x11c8   : > { %9956 = vmatprep.subr.bf16.mxu1 %v4349_v46  ;;  %v11093_v25 = vpop.eup %11092  ;;  %v4334_v11 = vmul.f32 %v11091_v50, %v12930_v17 }
0x11c9   : > { %9957 = vmatpush3.bf16.msra.mxu1 %v4349_v46  ;;  %v4340_v56 = vpack.c.bf16 %v4333_v34, %v4332_v42  ;;  %v4335_v52 = vmul.f32 %v11093_v25, %v12926_v37  ;;  %v10660_v37 = vld [vmem:[%s14320_s8 + $0x70] sm:$0xff]   ;;  %v10665_v34 = vld [vmem:[%s14320_s8 + $0x58] sm:$0xff]  }
0x11ca   : > { %9958 = vmatprep.subr.bf16.mxu1 %v4351_v19 }
0x11cb   : > { %9964 = vmatprep.mubr.msk.bf16.mxu1 %vm839_vm0, %v4340_v56  ;;  %v4341_v49 = vpack.c.bf16 %v4335_v52, %v4334_v11 }
0x11cd   : > { %9959 = vmatpush3.bf16.msra.mxu1 %v4351_v19 }
0x11ce   : > { %9960 = vmatprep.subr.bf16.mxu1 %v4353_v23 }
0x11d1   : > { %9961 = vmatpush3.bf16.msra.mxu1 %v4353_v23  ;;  %v8772_v23 = vld [vmem:[%s14321_s9 + $0x1] ss:$0 sm:$0xff] }
0x11f1   : > { %v4323_v26 = vpop.xlane.xlu1 %4322 }
0x11f2   : > { %11094 = vrcp.f32 %v4323_v26 }
0x11f3   : > { %11096 = vrcp.f32 %v4314_v39 }
0x11f4   : > { %11098 = vrcp.f32 %v4320_v1 }
0x11f5   : > { %v4317_v62 = vpop.xlane.xlu1 %4316 }
0x11f6   : > { %11100 = vrcp.f32 %v4317_v62 }
0x11f9   : > { %v4355_v48 = vpop.permute.xlu1 %4354 }
0x11fa   : > { %9962 = vmatprep.subr.bf16.mxu1 %v4355_v48 }
0x11fb   : > { %9963 = vmatpush3.bf16.msra.mxu1 %v4355_v48 }
0x11fc   : > { %9972 = vmatprep.subr.bf16.mxu1 %v10658_v57  ;;  %v11095_v51 = vpop.eup %11094 }
0x11fd   : > { %v11097_v9 = vpop.eup %11096  ;;  %v4339_v18 = vmul.f32 %v11095_v51, %v12964_v36 }
0x11fe   : > { %9965 = vmatmul.mubr.msk.bf16.vlgmr.msra.gmra.mrb[88].mxu1 %vm839_vm0, %v4341_v49  ;;  %v11099_v17 = vpop.eup %11098  ;;  %v4336_v41 = vmul.f32 %v11097_v9, %v12946_v27 }
0x11ff   : > { %9973 = vmatpush3.bf16.msra.mxu1 %v10658_v57  ;;  %v4338_v2 = vmul.f32 %v11099_v17, %v12942_v58 }
0x1200   : > { %v11101_v53 = vpop.eup %11100  ;;  %9974 = vmatprep.subr.bf16.mxu1 %v10659_v24 }
0x1201   : > { %v4337_v40 = vmul.f32 %v11101_v53, %v11085_v16  ;;  %v4343_v12 = vpack.c.bf16 %v4339_v18, %v4338_v2 }
0x1203   : > { %v4342_v8 = vpack.c.bf16 %v4337_v40, %v4336_v41  ;;  %9975 = vmatpush3.bf16.msra.mxu1 %v10659_v24 }
0x1204   : > { %9976 = vmatprep.subr.bf16.mxu1 %v10660_v37 }
0x1205   : > { %9968 = vmatprep.mubr.msk.bf16.mxu1 %vm839_vm0, %v4342_v8  ;;  %v10674_v8 = vld [vmem:[%s14324_s12 + $0x124] ss:$16 sps:$4 sm:$0xff]  }
0x1206   : > { %9969 = vmatmul.mubr.msk.bf16.gmra.mrb[92].mxu1 %vm839_vm0, %v4343_v12  ;;  %v10677_v12 = vld [vmem:[%s14324_s12 + $0x12c] ss:$16 sps:$4 sm:$0xff]  }
0x1207   : > { %9977 = vmatpush3.bf16.msra.mxu1 %v10660_v37 }
0x1208   : > { %9978 = vmatprep.subr.bf16.mxu1 %v10661_v3 }
0x120b   : > { %9979 = vmatpush3.bf16.msra.mxu1 %v10661_v3 }
0x120c   : > { %9988 = vmatprep.subr.bf16.mxu1 %v10662_v30 }
0x1230   : > { %v9934_v61 = vpop.f32.mrb[80].mxu1 }
0x1231   : > { %v4096_v43 = vpop.f32.mrb[81].mxu1 }
0x1232   : > { %v9935_v44 = vpop.f32.mrb[82].mxu1 }
0x1233   : > { %v4128_v36 = vpack.c.bf16 %v9935_v44, %v9934_v61  ;;  %v4099_v6 = vpop.f32.mrb[83].mxu1  ;;  %v10672_v61 = vld [vmem:[%s14324_s12 + $0x120] ss:$16 sps:$4 sm:$0xff]  }
0x1234   : > { %v4127_v20 = vpack.c.bf16 %v4099_v6, %v4096_v43  ;;  %v10675_v43 = vld [vmem:[%s14324_s12 + $0x128] ss:$16 sps:$4 sm:$0xff]  }
0x1239   : > { %v9938_v28 = vpop.f32.mrb[84].mxu1 }
0x123a   : > { %v4112_v27 = vpop.f32.mrb[85].mxu1 }
0x123b   : > { %v9939_v13 = vpop.f32.mrb[86].mxu1 }
0x123c   : > { %v4130_v32 = vpack.c.bf16 %v9939_v13, %v9938_v28  ;;  %v4115_v58 = vpop.f32.mrb[87].mxu1 }
0x123d   : > { %v4129_v47 = vpack.c.bf16 %v4115_v58, %v4112_v27 }
0x12d1   : > { %v9966_v16 = vpop.f32.mrb[88].mxu1 }
0x12d2   : > { %v4406_v31 = vpop.f32.mrb[89].mxu1 }
0x12d3   : > { %v9967_v38 = vpop.f32.mrb[90].mxu1 }
0x12d4   : > { %v4438_v5 = vpack.c.bf16 %v9967_v38, %v9966_v16  ;;  %v4409_v21 = vpop.f32.mrb[91].mxu1 }
0x12d5   : > { %v4437_v22 = vpack.c.bf16 %v4409_v21, %v4406_v31 }
0x12d7   : > { %9980 = vmatprep.mubr.msk.bf16.mxu1 %vm839_vm0, %v4437_v22 }
0x12d8   : > { %9981 = vmatmul.mubr.msk.bf16.vlgmr.msra.gmra.mrb[96].mxu1 %vm839_vm0, %v4438_v5 }
0x12d9   : > { %v9970_v1 = vpop.f32.mrb[92].mxu1  ;;  %9989 = vmatpush3.bf16.msra.mxu1 %v10662_v30 }
0x12da   : > { %v4422_v39 = vpop.f32.mrb[93].mxu1  ;;  %9990 = vmatprep.subr.bf16.mxu1 %v10663_v15 }
0x12db   : > { %v9971_v35 = vpop.f32.mrb[94].mxu1 }
0x12dc   : > { %v4440_v19 = vpack.c.bf16 %v9971_v35, %v9970_v1  ;;  %v4425_v46 = vpop.f32.mrb[95].mxu1 }
0x12dd   : > { %v4439_v42 = vpack.c.bf16 %v4425_v46, %v4422_v39  ;;  %9991 = vmatpush3.bf16.msra.mxu1 %v10663_v15 }
0x12de   : > { %9992 = vmatprep.subr.bf16.mxu1 %v10664_v54 }
0x12df   : > { %9984 = vmatprep.mubr.msk.bf16.mxu1 %vm839_vm0, %v4439_v42 }
0x12e0   : > { %9985 = vmatmul.mubr.msk.bf16.gmra.mrb[100].mxu1 %vm839_vm0, %v4440_v19 }
0x12e1   : > { %9993 = vmatpush3.bf16.msra.mxu1 %v10664_v54  ;;  %9996 = vmatprep.mubr.msk.bf16.mxu1 %vm839_vm0, %v4127_v20 }
0x12e2   : > { %9994 = vmatprep.subr.bf16.mxu1 %v10665_v34 }
0x12e5   : > { %9995 = vmatpush3.bf16.msra.mxu1 %v10665_v34 }
0x12e8   : > { %9997 = vmatmul.mubr.msk.bf16.vlgmr.msra.gmra.mrb[96].mxu1 %vm839_vm0, %v4128_v36 }
0x12e9   : > { %10000 = vmatprep.mubr.msk.bf16.mxu1 %vm839_vm0, %v4129_v47 }
0x12f0   : > { %10001 = vmatmul.mubr.msk.bf16.gmra.mrb[100].mxu1 %vm839_vm0, %v4130_v32 }
0x12f1   : > { %5112 = vmatprep.mubr.bf16.mxu1 %v14418_v33 }
0x13bb   : > { %v9998_v56 = vpop.f32.mrb[96].mxu1 }
0x13bc   : > { %v4612_v26 = vpop.f32.mrb[97].mxu1  ;;  %v4645_v11 = vadd.f32 %v9998_v56, %v12575_v45 }
0x13bd   : > { %v4643_v50 = vadd.f32 %v4612_v26, %v12565_v59  ;;  %v9999_v62 = vpop.f32.mrb[98].mxu1 }
0x13be   : > { %v4615_v25 = vpop.f32.mrb[99].mxu1  ;;  %v13032_v49 = vadd.f32 %v8772_v23, %v4645_v11  ;;  %v4646_v24 = vadd.f32 %v9999_v62, %v12580_v29  ;;  %v10683_v11 = vld [vmem:[%s14324_s12 + $0x14c] ss:$16 sps:$4 sm:$0xff]  }
0x13bf   : > { %v13026_v57 = vadd.f32 %v8772_v23, %v4643_v50  ;;  %v4644_v48 = vadd.f32 %v4615_v25, %v12570_v63  ;;  %v10680_v25 = vld [vmem:[%s14324_s12 + $0x144] ss:$16 sps:$4 sm:$0xff]  }
0x13c0   : > { %14433 = vst [vmem:[#allocation16_spill] sm:$0xff] %v13032_v49  ;;  %v13037_v17 = vadd.f32 %v8772_v23, %v4646_v24  ;;  %v10681_v24 = vld [vmem:[%s14324_s12 + $0x148] ss:$16 sps:$4 sm:$0xff]  }
0x13c1   : > { %14431 = vst [vmem:[#allocation15_spill] sm:$0xff] %v13026_v57  ;;  %v13029_v52 = vadd.f32 %v8772_v23, %v4644_v48  ;;  %4671 = vadd.xlane.f32.xlu0 %v13026_v57  ;;  %v10678_v48 = vld [vmem:[%s14324_s12 + $0x140] ss:$16 sps:$4 sm:$0xff]  }
0x13c2   : > { %14434 = vst [vmem:[#allocation7_spill] sm:$0xff] %v13037_v17 }
0x13c3   : > { %14432 = vst [vmem:[#allocation17_spill] sm:$0xff] %v13029_v52  ;;  %4673 = vadd.xlane.f32.xlu1 %v13029_v52  ;;  %v10002_v51 = vpop.f32.mrb[100].mxu1 }
0x13c4   : > { %v4628_v59 = vpop.f32.mrb[101].mxu1  ;;  %v4649_v29 = vadd.f32 %v10002_v51, %v12595_v4  ;;  %v10669_v4 = vld [vmem:[%s14324_s12 + $0x108] ss:$16 sps:$4 sm:$0xff]   ;;  %v10686_v51 = vld [vmem:[%s14324_s12 + $0x164] ss:$16 sps:$4 sm:$0xff]  }
0x13c5   : > { %4675 = vadd.xlane.f32.xlu0 %v13032_v49  ;;  %v10003_v9 = vpop.f32.mrb[102].mxu1  ;;  %v4647_v63 = vadd.f32 %v4628_v59, %v12585_v10  ;;  %v10666_v10 = vld [vmem:[%s14324_s12 + $0x100] ss:$16 sps:$4 sm:$0xff]   ;;  %v10689_v59 = vld [vmem:[%s14324_s12 + $0x16c] ss:$16 sps:$4 sm:$0xff]  }
0x13c6   : > { %v4631_v45 = vpop.f32.mrb[103].mxu1  ;;  %v4650_v18 = vadd.f32 %v10003_v9, %v12599_v55  ;;  %v13052_v2 = vadd.f32 %v8772_v23, %v4649_v29  ;;  %v10671_v55 = vld [vmem:[%s14324_s12 + $0x10c] ss:$16 sps:$4 sm:$0xff]   ;;  %v10684_v9 = vld [vmem:[%s14324_s12 + $0x160] ss:$16 sps:$4 sm:$0xff]  }
0x13c7   : > { %v4648_v53 = vadd.f32 %v4631_v45, %v12590_v0  ;;  %v13046_v41 = vadd.f32 %v8772_v23, %v4647_v63  ;;  %v10668_v0 = vld [vmem:[%s14324_s12 + $0x104] ss:$16 sps:$4 sm:$0xff]   ;;  %5080 = vmatprep.subr.bf16.mxu1 %v10671_v55  ;;  %v10687_v45 = vld [vmem:[%s14324_s12 + $0x168] ss:$16 sps:$4 sm:$0xff]  }
0x13c8   : > { %v13049_v40 = vadd.f32 %v8772_v23, %v4650_v18  ;;  %14438 = vst [vmem:[#allocation12_spill] sm:$0xff] %v13052_v2  ;;  %5007 = vmatprep.subr.bf16.mxu0 %v10668_v0  ;;  %5081 = vmatpush1.bf16.msra.mxu1 %v10669_v4  ;;  %v10692_v63 = vld [vmem:[%s14324_s12 + $0x184] ss:$16 sps:$4 sm:$0xff]   ;;  %v10690_v18 = vld [vmem:[%s14324_s12 + $0x180] ss:$16 sps:$4 sm:$0xff]  }
0x13c9   : > { %v13042_v37 = vadd.f32 %v8772_v23, %v4648_v53  ;;  %4677 = vadd.xlane.f32.xlu0 %v13037_v17  ;;  %14436 = vst [vmem:[#allocation9_spill] sm:$0xff] %v13046_v41  ;;  %5008 = vmatpush1.bf16.msra.mxu0 %v10666_v10  ;;  %v10695_v53 = vld [vmem:[%s14324_s12 + $0x18c] ss:$16 sps:$4 sm:$0xff]   ;;  %v10693_v29 = vld [vmem:[%s14324_s12 + $0x188] ss:$16 sps:$4 sm:$0xff]  }
0x13ca   : > { %14437 = vst [vmem:[#allocation10_spill] sm:$0xff] %v13049_v40  ;;  %5009 = vmatprep.subr.bf16.mxu0 %v10674_v8  ;;  %5082 = vmatprep.subr.bf16.mxu1 %v10677_v12  ;;  %v10698_v10 = vld [vmem:[%s14324_s12 + $0x1a4] ss:$16 sps:$4 sm:$0xff]   ;;  %v10701_v0 = vld [vmem:[%s14324_s12 + $0x1ac] ss:$16 sps:$4 sm:$0xff]  }
0x13cb   : > { %14435 = vst [vmem:[#allocation8_spill] sm:$0xff] %v13042_v37  ;;  %4681 = vadd.xlane.f32.xlu1 %v13042_v37  ;;  %v10696_v4 = vld [vmem:[%s14324_s12 + $0x1a0] ss:$16 sps:$4 sm:$0xff]   ;;  %v10699_v55 = vld [vmem:[%s14324_s12 + $0x1a8] ss:$16 sps:$4 sm:$0xff]  }
0x13cc   : > { %5083 = vmatpush1.bf16.msra.mxu1 %v10675_v43  ;;  %v10704_v8 = vld [vmem:[%s14324_s12 + $0x1c4] ss:$16 sps:$4 sm:$0xff]   ;;  %v10707_v12 = vld [vmem:[%s14324_s12 + $0x1cc] ss:$16 sps:$4 sm:$0xff]   ;;  %v10705_v43 = vld [vmem:[%s14324_s12 + $0x1c8] ss:$16 sps:$4 sm:$0xff]  }
0x13cd   : > { %4679 = vadd.xlane.f32.xlu0 %v13046_v41  ;;  %5010 = vmatpush1.bf16.msra.mxu0 %v10672_v61  ;;  %v10702_v61 = vld [vmem:[%s14324_s12 + $0x1c0] ss:$16 sps:$4 sm:$0xff]  }
0x13ce   : > { %5011 = vmatprep.subr.bf16.mxu0 %v10680_v25  ;;  %5084 = vmatprep.subr.bf16.mxu1 %v10683_v11 }
0x13cf   : > { %4685 = vadd.xlane.f32.xlu1 %v13049_v40 }
0x13d0   : > { %5085 = vmatpush1.bf16.msra.mxu1 %v10681_v24 }
0x13d1   : > { %4683 = vadd.xlane.f32.xlu0 %v13052_v2  ;;  %5012 = vmatpush1.bf16.msra.mxu0 %v10678_v48 }
0x13d2   : > { %5013 = vmatprep.subr.bf16.mxu0 %v10686_v51  ;;  %5086 = vmatprep.subr.bf16.mxu1 %v10689_v59 }
0x13d4   : > { %5087 = vmatpush1.bf16.msra.mxu1 %v10687_v45 }
0x13d5   : > { %5014 = vmatpush1.bf16.msra.mxu0 %v10684_v9  ;;  %5088 = vmatprep.subr.bf16.mxu1 %v10695_v53 }
0x13d6   : > { %5015 = vmatprep.subr.bf16.mxu0 %v10692_v63 }
0x13d8   : > { %5089 = vmatpush1.bf16.msra.mxu1 %v10693_v29  ;;  %v8776_v29 = vld [vmem:[%s14323_s11 + $0x1] ss:$0 sm:$0xff] }
0x13d9   : > { %5016 = vmatpush1.bf16.msra.mxu0 %v10690_v18  ;;  %5090 = vmatprep.subr.bf16.mxu1 %v10701_v0 }
0x13da   : > { %5017 = vmatprep.subr.bf16.mxu0 %v10698_v10 }
0x13dc   : > { %5091 = vmatpush1.bf16.msra.mxu1 %v10699_v55 }
0x13dd   : > { %5018 = vmatpush1.bf16.msra.mxu0 %v10696_v4  ;;  %5092 = vmatprep.subr.bf16.mxu1 %v10707_v12 }
0x13de   : > { %5019 = vmatprep.subr.bf16.mxu0 %v10704_v8 }
0x13e0   : > { %5093 = vmatpush1.bf16.msra.mxu1 %v10705_v43 }
0x13e1   : > { %5020 = vmatpush1.bf16.msra.mxu0 %v10702_v61 }
0x144e   : > { %v4672_v44 = vpop.xlane.xlu0 %4671 }
0x144f   : > { %v4687_v36 = vmul.f32 0.0078125, %v4672_v44  ;;  %v10710_v44 = vld [vmem:[%s14324_s12 + $0x1e4] ss:$16 sps:$4 sm:$0xff]  }
0x1450   : > { %v4674_v6 = vpop.xlane.xlu1 %4673  ;;  %5021 = vmatprep.subr.bf16.mxu0 %v10710_v44 }
0x1451   : > { %v13081_v20 = vsub.f32 %v13026_v57, %v4687_v36  ;;  %v4688_v28 = vmul.f32 0.0078125, %v4674_v6  ;;  %v10708_v36 = vld [vmem:[%s14324_s12 + $0x1e0] ss:$16 sps:$4 sm:$0xff]   ;;  %v10711_v6 = vld [vmem:[%s14324_s12 + $0x1e8] ss:$16 sps:$4 sm:$0xff]  }
0x1452   : > { %v4676_v27 = vpop.xlane.xlu0 %4675  ;;  %5022 = vmatpush1.bf16.msra.mxu0 %v10708_v36 }
0x1453   : > { %v13084_v13 = vsub.f32 %v13029_v52, %v4688_v28  ;;  %v4689_v32 = vmul.f32 0.0078125, %v4676_v27  ;;  %v4703_v58 = vmul.f32 %v13081_v20, %v13081_v20  ;;  %v10713_v28 = vld [vmem:[%s14324_s12 + $0x1ec] ss:$16 sps:$4 sm:$0xff]  }
0x1454   : > { %5094 = vmatprep.subr.bf16.mxu1 %v10713_v28 }
0x1455   : > { %v13089_v47 = vsub.f32 %v13032_v49, %v4689_v32  ;;  %4711 = vadd.xlane.f32.xlu0 %v4703_v58  ;;  %v4704_v3 = vmul.f32 %v13084_v13, %v13084_v13  ;;  %5095 = vmatpush1.bf16.msra.mxu1 %v10711_v6 }
0x1456   : > { %v4678_v30 = vpop.xlane.xlu0 %4677 }
0x1457   : > { %v4690_v16 = vmul.f32 0.0078125, %v4678_v30  ;;  %4713 = vadd.xlane.f32.xlu1 %v4704_v3  ;;  %v4705_v31 = vmul.f32 %v13089_v47, %v13089_v47 }
0x1458   : > { %v4682_v38 = vpop.xlane.xlu1 %4681 }
0x1459   : > { %v13096_v5 = vsub.f32 %v13037_v17, %v4690_v16  ;;  %v4692_v21 = vmul.f32 0.0078125, %v4682_v38  ;;  %4715 = vadd.xlane.f32.xlu0 %v4705_v31 }
0x145a   : > { %v4680_v22 = vpop.xlane.xlu0 %4679 }
0x145b   : > { %v13099_v15 = vsub.f32 %v13042_v37, %v4692_v21  ;;  %v4691_v1 = vmul.f32 0.0078125, %v4680_v22  ;;  %v4706_v39 = vmul.f32 %v13096_v5, %v13096_v5 }
0x145c   : > { %v4686_v54 = vpop.xlane.xlu1 %4685 }
0x145d   : > { %v13104_v35 = vsub.f32 %v13046_v41, %v4691_v1  ;;  %v4694_v19 = vmul.f32 0.0078125, %v4686_v54  ;;  %4717 = vadd.xlane.f32.xlu1 %v4706_v39  ;;  %v4708_v23 = vmul.f32 %v13099_v15, %v13099_v15 }
0x145e   : > { %v4684_v46 = vpop.xlane.xlu0 %4683 }
0x145f   : > { %v13107_v42 = vsub.f32 %v13049_v40, %v4694_v19  ;;  %v4693_v34 = vmul.f32 0.0078125, %v4684_v46  ;;  %v4707_v56 = vmul.f32 %v13104_v35, %v13104_v35 }
0x1461   : > { %v13114_v26 = vsub.f32 %v13052_v2, %v4693_v34  ;;  %4719 = vadd.xlane.f32.xlu0 %v4707_v56  ;;  %4721 = vadd.xlane.f32.xlu1 %v4708_v23  ;;  %v4710_v62 = vmul.f32 %v13107_v42, %v13107_v42  ;;  %v8775_v23 = vld [vmem:[%s14322_s10 + $0x1] ss:$0 sm:$0xff] }
0x1463   : > { %v4709_v50 = vmul.f32 %v13114_v26, %v13114_v26 }
0x1465   : > { %4723 = vadd.xlane.f32.xlu0 %v4709_v50  ;;  %4725 = vadd.xlane.f32.xlu1 %v4710_v62 }
0x14e2   : > { %v4712_v27 = vpop.xlane.xlu0 %4711 }
0x14e3   : > { %v4727_v32 = vmul.f32 0.0078125, %v4712_v27 }
0x14e4   : > { %v4714_v58 = vpop.xlane.xlu1 %4713 }
0x14e5   : > { %v4735_v3 = vadd.f32 1e-06, %v4727_v32  ;;  %v4728_v30 = vmul.f32 0.0078125, %v4714_v58 }
0x14e6   : > { %v4716_v16 = vpop.xlane.xlu0 %4715 }
0x14e7   : > { %11102 = vrsqrt.f32 %v4735_v3  ;;  %v4736_v31 = vadd.f32 1e-06, %v4728_v30  ;;  %v4729_v38 = vmul.f32 0.0078125, %v4716_v16 }
0x14e9   : > { %11104 = vrsqrt.f32 %v4736_v31  ;;  %v4737_v21 = vadd.f32 1e-06, %v4729_v38 }
0x14ea   : > { %v4718_v22 = vpop.xlane.xlu1 %4717 }
0x14eb   : > { %11106 = vrsqrt.f32 %v4737_v21  ;;  %v4730_v1 = vmul.f32 0.0078125, %v4718_v22 }
0x14ed   : > { %v4738_v39 = vadd.f32 1e-06, %v4730_v1 }
0x14ee   : > { %v4720_v54 = vpop.xlane.xlu0 %4719  ;;  %v4722_v19 = vpop.xlane.xlu1 %4721 }
0x14ef   : > { %11108 = vrsqrt.f32 %v4738_v39  ;;  %v4731_v46 = vmul.f32 0.0078125, %v4720_v54  ;;  %v4732_v34 = vmul.f32 0.0078125, %v4722_v19  ;;  %v10716_v54 = vld [vmem:[%s14326_s14 + $0x100] sm:$0xff]   ;;  %v10718_v19 = vld [vmem:[%s14326_s14 + $0x148] sm:$0xff]  }
0x14f1   : > { %v11103_v56 = vpop.eup %11102  ;;  %v4739_v50 = vadd.f32 1e-06, %v4731_v46  ;;  %v4740_v62 = vadd.f32 1e-06, %v4732_v34  ;;  %v10719_v46 = vld [vmem:[%s14326_s14 + $0x1c8] sm:$0xff]  }
0x14f2   : > { %v4751_v25 = vmul.f32 %v11103_v56, %v13081_v20  ;;  %v4724_v11 = vpop.xlane.xlu0 %4723  ;;  %v4726_v48 = vpop.xlane.xlu1 %4725  ;;  %v10720_v34 = vld [vmem:[%s14326_s14 + $0x108] sm:$0xff]  }
0x14f3   : > { %v11105_v24 = vpop.eup %11104  ;;  %11110 = vrsqrt.f32 %v4739_v50  ;;  %v4733_v51 = vmul.f32 0.0078125, %v4724_v11  ;;  %v4734_v59 = vmul.f32 0.0078125, %v4726_v48  ;;  %v10721_v56 = vld [vmem:[%s14326_s14 + $0x188] sm:$0xff]   ;;  %v10723_v50 = vld [vmem:[%s14326_s14 + $0x1d0] sm:$0xff]   ;;  %v10726_v11 = vld [vmem:[%s14326_s14 + $0x158] sm:$0xff]  }
0x14f4   : > { %v4765_v9 = vmul.f32 %v8775_v23, %v4751_v25  ;;  %v4752_v45 = vmul.f32 %v11105_v24, %v13084_v13  ;;  %11112 = vrsqrt.f32 %v4740_v62  ;;  %v10724_v62 = vld [vmem:[%s14326_s14 + $0x110] sm:$0xff]   ;;  %v10727_v48 = vld [vmem:[%s14326_s14 + $0x1d8] sm:$0xff]  }
0x14f5   : > { %v11107_v63 = vpop.eup %11106  ;;  %v4741_v53 = vadd.f32 1e-06, %v4733_v51  ;;  %v4742_v18 = vadd.f32 1e-06, %v4734_v59  ;;  %v10725_v25 = vld [vmem:[%s14326_s14 + $0x190] sm:$0xff]   ;;  %v10728_v24 = vld [vmem:[%s14326_s14 + $0x118] sm:$0xff]  }
0x14f6   : > { %v4766_v10 = vmul.f32 %v8775_v23, %v4752_v45  ;;  %v4779_v20 = vadd.f32 %v8776_v29, %v4765_v9  ;;  %v4753_v4 = vmul.f32 %v11107_v63, %v13089_v47  ;;  %v10729_v51 = vld [vmem:[%s14326_s14 + $0x198] sm:$0xff]   ;;  %v10730_v59 = vld [vmem:[%s14326_s14 + $0x160] sm:$0xff]  }
0x14f7   : > { %11114 = vrsqrt.f32 %v4741_v53  ;;  %v10731_v9 = vld [vmem:[%s14326_s14 + $0x1e0] sm:$0xff]   ;;  %v10734_v53 = vld [vmem:[%s14326_s14 + $0x168] sm:$0xff]  }
0x14f8   : > { %v4780_v0 = vadd.f32 %v8776_v29, %v4766_v10  ;;  %11116 = vrsqrt.f32 %v4742_v18  ;;  %v4767_v13 = vmul.f32 %v8775_v23, %v4753_v4  ;;  %v10732_v45 = vld [vmem:[%s14326_s14 + $0x120] sm:$0xff]   ;;  %v10735_v18 = vld [vmem:[%s14326_s14 + $0x1e8] sm:$0xff]   ;;  %v10740_v4 = vld [vmem:[%s14326_s14 + $0x130] sm:$0xff]  }
0x14f9   : > { %v11109_v55 = vpop.eup %11108  ;;  %v10733_v63 = vld [vmem:[%s14326_s14 + $0x1a0] sm:$0xff]   ;;  %v10737_v10 = vld [vmem:[%s14326_s14 + $0x1a8] sm:$0xff]  }
0x14fa   : > { %v4787_v8 = vpack.c.bf16 %v4780_v0, %v4779_v20  ;;  %v4754_v12 = vmul.f32 %v11109_v55, %v13096_v5  ;;  %v4781_v28 = vadd.f32 %v8776_v29, %v4767_v13  ;;  %v10738_v20 = vld [vmem:[%s14326_s14 + $0x170] sm:$0xff]   ;;  %v10744_v13 = vld [vmem:[%s14326_s14 + $0x138] sm:$0xff]  }
0x14fb   : > { %v10739_v0 = vld [vmem:[%s14326_s14 + $0x1f0] sm:$0xff]  }
0x14fc   : > { %5040 = vmatmul.mubr.bf16.vlgmr.msra.gmra.mrb[104].mxu0 %v4787_v8  ;;  %5113 = vmatmul.mubr.bf16.vlgmr.msra.gmra.mrb[104].mxu1 %v4787_v8  ;;  %v4768_v61 = vmul.f32 %v8775_v23, %v4754_v12  ;;  %v10741_v55 = vld [vmem:[%s14326_s14 + $0x1b0] sm:$0xff]   ;;  %v10742_v8 = vld [vmem:[%s14326_s14 + $0x178] sm:$0xff]  }
0x14fd   : > { %v11111_v43 = vpop.eup %11110  ;;  %5049 = vmatprep.mubr.bf16.mxu0 %v14418_v33  ;;  %5122 = vmatprep.mubr.bf16.mxu1 %v14418_v33  ;;  %v10743_v12 = vld [vmem:[%s14326_s14 + $0x1f8] sm:$0xff]  }
0x14fe   : > { %v11113_v44 = vpop.eup %11112  ;;  %v4782_v36 = vadd.f32 %v8776_v29, %v4768_v61  ;;  %v4755_v6 = vmul.f32 %v11111_v43, %v13104_v35  ;;  %v10745_v61 = vld [vmem:[%s14326_s14 + $0x1b8] sm:$0xff]   ;;  %v13311_v43 = vld [vmem:[%s14328_s16] sm:$0xff]  }
0x14ff   : > { %v4756_v47 = vmul.f32 %v11113_v44, %v13099_v15  ;;  %v8809_v44 = vld [vmem:[%s14325_s13 + $0x4] sm:$0xf] }
0x1500   : > { %v4788_v32 = vpack.c.bf16 %v4782_v36, %v4781_v28  ;;  %v4769_v58 = vmul.f32 %v8775_v23, %v4755_v6  ;;  %v13318_v36 = vrot.slane %v8809_v44, %v14427_v60  ;;  %v13321_v6 = vrot.slane %v8809_v44, %v14429_v7  ;;  %v14439_v28 = vld [vmem:[#allocation3_spill] sm:$0xff] }
0x1501   : > { %v11115_v27 = vpop.eup %11114  ;;  %v4770_v5 = vmul.f32 %v8775_v23, %v4756_v47  ;;  %v13324_v47 = vrot.slane %v8809_v44, %v14428_v14 }
0x1502   : > { %v11117_v3 = vpop.eup %11116  ;;  %v4783_v30 = vadd.f32 %v8776_v29, %v4769_v58  ;;  %v4757_v31 = vmul.f32 %v11115_v27, %v13114_v26  ;;  %v10714_v26 = vld [vmem:[%s14326_s14 + $0x140] sm:$0xff]   ;;  %v14440_v27 = vsub.s32 3, %v14439_v28 }
0x1503   : > { %v4784_v16 = vadd.f32 %v8776_v29, %v4770_v5  ;;  %v4758_v35 = vmul.f32 %v11117_v3, %v13107_v42  ;;  %v10715_v42 = vld [vmem:[%s14326_s14 + $0x1c0] sm:$0xff]   ;;  %9492 = vmatprep.subr.bf16.mxu0 %v10714_v26 }
0x1504   : > { %5050 = vmatmul.mubr.bf16.gmra.mrb[108].mxu0 %v4788_v32  ;;  %5123 = vmatmul.mubr.bf16.gmra.mrb[108].mxu1 %v4788_v32  ;;  %v4771_v15 = vmul.f32 %v8775_v23, %v4757_v31  ;;  %v13328_v32 = vrot.slane %v8809_v44, %v14440_v27 }
0x1505   : > { %5059 = vmatprep.mubr.bf16.mxu0 %v14418_v33  ;;  %5132 = vmatprep.mubr.bf16.mxu1 %v14418_v33  ;;  %v4789_v38 = vpack.c.bf16 %v4784_v16, %v4783_v30  ;;  %v4772_v21 = vmul.f32 %v8775_v23, %v4758_v35  ;;  %v10722_v23 = vld [vmem:[%s14326_s14 + $0x150] sm:$0xff]  }
0x1506   : > { %v4785_v22 = vadd.f32 %v8776_v29, %v4771_v15  ;;  %9532 = vmatprep.subr.bf16.mxu1 %v10715_v42  ;;  %9493 = vmatpush3.bf16.msra.mxu0 %v10716_v54 }
0x1507   : > { %v4786_v1 = vadd.f32 %v8776_v29, %v4772_v21  ;;  %9494 = vmatprep.subr.bf16.mxu0 %v10718_v19  ;;  %v10736_v29 = vld [vmem:[%s14326_s14 + $0x128] sm:$0xff]  }
0x1509   : > { %v4790_v39 = vpack.c.bf16 %v4786_v1, %v4785_v22 }
0x150a   : > { %9495 = vmatpush3.bf16.msra.mxu0 %v10720_v34 }
0x150b   : > { %9496 = vmatprep.subr.bf16.mxu0 %v10722_v23 }
0x150c   : > { %5060 = vmatmul.mubr.bf16.gmra.mrb[112].mxu0 %v4789_v38  ;;  %5133 = vmatmul.mubr.bf16.gmra.mrb[112].mxu1 %v4789_v38 }
0x150d   : > { %5069 = vmatprep.mubr.bf16.mxu0 %v14418_v33  ;;  %5142 = vmatprep.mubr.bf16.mxu1 %v14418_v33  ;;  %v10717_v33 = vld [vmem:[%s14326_s14 + $0x180] sm:$0xff]  }
0x150e   : > { %9533 = vmatpush3.bf16.msra.mxu1 %v10717_v33  ;;  %9497 = vmatpush3.bf16.msra.mxu0 %v10724_v62 }
0x150f   : > { %9534 = vmatprep.subr.bf16.mxu1 %v10719_v46  ;;  %9498 = vmatprep.subr.bf16.mxu0 %v10726_v11 }
0x1512   : > { %9535 = vmatpush3.bf16.msra.mxu1 %v10721_v56  ;;  %9499 = vmatpush3.bf16.msra.mxu0 %v10728_v24 }
0x1513   : > { %9536 = vmatprep.subr.bf16.mxu1 %v10723_v50  ;;  %9500 = vmatprep.subr.bf16.mxu0 %v10730_v59 }
0x1514   : > { %5070 = vmatmul.mubr.bf16.gmra.mrb[116].mxu0 %v4790_v39  ;;  %5143 = vmatmul.mubr.bf16.gmra.mrb[116].mxu1 %v4790_v39 }
0x1516   : > { %9537 = vmatpush3.bf16.msra.mxu1 %v10725_v25  ;;  %9501 = vmatpush3.bf16.msra.mxu0 %v10732_v45 }
0x1517   : > { %9538 = vmatprep.subr.bf16.mxu1 %v10727_v48  ;;  %9502 = vmatprep.subr.bf16.mxu0 %v10734_v53 }
0x151a   : > { %9539 = vmatpush3.bf16.msra.mxu1 %v10729_v51  ;;  %9503 = vmatpush3.bf16.msra.mxu0 %v10736_v29 }
0x151b   : > { %9540 = vmatprep.subr.bf16.mxu1 %v10731_v9  ;;  %9504 = vmatprep.subr.bf16.mxu0 %v10738_v20 }
0x151e   : > { %9541 = vmatpush3.bf16.msra.mxu1 %v10733_v63  ;;  %9505 = vmatpush3.bf16.msra.mxu0 %v10740_v4 }
0x151f   : > { %9542 = vmatprep.subr.bf16.mxu1 %v10735_v18  ;;  %9506 = vmatprep.subr.bf16.mxu0 %v10742_v8 }
0x1522   : > { %9543 = vmatpush3.bf16.msra.mxu1 %v10737_v10  ;;  %9507 = vmatpush3.bf16.msra.mxu0 %v10744_v13 }
0x1523   : > { %9544 = vmatprep.subr.bf16.mxu1 %v10739_v0  ;;  %10004 = vmatprep.subr.bf16.mxu0 %v13311_v43 }
0x1526   : > { %9545 = vmatpush3.bf16.msra.mxu1 %v10741_v55 }
0x1527   : > { %9546 = vmatprep.subr.bf16.mxu1 %v10743_v12 }
0x152a   : > { %9547 = vmatpush3.bf16.msra.mxu1 %v10745_v61 }
0x15cf   : > { %v5041_v58 = vpop.f32.mrb[104].mxu0  ;;  %v5114_v5 = vpop.f32.mrb[104].mxu1 }
0x15d0   : > { %v13331_v3 = vadd.f32 %v5041_v58, %v13318_v36  ;;  %v13334_v30 = vadd.f32 %v5114_v5, %v13321_v6  ;;  %v5043_v60 = vpop.f32.mrb[105].mxu0  ;;  %v5116_v16 = vpop.f32.mrb[105].mxu1 }
0x15d1   : > { %v13337_v7 = vadd.f32 %v5043_v60, %v13324_v47  ;;  %v13340_v14 = vadd.f32 %v5116_v16, %v13328_v32  ;;  %v5045_v31 = vpop.f32.mrb[106].mxu0  ;;  %v5118_v35 = vpop.f32.mrb[106].mxu1 }
0x15d2   : > { %v5153_v38 = vmul.f32 %v13331_v3, %v13331_v3  ;;  %v5155_v15 = vmul.f32 %v13334_v30, %v13334_v30  ;;  %v13347_v21 = vadd.f32 %v5045_v31, %v13318_v36  ;;  %v13350_v22 = vadd.f32 %v5118_v35, %v13321_v6  ;;  %v5047_v1 = vpop.f32.mrb[107].mxu0  ;;  %v5120_v39 = vpop.f32.mrb[107].mxu1 }
0x15d3   : > { %v5154_v26 = vmul.f32 %v13337_v7, %v13337_v7  ;;  %v5156_v42 = vmul.f32 %v13340_v14, %v13340_v14  ;;  %v13357_v54 = vadd.f32 %v5047_v1, %v13324_v47  ;;  %v13360_v33 = vadd.f32 %v5120_v39, %v13328_v32 }
0x15d4   : > { %v5185_v19 = vmul.f32 %v5153_v38, %v13331_v3  ;;  %v5187_v46 = vmul.f32 %v5155_v15, %v13334_v30  ;;  %v5157_v34 = vmul.f32 %v13347_v21, %v13347_v21  ;;  %v5159_v56 = vmul.f32 %v13350_v22, %v13350_v22 }
0x15d5   : > { %v5186_v23 = vmul.f32 %v5154_v26, %v13337_v7  ;;  %v5188_v50 = vmul.f32 %v5156_v42, %v13340_v14  ;;  %v5158_v62 = vmul.f32 %v13357_v54, %v13357_v54  ;;  %v5160_v25 = vmul.f32 %v13360_v33, %v13360_v33 }
0x15d6   : > { %v5217_v11 = vmul.f32 0.044715, %v5185_v19  ;;  %v5219_v48 = vmul.f32 0.044715, %v5187_v46  ;;  %v5189_v24 = vmul.f32 %v5157_v34, %v13347_v21  ;;  %v5191_v51 = vmul.f32 %v5159_v56, %v13350_v22 }
0x15d7   : > { %v5218_v59 = vmul.f32 0.044715, %v5186_v23  ;;  %v5220_v9 = vmul.f32 0.044715, %v5188_v50  ;;  %v5190_v45 = vmul.f32 %v5158_v62, %v13357_v54  ;;  %v5192_v63 = vmul.f32 %v5160_v25, %v13360_v33  ;;  %v5051_v53 = vpop.f32.mrb[108].mxu0  ;;  %v5124_v18 = vpop.f32.mrb[108].mxu1 }
0x15d8   : > { %v5249_v29 = vadd.f32 %v5217_v11, %v13331_v3  ;;  %v5251_v10 = vadd.f32 %v5219_v48, %v13334_v30  ;;  %v5221_v20 = vmul.f32 0.044715, %v5189_v24  ;;  %v5223_v0 = vmul.f32 0.044715, %v5191_v51  ;;  %v5053_v4 = vpop.f32.mrb[109].mxu0  ;;  %v5126_v55 = vpop.f32.mrb[109].mxu1 }
0x15d9   : > { %v5250_v8 = vadd.f32 %v5218_v59, %v13337_v7  ;;  %v5252_v12 = vadd.f32 %v5220_v9, %v13340_v14  ;;  %v5222_v13 = vmul.f32 0.044715, %v5190_v45  ;;  %v5224_v61 = vmul.f32 0.044715, %v5192_v63  ;;  %v5055_v44 = vpop.f32.mrb[110].mxu0  ;;  %v5128_v28 = vpop.f32.mrb[110].mxu1 }
0x15da   : > { %v5281_v27 = vmul.f32 0.7978846, %v5249_v29  ;;  %v5283_v58 = vmul.f32 0.7978846, %v5251_v10  ;;  %v5253_v5 = vadd.f32 %v5221_v20, %v13347_v21  ;;  %v5255_v60 = vadd.f32 %v5223_v0, %v13350_v22  ;;  %v5057_v16 = vpop.f32.mrb[111].mxu0  ;;  %v5130_v31 = vpop.f32.mrb[111].mxu1 }
0x15db   : > { %v5282_v35 = vmul.f32 0.7978846, %v5250_v8  ;;  %v5284_v38 = vmul.f32 0.7978846, %v5252_v12  ;;  %v5254_v15 = vadd.f32 %v5222_v13, %v13357_v54  ;;  %v5256_v1 = vadd.f32 %v5224_v61, %v13360_v33 }
0x15dc   : > { %11118 = vtanh.f32 %v5281_v27  ;;  %v5285_v39 = vmul.f32 0.7978846, %v5253_v5  ;;  %v5287_v26 = vmul.f32 0.7978846, %v5255_v60  ;;  %v13387_v42 = vadd.f32 %v5051_v53, %v13318_v36 }
0x15dd   : > { %11120 = vtanh.f32 %v5283_v58  ;;  %v5286_v19 = vmul.f32 0.7978846, %v5254_v15  ;;  %v5288_v46 = vmul.f32 0.7978846, %v5256_v1  ;;  %v13390_v34 = vadd.f32 %v5124_v18, %v13321_v6 }
0x15de   : > { %11122 = vtanh.f32 %v5282_v35  ;;  %v5161_v56 = vmul.f32 %v13387_v42, %v13387_v42  ;;  %v13395_v23 = vadd.f32 %v5053_v4, %v13324_v47  ;;  %v13398_v50 = vadd.f32 %v5126_v55, %v13328_v32 }
0x15df   : > { %11124 = vtanh.f32 %v5284_v38  ;;  %v5163_v62 = vmul.f32 %v13390_v34, %v13390_v34  ;;  %v13403_v25 = vadd.f32 %v5055_v44, %v13318_v36  ;;  %v13406_v11 = vadd.f32 %v5128_v28, %v13321_v6  ;;  %v13408_v48 = vpop.f32.mrb[112].mxu0  ;;  %v13410_v24 = vpop.f32.mrb[112].mxu1 }
0x15e0   : > { %11126 = vtanh.f32 %v5285_v39  ;;  %v5193_v51 = vmul.f32 %v5161_v56, %v13387_v42  ;;  %v5162_v59 = vmul.f32 %v13395_v23, %v13395_v23  ;;  %v5164_v9 = vmul.f32 %v13398_v50, %v13398_v50  ;;  %v13417_v45 = vpop.f32.mrb[113].mxu0  ;;  %v13419_v63 = vpop.f32.mrb[113].mxu1 }
0x15e1   : > { %11128 = vtanh.f32 %v5287_v26  ;;  %v5195_v53 = vmul.f32 %v5163_v62, %v13390_v34  ;;  %v5165_v18 = vmul.f32 %v13403_v25, %v13403_v25  ;;  %v5167_v29 = vmul.f32 %v13406_v11, %v13406_v11  ;;  %v13426_v10 = vpop.f32.mrb[114].mxu0  ;;  %v13428_v20 = vpop.f32.mrb[114].mxu1 }
0x15e2   : > { %11130 = vtanh.f32 %v5286_v19  ;;  %v5225_v0 = vmul.f32 0.044715, %v5193_v51  ;;  %v5194_v4 = vmul.f32 %v5162_v59, %v13395_v23  ;;  %v5196_v55 = vmul.f32 %v5164_v9, %v13398_v50  ;;  %v13432_v8 = vpop.f32.mrb[115].mxu0  ;;  %v13434_v12 = vpop.f32.mrb[115].mxu1 }
0x15e3   : > { %11132 = vtanh.f32 %v5288_v46  ;;  %v5227_v13 = vmul.f32 0.044715, %v5195_v53  ;;  %v5197_v61 = vmul.f32 %v5165_v18, %v13403_v25  ;;  %v5199_v44 = vmul.f32 %v5167_v29, %v13406_v11 }
0x15e4   : > { %v5257_v28 = vadd.f32 %v5225_v0, %v13387_v42  ;;  %v5226_v27 = vmul.f32 0.044715, %v5194_v4  ;;  %v5228_v58 = vmul.f32 0.044715, %v5196_v55  ;;  %v13440_v5 = vadd.f32 %v5057_v16, %v13324_v47 }
0x15e5   : > { %v5259_v60 = vadd.f32 %v5227_v13, %v13390_v34  ;;  %v5229_v35 = vmul.f32 0.044715, %v5197_v61  ;;  %v5231_v38 = vmul.f32 0.044715, %v5199_v44  ;;  %v13444_v15 = vadd.f32 %v5130_v31, %v13328_v32 }
0x15e6   : > { %v11119_v1 = vpop.eup %11118  ;;  %v5289_v39 = vmul.f32 0.7978846, %v5257_v28  ;;  %v5258_v26 = vadd.f32 %v5226_v27, %v13395_v23  ;;  %v5260_v19 = vadd.f32 %v5228_v58, %v13398_v50  ;;  %v5166_v46 = vmul.f32 %v13440_v5, %v13440_v5 }
0x15e7   : > { %v11121_v56 = vpop.eup %11120  ;;  %v5345_v62 = vadd.f32 1.0, %v11119_v1  ;;  %v5291_v16 = vmul.f32 0.7978846, %v5259_v60  ;;  %v5261_v51 = vadd.f32 %v5229_v35, %v13403_v25  ;;  %v5263_v59 = vadd.f32 %v5231_v38, %v13406_v11  ;;  %v13452_v9 = vpop.f32.mrb[116].mxu0 }
0x15e8   : > { %v13454_v31 = vpop.f32.mrb[116].mxu1  ;;  %v13456_v53 = vpop.eup %11122  ;;  %v5347_v18 = vadd.f32 1.0, %v11121_v56  ;;  %11134 = vtanh.f32 %v5289_v39  ;;  %v5290_v29 = vmul.f32 0.7978846, %v5258_v26  ;;  %v5292_v0 = vmul.f32 0.7978846, %v5260_v19 }
0x15e9   : > { %v13458_v4 = vpop.f32.mrb[117].mxu0  ;;  %v13460_v55 = vpop.eup %11124  ;;  %v5377_v13 = vmul.f32 0.5, %v5345_v62  ;;  %11136 = vtanh.f32 %v5291_v16  ;;  %v5293_v61 = vmul.f32 0.7978846, %v5261_v51  ;;  %v5295_v44 = vmul.f32 0.7978846, %v5263_v59 }
0x15ea   : > { %v13462_v28 = vpop.f32.mrb[117].mxu1  ;;  %v11127_v27 = vpop.eup %11126  ;;  %v5379_v58 = vmul.f32 0.5, %v5347_v18  ;;  %11138 = vtanh.f32 %v5290_v29  ;;  %v5198_v60 = vmul.f32 %v5166_v46, %v13440_v5  ;;  %v5168_v35 = vmul.f32 %v13444_v15, %v13444_v15 }
0x15eb   : > { %v13467_v38 = vpop.f32.mrb[118].mxu0  ;;  %v13469_v1 = vpop.f32.mrb[118].mxu1  ;;  %v13472_v26 = vmul.f32 %v5377_v13, %v13331_v3  ;;  %v5349_v19 = vadd.f32 1.0, %v11127_v27  ;;  %11140 = vtanh.f32 %v5292_v0  ;;  %v13476_v56 = vadd.f32 %v13408_v48, %v13318_v36 }
0x15ec   : > { %v11129_v39 = vpop.eup %11128  ;;  %v13478_v62 = vpop.f32.mrb[119].mxu0  ;;  %v13485_v51 = vmul.f32 %v5379_v58, %v13334_v30  ;;  %11142 = vtanh.f32 %v5293_v61  ;;  %v5230_v18 = vmul.f32 0.044715, %v5198_v60  ;;  %v5200_v0 = vmul.f32 %v5168_v35, %v13444_v15 }
0x15ed   : > { %v13480_v46 = vpop.f32.mrb[119].mxu1  ;;  %v13482_v16 = vpop.eup %11130  ;;  %v5351_v59 = vadd.f32 1.0, %v11129_v39  ;;  %v5381_v29 = vmul.f32 0.5, %v5349_v19  ;;  %11144 = vtanh.f32 %v5295_v44  ;;  %v5169_v48 = vmul.f32 %v13476_v56, %v13476_v56 }
0x15ee   : > { %v13487_v3 = vpop.eup %11132  ;;  %v5262_v27 = vadd.f32 %v5230_v18, %v13440_v5  ;;  %v13495_v40 = vadd.f32 %v13410_v24, %v13321_v6  ;;  %v13499_v30 = vadd.f32 %v13417_v45, %v13324_v47  ;;  %v5232_v44 = vmul.f32 0.044715, %v5200_v0 }
0x15ef   : > { %v5383_v13 = vmul.f32 0.5, %v5351_v59  ;;  %v13502_v61 = vmul.f32 %v5381_v29, %v13347_v21  ;;  %v5201_v58 = vmul.f32 %v5169_v48, %v13476_v56  ;;  %v13507_v60 = vadd.f32 %v13419_v63, %v13328_v32 }
0x15f0   : > { %v5294_v39 = vmul.f32 0.7978846, %v5262_v27  ;;  %v5171_v24 = vmul.f32 %v13495_v40, %v13495_v40  ;;  %v5170_v45 = vmul.f32 %v13499_v30, %v13499_v30  ;;  %v5264_v19 = vadd.f32 %v5232_v44, %v13444_v15 }
0x15f1   : > { %v13510_v35 = vmul.f32 %v5383_v13, %v13350_v22  ;;  %v5233_v59 = vmul.f32 0.044715, %v5201_v58  ;;  %v5172_v63 = vmul.f32 %v13507_v60, %v13507_v60  ;;  %v13533_v58 = vadd.f32 %v13426_v10, %v13318_v36 }
0x15f2   : > { %v13521_v18 = vpop.eup %11134  ;;  %11146 = vtanh.f32 %v5294_v39  ;;  %v5203_v29 = vmul.f32 %v5171_v24, %v13495_v40  ;;  %v5202_v0 = vmul.f32 %v5170_v45, %v13499_v30  ;;  %v5296_v13 = vmul.f32 0.7978846, %v5264_v19 }
0x15f3   : > { %v13527_v48 = vpop.eup %11136  ;;  %v5265_v27 = vadd.f32 %v5233_v59, %v13476_v56  ;;  %v5204_v44 = vmul.f32 %v5172_v63, %v13507_v60  ;;  %v13539_v39 = vadd.f32 %v13428_v20, %v13321_v6  ;;  %v13543_v24 = vadd.f32 %v13432_v8, %v13324_v47 }
0x15f4   : > { %v13535_v21 = vpop.eup %11138  ;;  %v5235_v2 = vmul.f32 0.044715, %v5203_v29  ;;  %v5234_v22 = vmul.f32 0.044715, %v5202_v0  ;;  %11148 = vtanh.f32 %v5296_v13  ;;  %v5173_v10 = vmul.f32 %v13533_v58, %v13533_v58 }
0x15f5   : > { %v13545_v45 = vpop.eup %11140  ;;  %v5297_v19 = vmul.f32 0.7978846, %v5265_v27  ;;  %v5236_v59 = vmul.f32 0.044715, %v5204_v44  ;;  %v5175_v20 = vmul.f32 %v13539_v39, %v13539_v39  ;;  %v5174_v8 = vmul.f32 %v13543_v24, %v13543_v24 }
0x15f6   : > { %v13549_v63 = vpop.eup %11142  ;;  %v5267_v29 = vadd.f32 %v5235_v2, %v13495_v40  ;;  %v5266_v0 = vadd.f32 %v5234_v22, %v13499_v30  ;;  %v5205_v27 = vmul.f32 %v5173_v10, %v13533_v58  ;;  %v13563_v44 = vadd.f32 %v13434_v12, %v13328_v32 }
0x15f7   : > { %v13557_v37 = vpop.eup %11144  ;;  %11150 = vtanh.f32 %v5297_v19  ;;  %v5268_v13 = vadd.f32 %v5236_v59, %v13507_v60  ;;  %v5207_v22 = vmul.f32 %v5175_v20, %v13539_v39  ;;  %v5206_v17 = vmul.f32 %v5174_v8, %v13543_v24 }
0x15f8   : > { %v5299_v2 = vmul.f32 0.7978846, %v5267_v29  ;;  %v5298_v41 = vmul.f32 0.7978846, %v5266_v0  ;;  %v5237_v52 = vmul.f32 0.044715, %v5205_v27  ;;  %v5176_v57 = vmul.f32 %v13563_v44, %v13563_v44 }
0x15f9   : > { %v5300_v49 = vmul.f32 0.7978846, %v5268_v13  ;;  %v13571_v19 = vadd.f32 %v13452_v9, %v13318_v36  ;;  %v5239_v59 = vmul.f32 0.044715, %v5207_v22  ;;  %v5238_v10 = vmul.f32 0.044715, %v5206_v17 }
0x15fa   : > { %11152 = vtanh.f32 %v5299_v2  ;;  %v13575_v12 = vadd.f32 %v13454_v31, %v13321_v6  ;;  %v5269_v29 = vadd.f32 %v5237_v52, %v13533_v58  ;;  %v5208_v0 = vmul.f32 %v5176_v57, %v13563_v44 }
0x15fb   : > { %14441 = vst [vmem:[#allocation11_spill] sm:$0xff] %v13571_v19  ;;  %11154 = vtanh.f32 %v5298_v41  ;;  %v5177_v20 = vmul.f32 %v13571_v19, %v13571_v19  ;;  %v5271_v9 = vadd.f32 %v5239_v59, %v13539_v39  ;;  %v5270_v13 = vadd.f32 %v5238_v10, %v13543_v24 }
0x15fc   : > { %14442 = vst [vmem:[#allocation14_spill] sm:$0xff] %v13575_v12  ;;  %v13581_v8 = vpop.eup %11146  ;;  %11156 = vtanh.f32 %v5300_v49  ;;  %v5179_v17 = vmul.f32 %v13575_v12, %v13575_v12  ;;  %v5301_v31 = vmul.f32 0.7978846, %v5269_v29  ;;  %v5240_v27 = vmul.f32 0.044715, %v5208_v0 }
0x15fd   : > { %v5209_v41 = vmul.f32 %v5177_v20, %v13571_v19  ;;  %v13590_v57 = vadd.f32 %v13458_v4, %v13324_v47  ;;  %v5303_v52 = vmul.f32 0.7978846, %v5271_v9  ;;  %v5302_v2 = vmul.f32 0.7978846, %v5270_v13 }
0x15fe   : > { %v5211_v22 = vmul.f32 %v5179_v17, %v13575_v12  ;;  %v13595_v49 = vadd.f32 %v13462_v28, %v13328_v32  ;;  %v13597_v59 = vpop.eup %11148  ;;  %11158 = vtanh.f32 %v5301_v31  ;;  %v5272_v10 = vadd.f32 %v5240_v27, %v13563_v44 }
0x15ff   : > { %v5241_v29 = vmul.f32 0.044715, %v5209_v41  ;;  %v5178_v0 = vmul.f32 %v13590_v57, %v13590_v57  ;;  %11160 = vtanh.f32 %v5303_v52  ;;  %v13606_v9 = vadd.f32 %v13467_v38, %v13318_v36 }
0x1600   : > { %14443 = vst [vmem:[#allocation13_spill] sm:$0xff] %v13595_v49  ;;  %v5243_v4 = vmul.f32 0.044715, %v5211_v22  ;;  %v5180_v20 = vmul.f32 %v13595_v49, %v13595_v49  ;;  %11162 = vtanh.f32 %v5302_v2  ;;  %v5304_v13 = vmul.f32 0.7978846, %v5272_v10 }
0x1601   : > { %14444 = vst [vmem:[#allocation4_spill] sm:$0xff] %v13606_v9  ;;  %v13608_v28 = vpop.eup %11150  ;;  %v5273_v17 = vadd.f32 %v5241_v29, %v13571_v19  ;;  %v5210_v31 = vmul.f32 %v5178_v0, %v13590_v57  ;;  %v5181_v52 = vmul.f32 %v13606_v9, %v13606_v9  ;;  %v13618_v22 = vadd.f32 %v13469_v1, %v13321_v6 }
0x1602   : > { %v5275_v27 = vadd.f32 %v5243_v4, %v13575_v12  ;;  %v5212_v41 = vmul.f32 %v5180_v20, %v13595_v49  ;;  %11164 = vtanh.f32 %v5304_v13  ;;  %v13622_v2 = vadd.f32 %v13478_v62, %v13324_v47 }
0x1603   : > { %v5305_v36 = vmul.f32 0.7978846, %v5273_v17  ;;  %v5242_v38 = vmul.f32 0.044715, %v5210_v31  ;;  %v5213_v4 = vmul.f32 %v5181_v52, %v13606_v9  ;;  %v5183_v20 = vmul.f32 %v13618_v22, %v13618_v22 }
0x1604   : > { %v13624_v10 = vpop.eup %11152  ;;  %v5307_v29 = vmul.f32 0.7978846, %v5275_v27  ;;  %v5244_v0 = vmul.f32 0.044715, %v5212_v41  ;;  %v5182_v1 = vmul.f32 %v13622_v2, %v13622_v2  ;;  %v13636_v47 = vadd.f32 %v13480_v46, %v13328_v32 }
0x1605   : > { %v13629_v12 = vpop.eup %11154  ;;  %11166 = vtanh.f32 %v5305_v36  ;;  %v5274_v6 = vadd.f32 %v5242_v38, %v13590_v57  ;;  %v5245_v17 = vmul.f32 0.044715, %v5213_v4  ;;  %v5215_v31 = vmul.f32 %v5183_v20, %v13618_v22 }
0x1606   : > { %v13638_v62 = vpop.eup %11156  ;;  %11168 = vtanh.f32 %v5307_v29  ;;  %v5276_v13 = vadd.f32 %v5244_v0, %v13595_v49  ;;  %v5214_v41 = vmul.f32 %v5182_v1, %v13622_v2  ;;  %v5184_v52 = vmul.f32 %v13636_v47, %v13636_v47 }
0x1607   : > { %v5306_v27 = vmul.f32 0.7978846, %v5274_v6  ;;  %v5346_v36 = vadd.f32 1.0, %v13456_v53  ;;  %v5277_v32 = vadd.f32 %v5245_v17, %v13606_v9  ;;  %v5247_v46 = vmul.f32 0.044715, %v5215_v31 }
0x1608   : > { %v5308_v38 = vmul.f32 0.7978846, %v5276_v13  ;;  %v5350_v19 = vadd.f32 1.0, %v13482_v16  ;;  %v13648_v29 = vpop.eup %11158  ;;  %v5246_v0 = vmul.f32 0.044715, %v5214_v41  ;;  %v5216_v4 = vmul.f32 %v5184_v52, %v13636_v47 }
0x1609   : > { %11170 = vtanh.f32 %v5306_v27  ;;  %v5378_v20 = vmul.f32 0.5, %v5346_v36  ;;  %v13651_v6 = vpop.eup %11160  ;;  %v5309_v1 = vmul.f32 0.7978846, %v5277_v32  ;;  %v5279_v49 = vadd.f32 %v5247_v46, %v13618_v22 }
0x160a   : > { %11172 = vtanh.f32 %v5308_v38  ;;  %v5382_v53 = vmul.f32 0.5, %v5350_v19  ;;  %v11163_v13 = vpop.eup %11162  ;;  %v5278_v17 = vadd.f32 %v5246_v0, %v13622_v2  ;;  %v5248_v31 = vmul.f32 0.044715, %v5216_v4 }
0x160b   : > { %v5410_v16 = vmul.f32 %v5378_v20, %v13337_v7  ;;  %v5348_v9 = vadd.f32 1.0, %v13460_v55  ;;  %11174 = vtanh.f32 %v5309_v1  ;;  %v5311_v27 = vmul.f32 0.7978846, %v5279_v49 }
0x160c   : > { %v5414_v41 = vmul.f32 %v5382_v53, %v13357_v54  ;;  %v5352_v52 = vadd.f32 1.0, %v13487_v3  ;;  %v11165_v36 = vpop.eup %11164  ;;  %v5310_v38 = vmul.f32 0.7978846, %v5278_v17  ;;  %v5280_v32 = vadd.f32 %v5248_v31, %v13636_v47  ;;  %v10747_v3 = vld [vmem:[%s14328_s16 + $0x8] sm:$0xff]  }
0x160d   : > { %v5380_v46 = vmul.f32 0.5, %v5348_v9  ;;  %v5354_v19 = vadd.f32 1.0, %v13535_v21  ;;  %11176 = vtanh.f32 %v5311_v27  ;;  %v5358_v7 = vadd.f32 1.0, %v13581_v8 }
0x160e   : > { %v5442_v0 = vpack.c.bf16 %v5414_v41, %v5410_v16  ;;  %v5384_v4 = vmul.f32 0.5, %v5352_v52  ;;  %11178 = vtanh.f32 %v5310_v38  ;;  %v5312_v55 = vmul.f32 0.7978846, %v5280_v32 }
0x160f   : > { %v13662_v20 = vpop.eup %11166  ;;  %v5412_v54 = vmul.f32 %v5380_v46, %v13340_v14  ;;  %v5386_v49 = vmul.f32 0.5, %v5354_v19  ;;  %v5390_v9 = vmul.f32 0.5, %v5358_v7  ;;  %v5356_v53 = vadd.f32 1.0, %v13545_v45 }
0x1610   : > { %v13668_v1 = vpop.eup %11168  ;;  %5754 = vmatprep.mubr.bf16.mxu0 %v5442_v0  ;;  %v5416_v21 = vmul.f32 %v5384_v4, %v13360_v33  ;;  %v5360_v8 = vadd.f32 1.0, %v13597_v59  ;;  %11180 = vtanh.f32 %v5312_v55  ;;  %v14445_v17 = vpack.c.bf16 %v13502_v61, %v13472_v26 }
0x1611   : > { %v5418_v14 = vmul.f32 %v5386_v49, %v13395_v23  ;;  %v5353_v31 = vadd.f32 1.0, %v13521_v18  ;;  %v5357_v16 = vadd.f32 1.0, %v13549_v63  ;;  %v5422_v41 = vmul.f32 %v5390_v9, %v13440_v5  ;;  %v10748_v23 = vld [vmem:[%s14328_s16 + $0x10] sm:$0xff]  }
0x1612   : > { %5755 = vmatmul.mubr.bf16.vlgmr.msra.gmra.mrb[120].mxu0 %v14445_v17  ;;  %v5444_v27 = vpack.c.bf16 %v5416_v21, %v5412_v54  ;;  %v5388_v33 = vmul.f32 0.5, %v5356_v53  ;;  %v5392_v52 = vmul.f32 0.5, %v5360_v8  ;;  %v5355_v32 = vadd.f32 1.0, %v13527_v48 }
0x1613   : > { %10005 = vmatpush3.bf16.msra.mxu0 %v13311_v43  ;;  %v11171_v45 = vpop.eup %11170  ;;  %v5385_v59 = vmul.f32 0.5, %v5353_v31  ;;  %v5389_v38 = vmul.f32 0.5, %v5357_v16  ;;  %v5359_v26 = vadd.f32 1.0, %v13557_v37  ;;  %v5446_v18 = vpack.c.bf16 %v5422_v41, %v5418_v14 }
0x1614   : > { %10006 = vmatprep.subr.bf16.mxu0 %v10747_v3  ;;  %v11173_v61 = vpop.eup %11172  ;;  %5819 = vmatprep.mubr.bf16.mxu1 %v5444_v27  ;;  %v5420_v5 = vmul.f32 %v5388_v33, %v13398_v50  ;;  %v5424_v63 = vmul.f32 %v5392_v52, %v13444_v15  ;;  %v5362_v43 = vadd.f32 1.0, %v13629_v12  ;;  %v14446_v46 = vpack.c.bf16 %v13510_v35, %v13485_v51 }
0x1615   : > { %v5417_v37 = vmul.f32 %v5385_v59, %v13387_v42  ;;  %v5421_v48 = vmul.f32 %v5389_v38, %v13403_v25  ;;  %v5387_v19 = vmul.f32 0.5, %v5355_v32  ;;  %v5391_v0 = vmul.f32 0.5, %v5359_v26  ;;  %v11175_v4 = vpop.eup %11174  ;;  %5762 = vmatprep.mubr.bf16.mxu0 %v5446_v18 }
0x1616   : > { %5820 = vmatmul.mubr.bf16.vlgmr.msra.gmra.mrb[120].mxu1 %v14446_v46  ;;  %v5448_v7 = vpack.c.bf16 %v5424_v63, %v5420_v5  ;;  %v5366_v55 = vadd.f32 1.0, %v11163_v13  ;;  %v5394_v54 = vmul.f32 0.5, %v5362_v43  ;;  %v5364_v50 = vadd.f32 1.0, %v13638_v62  ;;  %v14447_v46 = vld [vmem:[#allocation13_spill] sm:$0xff] }
0x1617   : > { %10007 = vmatpush3.bf16.msra.mxu0 %v10747_v3  ;;  %v5445_v15 = vpack.c.bf16 %v5421_v48, %v5417_v37  ;;  %v5419_v12 = vmul.f32 %v5387_v19, %v13390_v34  ;;  %v5423_v51 = vmul.f32 %v5391_v0, %v13406_v11  ;;  %v5368_v35 = vadd.f32 1.0, %v11165_v36  ;;  %v11177_v42 = vpop.eup %11176 }
0x1618   : > { %10008 = vmatprep.subr.bf16.mxu0 %v10748_v23  ;;  %5827 = vmatprep.mubr.bf16.mxu1 %v5448_v7  ;;  %v5398_v25 = vmul.f32 0.5, %v5366_v55  ;;  %v5426_v49 = vmul.f32 %v5394_v54, %v13499_v30  ;;  %v5396_v21 = vmul.f32 0.5, %v5364_v50  ;;  %v5361_v9 = vadd.f32 1.0, %v13608_v28  ;;  %v11179_v13 = vpop.eup %11178  ;;  %v14450_v54 = vld [vmem:[#allocation14_spill] sm:$0xff] }
0x1619   : > { %v5447_v53 = vpack.c.bf16 %v5423_v51, %v5419_v12  ;;  %v5400_v62 = vmul.f32 0.5, %v5368_v35  ;;  %v5365_v3 = vadd.f32 1.0, %v13648_v29  ;;  %v5363_v34 = vadd.f32 1.0, %v13624_v10  ;;  %v10750_v12 = vld [vmem:[%s14328_s16 + $0x20] sm:$0xff]   ;;  %v10752_v51 = vld [vmem:[%s14328_s16 + $0x30] sm:$0xff]   ;;  %v10753_v35 = vld [vmem:[%s14328_s16 + $0x38] sm:$0xff]  }
0x161a   : > { %5763 = vmatmul.mubr.bf16.gmra.mrb[124].mxu0 %v5445_v15  ;;  %v5430_v11 = vmul.f32 %v5398_v25, %v13543_v24  ;;  %v5428_v36 = vmul.f32 %v5396_v21, %v13507_v60  ;;  %v5393_v8 = vmul.f32 0.5, %v5361_v9  ;;  %v5367_v17 = vadd.f32 1.0, %v13651_v6  ;;  %v11181_v30 = vpop.eup %11180  ;;  %v13737_v25 = vld [vmem:[%s14327_s15 + $0x1] ss:$0 sm:$0xff] }
0x161b   : > { %10009 = vmatpush3.bf16.msra.mxu0 %v10748_v23  ;;  %v5432_v14 = vmul.f32 %v5400_v62, %v13563_v44  ;;  %v5397_v28 = vmul.f32 0.5, %v5365_v3  ;;  %v5395_v31 = vmul.f32 0.5, %v5363_v34  ;;  %v5370_v16 = vadd.f32 1.0, %v11171_v45 }
0x161c   : > { %v5450_v27 = vpack.c.bf16 %v5430_v11, %v5426_v49  ;;  %v5425_v41 = vmul.f32 %v5393_v8, %v13476_v56  ;;  %v5399_v29 = vmul.f32 0.5, %v5367_v17  ;;  %v5374_v33 = vadd.f32 1.0, %v11179_v13 }
0x161d   : > { %v5452_v10 = vpack.c.bf16 %v5432_v14, %v5428_v36  ;;  %v5429_v24 = vmul.f32 %v5397_v28, %v13533_v58  ;;  %v5427_v60 = vmul.f32 %v5395_v31, %v13495_v40  ;;  %v5402_v52 = vmul.f32 0.5, %v5370_v16 }
0x161e   : > { %5828 = vmatmul.mubr.bf16.gmra.mrb[124].mxu1 %v5447_v53  ;;  %5770 = vmatprep.mubr.bf16.mxu0 %v5450_v27  ;;  %v5431_v6 = vmul.f32 %v5399_v29, %v13539_v39  ;;  %v5406_v59 = vmul.f32 0.5, %v5374_v33  ;;  %v5372_v44 = vadd.f32 1.0, %v11173_v61  ;;  %v5376_v38 = vadd.f32 1.0, %v11181_v30  ;;  %v14451_v33 = vld [vmem:[#allocation15_spill] sm:$0xff] }
0x161f   : > { %5835 = vmatprep.mubr.bf16.mxu1 %v5452_v10  ;;  %v5449_v45 = vpack.c.bf16 %v5429_v24, %v5425_v41  ;;  %v5434_v32 = vmul.f32 %v5402_v52, %v13590_v57  ;;  %v5369_v56 = vadd.f32 1.0, %v13662_v20  ;;  %v5373_v26 = vadd.f32 1.0, %v11175_v4  ;;  %v14448_v57 = vld [vmem:[#allocation11_spill] sm:$0xff]  ;;  %v14449_v20 = vld [vmem:[#allocation4_spill] sm:$0xff]  ;;  %v14452_v24 = vld [vmem:[#allocation17_spill] sm:$0xff] }
0x1620   : > { %v5451_v23 = vpack.c.bf16 %v5431_v6, %v5427_v60  ;;  %v5438_v18 = vmul.f32 %v5406_v59, %v13622_v2  ;;  %v5404_v58 = vmul.f32 0.5, %v5372_v44  ;;  %v5408_v5 = vmul.f32 0.5, %v5376_v38 }
0x1621   : > { %v5401_v40 = vmul.f32 0.5, %v5369_v56  ;;  %v5405_v63 = vmul.f32 0.5, %v5373_v26  ;;  %v5371_v39 = vadd.f32 1.0, %v13668_v1  ;;  %v5375_v43 = vadd.f32 1.0, %v11177_v42 }
0x1622   : > { %5771 = vmatmul.mubr.bf16.gmra.mrb[128].mxu0 %v5449_v45  ;;  %v5454_v61 = vpack.c.bf16 %v5438_v18, %v5434_v32  ;;  %v5436_v37 = vmul.f32 %v5404_v58, %v14447_v46  ;;  %v5440_v48 = vmul.f32 %v5408_v5, %v13636_v47  ;;  %v10749_v47 = vld [vmem:[%s14328_s16 + $0x18] sm:$0xff]  }
0x1623   : > { %v5433_v19 = vmul.f32 %v5401_v40, %v14448_v57  ;;  %v5437_v0 = vmul.f32 %v5405_v63, %v14449_v20  ;;  %v5403_v4 = vmul.f32 0.5, %v5371_v39  ;;  %v5407_v7 = vmul.f32 0.5, %v5375_v43  ;;  %10010 = vmatprep.subr.bf16.mxu0 %v10749_v47 }
0x1624   : > { %5778 = vmatprep.mubr.bf16.mxu0 %v5454_v61  ;;  %v5456_v2 = vpack.c.bf16 %v5440_v48, %v5436_v37  ;;  %10011 = vmatpush3.bf16.msra.mxu0 %v10749_v47  ;;  %v14453_v61 = vld [vmem:[#allocation16_spill] sm:$0xff]  ;;  %v14454_v37 = vld [vmem:[#allocation7_spill] sm:$0xff] }
0x1625   : > { %v5453_v55 = vpack.c.bf16 %v5437_v0, %v5433_v19  ;;  %v5435_v50 = vmul.f32 %v5403_v4, %v14450_v54  ;;  %v5439_v1 = vmul.f32 %v5407_v7, %v13618_v22  ;;  %10012 = vmatprep.subr.bf16.mxu0 %v10750_v12  ;;  %v10751_v22 = vld [vmem:[%s14328_s16 + $0x28] sm:$0xff]  }
0x1626   : > { %5836 = vmatmul.mubr.bf16.gmra.mrb[128].mxu1 %v5451_v23 }
0x1627   : > { %5843 = vmatprep.mubr.bf16.mxu1 %v5456_v2  ;;  %v5455_v15 = vpack.c.bf16 %v5439_v1, %v5435_v50 }
0x1628   : > { %10013 = vmatpush3.bf16.msra.mxu0 %v10750_v12 }
0x1629   : > { %10014 = vmatprep.subr.bf16.mxu0 %v10751_v22 }
0x162a   : > { %5779 = vmatmul.mubr.bf16.gmra.mrb[132].mxu0 %v5453_v55 }
0x162c   : > { %10015 = vmatpush3.bf16.msra.mxu0 %v10751_v22 }
0x162d   : > { %10016 = vmatprep.subr.bf16.mxu0 %v10752_v51 }
0x162e   : > { %5844 = vmatmul.mubr.bf16.gmra.mrb[132].mxu1 %v5455_v15 }
0x1630   : > { %10017 = vmatpush3.bf16.msra.mxu0 %v10752_v51 }
0x1631   : > { %10018 = vmatprep.subr.bf16.mxu0 %v10753_v35 }
0x1634   : > { %10019 = vmatpush3.bf16.msra.mxu0 %v10753_v35 }
0x16e5   : > { %v9508_v42 = vpop.f32.mrb[120].mxu0 }
0x16e6   : > { %v9509_v49 = vpop.f32.mrb[121].mxu0 }
0x16e7   : > { %v9510_v21 = vadd.f32 %v9509_v49, %v9508_v42  ;;  %v9511_v9 = vpop.f32.mrb[122].mxu0  ;;  %v14455_v42 = vld [vmem:[#allocation9_spill] sm:$0xff] }
0x16e8   : > { %v9512_v13 = vpop.f32.mrb[123].mxu0 }
0x16e9   : > { %v9548_v53 = vpop.f32.mrb[120].mxu1  ;;  %v5757_v62 = vadd.f32 %v9510_v21, %v13737_v25  ;;  %v9513_v3 = vadd.f32 %v9512_v13, %v9511_v9  ;;  %v14456_v21 = vld [vmem:[#allocation8_spill] sm:$0xff] }
0x16ea   : > { %v9549_v34 = vpop.f32.mrb[121].mxu1 }
0x16eb   : > { %v9550_v11 = vadd.f32 %v9549_v34, %v9548_v53  ;;  %v9551_v36 = vpop.f32.mrb[122].mxu1  ;;  %v5760_v8 = vadd.f32 %v9513_v3, %v13737_v25 }
0x16ec   : > { %v9552_v17 = vpop.f32.mrb[123].mxu1 }
0x16ed   : > { %v5822_v30 = vadd.f32 %v9550_v11, %v5757_v62  ;;  %v9553_v14 = vadd.f32 %v9552_v17, %v9551_v36  ;;  %v9514_v28 = vpop.f32.mrb[124].mxu0 }
0x16ee   : > { %v9515_v31 = vpop.f32.mrb[125].mxu0 }
0x16ef   : > { %v5825_v16 = vadd.f32 %v9553_v14, %v5760_v8  ;;  %v9516_v27 = vadd.f32 %v9515_v31, %v9514_v28  ;;  %v9517_v41 = vpop.f32.mrb[126].mxu0  ;;  %v5852_v10 = vadd.f32 %v5822_v30, %v14451_v33  ;;  %v14457_v31 = vld [vmem:[#allocation12_spill] sm:$0xff] }
0x16f0   : > { %v9518_v29 = vpop.f32.mrb[127].mxu0 }
0x16f1   : > { %v5853_v60 = vadd.f32 %v5825_v16, %v14452_v24  ;;  %v9554_v52 = vpop.f32.mrb[124].mxu1  ;;  %v5765_v6 = vadd.f32 %v9516_v27, %v13737_v25  ;;  %v9519_v59 = vadd.f32 %v9518_v29, %v9517_v41  ;;  %v14458_v27 = vld [vmem:[#allocation10_spill] sm:$0xff] }
0x16f2   : > { %v9555_v44 = vpop.f32.mrb[125].mxu1 }
0x16f3   : > { %v9556_v38 = vadd.f32 %v9555_v44, %v9554_v52  ;;  %v9557_v45 = vpop.f32.mrb[126].mxu1  ;;  %v5768_v32 = vadd.f32 %v9519_v59, %v13737_v25  ;;  %v5860_v56 = vpack.c.bf16 %v5853_v60, %v5852_v10  ;;  %v10754_v44 = vld [vmem:[%s14332_s20 + $0x40] sm:$0xff]  }
0x16f4   : > { %v9558_v26 = vpop.f32.mrb[127].mxu1  ;;  %10052 = vmatprep.subr.bf16.mxu0 %v10754_v44 }
0x16f5   : > { %v5830_v23 = vadd.f32 %v9556_v38, %v5765_v6  ;;  %v9559_v18 = vadd.f32 %v9558_v26, %v9557_v45  ;;  %10020 = vmatprep.mubr.bf16.mxu0 %v5860_v56  ;;  %v9520_v58 = vpop.f32.mrb[128].mxu0  ;;  %v10755_v38 = vld [vmem:[%s14332_s20] sm:$0xff]  }
0x16f6   : > { %v9521_v5 = vpop.f32.mrb[129].mxu0  ;;  %10028 = vmatprep.subr.bf16.mxu1 %v10755_v38 }
0x16f7   : > { %v5833_v40 = vadd.f32 %v9559_v18, %v5768_v32  ;;  %v9522_v63 = vadd.f32 %v9521_v5, %v9520_v58  ;;  %v9523_v39 = vpop.f32.mrb[130].mxu0  ;;  %v5854_v46 = vadd.f32 %v5830_v23, %v14453_v61  ;;  %10029 = vmatpush3.bf16.msra.mxu1 %v10755_v38 }
0x16f8   : > { %v9524_v43 = vpop.f32.mrb[131].mxu0 }
0x16f9   : > { %v5855_v48 = vadd.f32 %v5833_v40, %v14454_v37  ;;  %v9560_v57 = vpop.f32.mrb[128].mxu1  ;;  %v5773_v19 = vadd.f32 %v9522_v63, %v13737_v25  ;;  %v9525_v20 = vadd.f32 %v9524_v43, %v9523_v39 }
0x16fa   : > { %v9561_v0 = vpop.f32.mrb[129].mxu1 }
0x16fb   : > { %v5861_v4 = vpack.c.bf16 %v5855_v48, %v5854_v46  ;;  %v9562_v7 = vadd.f32 %v9561_v0, %v9560_v57  ;;  %v9563_v2 = vpop.f32.mrb[130].mxu1  ;;  %v5776_v55 = vadd.f32 %v9525_v20, %v13737_v25 }
0x16fc   : > { %v9564_v54 = vpop.f32.mrb[131].mxu1 }
0x16fd   : > { %v5838_v50 = vadd.f32 %v9562_v7, %v5773_v19  ;;  %v9565_v1 = vadd.f32 %v9564_v54, %v9563_v2  ;;  %10021 = vmatmul.mubr.bf16.vlgmr.msra.gmra.mrb[136].mxu0 %v5861_v4  ;;  %v9526_v15 = vpop.f32.mrb[132].mxu0 }
0x16fe   : > { %v9527_v47 = vpop.f32.mrb[133].mxu0  ;;  %10053 = vmatpush3.bf16.msra.mxu0 %v10754_v44 }
0x16ff   : > { %v5841_v12 = vadd.f32 %v9565_v1, %v5776_v55  ;;  %v9528_v22 = vadd.f32 %v9527_v47, %v9526_v15  ;;  %v9529_v51 = vpop.f32.mrb[134].mxu0  ;;  %v5856_v49 = vadd.f32 %v5838_v50, %v14455_v42 }
0x1700   : > { %v9530_v35 = vpop.f32.mrb[135].mxu0 }
0x1701   : > { %v5857_v9 = vadd.f32 %v5841_v12, %v14456_v21  ;;  %v9566_v13 = vpop.f32.mrb[132].mxu1  ;;  %v5781_v53 = vadd.f32 %v9528_v22, %v13737_v25  ;;  %v9531_v62 = vadd.f32 %v9530_v35, %v9529_v51  ;;  %v10756_v12 = vld [vmem:[%s14332_s20 + $0x48] sm:$0xff]   ;;  %v10759_v21 = vld [vmem:[%s14332_s20 + $0x10] sm:$0xff]  }
0x1702   : > { %v9567_v3 = vpop.f32.mrb[133].mxu1  ;;  %v10757_v22 = vld [vmem:[%s14332_s20 + $0x8] sm:$0xff]   ;;  %10054 = vmatprep.subr.bf16.mxu0 %v10756_v12 }
0x1703   : > { %v9568_v34 = vadd.f32 %v9567_v3, %v9566_v13  ;;  %v9569_v11 = vpop.f32.mrb[134].mxu1  ;;  %v5784_v36 = vadd.f32 %v9531_v62, %v13737_v25  ;;  %v5862_v8 = vpack.c.bf16 %v5857_v9, %v5856_v49  ;;  %10030 = vmatprep.subr.bf16.mxu1 %v10757_v22  ;;  %10055 = vmatpush3.bf16.msra.mxu0 %v10756_v12  ;;  %v10758_v49 = vld [vmem:[%s14332_s20 + $0x50] sm:$0xff]   ;;  %v10760_v9 = vld [vmem:[%s14332_s20 + $0x58] sm:$0xff]   ;;  %v10763_v62 = vld [vmem:[%s14332_s20 + $0x20] sm:$0xff]  }
0x1704   : > { %v9570_v17 = vpop.f32.mrb[135].mxu1  ;;  %10031 = vmatpush3.bf16.msra.mxu1 %v10757_v22  ;;  %10056 = vmatprep.subr.bf16.mxu0 %v10758_v49  ;;  %v10761_v13 = vld [vmem:[%s14332_s20 + $0x18] sm:$0xff]   ;;  %v10764_v3 = vld [vmem:[%s14332_s20 + $0x68] sm:$0xff]  }
0x1705   : > { %v5846_v30 = vadd.f32 %v9568_v34, %v5781_v53  ;;  %v9571_v14 = vadd.f32 %v9570_v17, %v9569_v11  ;;  %10024 = vmatprep.mubr.bf16.mxu0 %v5862_v8  ;;  %10032 = vmatprep.subr.bf16.mxu1 %v10759_v21  ;;  %v10762_v53 = vld [vmem:[%s14332_s20 + $0x60] sm:$0xff]   ;;  %v10765_v34 = vld [vmem:[%s14332_s20 + $0x28] sm:$0xff]   ;;  %v10766_v11 = vld [vmem:[%s14332_s20 + $0x70] sm:$0xff]  }
0x1706   : > { %v10768_v8 = vld [vmem:[%s14332_s20 + $0x78] sm:$0xff]  }
0x1707   : > { %v5849_v28 = vadd.f32 %v9571_v14, %v5784_v36  ;;  %v5858_v16 = vadd.f32 %v5846_v30, %v14457_v31  ;;  %10057 = vmatpush3.bf16.msra.mxu0 %v10758_v49  ;;  %v10767_v36 = vld [vmem:[%s14332_s20 + $0x30] sm:$0xff]   ;;  %v10769_v17 = vld [vmem:[%s14332_s20 + $0x38] sm:$0xff]   ;;  %v10770_v30 = vld [vmem:[%s14332_s20 + $0x80] sm:$0xff]  }
0x1708   : > { %10033 = vmatpush3.bf16.msra.mxu1 %v10759_v21  ;;  %10058 = vmatprep.subr.bf16.mxu0 %v10760_v9  ;;  %v10772_v49 = vld [vmem:[%s14332_s20 + $0x90] sm:$0xff]  }
0x1709   : > { %v5859_v41 = vadd.f32 %v5849_v28, %v14458_v27  ;;  %10034 = vmatprep.subr.bf16.mxu1 %v10761_v13 }
0x170b   : > { %v5863_v29 = vpack.c.bf16 %v5859_v41, %v5858_v16  ;;  %10059 = vmatpush3.bf16.msra.mxu0 %v10760_v9 }
0x170c   : > { %10035 = vmatpush3.bf16.msra.mxu1 %v10761_v13  ;;  %10060 = vmatprep.subr.bf16.mxu0 %v10762_v53 }
0x170d   : > { %10025 = vmatmul.mubr.bf16.gmra.mrb[140].mxu0 %v5863_v29  ;;  %10036 = vmatprep.subr.bf16.mxu1 %v10763_v62 }
0x170f   : > { %10061 = vmatpush3.bf16.msra.mxu0 %v10762_v53 }
0x1710   : > { %10037 = vmatpush3.bf16.msra.mxu1 %v10763_v62  ;;  %10062 = vmatprep.subr.bf16.mxu0 %v10764_v3 }
0x1711   : > { %10038 = vmatprep.subr.bf16.mxu1 %v10765_v34 }
0x1713   : > { %10063 = vmatpush3.bf16.msra.mxu0 %v10764_v3 }
0x1714   : > { %10039 = vmatpush3.bf16.msra.mxu1 %v10765_v34  ;;  %10064 = vmatprep.subr.bf16.mxu0 %v10766_v11  ;;  %v10773_v34 = vld [vmem:[%s14332_s20 + $0x98] sm:$0xff]  }
0x1715   : > { %10040 = vmatprep.subr.bf16.mxu1 %v10767_v36 }
0x1717   : > { %10065 = vmatpush3.bf16.msra.mxu0 %v10766_v11 }
0x1718   : > { %10041 = vmatpush3.bf16.msra.mxu1 %v10767_v36  ;;  %10066 = vmatprep.subr.bf16.mxu0 %v10768_v8 }
0x1719   : > { %10042 = vmatprep.subr.bf16.mxu1 %v10769_v17 }
0x171b   : > { %10067 = vmatpush3.bf16.msra.mxu0 %v10768_v8 }
0x171c   : > { %10043 = vmatpush3.bf16.msra.mxu1 %v10769_v17  ;;  %10108 = vmatprep.subr.bf16.mxu0 %v10770_v30 }
0x17d0   : > { %v10022_v33 = vpop.f32.mrb[136].mxu0 }
0x17d1   : > { %v5962_v10 = vpop.f32.mrb[137].mxu0 }
0x17d2   : > { %5995 = vadd.xlane.f32.xlu0 %v5962_v10  ;;  %v10023_v24 = vpop.f32.mrb[138].mxu0 }
0x17d3   : > { %v5965_v60 = vpop.f32.mrb[139].mxu0 }
0x17d4   : > { %5997 = vadd.xlane.f32.xlu1 %v5965_v60 }
0x17d6   : > { %5999 = vadd.xlane.f32.xlu0 %v10022_v33 }
0x17d8   : > { %6001 = vadd.xlane.f32.xlu1 %v10023_v24 }
0x17e0   : > { %v10026_v25 = vpop.f32.mrb[140].mxu0 }
0x17e1   : > { %v5978_v52 = vpop.f32.mrb[141].mxu0 }
0x17e2   : > { %6003 = vadd.xlane.f32.xlu0 %v5978_v52  ;;  %v10027_v6 = vpop.f32.mrb[142].mxu0 }
0x17e3   : > { %v5981_v59 = vpop.f32.mrb[143].mxu0 }
0x17e4   : > { %6005 = vadd.xlane.f32.xlu1 %v5981_v59 }
0x17e6   : > { %6007 = vadd.xlane.f32.xlu0 %v10026_v25 }
0x17e8   : > { %6009 = vadd.xlane.f32.xlu1 %v10027_v6 }
0x185f   : > { %v5996_v45 = vpop.xlane.xlu0 %5995 }
0x1860   : > { %v6011_v32 = vmul.f32 0.0078125, %v5996_v45 }
0x1861   : > { %v5998_v56 = vpop.xlane.xlu1 %5997 }
0x1862   : > { %v13761_v26 = vsub.f32 %v5962_v10, %v6011_v32  ;;  %v6012_v23 = vmul.f32 0.0078125, %v5998_v56 }
0x1863   : > { %v6000_v18 = vpop.xlane.xlu0 %5999 }
0x1864   : > { %v13763_v58 = vsub.f32 %v5965_v60, %v6012_v23  ;;  %v6013_v5 = vmul.f32 0.0078125, %v6000_v18  ;;  %v6027_v40 = vmul.f32 %v13761_v26, %v13761_v26 }
0x1865   : > { %v6002_v63 = vpop.xlane.xlu1 %6001 }
0x1866   : > { %v13767_v39 = vsub.f32 %v10022_v33, %v6013_v5  ;;  %v6014_v43 = vmul.f32 0.0078125, %v6002_v63  ;;  %6035 = vadd.xlane.f32.xlu0 %v6027_v40  ;;  %v6028_v61 = vmul.f32 %v13763_v58, %v13763_v58  ;;  %v8949_v5 = vld [vmem:[%s14330_s18] ss:$0 sm:$0xff] }
0x1868   : > { %v13771_v46 = vsub.f32 %v10023_v24, %v6014_v43  ;;  %6037 = vadd.xlane.f32.xlu1 %v6028_v61  ;;  %v6029_v37 = vmul.f32 %v13767_v39, %v13767_v39 }
0x186a   : > { %6039 = vadd.xlane.f32.xlu0 %v6029_v37  ;;  %v6030_v48 = vmul.f32 %v13771_v46, %v13771_v46 }
0x186c   : > { %6041 = vadd.xlane.f32.xlu1 %v6030_v48 }
0x186f   : > { %v6004_v57 = vpop.xlane.xlu0 %6003 }
0x1870   : > { %v6015_v19 = vmul.f32 0.0078125, %v6004_v57 }
0x1871   : > { %v6006_v20 = vpop.xlane.xlu1 %6005 }
0x1872   : > { %v13777_v0 = vsub.f32 %v5978_v52, %v6015_v19  ;;  %v6016_v4 = vmul.f32 0.0078125, %v6006_v20 }
0x1873   : > { %v6008_v7 = vpop.xlane.xlu0 %6007 }
0x1874   : > { %v13779_v2 = vsub.f32 %v5981_v59, %v6016_v4  ;;  %v6017_v55 = vmul.f32 0.0078125, %v6008_v7  ;;  %v6031_v54 = vmul.f32 %v13777_v0, %v13777_v0 }
0x1875   : > { %v6010_v50 = vpop.xlane.xlu1 %6009 }
0x1876   : > { %v13783_v1 = vsub.f32 %v10026_v25, %v6017_v55  ;;  %v6018_v15 = vmul.f32 0.0078125, %v6010_v50  ;;  %6043 = vadd.xlane.f32.xlu0 %v6031_v54  ;;  %v6032_v47 = vmul.f32 %v13779_v2, %v13779_v2 }
0x1878   : > { %v13793_v51 = vsub.f32 %v10027_v6, %v6018_v15  ;;  %6045 = vadd.xlane.f32.xlu1 %v6032_v47  ;;  %v6033_v35 = vmul.f32 %v13783_v1, %v13783_v1  ;;  %v8948_v6 = vld [vmem:[%s14329_s17] ss:$0 sm:$0xff] }
0x187a   : > { %6047 = vadd.xlane.f32.xlu0 %v6033_v35  ;;  %v6034_v42 = vmul.f32 %v13793_v51, %v13793_v51 }
0x187c   : > { %6049 = vadd.xlane.f32.xlu1 %v6034_v42 }
0x18f3   : > { %v6036_v14 = vpop.xlane.xlu0 %6035 }
0x18f4   : > { %v6051_v28 = vmul.f32 0.0078125, %v6036_v14 }
0x18f5   : > { %v6038_v31 = vpop.xlane.xlu1 %6037 }
0x18f6   : > { %v6059_v16 = vadd.f32 1e-06, %v6051_v28  ;;  %v6052_v27 = vmul.f32 0.0078125, %v6038_v31 }
0x18f7   : > { %v6040_v41 = vpop.xlane.xlu0 %6039 }
0x18f8   : > { %11182 = vrsqrt.f32 %v6059_v16  ;;  %v6060_v29 = vadd.f32 1e-06, %v6052_v27  ;;  %v6053_v33 = vmul.f32 0.0078125, %v6040_v41  ;;  %v10776_v16 = vld [vmem:[%s14332_s20 + $0xb0] sm:$0xff]   ;;  %v10777_v27 = vld [vmem:[%s14332_s20 + $0xb8] sm:$0xff]   ;;  %v10778_v41 = vld [vmem:[%s14332_s20 + $0xc0] sm:$0xff]  }
0x18f9   : > { %v6042_v10 = vpop.xlane.xlu1 %6041 }
0x18fa   : > { %11184 = vrsqrt.f32 %v6060_v29  ;;  %v6061_v24 = vadd.f32 1e-06, %v6053_v33  ;;  %v6054_v60 = vmul.f32 0.0078125, %v6042_v10  ;;  %v10779_v29 = vld [vmem:[%s14332_s20 + $0xc8] sm:$0xff]   ;;  %v10780_v33 = vld [vmem:[%s14332_s20 + $0xd0] sm:$0xff]   ;;  %v10781_v10 = vld [vmem:[%s14332_s20 + $0xd8] sm:$0xff]  }
0x18fc   : > { %11186 = vrsqrt.f32 %v6061_v24  ;;  %v6062_v25 = vadd.f32 1e-06, %v6054_v60  ;;  %v10782_v24 = vld [vmem:[%s14332_s20 + $0xe0] sm:$0xff]   ;;  %v10783_v60 = vld [vmem:[%s14332_s20 + $0xe8] sm:$0xff]  }
0x18fe   : > { %11188 = vrsqrt.f32 %v6062_v25  ;;  %v10784_v25 = vld [vmem:[%s14332_s20 + $0xf0] sm:$0xff]  }
0x1902   : > { %v11183_v52 = vpop.eup %11182 }
0x1903   : > { %v6075_v59 = vmul.f32 %v11183_v52, %v13761_v26  ;;  %v6044_v44 = vpop.xlane.xlu0 %6043  ;;  %v10785_v52 = vld [vmem:[%s14332_s20 + $0xf8] sm:$0xff]  }
0x1904   : > { %v11185_v38 = vpop.eup %11184  ;;  %v6055_v45 = vmul.f32 0.0078125, %v6044_v44  ;;  %v10788_v44 = vld [vmem:[%s14332_s20 + $0x150] sm:$0xff]  }
0x1905   : > { %v6089_v32 = vmul.f32 %v8948_v6, %v6075_v59  ;;  %v6076_v56 = vmul.f32 %v11185_v38, %v13763_v58  ;;  %v6046_v23 = vpop.xlane.xlu1 %6045  ;;  %v10787_v59 = vld [vmem:[%s14332_s20 + $0x148] sm:$0xff]   ;;  %v10789_v38 = vld [vmem:[%s14332_s20 + $0x158] sm:$0xff]  }
0x1906   : > { %v11187_v18 = vpop.eup %11186  ;;  %v6063_v40 = vadd.f32 1e-06, %v6055_v45  ;;  %v6056_v63 = vmul.f32 0.0078125, %v6046_v23  ;;  %v10790_v45 = vld [vmem:[%s14332_s20 + $0x160] sm:$0xff]   ;;  %v10793_v23 = vld [vmem:[%s14332_s20 + $0x178] sm:$0xff]  }
0x1907   : > { %v6090_v43 = vmul.f32 %v8948_v6, %v6076_v56  ;;  %v6077_v61 = vmul.f32 %v11187_v18, %v13767_v39  ;;  %v6048_v37 = vpop.xlane.xlu0 %6047  ;;  %v6103_v19 = vadd.f32 %v8949_v5, %v6089_v32  ;;  %v10791_v32 = vld [vmem:[%s14332_s20 + $0x168] sm:$0xff]   ;;  %v10792_v56 = vld [vmem:[%s14332_s20 + $0x170] sm:$0xff]   ;;  %v10794_v18 = vld [vmem:[%s14332_s20 + $0x180] sm:$0xff]  }
0x1908   : > { %v11189_v48 = vpop.eup %11188  ;;  %11190 = vrsqrt.f32 %v6063_v40  ;;  %v6064_v26 = vadd.f32 1e-06, %v6056_v63  ;;  %v6057_v57 = vmul.f32 0.0078125, %v6048_v37  ;;  %v10796_v40 = vld [vmem:[%s14332_s20 + $0x190] sm:$0xff]   ;;  %v10797_v63 = vld [vmem:[%s14332_s20 + $0x198] sm:$0xff]   ;;  %v10810_v37 = vld [vmem:[%s14331_s19 + $0x20] sm:$0xff]  }
0x1909   : > { %v6104_v20 = vadd.f32 %v8949_v5, %v6090_v43  ;;  %v6091_v4 = vmul.f32 %v8948_v6, %v6077_v61  ;;  %v6078_v58 = vmul.f32 %v11189_v48, %v13771_v46  ;;  %v6050_v7 = vpop.xlane.xlu1 %6049  ;;  %v10771_v46 = vld [vmem:[%s14332_s20 + $0x88] sm:$0xff]   ;;  %v10798_v43 = vld [vmem:[%s14332_s20 + $0x1a0] sm:$0xff]   ;;  %v10800_v48 = vld [vmem:[%s14332_s20 + $0x1b0] sm:$0xff]  }
0x190a   : > { %11192 = vrsqrt.f32 %v6064_v26  ;;  %v6065_v55 = vadd.f32 1e-06, %v6057_v57  ;;  %v6058_v54 = vmul.f32 0.0078125, %v6050_v7  ;;  %v10799_v61 = vld [vmem:[%s14332_s20 + $0x1a8] sm:$0xff]   ;;  %v10801_v26 = vld [vmem:[%s14332_s20 + $0x1b8] sm:$0xff]   ;;  %v10802_v57 = vld [vmem:[%s14332_s20 + $0x1c0] sm:$0xff]  }
0x190b   : > { %v13848_v50 = vpack.c.bf16 %v6104_v20, %v6103_v19  ;;  %v6092_v15 = vmul.f32 %v8948_v6, %v6078_v58  ;;  %v6105_v39 = vadd.f32 %v8949_v5, %v6091_v4  ;;  %v10803_v19 = vld [vmem:[%s14332_s20 + $0x1c8] sm:$0xff]   ;;  %v10804_v20 = vld [vmem:[%s14332_s20 + $0x1d0] sm:$0xff]   ;;  %v10805_v4 = vld [vmem:[%s14332_s20 + $0x1d8] sm:$0xff]  }
0x190c   : > { %11194 = vrsqrt.f32 %v6065_v55  ;;  %v6066_v47 = vadd.f32 1e-06, %v6058_v54  ;;  %v10806_v58 = vld [vmem:[%s14332_s20 + $0x1e0] sm:$0xff]   ;;  %v10807_v7 = vld [vmem:[%s14332_s20 + $0x1e8] sm:$0xff]   ;;  %v10808_v55 = vld [vmem:[%s14332_s20 + $0x1f0] sm:$0xff]  }
0x190d   : > { %v6106_v12 = vadd.f32 %v8949_v5, %v6092_v15  ;;  %10044 = vmatprep.mubr.bf16.mxu1 %v13848_v50  ;;  %10068 = vmatprep.mubr.bf16.mxu0 %v13848_v50  ;;  %v10809_v54 = vld [vmem:[%s14332_s20 + $0x1f8] sm:$0xff]  }
0x190e   : > { %11196 = vrsqrt.f32 %v6066_v47 }
0x190f   : > { %v13852_v22 = vpack.c.bf16 %v6106_v12, %v6105_v39 }
0x1911   : > { %10045 = vmatmul.mubr.bf16.vlgmr.msra.gmra.mrb[136].mxu1 %v13852_v22  ;;  %10069 = vmatmul.mubr.bf16.vlgmr.msra.gmra.mrb[144].mxu0 %v13852_v22 }
0x1912   : > { %v11191_v35 = vpop.eup %11190  ;;  %10109 = vmatpush3.bf16.msra.mxu0 %v10770_v30 }
0x1913   : > { %v6079_v42 = vmul.f32 %v11191_v35, %v13777_v0  ;;  %10110 = vmatprep.subr.bf16.mxu0 %v10771_v46 }
0x1914   : > { %v11193_v21 = vpop.eup %11192 }
0x1915   : > { %v6093_v9 = vmul.f32 %v8948_v6, %v6079_v42  ;;  %v6080_v13 = vmul.f32 %v11193_v21, %v13779_v2 }
0x1916   : > { %v11195_v53 = vpop.eup %11194  ;;  %10111 = vmatpush3.bf16.msra.mxu0 %v10771_v46 }
0x1917   : > { %v6094_v62 = vmul.f32 %v8948_v6, %v6080_v13  ;;  %v6081_v3 = vmul.f32 %v11195_v53, %v13783_v1  ;;  %10112 = vmatprep.subr.bf16.mxu0 %v10772_v49  ;;  %v6107_v11 = vadd.f32 %v8949_v5, %v6093_v9  ;;  %v10774_v1 = vld [vmem:[%s14332_s20 + $0xa0] sm:$0xff]  }
0x1918   : > { %v11197_v0 = vpop.eup %11196 }
0x1919   : > { %v6108_v36 = vadd.f32 %v8949_v5, %v6094_v62  ;;  %v6095_v8 = vmul.f32 %v8948_v6, %v6081_v3  ;;  %v6082_v17 = vmul.f32 %v11197_v0, %v13793_v51  ;;  %v10775_v51 = vld [vmem:[%s14332_s20 + $0xa8] sm:$0xff]  }
0x191a   : > { %10113 = vmatpush3.bf16.msra.mxu0 %v10772_v49 }
0x191b   : > { %v13869_v30 = vpack.c.bf16 %v6108_v36, %v6107_v11  ;;  %v6096_v2 = vmul.f32 %v8948_v6, %v6082_v17  ;;  %10114 = vmatprep.subr.bf16.mxu0 %v10773_v34  ;;  %v6109_v14 = vadd.f32 %v8949_v5, %v6095_v8  ;;  %v10786_v6 = vld [vmem:[%s14332_s20 + $0x140] sm:$0xff]  }
0x191d   : > { %v6110_v28 = vadd.f32 %v8949_v5, %v6096_v2  ;;  %10048 = vmatprep.mubr.bf16.mxu1 %v13869_v30  ;;  %10072 = vmatprep.mubr.bf16.mxu0 %v13869_v30  ;;  %v10795_v5 = vld [vmem:[%s14332_s20 + $0x188] sm:$0xff]  }
0x191e   : > { %10115 = vmatpush3.bf16.msra.mxu0 %v10773_v34 }
0x191f   : > { %v13876_v31 = vpack.c.bf16 %v6110_v28, %v6109_v14  ;;  %10116 = vmatprep.subr.bf16.mxu0 %v10774_v1 }
0x1921   : > { %10049 = vmatmul.mubr.bf16.gmra.mrb[140].mxu1 %v13876_v31  ;;  %10073 = vmatmul.mubr.bf16.gmra.mrb[148].mxu0 %v13876_v31 }
0x1922   : > { %10117 = vmatpush3.bf16.msra.mxu0 %v10774_v1  ;;  %10124 = vmatprep.mubr.bf16.mxu0 %v13848_v50 }
0x1923   : > { %10118 = vmatprep.subr.bf16.mxu0 %v10775_v51  ;;  %10084 = vmatprep.mubr.msk.bf16.mxu1 %vm839_vm0, %v10810_v37  ;;  %v10821_v37 = vld [vmem:[%s14331_s19 + $0x58] sm:$0xff]  }
0x1926   : > { %10119 = vmatpush3.bf16.msra.mxu0 %v10775_v51  ;;  %v10811_v51 = vld [vmem:[%s14331_s19 + $0x28] sm:$0xff]  }
0x1927   : > { %10120 = vmatprep.subr.bf16.mxu0 %v10776_v16 }
0x192a   : > { %10121 = vmatpush3.bf16.msra.mxu0 %v10776_v16  ;;  %v10812_v16 = vld [vmem:[%s14331_s19 + $0x30] sm:$0xff]  }
0x192b   : > { %10122 = vmatprep.subr.bf16.mxu0 %v10777_v27 }
0x192e   : > { %10123 = vmatpush3.bf16.msra.mxu0 %v10777_v27 }
0x192f   : > { %10148 = vmatprep.subr.bf16.mxu0 %v10778_v41 }
0x1931   : > { %10125 = vmatmul.mubr.bf16.vlgmr.msra.gmra.mrb[152].mxu0 %v13852_v22 }
0x1932   : > { %10128 = vmatprep.mubr.bf16.mxu0 %v13869_v30  ;;  %10149 = vmatpush3.bf16.msra.mxu0 %v10778_v41 }
0x1933   : > { %10150 = vmatprep.subr.bf16.mxu0 %v10779_v29 }
0x1936   : > { %10151 = vmatpush3.bf16.msra.mxu0 %v10779_v29 }
0x1937   : > { %10152 = vmatprep.subr.bf16.mxu0 %v10780_v33 }
0x1939   : > { %10129 = vmatmul.mubr.bf16.gmra.mrb[156].mxu0 %v13876_v31 }
0x193a   : > { %10153 = vmatpush3.bf16.msra.mxu0 %v10780_v33  ;;  %10164 = vmatprep.mubr.bf16.mxu0 %v13848_v50  ;;  %v10813_v33 = vld [vmem:[%s14331_s19 + $0x38] sm:$0xff]  }
0x193b   : > { %10154 = vmatprep.subr.bf16.mxu0 %v10781_v10 }
0x193e   : > { %10155 = vmatpush3.bf16.msra.mxu0 %v10781_v10 }
0x193f   : > { %10156 = vmatprep.subr.bf16.mxu0 %v10782_v24 }
0x1942   : > { %10157 = vmatpush3.bf16.msra.mxu0 %v10782_v24 }
0x1943   : > { %10158 = vmatprep.subr.bf16.mxu0 %v10783_v60 }
0x1946   : > { %10159 = vmatpush3.bf16.msra.mxu0 %v10783_v60  ;;  %v10814_v60 = vld [vmem:[%s14331_s19] sm:$0xff]  }
0x1947   : > { %10160 = vmatprep.subr.bf16.mxu0 %v10784_v25 }
0x194a   : > { %10161 = vmatpush3.bf16.msra.mxu0 %v10784_v25 }
0x194b   : > { %10162 = vmatprep.subr.bf16.mxu0 %v10785_v52 }
0x194e   : > { %10163 = vmatpush3.bf16.msra.mxu0 %v10785_v52 }
0x194f   : > { %10228 = vmatprep.subr.bf16.mxu0 %v10786_v6 }
0x1951   : > { %10165 = vmatmul.mubr.bf16.vlgmr.msra.gmra.mrb[160].mxu0 %v13852_v22 }
0x1952   : > { %10168 = vmatprep.mubr.bf16.mxu0 %v13869_v30  ;;  %10229 = vmatpush3.bf16.msra.mxu0 %v10786_v6 }
0x1953   : > { %10230 = vmatprep.subr.bf16.mxu0 %v10787_v59 }
0x1956   : > { %10231 = vmatpush3.bf16.msra.mxu0 %v10787_v59 }
0x1957   : > { %10232 = vmatprep.subr.bf16.mxu0 %v10788_v44 }
0x1959   : > { %10169 = vmatmul.mubr.bf16.gmra.mrb[164].mxu0 %v13876_v31 }
0x195a   : > { %10233 = vmatpush3.bf16.msra.mxu0 %v10788_v44  ;;  %10244 = vmatprep.mubr.bf16.mxu0 %v13848_v50  ;;  %v10815_v44 = vld [vmem:[%s14331_s19 + $0x8] sm:$0xff]  }
0x195b   : > { %10234 = vmatprep.subr.bf16.mxu0 %v10789_v38 }
0x195e   : > { %10235 = vmatpush3.bf16.msra.mxu0 %v10789_v38 }
0x195f   : > { %10236 = vmatprep.subr.bf16.mxu0 %v10790_v45 }
0x1962   : > { %10237 = vmatpush3.bf16.msra.mxu0 %v10790_v45 }
0x1963   : > { %10238 = vmatprep.subr.bf16.mxu0 %v10791_v32 }
0x1966   : > { %10239 = vmatpush3.bf16.msra.mxu0 %v10791_v32  ;;  %v10816_v32 = vld [vmem:[%s14331_s19 + $0x10] sm:$0xff]  }
0x1967   : > { %10240 = vmatprep.subr.bf16.mxu0 %v10792_v56 }
0x196a   : > { %10241 = vmatpush3.bf16.msra.mxu0 %v10792_v56 }
0x196b   : > { %10242 = vmatprep.subr.bf16.mxu0 %v10793_v23 }
0x196e   : > { %10243 = vmatpush3.bf16.msra.mxu0 %v10793_v23  ;;  %v10817_v23 = vld [vmem:[%s14331_s19 + $0x18] sm:$0xff]  }
0x196f   : > { %10268 = vmatprep.subr.bf16.mxu0 %v10794_v18 }
0x1971   : > { %10245 = vmatmul.mubr.bf16.vlgmr.msra.gmra.mrb[168].mxu0 %v13852_v22 }
0x1972   : > { %10248 = vmatprep.mubr.bf16.mxu0 %v13869_v30  ;;  %10269 = vmatpush3.bf16.msra.mxu0 %v10794_v18  ;;  %v10818_v18 = vld [vmem:[%s14331_s19 + $0x40] sm:$0xff]  }
0x1973   : > { %10270 = vmatprep.subr.bf16.mxu0 %v10795_v5 }
0x1976   : > { %10271 = vmatpush3.bf16.msra.mxu0 %v10795_v5  ;;  %v10819_v5 = vld [vmem:[%s14331_s19 + $0x48] sm:$0xff]  }
0x1977   : > { %10272 = vmatprep.subr.bf16.mxu0 %v10796_v40 }
0x1979   : > { %10249 = vmatmul.mubr.bf16.gmra.mrb[172].mxu0 %v13876_v31 }
0x197a   : > { %10273 = vmatpush3.bf16.msra.mxu0 %v10796_v40  ;;  %10284 = vmatprep.mubr.bf16.mxu0 %v13848_v50  ;;  %v10820_v40 = vld [vmem:[%s14331_s19 + $0x50] sm:$0xff]  }
0x197b   : > { %10274 = vmatprep.subr.bf16.mxu0 %v10797_v63 }
0x197e   : > { %10275 = vmatpush3.bf16.msra.mxu0 %v10797_v63 }
0x197f   : > { %10276 = vmatprep.subr.bf16.mxu0 %v10798_v43 }
0x1982   : > { %10277 = vmatpush3.bf16.msra.mxu0 %v10798_v43 }
0x1983   : > { %10278 = vmatprep.subr.bf16.mxu0 %v10799_v61 }
0x1986   : > { %10279 = vmatpush3.bf16.msra.mxu0 %v10799_v61 }
0x1987   : > { %10280 = vmatprep.subr.bf16.mxu0 %v10800_v48 }
0x198a   : > { %10281 = vmatpush3.bf16.msra.mxu0 %v10800_v48 }
0x198b   : > { %10282 = vmatprep.subr.bf16.mxu0 %v10801_v26 }
0x198e   : > { %10283 = vmatpush3.bf16.msra.mxu0 %v10801_v26 }
0x198f   : > { %10308 = vmatprep.subr.bf16.mxu0 %v10802_v57 }
0x1991   : > { %10285 = vmatmul.mubr.bf16.vlgmr.msra.gmra.mrb[176].mxu0 %v13852_v22 }
0x1992   : > { %10288 = vmatprep.mubr.bf16.mxu0 %v13869_v30  ;;  %10309 = vmatpush3.bf16.msra.mxu0 %v10802_v57  ;;  %v10822_v57 = vld [vmem:[%s14331_s19 + $0x60] sm:$0xff]  }
0x1993   : > { %10310 = vmatprep.subr.bf16.mxu0 %v10803_v19 }
0x1996   : > { %10311 = vmatpush3.bf16.msra.mxu0 %v10803_v19 }
0x1997   : > { %10312 = vmatprep.subr.bf16.mxu0 %v10804_v20 }
0x1999   : > { %10289 = vmatmul.mubr.bf16.gmra.mrb[180].mxu0 %v13876_v31 }
0x199a   : > { %10313 = vmatpush3.bf16.msra.mxu0 %v10804_v20  ;;  %10324 = vmatprep.mubr.bf16.mxu0 %v13848_v50 }
0x199b   : > { %10314 = vmatprep.subr.bf16.mxu0 %v10805_v4 }
0x199e   : > { %10315 = vmatpush3.bf16.msra.mxu0 %v10805_v4 }
0x199f   : > { %10316 = vmatprep.subr.bf16.mxu0 %v10806_v58 }
0x19a2   : > { %10317 = vmatpush3.bf16.msra.mxu0 %v10806_v58 }
0x19a3   : > { %10318 = vmatprep.subr.bf16.mxu0 %v10807_v7 }
0x19a6   : > { %10319 = vmatpush3.bf16.msra.mxu0 %v10807_v7 }
0x19a7   : > { %10320 = vmatprep.subr.bf16.mxu0 %v10808_v55 }
0x19aa   : > { %10321 = vmatpush3.bf16.msra.mxu0 %v10808_v55 }
0x19ab   : > { %10322 = vmatprep.subr.bf16.mxu0 %v10809_v54 }
0x19ae   : > { %10323 = vmatpush3.bf16.msra.mxu0 %v10809_v54 }
0x19b1   : > { %10325 = vmatmul.mubr.bf16.vlgmr.msra.gmra.mrb[184].mxu0 %v13852_v22 }
0x19b2   : > { %10328 = vmatprep.mubr.bf16.mxu0 %v13869_v30 }
0x19b9   : > { %10329 = vmatmul.mubr.bf16.gmra.mrb[188].mxu0 %v13876_v31 }
0x19e4   : > { %v10046_v15 = vpop.f32.mrb[136].mxu1  ;;  %v10070_v47 = vpop.f32.mrb[144].mxu0 }
0x19e5   : > { %v6213_v39 = vpop.f32.mrb[137].mxu1  ;;  %v6355_v12 = vpop.f32.mrb[145].mxu0 }
0x19e6   : > { %v10047_v46 = vpop.f32.mrb[138].mxu1  ;;  %v10071_v35 = vpop.f32.mrb[146].mxu0 }
0x19e7   : > { %v6253_v42 = vpack.c.bf16 %v10047_v46, %v10046_v15  ;;  %v6396_v49 = vpack.c.bf16 %v10071_v35, %v10070_v47  ;;  %v6216_v21 = vpop.f32.mrb[139].mxu1  ;;  %v6358_v9 = vpop.f32.mrb[147].mxu0  ;;  %v10824_v15 = vld [vmem:[%s14332_s20 + $0x100] sm:$0xff]   ;;  %v10823_v47 = vld [vmem:[%s14331_s19 + $0x68] sm:$0xff]   ;;  %v10828_v46 = vld [vmem:[%s14332_s20 + $0x110] sm:$0xff]  }
0x19e8   : > { %v6252_v13 = vpack.c.bf16 %v6216_v21, %v6213_v39  ;;  %v6395_v53 = vpack.c.bf16 %v6358_v9, %v6355_v12  ;;  %v10826_v39 = vld [vmem:[%s14331_s19 + $0x70] sm:$0xff]   ;;  %v10825_v12 = vld [vmem:[%s14332_s20 + $0x108] sm:$0xff]   ;;  %v10827_v35 = vld [vmem:[%s14331_s19 + $0x78] sm:$0xff]  }
0x19e9   : > { %v10830_v21 = vld [vmem:[%s14332_s20 + $0x120] sm:$0xff]  }
0x19ea   : > { %10076 = vmatprep.subr.bf16.mxu1 %v6395_v53 }
0x19eb   : > { %10077 = vmatpush3.bf16.msra.mxu1 %v6395_v53 }
0x19ec   : > { %10078 = vmatprep.subr.bf16.mxu1 %v6396_v49 }
0x19ef   : > { %10079 = vmatpush3.bf16.msra.mxu1 %v6396_v49 }
0x19f4   : > { %v10050_v62 = vpop.f32.mrb[140].mxu1  ;;  %v10074_v3 = vpop.f32.mrb[148].mxu0 }
0x19f5   : > { %v6229_v34 = vpop.f32.mrb[141].mxu1  ;;  %v6371_v0 = vpop.f32.mrb[149].mxu0 }
0x19f6   : > { %v10051_v11 = vpop.f32.mrb[142].mxu1  ;;  %v10075_v36 = vpop.f32.mrb[150].mxu0 }
0x19f7   : > { %v6255_v8 = vpack.c.bf16 %v10051_v11, %v10050_v62  ;;  %v6398_v17 = vpack.c.bf16 %v10075_v36, %v10074_v3  ;;  %v6232_v2 = vpop.f32.mrb[143].mxu1  ;;  %v6374_v1 = vpop.f32.mrb[151].mxu0  ;;  %v10832_v11 = vld [vmem:[%s14332_s20 + $0x130] sm:$0xff]  }
0x19f8   : > { %v6254_v14 = vpack.c.bf16 %v6232_v2, %v6229_v34  ;;  %v6397_v28 = vpack.c.bf16 %v6374_v1, %v6371_v0  ;;  %v10831_v34 = vld [vmem:[%s14332_s20 + $0x128] sm:$0xff]  }
0x19fa   : > { %10080 = vmatprep.subr.bf16.mxu1 %v6397_v28 }
0x19fb   : > { %10081 = vmatpush3.bf16.msra.mxu1 %v6397_v28 }
0x19fc   : > { %10082 = vmatprep.subr.bf16.mxu1 %v6398_v17 }
0x19ff   : > { %10083 = vmatpush3.bf16.msra.mxu1 %v6398_v17 }
0x1a00   : > { %10092 = vmatprep.subr.bf16.mxu1 %v6252_v13 }
0x1a02   : > { %10085 = vmatmul.mubr.msk.bf16.vlgmr.msra.gmra.mrb[144].mxu1 %vm839_vm0, %v10811_v51 }
0x1a03   : > { %10093 = vmatpush3.bf16.msra.mxu1 %v6252_v13  ;;  %10088 = vmatprep.mubr.msk.bf16.mxu1 %vm839_vm0, %v10812_v16 }
0x1a04   : > { %v10126_v27 = vpop.f32.mrb[152].mxu0  ;;  %10094 = vmatprep.subr.bf16.mxu1 %v6253_v42 }
0x1a05   : > { %v6692_v41 = vpop.f32.mrb[153].mxu0 }
0x1a06   : > { %v10127_v29 = vpop.f32.mrb[154].mxu0 }
0x1a07   : > { %v6733_v10 = vpack.c.bf16 %v10127_v29, %v10126_v27  ;;  %v6695_v24 = vpop.f32.mrb[155].mxu0  ;;  %10095 = vmatpush3.bf16.msra.mxu1 %v6253_v42  ;;  %v10829_v42 = vld [vmem:[%s14332_s20 + $0x118] sm:$0xff]  }
0x1a08   : > { %v6732_v25 = vpack.c.bf16 %v6695_v24, %v6692_v41  ;;  %10096 = vmatprep.subr.bf16.mxu1 %v6254_v14 }
0x1a0a   : > { %10089 = vmatmul.mubr.msk.bf16.gmra.mrb[148].mxu1 %vm839_vm0, %v10813_v33 }
0x1a0b   : > { %10097 = vmatpush3.bf16.msra.mxu1 %v6254_v14  ;;  %10100 = vmatprep.mubr.msk.bf16.mxu1 %vm839_vm0, %v10814_v60  ;;  %v10833_v14 = vld [vmem:[%s14332_s20 + $0x138] sm:$0xff]  }
0x1a0c   : > { %v10130_v52 = vpop.f32.mrb[156].mxu0  ;;  %10098 = vmatprep.subr.bf16.mxu1 %v6255_v8 }
0x1a0d   : > { %v6708_v6 = vpop.f32.mrb[157].mxu0 }
0x1a0e   : > { %v10131_v59 = vpop.f32.mrb[158].mxu0 }
0x1a0f   : > { %v6735_v38 = vpack.c.bf16 %v10131_v59, %v10130_v52  ;;  %v6711_v45 = vpop.f32.mrb[159].mxu0  ;;  %10099 = vmatpush3.bf16.msra.mxu1 %v6255_v8 }
0x1a10   : > { %v6734_v56 = vpack.c.bf16 %v6711_v45, %v6708_v6  ;;  %10132 = vmatprep.subr.bf16.mxu1 %v6732_v25 }
0x1a12   : > { %10101 = vmatmul.mubr.msk.bf16.vlgmr.msra.gmra.mrb[144].mxu1 %vm839_vm0, %v10815_v44 }
0x1a13   : > { %10133 = vmatpush3.bf16.msra.mxu1 %v6732_v25  ;;  %10104 = vmatprep.mubr.msk.bf16.mxu1 %vm839_vm0, %v10816_v32 }
0x1a14   : > { %10134 = vmatprep.subr.bf16.mxu1 %v6733_v10 }
0x1a17   : > { %10135 = vmatpush3.bf16.msra.mxu1 %v6733_v10 }
0x1a18   : > { %10136 = vmatprep.subr.bf16.mxu1 %v6734_v56 }
0x1a1a   : > { %10105 = vmatmul.mubr.msk.bf16.gmra.mrb[148].mxu1 %vm839_vm0, %v10817_v23 }
0x1a1b   : > { %10137 = vmatpush3.bf16.msra.mxu1 %v6734_v56  ;;  %10140 = vmatprep.mubr.msk.bf16.mxu1 %vm839_vm0, %v10818_v18 }
0x1a1c   : > { %10138 = vmatprep.subr.bf16.mxu1 %v6735_v38 }
0x1a1f   : > { %10139 = vmatpush3.bf16.msra.mxu1 %v6735_v38 }
0x1a22   : > { %10141 = vmatmul.mubr.msk.bf16.vlgmr.msra.gmra.mrb[144].mxu1 %vm839_vm0, %v10819_v5 }
0x1a23   : > { %10144 = vmatprep.mubr.msk.bf16.mxu1 %vm839_vm0, %v10820_v40 }
0x1a24   : > { %v10166_v63 = vpop.f32.mrb[160].mxu0 }
0x1a25   : > { %v6940_v43 = vpop.f32.mrb[161].mxu0 }
0x1a26   : > { %v10167_v61 = vpop.f32.mrb[162].mxu0 }
0x1a27   : > { %v6981_v48 = vpack.c.bf16 %v10167_v61, %v10166_v63  ;;  %v6943_v26 = vpop.f32.mrb[163].mxu0 }
0x1a28   : > { %v6980_v19 = vpack.c.bf16 %v6943_v26, %v6940_v43  ;;  %v10834_v43 = vld [vmem:[%s14331_s19 + $0x80] sm:$0xff]  }
0x1a2a   : > { %10172 = vmatprep.subr.bf16.mxu1 %v6980_v19  ;;  %10145 = vmatmul.mubr.msk.bf16.gmra.mrb[148].mxu1 %vm839_vm0, %v10821_v37 }
0x1a2b   : > { %10173 = vmatpush3.bf16.msra.mxu1 %v6980_v19  ;;  %10180 = vmatprep.mubr.msk.bf16.mxu1 %vm839_vm0, %v10822_v57 }
0x1a2c   : > { %v10170_v20 = vpop.f32.mrb[164].mxu0  ;;  %10174 = vmatprep.subr.bf16.mxu1 %v6981_v48 }
0x1a2d   : > { %v6956_v4 = vpop.f32.mrb[165].mxu0 }
0x1a2e   : > { %v10171_v58 = vpop.f32.mrb[166].mxu0 }
0x1a2f   : > { %v6983_v7 = vpack.c.bf16 %v10171_v58, %v10170_v20  ;;  %v6959_v55 = vpop.f32.mrb[167].mxu0  ;;  %10175 = vmatpush3.bf16.msra.mxu1 %v6981_v48 }
0x1a30   : > { %v6982_v54 = vpack.c.bf16 %v6959_v55, %v6956_v4 }
0x1a32   : > { %10176 = vmatprep.subr.bf16.mxu1 %v6982_v54 }
0x1a33   : > { %10177 = vmatpush3.bf16.msra.mxu1 %v6982_v54 }
0x1a34   : > { %10178 = vmatprep.subr.bf16.mxu1 %v6983_v7 }
0x1a37   : > { %10179 = vmatpush3.bf16.msra.mxu1 %v6983_v7 }
0x1a38   : > { %10188 = vmatprep.subr.bf16.mxu1 %v10824_v15 }
0x1a3a   : > { %10181 = vmatmul.mubr.msk.bf16.vlgmr.msra.gmra.mrb[144].mxu1 %vm839_vm0, %v10823_v47  ;;  %v10836_v47 = vld [vmem:[%s14331_s19 + $0x90] sm:$0xff]  }
0x1a3b   : > { %10189 = vmatpush3.bf16.msra.mxu1 %v10824_v15  ;;  %10184 = vmatprep.mubr.msk.bf16.mxu1 %vm839_vm0, %v10826_v39  ;;  %v10835_v15 = vld [vmem:[%s14331_s19 + $0x88] sm:$0xff]   ;;  %v10837_v39 = vld [vmem:[%s14331_s19 + $0x98] sm:$0xff]  }
0x1a3c   : > { %10190 = vmatprep.subr.bf16.mxu1 %v10825_v12 }
0x1a3f   : > { %10191 = vmatpush3.bf16.msra.mxu1 %v10825_v12  ;;  %v10838_v12 = vld [vmem:[%s14331_s19 + $0xa0] sm:$0xff]  }
0x1a40   : > { %10192 = vmatprep.subr.bf16.mxu1 %v10828_v46 }
0x1a42   : > { %10185 = vmatmul.mubr.msk.bf16.gmra.mrb[148].mxu1 %vm839_vm0, %v10827_v35  ;;  %v10840_v35 = vld [vmem:[%s14331_s19 + $0xb0] sm:$0xff]  }
0x1a43   : > { %10193 = vmatpush3.bf16.msra.mxu1 %v10828_v46  ;;  %10204 = vmatprep.mubr.bf16.mxu1 %v13848_v50  ;;  %v10839_v46 = vld [vmem:[%s14331_s19 + $0xa8] sm:$0xff]  }
0x1a44   : > { %v10246_v49 = vpop.f32.mrb[168].mxu0  ;;  %10194 = vmatprep.subr.bf16.mxu1 %v10829_v42 }
0x1a45   : > { %v7436_v9 = vpop.f32.mrb[169].mxu0 }
0x1a46   : > { %v10247_v13 = vpop.f32.mrb[170].mxu0 }
0x1a47   : > { %v14085_v53 = vpack.c.bf16 %v10247_v13, %v10246_v49  ;;  %10195 = vmatpush3.bf16.msra.mxu1 %v10829_v42  ;;  %v7439_v62 = vpop.f32.mrb[171].mxu0  ;;  %v10841_v42 = vld [vmem:[%s14331_s19 + $0xb8] sm:$0xff]   ;;  %v10842_v49 = vld [vmem:[%s14331_s19 + $0xc0] sm:$0xff]  }
0x1a48   : > { %v14087_v3 = vpack.c.bf16 %v7439_v62, %v7436_v9  ;;  %10196 = vmatprep.subr.bf16.mxu1 %v10830_v21  ;;  %v10844_v9 = vld [vmem:[%s14331_s19 + $0xd0] sm:$0xff]   ;;  %v10845_v13 = vld [vmem:[%s14331_s19 + $0xd8] sm:$0xff]   ;;  %v10848_v62 = vld [vmem:[%s14332_s20 + $0x200] sm:$0xff]  }
0x1a4b   : > { %10197 = vmatpush3.bf16.msra.mxu1 %v10830_v21  ;;  %v10843_v21 = vld [vmem:[%s14331_s19 + $0xc8] sm:$0xff]  }
0x1a4c   : > { %v10250_v0 = vpop.f32.mrb[172].mxu0  ;;  %10198 = vmatprep.subr.bf16.mxu1 %v10831_v34 }
0x1a4d   : > { %v7452_v36 = vpop.f32.mrb[173].mxu0 }
0x1a4e   : > { %v10251_v8 = vpop.f32.mrb[174].mxu0 }
0x1a4f   : > { %v14095_v17 = vpack.c.bf16 %v10251_v8, %v10250_v0  ;;  %10199 = vmatpush3.bf16.msra.mxu1 %v10831_v34  ;;  %v7455_v2 = vpop.f32.mrb[175].mxu0  ;;  %v10850_v34 = vld [vmem:[%s14331_s19 + $0xf0] sm:$0xff]   ;;  %v10849_v0 = vld [vmem:[%s14332_s20 + $0x208] sm:$0xff]   ;;  %v10853_v8 = vld [vmem:[%s14332_s20 + $0x218] sm:$0xff]  }
0x1a50   : > { %v14097_v1 = vpack.c.bf16 %v7455_v2, %v7452_v36  ;;  %10200 = vmatprep.subr.bf16.mxu1 %v10832_v11  ;;  %v10851_v36 = vld [vmem:[%s14331_s19 + $0xf8] sm:$0xff]   ;;  %v10855_v2 = vld [vmem:[%s14332_s20 + $0x228] sm:$0xff]  }
0x1a53   : > { %10201 = vmatpush3.bf16.msra.mxu1 %v10832_v11  ;;  %v10852_v11 = vld [vmem:[%s14332_s20 + $0x210] sm:$0xff]  }
0x1a54   : > { %10202 = vmatprep.subr.bf16.mxu1 %v10833_v14 }
0x1a57   : > { %10203 = vmatpush3.bf16.msra.mxu1 %v10833_v14  ;;  %v10858_v14 = vld [vmem:[%s14331_s19 + $0x100] sm:$0xff]  }
0x1a5a   : > { %10205 = vmatmul.mubr.bf16.vlgmr.msra.gmra.mrb[152].mxu1 %v13852_v22 }
0x1a5b   : > { %10208 = vmatprep.mubr.bf16.mxu1 %v13869_v30 }
0x1a62   : > { %10209 = vmatmul.mubr.bf16.gmra.mrb[156].mxu1 %v13876_v31 }
0x1a63   : > { %10220 = vmatprep.mubr.msk.bf16.mxu1 %vm839_vm0, %v10834_v43 }
0x1a64   : > { %v10286_v28 = vpop.f32.mrb[176].mxu0 }
0x1a65   : > { %v7684_v51 = vpop.f32.mrb[177].mxu0 }
0x1a66   : > { %v10287_v16 = vpop.f32.mrb[178].mxu0 }
0x1a67   : > { %v14105_v27 = vpack.c.bf16 %v10287_v16, %v10286_v28  ;;  %v7687_v41 = vpop.f32.mrb[179].mxu0 }
0x1a68   : > { %v7724_v29 = vpack.c.bf16 %v7687_v41, %v7684_v51 }
0x1a6c   : > { %v10290_v33 = vpop.f32.mrb[180].mxu0 }
0x1a6d   : > { %v7700_v10 = vpop.f32.mrb[181].mxu0 }
0x1a6e   : > { %v10291_v24 = vpop.f32.mrb[182].mxu0 }
0x1a6f   : > { %v14107_v60 = vpack.c.bf16 %v10291_v24, %v10290_v33  ;;  %v7703_v25 = vpop.f32.mrb[183].mxu0 }
0x1a70   : > { %v14109_v52 = vpack.c.bf16 %v7703_v25, %v7700_v10  ;;  %v10860_v25 = vld [vmem:[%s14331_s19 + $0x110] sm:$0xff]  }
0x1a84   : > { %v10326_v6 = vpop.f32.mrb[184].mxu0 }
0x1a85   : > { %v7932_v59 = vpop.f32.mrb[185].mxu0 }
0x1a86   : > { %v10327_v44 = vpop.f32.mrb[186].mxu0 }
0x1a87   : > { %v14111_v38 = vpack.c.bf16 %v10327_v44, %v10326_v6  ;;  %v7935_v45 = vpop.f32.mrb[187].mxu0 }
0x1a88   : > { %v14113_v32 = vpack.c.bf16 %v7935_v45, %v7932_v59 }
0x1a8c   : > { %v10330_v56 = vpop.f32.mrb[188].mxu0 }
0x1a8d   : > { %v7948_v23 = vpop.f32.mrb[189].mxu0 }
0x1a8e   : > { %v10331_v18 = vpop.f32.mrb[190].mxu0 }
0x1a8f   : > { %v14115_v5 = vpack.c.bf16 %v10331_v18, %v10330_v56  ;;  %v7951_v40 = vpop.f32.mrb[191].mxu0 }
0x1a90   : > { %v14117_v63 = vpack.c.bf16 %v7951_v40, %v7948_v23 }
0x1b2d   : > { %v10206_v61 = vpop.f32.mrb[152].mxu1 }
0x1b2e   : > { %v7188_v37 = vpop.f32.mrb[153].mxu1 }
0x1b2f   : > { %v10207_v48 = vpop.f32.mrb[154].mxu1 }
0x1b30   : > { %v7229_v26 = vpack.c.bf16 %v10207_v48, %v10206_v61  ;;  %v7191_v57 = vpop.f32.mrb[155].mxu1 }
0x1b31   : > { %v7228_v19 = vpack.c.bf16 %v7191_v57, %v7188_v37 }
0x1b33   : > { %10212 = vmatprep.subr.bf16.mxu1 %v7228_v19 }
0x1b34   : > { %10213 = vmatpush3.bf16.msra.mxu1 %v7228_v19 }
0x1b35   : > { %v10210_v20 = vpop.f32.mrb[156].mxu1  ;;  %10214 = vmatprep.subr.bf16.mxu1 %v7229_v26 }
0x1b36   : > { %v7204_v4 = vpop.f32.mrb[157].mxu1 }
0x1b37   : > { %v10211_v58 = vpop.f32.mrb[158].mxu1 }
0x1b38   : > { %v7231_v7 = vpack.c.bf16 %v10211_v58, %v10210_v20  ;;  %v7207_v55 = vpop.f32.mrb[159].mxu1  ;;  %10215 = vmatpush3.bf16.msra.mxu1 %v7229_v26 }
0x1b39   : > { %v7230_v54 = vpack.c.bf16 %v7207_v55, %v7204_v4 }
0x1b3b   : > { %10216 = vmatprep.subr.bf16.mxu1 %v7230_v54 }
0x1b3c   : > { %10217 = vmatpush3.bf16.msra.mxu1 %v7230_v54 }
0x1b3d   : > { %10218 = vmatprep.subr.bf16.mxu1 %v7231_v7 }
0x1b40   : > { %10219 = vmatpush3.bf16.msra.mxu1 %v7231_v7 }
0x1b41   : > { %10252 = vmatprep.subr.bf16.mxu1 %v14087_v3 }
0x1b43   : > { %10221 = vmatmul.mubr.msk.bf16.vlgmr.msra.gmra.mrb[144].mxu1 %vm839_vm0, %v10835_v15 }
0x1b44   : > { %10253 = vmatpush3.bf16.msra.mxu1 %v14087_v3  ;;  %10224 = vmatprep.mubr.msk.bf16.mxu1 %vm839_vm0, %v10836_v47  ;;  %v10847_v3 = vld [vmem:[%s14331_s19 + $0xe8] sm:$0xff]  }
0x1b45   : > { %10254 = vmatprep.subr.bf16.mxu1 %v14085_v53 }
0x1b48   : > { %10255 = vmatpush3.bf16.msra.mxu1 %v14085_v53  ;;  %v10846_v53 = vld [vmem:[%s14331_s19 + $0xe0] sm:$0xff]  }
0x1b49   : > { %10256 = vmatprep.subr.bf16.mxu1 %v14097_v1 }
0x1b4b   : > { %10225 = vmatmul.mubr.msk.bf16.gmra.mrb[148].mxu1 %vm839_vm0, %v10837_v39 }
0x1b4c   : > { %10257 = vmatpush3.bf16.msra.mxu1 %v14097_v1  ;;  %10260 = vmatprep.mubr.msk.bf16.mxu1 %vm839_vm0, %v10838_v12  ;;  %v10856_v1 = vld [vmem:[%s14332_s20 + $0x230] sm:$0xff]  }
0x1b4d   : > { %10258 = vmatprep.subr.bf16.mxu1 %v14095_v17 }
0x1b50   : > { %10259 = vmatpush3.bf16.msra.mxu1 %v14095_v17  ;;  %v10854_v17 = vld [vmem:[%s14332_s20 + $0x220] sm:$0xff]  }
0x1b51   : > { %10292 = vmatprep.subr.bf16.mxu1 %v7724_v29 }
0x1b53   : > { %10261 = vmatmul.mubr.msk.bf16.vlgmr.msra.gmra.mrb[144].mxu1 %vm839_vm0, %v10839_v46 }
0x1b54   : > { %10293 = vmatpush3.bf16.msra.mxu1 %v7724_v29  ;;  %10264 = vmatprep.mubr.msk.bf16.mxu1 %vm839_vm0, %v10840_v35 }
0x1b55   : > { %10294 = vmatprep.subr.bf16.mxu1 %v14105_v27 }
0x1b58   : > { %10295 = vmatpush3.bf16.msra.mxu1 %v14105_v27 }
0x1b59   : > { %10296 = vmatprep.subr.bf16.mxu1 %v14109_v52 }
0x1b5b   : > { %10265 = vmatmul.mubr.msk.bf16.gmra.mrb[148].mxu1 %vm839_vm0, %v10841_v42 }
0x1b5c   : > { %10297 = vmatpush3.bf16.msra.mxu1 %v14109_v52  ;;  %10300 = vmatprep.mubr.msk.bf16.mxu1 %vm839_vm0, %v10842_v49  ;;  %v10861_v52 = vld [vmem:[%s14331_s19 + $0x118] sm:$0xff]  }
0x1b5d   : > { %10298 = vmatprep.subr.bf16.mxu1 %v14107_v60 }
0x1b60   : > { %10299 = vmatpush3.bf16.msra.mxu1 %v14107_v60  ;;  %v10859_v60 = vld [vmem:[%s14331_s19 + $0x108] sm:$0xff]  }
0x1b61   : > { %10332 = vmatprep.subr.bf16.mxu1 %v14113_v32 }
0x1b63   : > { %10301 = vmatmul.mubr.msk.bf16.vlgmr.msra.gmra.mrb[144].mxu1 %vm839_vm0, %v10843_v21 }
0x1b64   : > { %10333 = vmatpush3.bf16.msra.mxu1 %v14113_v32  ;;  %10304 = vmatprep.mubr.msk.bf16.mxu1 %vm839_vm0, %v10844_v9 }
0x1b65   : > { %10334 = vmatprep.subr.bf16.mxu1 %v14111_v38 }
0x1b68   : > { %10335 = vmatpush3.bf16.msra.mxu1 %v14111_v38 }
0x1b69   : > { %10336 = vmatprep.subr.bf16.mxu1 %v14117_v63 }
0x1b6b   : > { %10305 = vmatmul.mubr.msk.bf16.gmra.mrb[148].mxu1 %vm839_vm0, %v10845_v13 }
0x1b6c   : > { %10337 = vmatpush3.bf16.msra.mxu1 %v14117_v63  ;;  %10340 = vmatprep.mubr.msk.bf16.mxu1 %vm839_vm0, %v10846_v53 }
0x1b6d   : > { %10338 = vmatprep.subr.bf16.mxu1 %v14115_v5 }
0x1b70   : > { %10339 = vmatpush3.bf16.msra.mxu1 %v14115_v5 }
0x1b71   : > { %10348 = vmatprep.subr.bf16.mxu1 %v10848_v62 }
0x1b73   : > { %10341 = vmatmul.mubr.msk.bf16.vlgmr.msra.gmra.mrb[144].mxu1 %vm839_vm0, %v10847_v3 }
0x1b74   : > { %10349 = vmatpush3.bf16.msra.mxu1 %v10848_v62  ;;  %10344 = vmatprep.mubr.msk.bf16.mxu1 %vm839_vm0, %v10850_v34 }
0x1b75   : > { %10350 = vmatprep.subr.bf16.mxu1 %v10849_v0 }
0x1b78   : > { %10351 = vmatpush3.bf16.msra.mxu1 %v10849_v0 }
0x1b79   : > { %10352 = vmatprep.subr.bf16.mxu1 %v10852_v11 }
0x1b7b   : > { %10345 = vmatmul.mubr.msk.bf16.gmra.mrb[148].mxu1 %vm839_vm0, %v10851_v36 }
0x1b7c   : > { %10353 = vmatpush3.bf16.msra.mxu1 %v10852_v11  ;;  %10364 = vmatprep.mubr.bf16.mxu1 %v13848_v50  ;;  %v10857_v50 = vld [vmem:[%s14332_s20 + $0x238] sm:$0xff]  }
0x1b7d   : > { %10354 = vmatprep.subr.bf16.mxu1 %v10853_v8 }
0x1b80   : > { %10355 = vmatpush3.bf16.msra.mxu1 %v10853_v8 }
0x1b81   : > { %10356 = vmatprep.subr.bf16.mxu1 %v10854_v17 }
0x1b84   : > { %10357 = vmatpush3.bf16.msra.mxu1 %v10854_v17 }
0x1b85   : > { %10358 = vmatprep.subr.bf16.mxu1 %v10855_v2 }
0x1b88   : > { %10359 = vmatpush3.bf16.msra.mxu1 %v10855_v2 }
0x1b89   : > { %10360 = vmatprep.subr.bf16.mxu1 %v10856_v1 }
0x1b8c   : > { %10361 = vmatpush3.bf16.msra.mxu1 %v10856_v1 }
0x1b8d   : > { %10362 = vmatprep.subr.bf16.mxu1 %v10857_v50 }
0x1b90   : > { %10363 = vmatpush3.bf16.msra.mxu1 %v10857_v50 }
0x1b93   : > { %10365 = vmatmul.mubr.bf16.vlgmr.msra.gmra.mrb[160].mxu1 %v13852_v22 }
0x1b94   : > { %10368 = vmatprep.mubr.bf16.mxu1 %v13869_v30 }
0x1b9b   : > { %10369 = vmatmul.mubr.bf16.gmra.mrb[164].mxu1 %v13876_v31 }
0x1b9c   : > { %10380 = vmatprep.mubr.msk.bf16.mxu1 %vm839_vm0, %v10858_v14 }
0x1c66   : > { %v10366_v28 = vpop.f32.mrb[160].mxu1 }
0x1c67   : > { %v8180_v51 = vpop.f32.mrb[161].mxu1 }
0x1c68   : > { %v10367_v16 = vpop.f32.mrb[162].mxu1 }
0x1c69   : > { %v8221_v27 = vpack.c.bf16 %v10367_v16, %v10366_v28  ;;  %v8183_v41 = vpop.f32.mrb[163].mxu1 }
0x1c6a   : > { %v8220_v29 = vpack.c.bf16 %v8183_v41, %v8180_v51 }
0x1c6c   : > { %10372 = vmatprep.subr.bf16.mxu1 %v8220_v29 }
0x1c6d   : > { %10373 = vmatpush3.bf16.msra.mxu1 %v8220_v29 }
0x1c6e   : > { %v10370_v33 = vpop.f32.mrb[164].mxu1  ;;  %10374 = vmatprep.subr.bf16.mxu1 %v8221_v27 }
0x1c6f   : > { %v8196_v22 = vpop.f32.mrb[165].mxu1 }
0x1c70   : > { %v10371_v30 = vpop.f32.mrb[166].mxu1 }
0x1c71   : > { %v8223_v10 = vpack.c.bf16 %v10371_v30, %v10370_v33  ;;  %v8199_v31 = vpop.f32.mrb[167].mxu1  ;;  %10375 = vmatpush3.bf16.msra.mxu1 %v8221_v27 }
0x1c72   : > { %v8222_v24 = vpack.c.bf16 %v8199_v31, %v8196_v22 }
0x1c74   : > { %10376 = vmatprep.subr.bf16.mxu1 %v8222_v24 }
0x1c75   : > { %10377 = vmatpush3.bf16.msra.mxu1 %v8222_v24 }
0x1c76   : > { %10378 = vmatprep.subr.bf16.mxu1 %v8223_v10 }
0x1c79   : > { %10379 = vmatpush3.bf16.msra.mxu1 %v8223_v10 }
0x1c7c   : > { %10381 = vmatmul.mubr.msk.bf16.vlgmr.msra.gmra.mrb[144].mxu1 %vm839_vm0, %v10859_v60  ;;  %v9286_v60 = vld [vmem:[%s14333_s21] ss:$0 sm:$0xff] }
0x1c7d   : > { %10384 = vmatprep.mubr.msk.bf16.mxu1 %vm839_vm0, %v10860_v25 }
0x1c84   : > { %10385 = vmatmul.mubr.msk.bf16.gmra.mrb[148].mxu1 %vm839_vm0, %v10861_v52 }
0x1d4f   : > { %v10382_v6 = vpop.f32.mrb[144].mxu1 }
0x1d50   : > { %8335 = vadd.xlane.f32.xlu0 %v10382_v6  ;;  %v8290_v59 = vpop.f32.mrb[145].mxu1 }
0x1d51   : > { %v10383_v44 = vpop.f32.mrb[146].mxu1 }
0x1d52   : > { %8337 = vadd.xlane.f32.xlu1 %v10383_v44  ;;  %v8293_v38 = vpop.f32.mrb[147].mxu1 }
0x1d54   : > { %8331 = vadd.xlane.f32.xlu0 %v8290_v59 }
0x1d56   : > { %8333 = vadd.xlane.f32.xlu1 %v8293_v38 }
0x1d57   : > { %v10386_v45 = vpop.f32.mrb[148].mxu1 }
0x1d58   : > { %v8306_v32 = vpop.f32.mrb[149].mxu1 }
0x1d59   : > { %8339 = vadd.xlane.f32.xlu0 %v8306_v32  ;;  %v10387_v56 = vpop.f32.mrb[150].mxu1 }
0x1d5a   : > { %v8309_v23 = vpop.f32.mrb[151].mxu1 }
0x1d5b   : > { %8341 = vadd.xlane.f32.xlu1 %v8309_v23 }
0x1d5d   : > { %8343 = vadd.xlane.f32.xlu0 %v10386_v45 }
0x1d5f   : > { %8345 = vadd.xlane.f32.xlu1 %v10387_v56 }
0x1ddd   : > { %v8336_v18 = vpop.xlane.xlu0 %8335 }
0x1dde   : > { %v8349_v5 = vmul.f32 0.0078125, %v8336_v18 }
0x1ddf   : > { %v8338_v40 = vpop.xlane.xlu1 %8337 }
0x1de0   : > { %v14249_v63 = vsub.f32 %v10382_v6, %v8349_v5  ;;  %v8350_v43 = vmul.f32 0.0078125, %v8338_v40 }
0x1de1   : > { %v8332_v61 = vpop.xlane.xlu0 %8331 }
0x1de2   : > { %v14251_v37 = vsub.f32 %v10383_v44, %v8350_v43  ;;  %v8347_v48 = vmul.f32 0.0078125, %v8332_v61  ;;  %v8365_v26 = vmul.f32 %v14249_v63, %v14249_v63 }
0x1de3   : > { %v8334_v57 = vpop.xlane.xlu1 %8333 }
0x1de4   : > { %v14255_v19 = vsub.f32 %v8290_v59, %v8347_v48  ;;  %v8348_v20 = vmul.f32 0.0078125, %v8334_v57  ;;  %8375 = vadd.xlane.f32.xlu0 %v8365_v26  ;;  %v8366_v4 = vmul.f32 %v14251_v37, %v14251_v37 }
0x1de6   : > { %v14259_v58 = vsub.f32 %v8293_v38, %v8348_v20  ;;  %v8340_v7 = vpop.xlane.xlu0 %8339  ;;  %8377 = vadd.xlane.f32.xlu1 %v8366_v4  ;;  %v8363_v55 = vmul.f32 %v14255_v19, %v14255_v19  ;;  %v9287_v38 = vld [vmem:[%s14334_s22] ss:$0 sm:$0xff] }
0x1de7   : > { %v8351_v54 = vmul.f32 0.0078125, %v8340_v7 }
0x1de8   : > { %8371 = vadd.xlane.f32.xlu0 %v8363_v55  ;;  %v8342_v15 = vpop.xlane.xlu1 %8341  ;;  %v8364_v47 = vmul.f32 %v14259_v58, %v14259_v58 }
0x1de9   : > { %v14265_v39 = vsub.f32 %v8306_v32, %v8351_v54  ;;  %v8352_v12 = vmul.f32 0.0078125, %v8342_v15 }
0x1dea   : > { %v8344_v46 = vpop.xlane.xlu0 %8343  ;;  %8373 = vadd.xlane.f32.xlu1 %v8364_v47 }
0x1deb   : > { %v14267_v35 = vsub.f32 %v8309_v23, %v8352_v12  ;;  %v8353_v42 = vmul.f32 0.0078125, %v8344_v46  ;;  %v8367_v49 = vmul.f32 %v14265_v39, %v14265_v39 }
0x1dec   : > { %v8346_v21 = vpop.xlane.xlu1 %8345 }
0x1ded   : > { %v14271_v9 = vsub.f32 %v10386_v45, %v8353_v42  ;;  %v8354_v13 = vmul.f32 0.0078125, %v8346_v21  ;;  %8379 = vadd.xlane.f32.xlu0 %v8367_v49  ;;  %v8368_v53 = vmul.f32 %v14267_v35, %v14267_v35 }
0x1def   : > { %v14275_v62 = vsub.f32 %v10387_v56, %v8354_v13  ;;  %8381 = vadd.xlane.f32.xlu1 %v8368_v53  ;;  %v8369_v3 = vmul.f32 %v14271_v9, %v14271_v9 }
0x1df1   : > { %8383 = vadd.xlane.f32.xlu0 %v8369_v3  ;;  %v8370_v34 = vmul.f32 %v14275_v62, %v14275_v62 }
0x1df3   : > { %8385 = vadd.xlane.f32.xlu1 %v8370_v34 }
0x1e71   : > { %v8376_v0 = vpop.xlane.xlu0 %8375 }
0x1e72   : > { %v8389_v11 = vmul.f32 0.0078125, %v8376_v0 }
0x1e73   : > { %v8378_v36 = vpop.xlane.xlu1 %8377 }
0x1e74   : > { %v8397_v8 = vadd.f32 1e-06, %v8389_v11  ;;  %v8390_v17 = vmul.f32 0.0078125, %v8378_v36 }
0x1e75   : > { %v8372_v2 = vpop.xlane.xlu0 %8371 }
0x1e76   : > { %11198 = vrsqrt.f32 %v8397_v8  ;;  %v8398_v1 = vadd.f32 1e-06, %v8390_v17  ;;  %v8387_v50 = vmul.f32 0.0078125, %v8372_v2 }
0x1e77   : > { %v8374_v14 = vpop.xlane.xlu1 %8373 }
0x1e78   : > { %11200 = vrsqrt.f32 %v8398_v1  ;;  %v8395_v28 = vadd.f32 1e-06, %v8387_v50  ;;  %v8388_v51 = vmul.f32 0.0078125, %v8374_v14 }
0x1e7a   : > { %11202 = vrsqrt.f32 %v8395_v28  ;;  %v8396_v16 = vadd.f32 1e-06, %v8388_v51  ;;  %v8380_v27 = vpop.xlane.xlu0 %8379 }
0x1e7b   : > { %v8391_v41 = vmul.f32 0.0078125, %v8380_v27 }
0x1e7c   : > { %11204 = vrsqrt.f32 %v8396_v16  ;;  %v8382_v29 = vpop.xlane.xlu1 %8381 }
0x1e7d   : > { %v8399_v33 = vadd.f32 1e-06, %v8391_v41  ;;  %v8392_v22 = vmul.f32 0.0078125, %v8382_v29 }
0x1e7e   : > { %v8384_v30 = vpop.xlane.xlu0 %8383 }
0x1e7f   : > { %11206 = vrsqrt.f32 %v8399_v33  ;;  %v8400_v10 = vadd.f32 1e-06, %v8392_v22  ;;  %v8393_v31 = vmul.f32 0.0078125, %v8384_v30 }
0x1e80   : > { %v11199_v24 = vpop.eup %11198  ;;  %v8386_v25 = vpop.xlane.xlu1 %8385 }
0x1e81   : > { %v8413_v52 = vmul.f32 %v11199_v24, %v14249_v63  ;;  %11208 = vrsqrt.f32 %v8400_v10  ;;  %v8401_v6 = vadd.f32 1e-06, %v8393_v31  ;;  %v8394_v59 = vmul.f32 0.0078125, %v8386_v25 }
0x1e82   : > { %v11201_v44 = vpop.eup %11200 }
0x1e83   : > { %v8427_v45 = vmul.f32 %v9286_v60, %v8413_v52  ;;  %v8414_v32 = vmul.f32 %v11201_v44, %v14251_v37  ;;  %11210 = vrsqrt.f32 %v8401_v6  ;;  %v8402_v56 = vadd.f32 1e-06, %v8394_v59 }
0x1e84   : > { %v11203_v23 = vpop.eup %11202 }
0x1e85   : > { %v8441_v18 = vadd.f32 %v9287_v38, %v8427_v45  ;;  %v8428_v5 = vmul.f32 %v9286_v60, %v8414_v32  ;;  %v8411_v40 = vmul.f32 %v11203_v23, %v14255_v19  ;;  %11212 = vrsqrt.f32 %v8402_v56 }
0x1e86   : > { %v11205_v63 = vpop.eup %11204 }
0x1e87   : > { %8449 = vst [vmem:[%s14293_s30 + $0x10] sm:$0xff] %v8441_v18  ;;  %v8442_v43 = vadd.f32 %v9287_v38, %v8428_v5  ;;  %v8425_v61 = vmul.f32 %v9286_v60, %v8411_v40  ;;  %v8412_v37 = vmul.f32 %v11205_v63, %v14259_v58 }
0x1e89   : > { %v11207_v48 = vpop.eup %11206  ;;  %8450 = vst [vmem:[%s14293_s30 + $0x18] sm:$0xff] %v8442_v43  ;;  %v8439_v26 = vadd.f32 %v9287_v38, %v8425_v61  ;;  %v8426_v57 = vmul.f32 %v9286_v60, %v8412_v37 }
0x1e8a   : > { %v8415_v20 = vmul.f32 %v11207_v48, %v14265_v39 }
0x1e8b   : > { %v11209_v4 = vpop.eup %11208  ;;  %8447 = vst [vmem:[%s14293_s30] sm:$0xff] %v8439_v26  ;;  %v8440_v7 = vadd.f32 %v9287_v38, %v8426_v57 }
0x1e8c   : > { %v8429_v19 = vmul.f32 %v9286_v60, %v8415_v20  ;;  %v8416_v55 = vmul.f32 %v11209_v4, %v14267_v35 }
0x1e8d   : > { %v11211_v54 = vpop.eup %11210  ;;  %8448 = vst [vmem:[%s14293_s30 + $0x8] sm:$0xff] %v8440_v7 }
0x1e8e   : > { %v8443_v15 = vadd.f32 %v9287_v38, %v8429_v19  ;;  %v8430_v58 = vmul.f32 %v9286_v60, %v8416_v55  ;;  %v8417_v47 = vmul.f32 %v11211_v54, %v14271_v9 }
0x1e8f   : > { %v11213_v12 = vpop.eup %11212 }
0x1e90   : > { %8451 = vst [vmem:[%s14293_s30 + $0x20] sm:$0xff] %v8443_v15  ;;  %v8444_v46 = vadd.f32 %v9287_v38, %v8430_v58  ;;  %v8431_v42 = vmul.f32 %v9286_v60, %v8417_v47  ;;  %v8418_v39 = vmul.f32 %v11213_v12, %v14275_v62 }
0x1e92   : > { %8452 = vst [vmem:[%s14293_s30 + $0x28] sm:$0xff] %v8444_v46  ;;  %v8445_v49 = vadd.f32 %v9287_v38, %v8431_v42  ;;  %v8432_v21 = vmul.f32 %v9286_v60, %v8418_v39 }
0x1e94   : > { %8453 = vst [vmem:[%s14293_s30 + $0x30] sm:$0xff] %v8445_v49  ;;  %v8446_v13 = vadd.f32 %v9287_v38, %v8432_v21 }
0x1e96   : > { %8454 = vst [vmem:[%s14293_s30 + $0x38] sm:$0xff] %v8446_v13 }
0x1e97 PF: > { %s14460_s4 = sld [smem:[#allocation2_spill]] }
0x1e9d   : > { %s33_s4 = sadd.s32 1, %s14460_s4  }
0x1e9e   : > { %p30_p4 = scmp.ge.s32.totalorder %s33_s4, 6  }
0x1ea0   :  { %32 = sbr.rel (!%p30_p4) target bundleno = 10 (0xa), region = 170 }

</bundles_post_ra>
